<compile_context>
chip_gen: v6e
topology: v6e:2x2x1
jax: 0.10.0
libtpu: 0.0.40
codegen_flags: <defaults>
</compile_context>

<pallas_src>
import math
from functools import partial

import jax
import jax.numpy as jnp
from jax import lax
from jax.experimental import pallas as pl
from jax.experimental.pallas import tpu as pltpu

# Keep both the in-kernel and the reference matmuls at full f32 accuracy.
jax.config.update("jax_default_matmul_precision", "highest")


# ----------------------------- fused Pallas kernel ---------------------------

def _decoder_stack_kernel(
        x_ref, mem_ref, smask_ref, cmask_ref,
        sa_wq, sa_wk, sa_wv, sa_wo, sa_bq, sa_bk, sa_bv, sa_bo,
        ca_wq, ca_wk, ca_wv, ca_wo, ca_bq, ca_bk, ca_bv, ca_bo,
        n1w, n1b, n2w, n2b, n3w, n3b,
        ffn_w1, ffn_w2,
        o_ref,
        *, E, H, eps):
    f32 = jnp.float32
    dh = E // H
    scale = 1.0 / math.sqrt(dh)

    def mm(a, w):
        # weights are pre-transposed in the wrapper: plain (N,K)@(K,M).
        return jnp.dot(a, w, preferred_element_type=f32)

    def split_heads(z):
        # (n, E) -> (H, n, dh).  Static dh-wide lane slices stacked on a new
        # major axis (kept instead of a minor-dim reshape for robust lowering).
        return jnp.stack([z[:, h * dh:(h + 1) * dh] for h in range(H)], axis=0)

    def merge_heads(z):
        # (H, n, dh) -> (n, E)
        return jnp.concatenate([z[h] for h in range(H)], axis=1)

    def attention(xq, xkv, wq, bq, wk, bk, wv, bv, wo, bo, mask):
        # xq: (n_q, E), xkv: (n_kv, E), mask: (n_q, n_kv) additive 0/-1e30.
        qh = split_heads((mm(xq, wq[0]) + bq[0]) * scale)    # (H, n_q, dh)
        kh = split_heads(mm(xkv, wk[0]) + bk[0])             # (H, n_kv, dh)
        vh = split_heads(mm(xkv, wv[0]) + bv[0])             # (H, n_kv, dh)
        s = jnp.einsum('hqd,hkd->hqk', qh, kh,
                       preferred_element_type=f32)           # (H, n_q, n_kv)
        s = s + mask                                         # broadcast over H
        m = jnp.max(s, axis=-1, keepdims=True)
        p = jnp.exp(s - m)                                   # masked -> 0.0
        p = p * pl.reciprocal(jnp.sum(p, axis=-1, keepdims=True), approx=True)
        o = jnp.einsum('hqk,hkd->hqd', p, vh,
                       preferred_element_type=f32)           # (H, n_q, dh)
        return mm(merge_heads(o), wo[0]) + bo[0]             # (n_q, E)

    def add_layernorm(a, b, g, beta):
        z = a + b
        mu = jnp.mean(z, axis=-1, keepdims=True)
        zc = z - mu
        var = jnp.mean(zc * zc, axis=-1, keepdims=True)
        return zc * lax.rsqrt(var + eps) * g + beta

    # o_ref's block index is constant across the layer grid, so it stays
    # resident in VMEM and carries the activations between layers.
    @pl.when(pl.program_id(0) == 0)
    def _():
        o_ref[...] = x_ref[...]

    x = o_ref[...]                                           # (nt, E)
    mem = mem_ref[...]                                       # (ns, E)

    # ---- self-attention block ------------------------------------------------
    sa = attention(x, x, sa_wq, sa_bq, sa_wk, sa_bk, sa_wv, sa_bv,
                   sa_wo, sa_bo, smask_ref[...])
    x = add_layernorm(x, sa, n1w[0], n1b[0])

    # ---- cross-attention block -----------------------------------------------
    ca = attention(x, mem, ca_wq, ca_bq, ca_wk, ca_bk, ca_wv, ca_bv,
                   ca_wo, ca_bo, cmask_ref[...])
    x = add_layernorm(x, ca, n2w[0], n2b[0])

    # ---- feed-forward expert (Linear -> exact GELU -> Linear, no bias) -------
    h = mm(x, ffn_w1[0])                                     # (nt, F)
    h = 0.5 * h * (1.0 + lax.erf(h * 0.7071067811865476))    # erf GELU
    ff = mm(h, ffn_w2[0])                                    # (nt, E)
    x = add_layernorm(x, ff, n3w[0], n3b[0])

    o_ref[...] = x


# ------------------------------ wrapper ---------------------------------------

def transformer_decoder(tgt, memory, params, nhead, eps=1e-5):
    """Full decoder stack.  tgt: (B, T, E), memory: (B, S, E)  (batch_first)."""
    f32 = jnp.float32
    B, T, E = tgt.shape
    S = memory.shape[1]
    size = S                          # module: FFN expert selected by memory.shape[1]
    layers = params['layers']
    L = len(layers)
    H = nhead
    nt, ns = B * T, B * S

    def stack(fn):
        return jnp.stack([jnp.asarray(fn(lp), f32) for lp in layers])

    def mha_stacks(key):
        w = lambda lp: lp[key]['in_proj_weight']
        b = lambda lp: lp[key]['in_proj_bias']
        return (
            stack(lambda lp: w(lp)[0:E].T),                       # wq_t (L,E,E)
            stack(lambda lp: w(lp)[E:2 * E].T),                   # wk_t
            stack(lambda lp: w(lp)[2 * E:3 * E].T),               # wv_t
            stack(lambda lp: lp[key]['out_proj_weight'].T),       # wo_t
            stack(lambda lp: b(lp)[0:E].reshape(1, E)),           # bq  (L,1,E)
            stack(lambda lp: b(lp)[E:2 * E].reshape(1, E)),       # bk
            stack(lambda lp: b(lp)[2 * E:3 * E].reshape(1, E)),   # bv
            stack(lambda lp: lp[key]['out_proj_bias'].reshape(1, E)),  # bo
        )

    sa_stacks = mha_stacks('self_attn')
    ca_stacks = mha_stacks('cross_attn')
    norm_stacks = tuple(
        stack(lambda lp, n=n: lp[n].reshape(1, E))
        for n in ('norm1_w', 'norm1_b', 'norm2_w', 'norm2_b', 'norm3_w', 'norm3_b'))
    w1_t = stack(lambda lp: lp['experts'][f'Expert-{size}']['w1'].T)   # (L, E, F)
    w2_t = stack(lambda lp: lp['experts'][f'Expert-{size}']['w2'].T)   # (L, F, E)
    Fdim = int(w1_t.shape[-1])

    # Precomputed batch-validity masks (rows ordered (batch, position)).
    row_b = jnp.repeat(jnp.arange(B), T)                      # (nt,)
    col_b = jnp.repeat(jnp.arange(B), S)                      # (ns,)
    self_mask = jnp.where(row_b[:, None] == row_b[None, :], 0.0, -1e30).astype(f32)
    cross_mask = jnp.where(row_b[:, None] == col_b[None, :], 0.0, -1e30).astype(f32)

    inputs = [
        tgt.reshape(nt, E).astype(f32),
        memory.reshape(ns, E).astype(f32),
        self_mask, cross_mask,
        *sa_stacks, *ca_stacks, *norm_stacks, w1_t, w2_t,
    ]

    def const_spec(shape):
        nd = len(shape)
        return pl.BlockSpec(tuple(shape), lambda l, _n=nd: (0,) * _n)

    def layer_spec(shape):                       # shape includes the leading L
        inner = tuple(shape[1:])
        nd = len(inner)
        return pl.BlockSpec((1,) + inner, lambda l, _n=nd: (l,) + (0,) * _n)

    in_specs = ([const_spec(a.shape) for a in inputs[:4]]
                + [layer_spec(a.shape) for a in inputs[4:]])

    # Advisory cost hint for the XLA scheduler.
    flops_layer = (2 * nt * E * E * 6 + 2 * ns * E * E * 2    # projections
                   + 4 * nt * nt * E + 4 * nt * ns * E        # scores + p@v
                   + 4 * nt * E * Fdim)                       # FFN
    transc_layer = H * nt * (nt + ns) + nt * Fdim             # exp + erf
    bytes_acc = sum(int(a.size) * 4 for a in inputs) + nt * E * 4

    kernel = partial(_decoder_stack_kernel, E=E, H=H, eps=eps)
    out = pl.pallas_call(
        kernel,
        out_shape=jax.ShapeDtypeStruct((nt, E), f32),
        grid_spec=pltpu.PrefetchScalarGridSpec(
            num_scalar_prefetch=0,
            grid=(L,),
            in_specs=in_specs,
            out_specs=const_spec((nt, E)),
        ),
        compiler_params=pltpu.CompilerParams(
            dimension_semantics=("arbitrary",)),
        cost_estimate=pl.CostEstimate(
            flops=int(L * flops_layer),
            transcendentals=int(L * transc_layer),
            bytes_accessed=int(bytes_acc)),
    )(*inputs)
    return out.reshape(B, T, E)


# -------------------------- pure-JAX reference --------------------------------

def _reference(tgt, memory, params, nhead, eps=1e-5):
    B, T, E = tgt.shape
    S = memory.shape[1]
    dh = E // nhead

    def mha(xq, xkv, p):
        Lq, Lk = xq.shape[1], xkv.shape[1]
        w, b = p['in_proj_weight'], p['in_proj_bias']
        q = xq @ w[:E].T + b[:E]
        k = xkv @ w[E:2 * E].T + b[E:2 * E]
        v = xkv @ w[2 * E:].T + b[2 * E:]
        q = q.reshape(B, Lq, nhead, dh).transpose(0, 2, 1, 3)
        k = k.reshape(B, Lk, nhead, dh).transpose(0, 2, 1, 3)
        v = v.reshape(B, Lk, nhead, dh).transpose(0, 2, 1, 3)
        s = jnp.einsum('bhld,bhsd->bhls', q, k) / math.sqrt(dh)
        pr = jax.nn.softmax(s, axis=-1)
        o = jnp.einsum('bhls,bhsd->bhld', pr, v)
        o = o.transpose(0, 2, 1, 3).reshape(B, Lq, E)
        return o @ p['out_proj_weight'].T + p['out_proj_bias']

    def ln(z, g, bb):
        mu = z.mean(-1, keepdims=True)
        var = ((z - mu) ** 2).mean(-1, keepdims=True)
        return (z - mu) / jnp.sqrt(var + eps) * g + bb

    x = tgt
    for lp in params['layers']:
        x = ln(x + mha(x, x, lp['self_attn']), lp['norm1_w'], lp['norm1_b'])
        x = ln(x + mha(x, memory, lp['cross_attn']), lp['norm2_w'], lp['norm2_b'])
        e = lp['experts'][f'Expert-{S}']
        h = x @ e['w1'].T
        h = 0.5 * h * (1.0 + lax.erf(h * 0.7071067811865476))
        x = ln(x + h @ e['w2'].T, lp['norm3_w'], lp['norm3_b'])
    return x


# --------------------------- deterministic params -----------------------------

def init_params(key, d_model, nhead, dim_feedforward, max_size, num_layers):
    def nrm(k, shape, scale=0.05):
        return scale * jax.random.normal(k, shape, dtype=jnp.float32)

    layer_keys = jax.random.split(key, num_layers)
    layers = []
    for lk in layer_keys:
        ks = iter(jax.random.split(lk, 8 + 2 * (max_size - 2)))

        def mha_params():
            return {
                'in_proj_weight': nrm(next(ks), (3 * d_model, d_model)),
                'in_proj_bias': nrm(next(ks), (3 * d_model,)),
                'out_proj_weight': nrm(next(ks), (d_model, d_model)),
                'out_proj_bias': nrm(next(ks), (d_model,)),
            }

        lp = {
            'self_attn': mha_params(),
            'cross_attn': mha_params(),
            'norm1_w': jnp.ones((d_model,), jnp.float32),
            'norm1_b': jnp.zeros((d_model,), jnp.float32),
            'norm2_w': jnp.ones((d_model,), jnp.float32),
            'norm2_b': jnp.zeros((d_model,), jnp.float32),
            'norm3_w': jnp.ones((d_model,), jnp.float32),
            'norm3_b': jnp.zeros((d_model,), jnp.float32),
            'experts': {
                f'Expert-{s}': {
                    'w1': nrm(next(ks), (dim_feedforward, d_model)),  # Linear(E->F), bias=False
                    'w2': nrm(next(ks), (d_model, dim_feedforward)),  # Linear(F->E), bias=False
                } for s in range(3, max_size + 1)
            },
        }
        layers.append(lp)
    return {'layers': layers}


# --------------------------------- main ----------------------------------------

if __name__ == "__main__":
    d_model, nhead, dim_feedforward, max_size = 32, 4, 128, 6
    num_layers = 2
    B, T, S = 4, 8, 5      # S = memory.shape[1] (graph size) must lie in [3, max_size]

    key = jax.random.PRNGKey(0)
    kp, kt, km = jax.random.split(key, 3)
    params = init_params(kp, d_model, nhead, dim_feedforward, max_size, num_layers)

    tgt = jax.random.normal(kt, (B, T, d_model), dtype=jnp.float32)
    memory = jax.random.normal(km, (B, S, d_model), dtype=jnp.float32)

    out = transformer_decoder(tgt, memory, params, nhead)
    out = jax.block_until_ready(out)

    assert out.shape == (B, T, d_model)
    assert bool(jnp.all(jnp.isfinite(out)))

    ref = jax.block_until_ready(_reference(tgt, memory, params, nhead))
    assert bool(jnp.allclose(out, ref, atol=5e-3, rtol=5e-3)), \
        f"max abs diff {float(jnp.max(jnp.abs(out - ref)))}"

    print("KERNEL_OK")
</pallas_src>

<mosaic_0001>
module attributes {stable_mosaic.version = 11 : i64} {
  func.func @_decoder_stack_kernel(%arg0: i32, %arg1: memref<32x32xf32, #tpu.memory_space<vmem>>, %arg2: memref<20x32xf32, #tpu.memory_space<vmem>>, %arg3: memref<32x32xf32, #tpu.memory_space<vmem>>, %arg4: memref<32x20xf32, #tpu.memory_space<vmem>>, %arg5: memref<1x32x32xf32, #tpu.memory_space<vmem>>, %arg6: memref<1x32x32xf32, #tpu.memory_space<vmem>>, %arg7: memref<1x32x32xf32, #tpu.memory_space<vmem>>, %arg8: memref<1x32x32xf32, #tpu.memory_space<vmem>>, %arg9: memref<1x1x32xf32, #tpu.memory_space<vmem>>, %arg10: memref<1x1x32xf32, #tpu.memory_space<vmem>>, %arg11: memref<1x1x32xf32, #tpu.memory_space<vmem>>, %arg12: memref<1x1x32xf32, #tpu.memory_space<vmem>>, %arg13: memref<1x32x32xf32, #tpu.memory_space<vmem>>, %arg14: memref<1x32x32xf32, #tpu.memory_space<vmem>>, %arg15: memref<1x32x32xf32, #tpu.memory_space<vmem>>, %arg16: memref<1x32x32xf32, #tpu.memory_space<vmem>>, %arg17: memref<1x1x32xf32, #tpu.memory_space<vmem>>, %arg18: memref<1x1x32xf32, #tpu.memory_space<vmem>>, %arg19: memref<1x1x32xf32, #tpu.memory_space<vmem>>, %arg20: memref<1x1x32xf32, #tpu.memory_space<vmem>>, %arg21: memref<1x1x32xf32, #tpu.memory_space<vmem>>, %arg22: memref<1x1x32xf32, #tpu.memory_space<vmem>>, %arg23: memref<1x1x32xf32, #tpu.memory_space<vmem>>, %arg24: memref<1x1x32xf32, #tpu.memory_space<vmem>>, %arg25: memref<1x1x32xf32, #tpu.memory_space<vmem>>, %arg26: memref<1x1x32xf32, #tpu.memory_space<vmem>>, %arg27: memref<1x32x128xf32, #tpu.memory_space<vmem>>, %arg28: memref<1x128x32xf32, #tpu.memory_space<vmem>>, %arg29: memref<32x32xf32, #tpu.memory_space<vmem>>) attributes {dimension_semantics = [#tpu.dimension_semantics<arbitrary>], iteration_bounds = array<i64: 2>, scalar_prefetch = 0 : i64, scratch_operands = 0 : i64, tpu.core_type = #tpu.core_type<tc>, window_params = [{pipeline_mode = #tpu.pipeline_mode<synchronous>, transform_indices = @transform_0, window_bounds = array<i64: 32, 32>}, {pipeline_mode = #tpu.pipeline_mode<synchronous>, transform_indices = @transform_1, window_bounds = array<i64: 20, 32>}, {pipeline_mode = #tpu.pipeline_mode<synchronous>, transform_indices = @transform_2, window_bounds = array<i64: 32, 32>}, {pipeline_mode = #tpu.pipeline_mode<synchronous>, transform_indices = @transform_3, window_bounds = array<i64: 32, 20>}, {transform_indices = @transform_4, window_bounds = array<i64: 1, 32, 32>}, {transform_indices = @transform_5, window_bounds = array<i64: 1, 32, 32>}, {transform_indices = @transform_6, window_bounds = array<i64: 1, 32, 32>}, {transform_indices = @transform_7, window_bounds = array<i64: 1, 32, 32>}, {transform_indices = @transform_8, window_bounds = array<i64: 1, 1, 32>}, {transform_indices = @transform_9, window_bounds = array<i64: 1, 1, 32>}, {transform_indices = @transform_10, window_bounds = array<i64: 1, 1, 32>}, {transform_indices = @transform_11, window_bounds = array<i64: 1, 1, 32>}, {transform_indices = @transform_12, window_bounds = array<i64: 1, 32, 32>}, {transform_indices = @transform_13, window_bounds = array<i64: 1, 32, 32>}, {transform_indices = @transform_14, window_bounds = array<i64: 1, 32, 32>}, {transform_indices = @transform_15, window_bounds = array<i64: 1, 32, 32>}, {transform_indices = @transform_16, window_bounds = array<i64: 1, 1, 32>}, {transform_indices = @transform_17, window_bounds = array<i64: 1, 1, 32>}, {transform_indices = @transform_18, window_bounds = array<i64: 1, 1, 32>}, {transform_indices = @transform_19, window_bounds = array<i64: 1, 1, 32>}, {transform_indices = @transform_20, window_bounds = array<i64: 1, 1, 32>}, {transform_indices = @transform_21, window_bounds = array<i64: 1, 1, 32>}, {transform_indices = @transform_22, window_bounds = array<i64: 1, 1, 32>}, {transform_indices = @transform_23, window_bounds = array<i64: 1, 1, 32>}, {transform_indices = @transform_24, window_bounds = array<i64: 1, 1, 32>}, {transform_indices = @transform_25, window_bounds = array<i64: 1, 1, 32>}, {transform_indices = @transform_26, window_bounds = array<i64: 1, 32, 128>}, {transform_indices = @transform_27, window_bounds = array<i64: 1, 128, 32>}, {pipeline_mode = #tpu.pipeline_mode<synchronous>, transform_indices = @transform_28, window_bounds = array<i64: 32, 32>}]} {
    %c0_i32 = arith.constant 0 : i32
    %0 = arith.cmpi eq, %arg0, %c0_i32 : i32
    %1 = arith.extui %0 : i1 to i32
    %c0_i32_0 = arith.constant 0 : i32
    %2 = arith.cmpi ne, %1, %c0_i32_0 : i32
    scf.if %2 {
      %c0_119 = arith.constant 0 : index
      %c0_120 = arith.constant 0 : index
      %259 = vector.load %arg1[%c0_119, %c0_120] : memref<32x32xf32, #tpu.memory_space<vmem>>, vector<32x32xf32>
      %c0_121 = arith.constant 0 : index
      %c0_122 = arith.constant 0 : index
      %260 = vector.load %arg29[%c0_121, %c0_122] : memref<32x32xf32, #tpu.memory_space<vmem>>, vector<32x32xf32>
      tpu.vector_store %arg29[%c0_121, %c0_122], %259 {strides = array<i32>} : memref<32x32xf32, #tpu.memory_space<vmem>>, vector<32x32xf32>,
    } else {
    }
    %c0 = arith.constant 0 : index
    %c0_1 = arith.constant 0 : index
    %3 = vector.load %arg29[%c0, %c0_1] : memref<32x32xf32, #tpu.memory_space<vmem>>, vector<32x32xf32>
    %c0_2 = arith.constant 0 : index
    %c0_3 = arith.constant 0 : index
    %4 = vector.load %arg2[%c0_2, %c0_3] : memref<20x32xf32, #tpu.memory_space<vmem>>, vector<20x32xf32>
    %c0_4 = arith.constant 0 : index
    %c0_5 = arith.constant 0 : index
    %5 = vector.load %arg3[%c0_4, %c0_5] : memref<32x32xf32, #tpu.memory_space<vmem>>, vector<32x32xf32>
    %c0_6 = arith.constant 0 : index
    %c0_7 = arith.constant 0 : index
    %c0_8 = arith.constant 0 : index
    %6 = vector.load %arg5[%c0_6, %c0_7, %c0_8] : memref<1x32x32xf32, #tpu.memory_space<vmem>>, vector<1x32x32xf32>
    %7 = vector.shape_cast %6 : vector<1x32x32xf32> to vector<32x32xf32>
    %cst = arith.constant dense<0.000000e+00> : vector<32x32xf32>
    %8 = tpu.matmul %3, %7, %cst {dimension_numbers = #tpu.dot_dimension_numbers<[1], [0], [0], [1], [0, 0, 1, 1], [], []>, precision = #tpu.contract_precision<fp32>} : vector<32x32xf32>, vector<32x32xf32>, vector<32x32xf32> -> vector<32x32xf32>
    %c0_9 = arith.constant 0 : index
    %c0_10 = arith.constant 0 : index
    %c0_11 = arith.constant 0 : index
    %9 = vector.load %arg9[%c0_9, %c0_10, %c0_11] : memref<1x1x32xf32, #tpu.memory_space<vmem>>, vector<1x1x32xf32>
    %10 = vector.shape_cast %9 : vector<1x1x32xf32> to vector<1x32xf32>
    %11 = vector.broadcast %10 : vector<1x32xf32> to vector<32x32xf32>
    %12 = arith.addf %8, %11 : vector<32x32xf32>
    %cst_12 = arith.constant 0.353553385 : f32
    %13 = vector.broadcast %cst_12 : f32 to vector<32x32xf32>
    %14 = arith.mulf %12, %13 : vector<32x32xf32>
    %15 = vector.extract_strided_slice %14 {offsets = [0, 0], sizes = [32, 8], strides = [1, 1]} : vector<32x32xf32> to vector<32x8xf32>
    %16 = vector.extract_strided_slice %14 {offsets = [0, 8], sizes = [32, 8], strides = [1, 1]} : vector<32x32xf32> to vector<32x8xf32>
    %17 = vector.extract_strided_slice %14 {offsets = [0, 16], sizes = [32, 8], strides = [1, 1]} : vector<32x32xf32> to vector<32x8xf32>
    %18 = vector.extract_strided_slice %14 {offsets = [0, 24], sizes = [32, 8], strides = [1, 1]} : vector<32x32xf32> to vector<32x8xf32>
    %19 = vector.shape_cast %15 : vector<32x8xf32> to vector<1x32x8xf32>
    %20 = vector.shape_cast %16 : vector<32x8xf32> to vector<1x32x8xf32>
    %21 = vector.shape_cast %17 : vector<32x8xf32> to vector<1x32x8xf32>
    %22 = vector.shape_cast %18 : vector<32x8xf32> to vector<1x32x8xf32>
    %23 = tpu.concatenate %19, %20, %21, %22 in 0 : vector<1x32x8xf32>, vector<1x32x8xf32>, vector<1x32x8xf32>, vector<1x32x8xf32> -> vector<4x32x8xf32>
    %c0_13 = arith.constant 0 : index
    %c0_14 = arith.constant 0 : index
    %c0_15 = arith.constant 0 : index
    %24 = vector.load %arg6[%c0_13, %c0_14, %c0_15] : memref<1x32x32xf32, #tpu.memory_space<vmem>>, vector<1x32x32xf32>
    %25 = vector.shape_cast %24 : vector<1x32x32xf32> to vector<32x32xf32>
    %cst_16 = arith.constant dense<0.000000e+00> : vector<32x32xf32>
    %26 = tpu.matmul %3, %25, %cst_16 {dimension_numbers = #tpu.dot_dimension_numbers<[1], [0], [0], [1], [0, 0, 1, 1], [], []>, precision = #tpu.contract_precision<fp32>} : vector<32x32xf32>, vector<32x32xf32>, vector<32x32xf32> -> vector<32x32xf32>
    %c0_17 = arith.constant 0 : index
    %c0_18 = arith.constant 0 : index
    %c0_19 = arith.constant 0 : index
    %27 = vector.load %arg10[%c0_17, %c0_18, %c0_19] : memref<1x1x32xf32, #tpu.memory_space<vmem>>, vector<1x1x32xf32>
    %28 = vector.shape_cast %27 : vector<1x1x32xf32> to vector<1x32xf32>
    %29 = vector.broadcast %28 : vector<1x32xf32> to vector<32x32xf32>
    %30 = arith.addf %26, %29 : vector<32x32xf32>
    %31 = vector.extract_strided_slice %30 {offsets = [0, 0], sizes = [32, 8], strides = [1, 1]} : vector<32x32xf32> to vector<32x8xf32>
    %32 = vector.extract_strided_slice %30 {offsets = [0, 8], sizes = [32, 8], strides = [1, 1]} : vector<32x32xf32> to vector<32x8xf32>
    %33 = vector.extract_strided_slice %30 {offsets = [0, 16], sizes = [32, 8], strides = [1, 1]} : vector<32x32xf32> to vector<32x8xf32>
    %34 = vector.extract_strided_slice %30 {offsets = [0, 24], sizes = [32, 8], strides = [1, 1]} : vector<32x32xf32> to vector<32x8xf32>
    %35 = vector.shape_cast %31 : vector<32x8xf32> to vector<1x32x8xf32>
    %36 = vector.shape_cast %32 : vector<32x8xf32> to vector<1x32x8xf32>
    %37 = vector.shape_cast %33 : vector<32x8xf32> to vector<1x32x8xf32>
    %38 = vector.shape_cast %34 : vector<32x8xf32> to vector<1x32x8xf32>
    %39 = tpu.concatenate %35, %36, %37, %38 in 0 : vector<1x32x8xf32>, vector<1x32x8xf32>, vector<1x32x8xf32>, vector<1x32x8xf32> -> vector<4x32x8xf32>
    %c0_20 = arith.constant 0 : index
    %c0_21 = arith.constant 0 : index
    %c0_22 = arith.constant 0 : index
    %40 = vector.load %arg7[%c0_20, %c0_21, %c0_22] : memref<1x32x32xf32, #tpu.memory_space<vmem>>, vector<1x32x32xf32>
    %41 = vector.shape_cast %40 : vector<1x32x32xf32> to vector<32x32xf32>
    %cst_23 = arith.constant dense<0.000000e+00> : vector<32x32xf32>
    %42 = tpu.matmul %3, %41, %cst_23 {dimension_numbers = #tpu.dot_dimension_numbers<[1], [0], [0], [1], [0, 0, 1, 1], [], []>, precision = #tpu.contract_precision<fp32>} : vector<32x32xf32>, vector<32x32xf32>, vector<32x32xf32> -> vector<32x32xf32>
    %c0_24 = arith.constant 0 : index
    %c0_25 = arith.constant 0 : index
    %c0_26 = arith.constant 0 : index
    %43 = vector.load %arg11[%c0_24, %c0_25, %c0_26] : memref<1x1x32xf32, #tpu.memory_space<vmem>>, vector<1x1x32xf32>
    %44 = vector.shape_cast %43 : vector<1x1x32xf32> to vector<1x32xf32>
    %45 = vector.broadcast %44 : vector<1x32xf32> to vector<32x32xf32>
    %46 = arith.addf %42, %45 : vector<32x32xf32>
    %47 = vector.extract_strided_slice %46 {offsets = [0, 0], sizes = [32, 8], strides = [1, 1]} : vector<32x32xf32> to vector<32x8xf32>
    %48 = vector.extract_strided_slice %46 {offsets = [0, 8], sizes = [32, 8], strides = [1, 1]} : vector<32x32xf32> to vector<32x8xf32>
    %49 = vector.extract_strided_slice %46 {offsets = [0, 16], sizes = [32, 8], strides = [1, 1]} : vector<32x32xf32> to vector<32x8xf32>
    %50 = vector.extract_strided_slice %46 {offsets = [0, 24], sizes = [32, 8], strides = [1, 1]} : vector<32x32xf32> to vector<32x8xf32>
    %51 = vector.shape_cast %47 : vector<32x8xf32> to vector<1x32x8xf32>
    %52 = vector.shape_cast %48 : vector<32x8xf32> to vector<1x32x8xf32>
    %53 = vector.shape_cast %49 : vector<32x8xf32> to vector<1x32x8xf32>
    %54 = vector.shape_cast %50 : vector<32x8xf32> to vector<1x32x8xf32>
    %55 = tpu.concatenate %51, %52, %53, %54 in 0 : vector<1x32x8xf32>, vector<1x32x8xf32>, vector<1x32x8xf32>, vector<1x32x8xf32> -> vector<4x32x8xf32>
    "tpu.trace_start"() <{level = 10 : i32, message = "hqd,hkd->hqk"}> : () -> ()
    %cst_27 = arith.constant dense<0.000000e+00> : vector<4x32x32xf32>
    %56 = tpu.matmul %23, %39, %cst_27 {dimension_numbers = #tpu.dot_dimension_numbers<[2], [2], [1], [1], [0, 0, 0, 1, 1, 1], [0], [0]>, precision = #tpu.contract_precision<fp32>} : vector<4x32x8xf32>, vector<4x32x8xf32>, vector<4x32x32xf32> -> vector<4x32x32xf32>
    "tpu.trace_stop"() : () -> ()
    %57 = vector.shape_cast %5 : vector<32x32xf32> to vector<1x32x32xf32>
    %58 = vector.broadcast %57 : vector<1x32x32xf32> to vector<4x32x32xf32>
    %59 = arith.addf %56, %58 : vector<4x32x32xf32>
    %cst_28 = arith.constant dense<0xFF800000> : vector<4x32xf32>
    %60 = vector.multi_reduction <maximumf>, %59, %cst_28 [2] : vector<4x32x32xf32> to vector<4x32xf32>
    %61 = vector.shape_cast %60 : vector<4x32xf32> to vector<4x32x1xf32>
    %62 = vector.broadcast %61 : vector<4x32x1xf32> to vector<4x32x32xf32>
    %63 = arith.subf %59, %62 : vector<4x32x32xf32>
    %64 = math.exp %63 : vector<4x32x32xf32>
    %cst_29 = arith.constant dense<0.000000e+00> : vector<4x32xf32>
    %65 = vector.multi_reduction <add>, %64, %cst_29 [2] : vector<4x32x32xf32> to vector<4x32xf32>
    %66 = vector.shape_cast %65 : vector<4x32xf32> to vector<4x32x1xf32>
    %67 = tpu.reciprocal %66 {approx = true} : vector<4x32x1xf32> -> vector<4x32x1xf32>
    %68 = vector.broadcast %67 : vector<4x32x1xf32> to vector<4x32x32xf32>
    %69 = arith.mulf %64, %68 : vector<4x32x32xf32>
    "tpu.trace_start"() <{level = 10 : i32, message = "hqk,hkd->hqd"}> : () -> ()
    %cst_30 = arith.constant dense<0.000000e+00> : vector<4x32x8xf32>
    %70 = tpu.matmul %69, %55, %cst_30 {dimension_numbers = #tpu.dot_dimension_numbers<[2], [1], [1], [2], [0, 0, 0, 1, 1, 2], [0], [0]>, precision = #tpu.contract_precision<fp32>} : vector<4x32x32xf32>, vector<4x32x8xf32>, vector<4x32x8xf32> -> vector<4x32x8xf32>
    "tpu.trace_stop"() : () -> ()
    %71 = vector.extract_strided_slice %70 {offsets = [0, 0, 0], sizes = [1, 32, 8], strides = [1, 1, 1]} : vector<4x32x8xf32> to vector<1x32x8xf32>
    %72 = vector.shape_cast %71 : vector<1x32x8xf32> to vector<32x8xf32>
    %73 = vector.extract_strided_slice %70 {offsets = [1, 0, 0], sizes = [1, 32, 8], strides = [1, 1, 1]} : vector<4x32x8xf32> to vector<1x32x8xf32>
    %74 = vector.shape_cast %73 : vector<1x32x8xf32> to vector<32x8xf32>
    %75 = vector.extract_strided_slice %70 {offsets = [2, 0, 0], sizes = [1, 32, 8], strides = [1, 1, 1]} : vector<4x32x8xf32> to vector<1x32x8xf32>
    %76 = vector.shape_cast %75 : vector<1x32x8xf32> to vector<32x8xf32>
    %77 = vector.extract_strided_slice %70 {offsets = [3, 0, 0], sizes = [1, 32, 8], strides = [1, 1, 1]} : vector<4x32x8xf32> to vector<1x32x8xf32>
    %78 = vector.shape_cast %77 : vector<1x32x8xf32> to vector<32x8xf32>
    %79 = tpu.concatenate %72, %74, %76, %78 in 1 : vector<32x8xf32>, vector<32x8xf32>, vector<32x8xf32>, vector<32x8xf32> -> vector<32x32xf32>
    %c0_31 = arith.constant 0 : index
    %c0_32 = arith.constant 0 : index
    %c0_33 = arith.constant 0 : index
    %80 = vector.load %arg8[%c0_31, %c0_32, %c0_33] : memref<1x32x32xf32, #tpu.memory_space<vmem>>, vector<1x32x32xf32>
    %81 = vector.shape_cast %80 : vector<1x32x32xf32> to vector<32x32xf32>
    %cst_34 = arith.constant dense<0.000000e+00> : vector<32x32xf32>
    %82 = tpu.matmul %79, %81, %cst_34 {dimension_numbers = #tpu.dot_dimension_numbers<[1], [0], [0], [1], [0, 0, 1, 1], [], []>, precision = #tpu.contract_precision<fp32>} : vector<32x32xf32>, vector<32x32xf32>, vector<32x32xf32> -> vector<32x32xf32>
    %c0_35 = arith.constant 0 : index
    %c0_36 = arith.constant 0 : index
    %c0_37 = arith.constant 0 : index
    %83 = vector.load %arg12[%c0_35, %c0_36, %c0_37] : memref<1x1x32xf32, #tpu.memory_space<vmem>>, vector<1x1x32xf32>
    %84 = vector.shape_cast %83 : vector<1x1x32xf32> to vector<1x32xf32>
    %85 = vector.broadcast %84 : vector<1x32xf32> to vector<32x32xf32>
    %86 = arith.addf %82, %85 : vector<32x32xf32>
    %c0_38 = arith.constant 0 : index
    %c0_39 = arith.constant 0 : index
    %c0_40 = arith.constant 0 : index
    %87 = vector.load %arg21[%c0_38, %c0_39, %c0_40] : memref<1x1x32xf32, #tpu.memory_space<vmem>>, vector<1x1x32xf32>
    %88 = vector.shape_cast %87 : vector<1x1x32xf32> to vector<1x32xf32>
    %c0_41 = arith.constant 0 : index
    %c0_42 = arith.constant 0 : index
    %c0_43 = arith.constant 0 : index
    %89 = vector.load %arg22[%c0_41, %c0_42, %c0_43] : memref<1x1x32xf32, #tpu.memory_space<vmem>>, vector<1x1x32xf32>
    %90 = vector.shape_cast %89 : vector<1x1x32xf32> to vector<1x32xf32>
    %91 = arith.addf %3, %86 : vector<32x32xf32>
    %cst_44 = arith.constant dense<0.000000e+00> : vector<32xf32>
    %92 = vector.multi_reduction <add>, %91, %cst_44 [1] : vector<32x32xf32> to vector<32xf32>
    %93 = vector.shape_cast %92 : vector<32xf32> to vector<32x1xf32>
    %cst_45 = arith.constant 3.200000e+01 : f32
    %94 = vector.broadcast %cst_45 : f32 to vector<32x1xf32>
    %95 = arith.divf %93, %94 : vector<32x1xf32>
    %96 = vector.broadcast %95 : vector<32x1xf32> to vector<32x32xf32>
    %97 = arith.subf %91, %96 : vector<32x32xf32>
    %98 = arith.mulf %97, %97 : vector<32x32xf32>
    %cst_46 = arith.constant dense<0.000000e+00> : vector<32xf32>
    %99 = vector.multi_reduction <add>, %98, %cst_46 [1] : vector<32x32xf32> to vector<32xf32>
    %100 = vector.shape_cast %99 : vector<32xf32> to vector<32x1xf32>
    %cst_47 = arith.constant 3.200000e+01 : f32
    %101 = vector.broadcast %cst_47 : f32 to vector<32x1xf32>
    %102 = arith.divf %100, %101 : vector<32x1xf32>
    %cst_48 = arith.constant 9.99999974E-6 : f32
    %103 = vector.broadcast %cst_48 : f32 to vector<32x1xf32>
    %104 = arith.addf %102, %103 : vector<32x1xf32>
    %105 = math.rsqrt %104 : vector<32x1xf32>
    %106 = vector.broadcast %105 : vector<32x1xf32> to vector<32x32xf32>
    %107 = arith.mulf %97, %106 : vector<32x32xf32>
    %108 = vector.broadcast %88 : vector<1x32xf32> to vector<32x32xf32>
    %109 = arith.mulf %107, %108 : vector<32x32xf32>
    %110 = vector.broadcast %90 : vector<1x32xf32> to vector<32x32xf32>
    %111 = arith.addf %109, %110 : vector<32x32xf32>
    %c0_49 = arith.constant 0 : index
    %c0_50 = arith.constant 0 : index
    %112 = vector.load %arg4[%c0_49, %c0_50] : memref<32x20xf32, #tpu.memory_space<vmem>>, vector<32x20xf32>
    %c0_51 = arith.constant 0 : index
    %c0_52 = arith.constant 0 : index
    %c0_53 = arith.constant 0 : index
    %113 = vector.load %arg13[%c0_51, %c0_52, %c0_53] : memref<1x32x32xf32, #tpu.memory_space<vmem>>, vector<1x32x32xf32>
    %114 = vector.shape_cast %113 : vector<1x32x32xf32> to vector<32x32xf32>
    %cst_54 = arith.constant dense<0.000000e+00> : vector<32x32xf32>
    %115 = tpu.matmul %111, %114, %cst_54 {dimension_numbers = #tpu.dot_dimension_numbers<[1], [0], [0], [1], [0, 0, 1, 1], [], []>, precision = #tpu.contract_precision<fp32>} : vector<32x32xf32>, vector<32x32xf32>, vector<32x32xf32> -> vector<32x32xf32>
    %c0_55 = arith.constant 0 : index
    %c0_56 = arith.constant 0 : index
    %c0_57 = arith.constant 0 : index
    %116 = vector.load %arg17[%c0_55, %c0_56, %c0_57] : memref<1x1x32xf32, #tpu.memory_space<vmem>>, vector<1x1x32xf32>
    %117 = vector.shape_cast %116 : vector<1x1x32xf32> to vector<1x32xf32>
    %118 = vector.broadcast %117 : vector<1x32xf32> to vector<32x32xf32>
    %119 = arith.addf %115, %118 : vector<32x32xf32>
    %cst_58 = arith.constant 0.353553385 : f32
    %120 = vector.broadcast %cst_58 : f32 to vector<32x32xf32>
    %121 = arith.mulf %119, %120 : vector<32x32xf32>
    %122 = vector.extract_strided_slice %121 {offsets = [0, 0], sizes = [32, 8], strides = [1, 1]} : vector<32x32xf32> to vector<32x8xf32>
    %123 = vector.extract_strided_slice %121 {offsets = [0, 8], sizes = [32, 8], strides = [1, 1]} : vector<32x32xf32> to vector<32x8xf32>
    %124 = vector.extract_strided_slice %121 {offsets = [0, 16], sizes = [32, 8], strides = [1, 1]} : vector<32x32xf32> to vector<32x8xf32>
    %125 = vector.extract_strided_slice %121 {offsets = [0, 24], sizes = [32, 8], strides = [1, 1]} : vector<32x32xf32> to vector<32x8xf32>
    %126 = vector.shape_cast %122 : vector<32x8xf32> to vector<1x32x8xf32>
    %127 = vector.shape_cast %123 : vector<32x8xf32> to vector<1x32x8xf32>
    %128 = vector.shape_cast %124 : vector<32x8xf32> to vector<1x32x8xf32>
    %129 = vector.shape_cast %125 : vector<32x8xf32> to vector<1x32x8xf32>
    %130 = tpu.concatenate %126, %127, %128, %129 in 0 : vector<1x32x8xf32>, vector<1x32x8xf32>, vector<1x32x8xf32>, vector<1x32x8xf32> -> vector<4x32x8xf32>
    %c0_59 = arith.constant 0 : index
    %c0_60 = arith.constant 0 : index
    %c0_61 = arith.constant 0 : index
    %131 = vector.load %arg14[%c0_59, %c0_60, %c0_61] : memref<1x32x32xf32, #tpu.memory_space<vmem>>, vector<1x32x32xf32>
    %132 = vector.shape_cast %131 : vector<1x32x32xf32> to vector<32x32xf32>
    %cst_62 = arith.constant dense<0.000000e+00> : vector<20x32xf32>
    %133 = tpu.matmul %4, %132, %cst_62 {dimension_numbers = #tpu.dot_dimension_numbers<[1], [0], [0], [1], [0, 0, 1, 1], [], []>, precision = #tpu.contract_precision<fp32>} : vector<20x32xf32>, vector<32x32xf32>, vector<20x32xf32> -> vector<20x32xf32>
    %c0_63 = arith.constant 0 : index
    %c0_64 = arith.constant 0 : index
    %c0_65 = arith.constant 0 : index
    %134 = vector.load %arg18[%c0_63, %c0_64, %c0_65] : memref<1x1x32xf32, #tpu.memory_space<vmem>>, vector<1x1x32xf32>
    %135 = vector.shape_cast %134 : vector<1x1x32xf32> to vector<1x32xf32>
    %136 = vector.broadcast %135 : vector<1x32xf32> to vector<20x32xf32>
    %137 = arith.addf %133, %136 : vector<20x32xf32>
    %138 = vector.extract_strided_slice %137 {offsets = [0, 0], sizes = [20, 8], strides = [1, 1]} : vector<20x32xf32> to vector<20x8xf32>
    %139 = vector.extract_strided_slice %137 {offsets = [0, 8], sizes = [20, 8], strides = [1, 1]} : vector<20x32xf32> to vector<20x8xf32>
    %140 = vector.extract_strided_slice %137 {offsets = [0, 16], sizes = [20, 8], strides = [1, 1]} : vector<20x32xf32> to vector<20x8xf32>
    %141 = vector.extract_strided_slice %137 {offsets = [0, 24], sizes = [20, 8], strides = [1, 1]} : vector<20x32xf32> to vector<20x8xf32>
    %142 = vector.shape_cast %138 : vector<20x8xf32> to vector<1x20x8xf32>
    %143 = vector.shape_cast %139 : vector<20x8xf32> to vector<1x20x8xf32>
    %144 = vector.shape_cast %140 : vector<20x8xf32> to vector<1x20x8xf32>
    %145 = vector.shape_cast %141 : vector<20x8xf32> to vector<1x20x8xf32>
    %146 = tpu.concatenate %142, %143, %144, %145 in 0 : vector<1x20x8xf32>, vector<1x20x8xf32>, vector<1x20x8xf32>, vector<1x20x8xf32> -> vector<4x20x8xf32>
    %c0_66 = arith.constant 0 : index
    %c0_67 = arith.constant 0 : index
    %c0_68 = arith.constant 0 : index
    %147 = vector.load %arg15[%c0_66, %c0_67, %c0_68] : memref<1x32x32xf32, #tpu.memory_space<vmem>>, vector<1x32x32xf32>
    %148 = vector.shape_cast %147 : vector<1x32x32xf32> to vector<32x32xf32>
    %cst_69 = arith.constant dense<0.000000e+00> : vector<20x32xf32>
    %149 = tpu.matmul %4, %148, %cst_69 {dimension_numbers = #tpu.dot_dimension_numbers<[1], [0], [0], [1], [0, 0, 1, 1], [], []>, precision = #tpu.contract_precision<fp32>} : vector<20x32xf32>, vector<32x32xf32>, vector<20x32xf32> -> vector<20x32xf32>
    %c0_70 = arith.constant 0 : index
    %c0_71 = arith.constant 0 : index
    %c0_72 = arith.constant 0 : index
    %150 = vector.load %arg19[%c0_70, %c0_71, %c0_72] : memref<1x1x32xf32, #tpu.memory_space<vmem>>, vector<1x1x32xf32>
    %151 = vector.shape_cast %150 : vector<1x1x32xf32> to vector<1x32xf32>
    %152 = vector.broadcast %151 : vector<1x32xf32> to vector<20x32xf32>
    %153 = arith.addf %149, %152 : vector<20x32xf32>
    %154 = vector.extract_strided_slice %153 {offsets = [0, 0], sizes = [20, 8], strides = [1, 1]} : vector<20x32xf32> to vector<20x8xf32>
    %155 = vector.extract_strided_slice %153 {offsets = [0, 8], sizes = [20, 8], strides = [1, 1]} : vector<20x32xf32> to vector<20x8xf32>
    %156 = vector.extract_strided_slice %153 {offsets = [0, 16], sizes = [20, 8], strides = [1, 1]} : vector<20x32xf32> to vector<20x8xf32>
    %157 = vector.extract_strided_slice %153 {offsets = [0, 24], sizes = [20, 8], strides = [1, 1]} : vector<20x32xf32> to vector<20x8xf32>
    %158 = vector.shape_cast %154 : vector<20x8xf32> to vector<1x20x8xf32>
    %159 = vector.shape_cast %155 : vector<20x8xf32> to vector<1x20x8xf32>
    %160 = vector.shape_cast %156 : vector<20x8xf32> to vector<1x20x8xf32>
    %161 = vector.shape_cast %157 : vector<20x8xf32> to vector<1x20x8xf32>
    %162 = tpu.concatenate %158, %159, %160, %161 in 0 : vector<1x20x8xf32>, vector<1x20x8xf32>, vector<1x20x8xf32>, vector<1x20x8xf32> -> vector<4x20x8xf32>
    "tpu.trace_start"() <{level = 10 : i32, message = "hqd,hkd->hqk"}> : () -> ()
    %cst_73 = arith.constant dense<0.000000e+00> : vector<4x32x20xf32>
    %163 = tpu.matmul %130, %146, %cst_73 {dimension_numbers = #tpu.dot_dimension_numbers<[2], [2], [1], [1], [0, 0, 0, 1, 1, 1], [0], [0]>, precision = #tpu.contract_precision<fp32>} : vector<4x32x8xf32>, vector<4x20x8xf32>, vector<4x32x20xf32> -> vector<4x32x20xf32>
    "tpu.trace_stop"() : () -> ()
    %164 = vector.shape_cast %112 : vector<32x20xf32> to vector<1x32x20xf32>
    %165 = vector.broadcast %164 : vector<1x32x20xf32> to vector<4x32x20xf32>
    %166 = arith.addf %163, %165 : vector<4x32x20xf32>
    %cst_74 = arith.constant dense<0xFF800000> : vector<4x32xf32>
    %167 = vector.multi_reduction <maximumf>, %166, %cst_74 [2] : vector<4x32x20xf32> to vector<4x32xf32>
    %168 = vector.shape_cast %167 : vector<4x32xf32> to vector<4x32x1xf32>
    %169 = vector.broadcast %168 : vector<4x32x1xf32> to vector<4x32x20xf32>
    %170 = arith.subf %166, %169 : vector<4x32x20xf32>
    %171 = math.exp %170 : vector<4x32x20xf32>
    %cst_75 = arith.constant dense<0.000000e+00> : vector<4x32xf32>
    %172 = vector.multi_reduction <add>, %171, %cst_75 [2] : vector<4x32x20xf32> to vector<4x32xf32>
    %173 = vector.shape_cast %172 : vector<4x32xf32> to vector<4x32x1xf32>
    %174 = tpu.reciprocal %173 {approx = true} : vector<4x32x1xf32> -> vector<4x32x1xf32>
    %175 = vector.broadcast %174 : vector<4x32x1xf32> to vector<4x32x20xf32>
    %176 = arith.mulf %171, %175 : vector<4x32x20xf32>
    "tpu.trace_start"() <{level = 10 : i32, message = "hqk,hkd->hqd"}> : () -> ()
    %cst_76 = arith.constant dense<0.000000e+00> : vector<4x32x8xf32>
    %177 = tpu.matmul %176, %162, %cst_76 {dimension_numbers = #tpu.dot_dimension_numbers<[2], [1], [1], [2], [0, 0, 0, 1, 1, 2], [0], [0]>, precision = #tpu.contract_precision<fp32>} : vector<4x32x20xf32>, vector<4x20x8xf32>, vector<4x32x8xf32> -> vector<4x32x8xf32>
    "tpu.trace_stop"() : () -> ()
    %178 = vector.extract_strided_slice %177 {offsets = [0, 0, 0], sizes = [1, 32, 8], strides = [1, 1, 1]} : vector<4x32x8xf32> to vector<1x32x8xf32>
    %179 = vector.shape_cast %178 : vector<1x32x8xf32> to vector<32x8xf32>
    %180 = vector.extract_strided_slice %177 {offsets = [1, 0, 0], sizes = [1, 32, 8], strides = [1, 1, 1]} : vector<4x32x8xf32> to vector<1x32x8xf32>
    %181 = vector.shape_cast %180 : vector<1x32x8xf32> to vector<32x8xf32>
    %182 = vector.extract_strided_slice %177 {offsets = [2, 0, 0], sizes = [1, 32, 8], strides = [1, 1, 1]} : vector<4x32x8xf32> to vector<1x32x8xf32>
    %183 = vector.shape_cast %182 : vector<1x32x8xf32> to vector<32x8xf32>
    %184 = vector.extract_strided_slice %177 {offsets = [3, 0, 0], sizes = [1, 32, 8], strides = [1, 1, 1]} : vector<4x32x8xf32> to vector<1x32x8xf32>
    %185 = vector.shape_cast %184 : vector<1x32x8xf32> to vector<32x8xf32>
    %186 = tpu.concatenate %179, %181, %183, %185 in 1 : vector<32x8xf32>, vector<32x8xf32>, vector<32x8xf32>, vector<32x8xf32> -> vector<32x32xf32>
    %c0_77 = arith.constant 0 : index
    %c0_78 = arith.constant 0 : index
    %c0_79 = arith.constant 0 : index
    %187 = vector.load %arg16[%c0_77, %c0_78, %c0_79] : memref<1x32x32xf32, #tpu.memory_space<vmem>>, vector<1x32x32xf32>
    %188 = vector.shape_cast %187 : vector<1x32x32xf32> to vector<32x32xf32>
    %cst_80 = arith.constant dense<0.000000e+00> : vector<32x32xf32>
    %189 = tpu.matmul %186, %188, %cst_80 {dimension_numbers = #tpu.dot_dimension_numbers<[1], [0], [0], [1], [0, 0, 1, 1], [], []>, precision = #tpu.contract_precision<fp32>} : vector<32x32xf32>, vector<32x32xf32>, vector<32x32xf32> -> vector<32x32xf32>
    %c0_81 = arith.constant 0 : index
    %c0_82 = arith.constant 0 : index
    %c0_83 = arith.constant 0 : index
    %190 = vector.load %arg20[%c0_81, %c0_82, %c0_83] : memref<1x1x32xf32, #tpu.memory_space<vmem>>, vector<1x1x32xf32>
    %191 = vector.shape_cast %190 : vector<1x1x32xf32> to vector<1x32xf32>
    %192 = vector.broadcast %191 : vector<1x32xf32> to vector<32x32xf32>
    %193 = arith.addf %189, %192 : vector<32x32xf32>
    %c0_84 = arith.constant 0 : index
    %c0_85 = arith.constant 0 : index
    %c0_86 = arith.constant 0 : index
    %194 = vector.load %arg23[%c0_84, %c0_85, %c0_86] : memref<1x1x32xf32, #tpu.memory_space<vmem>>, vector<1x1x32xf32>
    %195 = vector.shape_cast %194 : vector<1x1x32xf32> to vector<1x32xf32>
    %c0_87 = arith.constant 0 : index
    %c0_88 = arith.constant 0 : index
    %c0_89 = arith.constant 0 : index
    %196 = vector.load %arg24[%c0_87, %c0_88, %c0_89] : memref<1x1x32xf32, #tpu.memory_space<vmem>>, vector<1x1x32xf32>
    %197 = vector.shape_cast %196 : vector<1x1x32xf32> to vector<1x32xf32>
    %198 = arith.addf %111, %193 : vector<32x32xf32>
    %cst_90 = arith.constant dense<0.000000e+00> : vector<32xf32>
    %199 = vector.multi_reduction <add>, %198, %cst_90 [1] : vector<32x32xf32> to vector<32xf32>
    %200 = vector.shape_cast %199 : vector<32xf32> to vector<32x1xf32>
    %cst_91 = arith.constant 3.200000e+01 : f32
    %201 = vector.broadcast %cst_91 : f32 to vector<32x1xf32>
    %202 = arith.divf %200, %201 : vector<32x1xf32>
    %203 = vector.broadcast %202 : vector<32x1xf32> to vector<32x32xf32>
    %204 = arith.subf %198, %203 : vector<32x32xf32>
    %205 = arith.mulf %204, %204 : vector<32x32xf32>
    %cst_92 = arith.constant dense<0.000000e+00> : vector<32xf32>
    %206 = vector.multi_reduction <add>, %205, %cst_92 [1] : vector<32x32xf32> to vector<32xf32>
    %207 = vector.shape_cast %206 : vector<32xf32> to vector<32x1xf32>
    %cst_93 = arith.constant 3.200000e+01 : f32
    %208 = vector.broadcast %cst_93 : f32 to vector<32x1xf32>
    %209 = arith.divf %207, %208 : vector<32x1xf32>
    %cst_94 = arith.constant 9.99999974E-6 : f32
    %210 = vector.broadcast %cst_94 : f32 to vector<32x1xf32>
    %211 = arith.addf %209, %210 : vector<32x1xf32>
    %212 = math.rsqrt %211 : vector<32x1xf32>
    %213 = vector.broadcast %212 : vector<32x1xf32> to vector<32x32xf32>
    %214 = arith.mulf %204, %213 : vector<32x32xf32>
    %215 = vector.broadcast %195 : vector<1x32xf32> to vector<32x32xf32>
    %216 = arith.mulf %214, %215 : vector<32x32xf32>
    %217 = vector.broadcast %197 : vector<1x32xf32> to vector<32x32xf32>
    %218 = arith.addf %216, %217 : vector<32x32xf32>
    %c0_95 = arith.constant 0 : index
    %c0_96 = arith.constant 0 : index
    %c0_97 = arith.constant 0 : index
    %219 = vector.load %arg27[%c0_95, %c0_96, %c0_97] : memref<1x32x128xf32, #tpu.memory_space<vmem>>, vector<1x32x128xf32>
    %220 = vector.shape_cast %219 : vector<1x32x128xf32> to vector<32x128xf32>
    %cst_98 = arith.constant dense<0.000000e+00> : vector<32x128xf32>
    %221 = tpu.matmul %218, %220, %cst_98 {dimension_numbers = #tpu.dot_dimension_numbers<[1], [0], [0], [1], [0, 0, 1, 1], [], []>, precision = #tpu.contract_precision<fp32>} : vector<32x32xf32>, vector<32x128xf32>, vector<32x128xf32> -> vector<32x128xf32>
    %cst_99 = arith.constant 5.000000e-01 : f32
    %222 = vector.broadcast %cst_99 : f32 to vector<32x128xf32>
    %223 = arith.mulf %222, %221 : vector<32x128xf32>
    %cst_100 = arith.constant 0.707106769 : f32
    %224 = vector.broadcast %cst_100 : f32 to vector<32x128xf32>
    %225 = arith.mulf %221, %224 : vector<32x128xf32>
    %226 = math.erf %225 : vector<32x128xf32>
    %cst_101 = arith.constant 1.000000e+00 : f32
    %227 = vector.broadcast %cst_101 : f32 to vector<32x128xf32>
    %228 = arith.addf %227, %226 : vector<32x128xf32>
    %229 = arith.mulf %223, %228 : vector<32x128xf32>
    %c0_102 = arith.constant 0 : index
    %c0_103 = arith.constant 0 : index
    %c0_104 = arith.constant 0 : index
    %230 = vector.load %arg28[%c0_102, %c0_103, %c0_104] : memref<1x128x32xf32, #tpu.memory_space<vmem>>, vector<1x128x32xf32>
    %231 = vector.shape_cast %230 : vector<1x128x32xf32> to vector<128x32xf32>
    %cst_105 = arith.constant dense<0.000000e+00> : vector<32x32xf32>
    %232 = tpu.matmul %229, %231, %cst_105 {dimension_numbers = #tpu.dot_dimension_numbers<[1], [0], [0], [1], [0, 0, 1, 1], [], []>, precision = #tpu.contract_precision<fp32>} : vector<32x128xf32>, vector<128x32xf32>, vector<32x32xf32> -> vector<32x32xf32>
    %c0_106 = arith.constant 0 : index
    %c0_107 = arith.constant 0 : index
    %c0_108 = arith.constant 0 : index
    %233 = vector.load %arg25[%c0_106, %c0_107, %c0_108] : memref<1x1x32xf32, #tpu.memory_space<vmem>>, vector<1x1x32xf32>
    %234 = vector.shape_cast %233 : vector<1x1x32xf32> to vector<1x32xf32>
    %c0_109 = arith.constant 0 : index
    %c0_110 = arith.constant 0 : index
    %c0_111 = arith.constant 0 : index
    %235 = vector.load %arg26[%c0_109, %c0_110, %c0_111] : memref<1x1x32xf32, #tpu.memory_space<vmem>>, vector<1x1x32xf32>
    %236 = vector.shape_cast %235 : vector<1x1x32xf32> to vector<1x32xf32>
    %237 = arith.addf %218, %232 : vector<32x32xf32>
    %cst_112 = arith.constant dense<0.000000e+00> : vector<32xf32>
    %238 = vector.multi_reduction <add>, %237, %cst_112 [1] : vector<32x32xf32> to vector<32xf32>
    %239 = vector.shape_cast %238 : vector<32xf32> to vector<32x1xf32>
    %cst_113 = arith.constant 3.200000e+01 : f32
    %240 = vector.broadcast %cst_113 : f32 to vector<32x1xf32>
    %241 = arith.divf %239, %240 : vector<32x1xf32>
    %242 = vector.broadcast %241 : vector<32x1xf32> to vector<32x32xf32>
    %243 = arith.subf %237, %242 : vector<32x32xf32>
    %244 = arith.mulf %243, %243 : vector<32x32xf32>
    %cst_114 = arith.constant dense<0.000000e+00> : vector<32xf32>
    %245 = vector.multi_reduction <add>, %244, %cst_114 [1] : vector<32x32xf32> to vector<32xf32>
    %246 = vector.shape_cast %245 : vector<32xf32> to vector<32x1xf32>
    %cst_115 = arith.constant 3.200000e+01 : f32
    %247 = vector.broadcast %cst_115 : f32 to vector<32x1xf32>
    %248 = arith.divf %246, %247 : vector<32x1xf32>
    %cst_116 = arith.constant 9.99999974E-6 : f32
    %249 = vector.broadcast %cst_116 : f32 to vector<32x1xf32>
    %250 = arith.addf %248, %249 : vector<32x1xf32>
    %251 = math.rsqrt %250 : vector<32x1xf32>
    %252 = vector.broadcast %251 : vector<32x1xf32> to vector<32x32xf32>
    %253 = arith.mulf %243, %252 : vector<32x32xf32>
    %254 = vector.broadcast %234 : vector<1x32xf32> to vector<32x32xf32>
    %255 = arith.mulf %253, %254 : vector<32x32xf32>
    %256 = vector.broadcast %236 : vector<1x32xf32> to vector<32x32xf32>
    %257 = arith.addf %255, %256 : vector<32x32xf32>
    %c0_117 = arith.constant 0 : index
    %c0_118 = arith.constant 0 : index
    %258 = vector.load %arg29[%c0_117, %c0_118] : memref<32x32xf32, #tpu.memory_space<vmem>>, vector<32x32xf32>
    tpu.vector_store %arg29[%c0_117, %c0_118], %257 {strides = array<i32>} : memref<32x32xf32, #tpu.memory_space<vmem>>, vector<32x32xf32>,
    return
  }
  func.func @transform_0(%arg0: i32) -> (i32, i32) {
    %c0_i32 = arith.constant 0 : i32
    %c0_i32_0 = arith.constant 0 : i32
    %c0_i32_1 = arith.constant 0 : i32
    return %c0_i32, %c0_i32_0 : i32, i32
  }
  func.func @transform_1(%arg0: i32) -> (i32, i32) {
    %c0_i32 = arith.constant 0 : i32
    %c0_i32_0 = arith.constant 0 : i32
    %c0_i32_1 = arith.constant 0 : i32
    return %c0_i32, %c0_i32_0 : i32, i32
  }
  func.func @transform_2(%arg0: i32) -> (i32, i32) {
    %c0_i32 = arith.constant 0 : i32
    %c0_i32_0 = arith.constant 0 : i32
    %c0_i32_1 = arith.constant 0 : i32
    return %c0_i32, %c0_i32_0 : i32, i32
  }
  func.func @transform_3(%arg0: i32) -> (i32, i32) {
    %c0_i32 = arith.constant 0 : i32
    %c0_i32_0 = arith.constant 0 : i32
    %c0_i32_1 = arith.constant 0 : i32
    return %c0_i32, %c0_i32_0 : i32, i32
  }
  func.func @transform_4(%arg0: i32) -> (i32, i32, i32) {
    %c0_i32 = arith.constant 0 : i32
    %c0_i32_0 = arith.constant 0 : i32
    %c0_i32_1 = arith.constant 0 : i32
    return %arg0, %c0_i32, %c0_i32_0 : i32, i32, i32
  }
  func.func @transform_5(%arg0: i32) -> (i32, i32, i32) {
    %c0_i32 = arith.constant 0 : i32
    %c0_i32_0 = arith.constant 0 : i32
    %c0_i32_1 = arith.constant 0 : i32
    return %arg0, %c0_i32, %c0_i32_0 : i32, i32, i32
  }
  func.func @transform_6(%arg0: i32) -> (i32, i32, i32) {
    %c0_i32 = arith.constant 0 : i32
    %c0_i32_0 = arith.constant 0 : i32
    %c0_i32_1 = arith.constant 0 : i32
    return %arg0, %c0_i32, %c0_i32_0 : i32, i32, i32
  }
  func.func @transform_7(%arg0: i32) -> (i32, i32, i32) {
    %c0_i32 = arith.constant 0 : i32
    %c0_i32_0 = arith.constant 0 : i32
    %c0_i32_1 = arith.constant 0 : i32
    return %arg0, %c0_i32, %c0_i32_0 : i32, i32, i32
  }
  func.func @transform_8(%arg0: i32) -> (i32, i32, i32) {
    %c0_i32 = arith.constant 0 : i32
    %c0_i32_0 = arith.constant 0 : i32
    %c0_i32_1 = arith.constant 0 : i32
    return %arg0, %c0_i32, %c0_i32_0 : i32, i32, i32
  }
  func.func @transform_9(%arg0: i32) -> (i32, i32, i32) {
    %c0_i32 = arith.constant 0 : i32
    %c0_i32_0 = arith.constant 0 : i32
    %c0_i32_1 = arith.constant 0 : i32
    return %arg0, %c0_i32, %c0_i32_0 : i32, i32, i32
  }
  func.func @transform_10(%arg0: i32) -> (i32, i32, i32) {
    %c0_i32 = arith.constant 0 : i32
    %c0_i32_0 = arith.constant 0 : i32
    %c0_i32_1 = arith.constant 0 : i32
    return %arg0, %c0_i32, %c0_i32_0 : i32, i32, i32
  }
  func.func @transform_11(%arg0: i32) -> (i32, i32, i32) {
    %c0_i32 = arith.constant 0 : i32
    %c0_i32_0 = arith.constant 0 : i32
    %c0_i32_1 = arith.constant 0 : i32
    return %arg0, %c0_i32, %c0_i32_0 : i32, i32, i32
  }
  func.func @transform_12(%arg0: i32) -> (i32, i32, i32) {
    %c0_i32 = arith.constant 0 : i32
    %c0_i32_0 = arith.constant 0 : i32
    %c0_i32_1 = arith.constant 0 : i32
    return %arg0, %c0_i32, %c0_i32_0 : i32, i32, i32
  }
  func.func @transform_13(%arg0: i32) -> (i32, i32, i32) {
    %c0_i32 = arith.constant 0 : i32
    %c0_i32_0 = arith.constant 0 : i32
    %c0_i32_1 = arith.constant 0 : i32
    return %arg0, %c0_i32, %c0_i32_0 : i32, i32, i32
  }
  func.func @transform_14(%arg0: i32) -> (i32, i32, i32) {
    %c0_i32 = arith.constant 0 : i32
    %c0_i32_0 = arith.constant 0 : i32
    %c0_i32_1 = arith.constant 0 : i32
    return %arg0, %c0_i32, %c0_i32_0 : i32, i32, i32
  }
  func.func @transform_15(%arg0: i32) -> (i32, i32, i32) {
    %c0_i32 = arith.constant 0 : i32
    %c0_i32_0 = arith.constant 0 : i32
    %c0_i32_1 = arith.constant 0 : i32
    return %arg0, %c0_i32, %c0_i32_0 : i32, i32, i32
  }
  func.func @transform_16(%arg0: i32) -> (i32, i32, i32) {
    %c0_i32 = arith.constant 0 : i32
    %c0_i32_0 = arith.constant 0 : i32
    %c0_i32_1 = arith.constant 0 : i32
    return %arg0, %c0_i32, %c0_i32_0 : i32, i32, i32
  }
  func.func @transform_17(%arg0: i32) -> (i32, i32, i32) {
    %c0_i32 = arith.constant 0 : i32
    %c0_i32_0 = arith.constant 0 : i32
    %c0_i32_1 = arith.constant 0 : i32
    return %arg0, %c0_i32, %c0_i32_0 : i32, i32, i32
  }
  func.func @transform_18(%arg0: i32) -> (i32, i32, i32) {
    %c0_i32 = arith.constant 0 : i32
    %c0_i32_0 = arith.constant 0 : i32
    %c0_i32_1 = arith.constant 0 : i32
    return %arg0, %c0_i32, %c0_i32_0 : i32, i32, i32
  }
  func.func @transform_19(%arg0: i32) -> (i32, i32, i32) {
    %c0_i32 = arith.constant 0 : i32
    %c0_i32_0 = arith.constant 0 : i32
    %c0_i32_1 = arith.constant 0 : i32
    return %arg0, %c0_i32, %c0_i32_0 : i32, i32, i32
  }
  func.func @transform_20(%arg0: i32) -> (i32, i32, i32) {
    %c0_i32 = arith.constant 0 : i32
    %c0_i32_0 = arith.constant 0 : i32
    %c0_i32_1 = arith.constant 0 : i32
    return %arg0, %c0_i32, %c0_i32_0 : i32, i32, i32
  }
  func.func @transform_21(%arg0: i32) -> (i32, i32, i32) {
    %c0_i32 = arith.constant 0 : i32
    %c0_i32_0 = arith.constant 0 : i32
    %c0_i32_1 = arith.constant 0 : i32
    return %arg0, %c0_i32, %c0_i32_0 : i32, i32, i32
  }
  func.func @transform_22(%arg0: i32) -> (i32, i32, i32) {
    %c0_i32 = arith.constant 0 : i32
    %c0_i32_0 = arith.constant 0 : i32
    %c0_i32_1 = arith.constant 0 : i32
    return %arg0, %c0_i32, %c0_i32_0 : i32, i32, i32
  }
  func.func @transform_23(%arg0: i32) -> (i32, i32, i32) {
    %c0_i32 = arith.constant 0 : i32
    %c0_i32_0 = arith.constant 0 : i32
    %c0_i32_1 = arith.constant 0 : i32
    return %arg0, %c0_i32, %c0_i32_0 : i32, i32, i32
  }
  func.func @transform_24(%arg0: i32) -> (i32, i32, i32) {
    %c0_i32 = arith.constant 0 : i32
    %c0_i32_0 = arith.constant 0 : i32
    %c0_i32_1 = arith.constant 0 : i32
    return %arg0, %c0_i32, %c0_i32_0 : i32, i32, i32
  }
  func.func @transform_25(%arg0: i32) -> (i32, i32, i32) {
    %c0_i32 = arith.constant 0 : i32
    %c0_i32_0 = arith.constant 0 : i32
    %c0_i32_1 = arith.constant 0 : i32
    return %arg0, %c0_i32, %c0_i32_0 : i32, i32, i32
  }
  func.func @transform_26(%arg0: i32) -> (i32, i32, i32) {
    %c0_i32 = arith.constant 0 : i32
    %c0_i32_0 = arith.constant 0 : i32
    %c0_i32_1 = arith.constant 0 : i32
    return %arg0, %c0_i32, %c0_i32_0 : i32, i32, i32
  }
  func.func @transform_27(%arg0: i32) -> (i32, i32, i32) {
    %c0_i32 = arith.constant 0 : i32
    %c0_i32_0 = arith.constant 0 : i32
    %c0_i32_1 = arith.constant 0 : i32
    return %arg0, %c0_i32, %c0_i32_0 : i32, i32, i32
  }
  func.func @transform_28(%arg0: i32) -> (i32, i32) {
    %c0_i32 = arith.constant 0 : i32
    %c0_i32_0 = arith.constant 0 : i32
    %c0_i32_1 = arith.constant 0 : i32
    return %c0_i32, %c0_i32_0 : i32, i32
  }
}

</mosaic_0001>

<bundles_post_ra>
// kernel: tpu_custom_call.1
= control target key start
LH: loop header
LB: loop body
LE: loop exit
PB: predicated region body
PF: predicated region fallthrough
CT: control target
= control target key end

     0   :  { %s28470_s0 = inlined_call_operand.vmem [shape: f32[32,32], index: 0, kind: input, shape index: {}]   ;;  %s28471_s1 = inlined_call_operand.hbm [shape: f32[20,32], index: 1, kind: input, shape index: {}]   ;;  %s28472_s2 = inlined_call_operand.hbm [shape: f32[32,32], index: 2, kind: input, shape index: {}]   ;;  %s28473_s3 = inlined_call_operand.vmem [shape: f32[32,20], index: 3, kind: input, shape index: {}]   ;;  %s28474_s4 = inlined_call_operand.vmem [shape: f32[2,32,32], index: 4, kind: input, shape index: {}]   ;;  %s28475_s5 = inlined_call_operand.vmem [shape: f32[2,32,32], index: 5, kind: input, shape index: {}]   ;;  %s28476_s6 = inlined_call_operand.vmem [shape: f32[2,32,32], index: 6, kind: input, shape index: {}]   ;;  %s28477_s7 = inlined_call_operand.vmem [shape: f32[2,32,32], index: 7, kind: input, shape index: {}]   ;;  %s28478_s8 = inlined_call_operand.vmem [shape: f32[2,1,32], index: 8, kind: input, shape index: {}]   ;;  %s28479_s9 = inlined_call_operand.vmem [shape: f32[2,1,32], index: 9, kind: input, shape index: {}]   ;;  %s28480_s10 = inlined_call_operand.vmem [shape: f32[2,1,32], index: 10, kind: input, shape index: {}]   ;;  %s28481_s11 = inlined_call_operand.vmem [shape: f32[2,1,32], index: 11, kind: input, shape index: {}]   ;;  %s28482_s12 = inlined_call_operand.vmem [shape: f32[2,32,32], index: 12, kind: input, shape index: {}]   ;;  %s28483_s13 = inlined_call_operand.hbm [shape: f32[2,32,32], index: 13, kind: input, shape index: {}]   ;;  %s28484_s14 = inlined_call_operand.hbm [shape: f32[2,32,32], index: 14, kind: input, shape index: {}]   ;;  %s28485_s15 = inlined_call_operand.hbm [shape: f32[2,32,32], index: 15, kind: input, shape index: {}]   ;;  %s28486_s16 = inlined_call_operand.hbm [shape: f32[2,1,32], index: 16, kind: input, shape index: {}]   ;;  %s28487_s17 = inlined_call_operand.hbm [shape: f32[2,1,32], index: 17, kind: input, shape index: {}]   ;;  %s28488_s18 = inlined_call_operand.hbm [shape: f32[2,1,32], index: 18, kind: input, shape index: {}]   ;;  %s28489_s19 = inlined_call_operand.hbm [shape: f32[2,1,32], index: 19, kind: input, shape index: {}]   ;;  %s28490_s20 = inlined_call_operand.hbm [shape: f32[2,1,32], index: 20, kind: input, shape index: {}]   ;;  %s28491_s21 = inlined_call_operand.hbm [shape: f32[2,1,32], index: 21, kind: input, shape index: {}]   ;;  %s28492_s22 = inlined_call_operand.hbm [shape: f32[2,1,32], index: 22, kind: input, shape index: {}]   ;;  %s28493_s23 = inlined_call_operand.hbm [shape: f32[2,1,32], index: 23, kind: input, shape index: {}]   ;;  %s28494_s24 = inlined_call_operand.hbm [shape: f32[2,1,32], index: 24, kind: input, shape index: {}]   ;;  %s28495_s25 = inlined_call_operand.hbm [shape: f32[2,1,32], index: 25, kind: input, shape index: {}]   ;;  %s28496_s26 = inlined_call_operand.hbm [shape: f32[2,32,128], index: 26, kind: input, shape index: {}]   ;;  %s28497_s27 = inlined_call_operand.vmem [shape: f32[2,128,32], index: 27, kind: input, shape index: {}]   ;;  %s28498_s28 = inlined_call_operand.hbm [shape: f32[32,32], index: 28, kind: output, shape index: {}]  }
   0x1   :  { %28571 = sst [smem:[#allocation55_spill]] %s28470_s0 }
   0x2   :  { %28572 = sst [smem:[#allocation56_spill]] %s28471_s1 }
   0x3   :  { %28573 = sst [smem:[#allocation57_spill]] %s28472_s2 }
   0x4   :  { %28574 = sst [smem:[#allocation58_spill]] %s28473_s3 }
   0x5   :  { %28575 = sst [smem:[#allocation59_spill]] %s28474_s4 }
   0x6   :  { %28576 = sst [smem:[#allocation60_spill]] %s28475_s5 }
   0x7   :  { %28577 = sst [smem:[#allocation61_spill]] %s28476_s6 }
   0x8   :  { %28578 = sst [smem:[#allocation62_spill]] %s28477_s7 }
   0x9   :  { %28579 = sst [smem:[#allocation63_spill]] %s28478_s8 }
   0xa   :  { %28580 = sst [smem:[#allocation64_spill]] %s28479_s9 }
   0xb   :  { %28581 = sst [smem:[#allocation65_spill]] %s28480_s10 }
   0xc   :  { %28582 = sst [smem:[#allocation66_spill]] %s28481_s11 }
   0xd   :  { %28583 = sst [smem:[#allocation67_spill]] %s28482_s12 }
   0xe   :  { %28584 = sst [smem:[#allocation68_spill]] %s28483_s13 }
   0xf   :  { %28585 = sst [smem:[#allocation69_spill]] %s28484_s14 }
  0x10   :  { %28586 = sst [smem:[#allocation70_spill]] %s28485_s15 }
  0x11   :  { %28587 = sst [smem:[#allocation71_spill]] %s28486_s16 }
  0x12   :  { %28588 = sst [smem:[#allocation72_spill]] %s28487_s17 }
  0x13   :  { %28589 = sst [smem:[#allocation73_spill]] %s28488_s18 }
  0x14   :  { %28590 = sst [smem:[#allocation74_spill]] %s28489_s19 }
  0x15   :  { %28591 = sst [smem:[#allocation75_spill]] %s28490_s20 }
  0x16   :  { %28592 = sst [smem:[#allocation76_spill]] %s28491_s21 }
  0x17   :  { %28593 = sst [smem:[#allocation77_spill]] %s28492_s22 }
  0x18   :  { %28594 = sst [smem:[#allocation78_spill]] %s28493_s23 }
  0x19   :  { %28595 = sst [smem:[#allocation79_spill]] %s28497_s27 }
  0x1a   :  { %28596 = sst [smem:[#allocation80_spill]] %s28498_s28 }
  0x1b   :  { %33 = vsyncpa [#allocation3], 0 }
  0x1c   :  { %34 = vsyncpa [#allocation6], 0 }
  0x1d   :  { %35 = vsyncpa [#allocation4], 0  ;;  %s23699_s8 = smov 0   ;;  %s23701_s5 = smov 0  }
  0x1e   :  { %s23703_s9 = smov 0   ;;  %s23705_s30 = smov 0  }
  0x1f LB: > { %28597 = sst [smem:[#allocation26_spill]] %s23514_s5  ;;  %s23718_s3 = sadd.s32 4294967295, %s23522_s30   ;;  %s23522_s30 = sphi %s23705_s30, %s28721_s30   ;;  %s23518_s9 = sphi %s23703_s9, %s28724_s9   ;;  %s23514_s5 = sphi %s23701_s5, %s28723_s5   ;;  %s23510_s8 = sphi %s23699_s8, %s28722_s8  }
  0x20   : > { %28598 = sst [smem:[#allocation27_spill]] %s23518_s9  ;;  %s23721_s6 = sadd.s32 1, %s23522_s30  }
  0x21   : > { %28599 = sst [smem:[#allocation28_spill]] %s23718_s3  ;;  %s363_s10 = ssub.s32 %s23522_s30, %s23721_s6 }
  0x22   : > { %28600 = sst [smem:[#allocation29_spill]] %s23721_s6  ;;  %s366_s0 = sadd.s32 1, %s23518_s9 }
  0x23   : > { %p364_p0 = scmp.eq.s32.totalorder %s363_s10, 0  ;;  %p373_p1 = scmp.ne.s32.totalorder %s23518_s9, %s23514_s5 }
  0x24   : > { %p374_p2 = scmp.eq.s32.totalorder %s23522_s30, 0  ;;  %p379_p3 = scmp.ne.s32.totalorder %s23514_s5, %s23510_s8 }
  0x25   : > { %s23731_s11 = scalar_select %p364_p0, %s23518_s9, %s366_s0  }
  0x26   : > { %p23733_p4 = por %p374_p2, %p373_p1  ;;  %p28503_p5 = scmp.eq.s32.totalorder %s23718_s3, 0 }
  0x27   : > { %28601 = sst [smem:[#allocation30_spill]] %s23731_s11  ;;  %p19169_p6 = scmp.ge.s32.totalorder %s23522_s30, 1 }
  0x28   : > { %p775_p7 = scmp.lt.s32.totalorder %s23522_s30, 3  ;;  %p23742_p8 = por %p28503_p5, %p379_p3 }
  0x29   : > { %s23524_s12 = smov [#allocation2]   ;;  %s23525_s8 = smov [#allocation5]  }
  0x2a   : > { %s28603_s2 = scalar_select %p23742_p8, 1, 0 }
  0x2b   : > { %p23747_p10 = pnand %p19169_p6, %p775_p7  ;;  %s790_s1 = sshll.u32 %s23524_s12, 4  ;;  %s791_s1 = int_to_ptr.vmem [resolvable:$true] %s790_s1 }
  0x2c   : > { %28604 = sst [smem:[#allocation31_spill]] %s28603_s2  ;;  %s803_s10 = sshll.u32 %s23525_s8, 4  ;;  %s804_s10 = int_to_ptr.vmem [resolvable:$true] %s803_s10 }
  0x2d   : > { %s28605_s7 = scalar_select %p23747_p10, 1, 0 }
  0x2e   : > { %p22811_p11 = pneg %p23747_p10  ;;  %s23047_s0 = scalar_lea.vmem %s791_s1, 384 }
  0x2f   : > { %28606 = sst [smem:[#allocation32_spill]] %s28605_s7  ;;  %p23048_p0 = scmp.ne.s32.totalorder %s791_s1, %s23047_s0 }
  0x30   : > { %p23755_p12 = pnand %p22811_p11, %p28503_p5  ;;  %p23055_p3 = scmp.lt.s32.totalorder %s791_s1, %s791_s1 }
  0x31   : > { %p23056_p6 = scmp.lt.s32.totalorder %s23047_s0, %s23047_s0 }
  0x32   : > { %p23038_p13 = pneg %p23755_p12 }
  0x33   : > { %p23057_p7 = por %p23056_p6, %p23055_p3 }
  0x34   : > { %p23050_p1 = pnand %p23048_p0, %p23038_p13 }
  0x36   : > { %p23051_p2 = pneg %p23050_p1 }
  0x38   : > { %p23058_p11 = pnand %p23057_p7, %p23051_p2 }
  0x3a   : > { %23061 = shalt.err (!%p23058_p11)
}
  0x3b   : > { %s23526_s12 = smov 128   ;;  %s23527_s11 = smov 8  }
  0x3c   : > { %s28608_s28 = sld [smem:[#allocation56_spill]]  ;;  %s23073_s27 = scalar_lea.vmem %s804_s10, 512 }
  0x3d   : > { %p23074_p9 = scmp.ne.s32.totalorder %s804_s10, %s23073_s27  ;;  %p23081_p5 = scmp.lt.s32.totalorder %s804_s10, %s804_s10 }
  0x3e   : > { %p23082_p8 = scmp.lt.s32.totalorder %s23073_s27, %s23073_s27 }
  0x3f   : > { %p23076_p0 = pnand %p23074_p9, %p23038_p13 }
  0x40   : > { %p23083_p3 = por %p23082_p8, %p23081_p5 }
  0x41   : > { %p23077_p1 = pneg %p23076_p0 }
  0x42   : > { %22814 = dma.hbm_to_vmem [thread:$0]  (!%p23755_p12), %s28608_s28, 384, %s791_s1, [#allocation3], %s23526_s12, %s23526_s12, %s23527_s11  }
  0x43   : > { %p23084_p2 = pnand %p23083_p3, %p23077_p1 }
  0x45   : > { %23087 = shalt.err (!%p23084_p2)
}
  0x46   : > { %s28609_s5 = sld [smem:[#allocation57_spill]]  ;;  %p19172_p6 = scmp.ge.s32.totalorder %s23522_s30, 2 }
  0x48   : > { %816 = sbr.rel (%p19172_p6) target bundleno = 420 (0x1a4), region = 32 }
  0x4c   : > { %22817 = dma.hbm_to_vmem [thread:$0]  (!%p23755_p12), %s28609_s5, 512, %s804_s10, [#allocation6], %s23526_s12, %s23526_s12, %s23527_s11  }
  0x4d   : > { %s884_s28 = sand.u32 1, %s23522_s30   ;;  %s23780_s6 = sand.u32 1, %s23518_s9  }
  0x4e   : > { %s23783_s27 = sshll.u32 %s23780_s6, 5  ;;  %s23786_s1 = sshll.u32 %s23522_s30, 9 }
  0x4f   : > { %28610 = sst [smem:[#allocation33_spill]] %s23783_s27  ;;  %s888_s11 = scalar_lea.vmem [#allocation7], %s23783_s27 }
  0x50   : > { %s28611_s13 = sld [smem:[#allocation68_spill]]  ;;  %s895_s10 = sshll.u32 %s888_s11, 4  ;;  %s23795_s10 = int_to_ptr.vmem [resolvable:$true] %s895_s10 }
  0x51   : > { %s23797_s12 = scalar_lea.sflag [#allocation3], %s884_s28 }
  0x56   : > { %s23792_s5 = scalar_lea.hbm %s28611_s13, %s23786_s1  ;;  %s23092_s4 = scalar_lea.hbm %s28611_s13, 1024 }
  0x57   : > { %s23088_s8 = scalar_lea.hbm %s23792_s5, 512  ;;  %p23093_p12 = scmp.lt.s32.totalorder %s23792_s5, %s28611_s13 }
  0x58   : > { %p23089_p5 = scmp.ne.s32.totalorder %s23792_s5, %s23088_s8  ;;  %p23094_p13 = scmp.lt.s32.totalorder %s23092_s4, %s23088_s8 }
  0x5a   : > { %p23090_p8 = pnand %p23089_p5, %p23733_p4  ;;  %p23095_p7 = por %p23094_p13, %p23093_p12 }
  0x5c   : > { %p23091_p9 = pneg %p23090_p8 }
  0x5e   : > { %p23096_p11 = pnand %p23095_p7, %p23091_p9 }
  0x60   : > { %23099 = shalt.err (!%p23096_p11)
}
  0x61   : > { %s23100_s28 = scalar_lea.vmem %s23795_s10, 512  ;;  %s23528_s11 = smov [#allocation7]  }
  0x62   : > { %p23101_p0 = scmp.ne.s32.totalorder %s23795_s10, %s23100_s28  ;;  %s23104_s9 = sshll.u32 %s23528_s11, 4  ;;  %s23105_s9 = int_to_ptr.vmem [resolvable:$false] %s23104_s9 }
  0x63   : > { %s23106_s0 = scalar_lea.vmem %s23105_s9, 1024  ;;  %p23107_p2 = scmp.lt.s32.totalorder %s23795_s10, %s23105_s9 }
  0x64   : > { %p23102_p1 = pnand %p23101_p0, %p23733_p4  ;;  %p23108_p6 = scmp.lt.s32.totalorder %s23106_s0, %s23100_s28 }
  0x66   : > { %p23103_p3 = pneg %p23102_p1  ;;  %p23109_p5 = por %p23108_p6, %p23107_p2 }
  0x68   : > { %p23110_p8 = pnand %p23109_p5, %p23103_p3 }
  0x6a   : > { %23113 = shalt.err (!%p23110_p8)
}
  0x6b   : > { %s28513_s3 = smov 128   ;;  %s28515_s8 = smov 8  }
  0x6c   : > { %22775 = dma.hbm_to_vmem [thread:$0]  (%p23733_p4), %s23792_s5, 512, %s23795_s10, %s23797_s12, %s28513_s3, %s28513_s3, %s28515_s8  }
  0x6d   : > { %s28612_s14 = sld [smem:[#allocation69_spill]]  ;;  %s909_s11 = scalar_lea.vmem [#allocation8], %s23783_s27 }
  0x6e   : > { %s916_s9 = sshll.u32 %s909_s11, 4  ;;  %s917_s9 = int_to_ptr.vmem [resolvable:$true] %s916_s9 }
  0x73   : > { %s23827_s28 = scalar_lea.hbm %s28612_s14, %s23786_s1  ;;  %s23118_s5 = scalar_lea.hbm %s28612_s14, 1024 }
  0x74   : > { %s23114_s0 = scalar_lea.hbm %s23827_s28, 512  ;;  %p23119_p7 = scmp.lt.s32.totalorder %s23827_s28, %s28612_s14 }
  0x75   : > { %p23115_p9 = scmp.ne.s32.totalorder %s23827_s28, %s23114_s0  ;;  %p23120_p11 = scmp.lt.s32.totalorder %s23118_s5, %s23114_s0 }
  0x77   : > { %p23116_p12 = pnand %p23115_p9, %p23733_p4  ;;  %p23121_p0 = por %p23120_p11, %p23119_p7 }
  0x79   : > { %p23117_p13 = pneg %p23116_p12 }
  0x7b   : > { %p23122_p1 = pnand %p23121_p0, %p23117_p13 }
  0x7d   : > { %23125 = shalt.err (!%p23122_p1)
}
  0x7e   : > { %s23126_s4 = scalar_lea.vmem %s917_s9, 512  ;;  %s23531_s2 = smov [#allocation8]  }
  0x7f   : > { %p23127_p3 = scmp.ne.s32.totalorder %s917_s9, %s23126_s4  ;;  %s23130_s11 = sshll.u32 %s23531_s2, 4  ;;  %s23131_s11 = int_to_ptr.vmem [resolvable:$false] %s23130_s11 }
  0x80   : > { %s23132_s8 = scalar_lea.vmem %s23131_s11, 1024  ;;  %p23133_p5 = scmp.lt.s32.totalorder %s917_s9, %s23131_s11 }
  0x81   : > { %p23128_p2 = pnand %p23127_p3, %p23733_p4  ;;  %p23134_p8 = scmp.lt.s32.totalorder %s23132_s8, %s23126_s4 }
  0x83   : > { %p23129_p6 = pneg %p23128_p2  ;;  %p23135_p9 = por %p23134_p8, %p23133_p5 }
  0x85   : > { %p23136_p12 = pnand %p23135_p9, %p23129_p6 }
  0x87   : > { %23139 = shalt.err (!%p23136_p12)
}
  0x88   : > { %s28613_s13 = smov 8   ;;  %s28614_s7 = smov 128  }
  0x89   : > { %22776 = dma.hbm_to_vmem [thread:$0]  (%p23733_p4), %s23827_s28, 512, %s917_s9, %s23797_s12, %s28614_s7, %s28614_s7, %s28613_s13  }
  0x8a   : > { %s28615_s15 = sld [smem:[#allocation70_spill]]  ;;  %s930_s8 = scalar_lea.vmem [#allocation9], %s23783_s27 }
  0x8b   : > { %s937_s10 = sshll.u32 %s930_s8, 4  ;;  %s938_s10 = int_to_ptr.vmem [resolvable:$true] %s937_s10 }
  0x90   : > { %s23854_s5 = scalar_lea.hbm %s28615_s15, %s23786_s1  ;;  %s23144_s28 = scalar_lea.hbm %s28615_s15, 1024 }
  0x91   : > { %s23140_s4 = scalar_lea.hbm %s23854_s5, 512  ;;  %p23145_p0 = scmp.lt.s32.totalorder %s23854_s5, %s28615_s15 }
  0x92   : > { %p23141_p13 = scmp.ne.s32.totalorder %s23854_s5, %s23140_s4  ;;  %p23146_p1 = scmp.lt.s32.totalorder %s23144_s28, %s23140_s4 }
  0x94   : > { %p23142_p7 = pnand %p23141_p13, %p23733_p4  ;;  %p23147_p3 = por %p23146_p1, %p23145_p0 }
  0x96   : > { %p23143_p11 = pneg %p23142_p7 }
  0x98   : > { %p23148_p2 = pnand %p23147_p3, %p23143_p11 }
  0x9a   : > { %23151 = shalt.err (!%p23148_p2)
}
  0x9b   : > { %s23152_s3 = scalar_lea.vmem %s938_s10, 512  ;;  %s23532_s0 = smov [#allocation9]  }
  0x9c   : > { %p23153_p6 = scmp.ne.s32.totalorder %s938_s10, %s23152_s3  ;;  %s23156_s8 = sshll.u32 %s23532_s0, 4  ;;  %s23157_s8 = int_to_ptr.vmem [resolvable:$false] %s23156_s8 }
  0x9d   : > { %s23158_s27 = scalar_lea.vmem %s23157_s8, 1024  ;;  %p23159_p9 = scmp.lt.s32.totalorder %s938_s10, %s23157_s8 }
  0x9e   : > { %p23154_p5 = pnand %p23153_p6, %p23733_p4  ;;  %p23160_p12 = scmp.lt.s32.totalorder %s23158_s27, %s23152_s3 }
  0xa0   : > { %p23155_p8 = pneg %p23154_p5  ;;  %p23161_p13 = por %p23160_p12, %p23159_p9 }
  0xa2   : > { %p23162_p7 = pnand %p23161_p13, %p23155_p8 }
  0xa4   : > { %23165 = shalt.err (!%p23162_p7)
}
  0xa5   : > { %22777 = dma.hbm_to_vmem [thread:$0]  (%p23733_p4), %s23854_s5, 512, %s938_s10, %s23797_s12, %s28614_s7, %s28614_s7, %s28613_s13  }
  0xa6   : > { %s23878_s14 = sshll.u32 %s23522_s30, 4  ;;  %s950_s4 = scalar_lea.vmem [#allocation10], %s23780_s6 }
  0xa7   : > { %s957_s2 = sshll.u32 %s950_s4, 4  ;;  %s28616_s16 = sld [smem:[#allocation71_spill]]  ;;  %s958_s2 = int_to_ptr.vmem [resolvable:$true] %s957_s2 }
  0xad   : > { %s955_s28 = scalar_lea.hbm %s28616_s16, %s23878_s14  ;;  %s23170_s8 = scalar_lea.hbm %s28616_s16, 32 }
  0xae   : > { %s23166_s9 = scalar_lea.hbm %s955_s28, 16  ;;  %p23171_p3 = scmp.lt.s32.totalorder %s955_s28, %s28616_s16 }
  0xaf   : > { %p23167_p11 = scmp.ne.s32.totalorder %s955_s28, %s23166_s9  ;;  %p23172_p2 = scmp.lt.s32.totalorder %s23170_s8, %s23166_s9 }
  0xb1   : > { %p23168_p0 = pnand %p23167_p11, %p23733_p4  ;;  %p23173_p6 = por %p23172_p2, %p23171_p3 }
  0xb3   : > { %p23169_p1 = pneg %p23168_p0 }
  0xb5   : > { %p23174_p5 = pnand %p23173_p6, %p23169_p1 }
  0xb7   : > { %23177 = shalt.err (!%p23174_p5)
}
  0xb8   : > { %s23178_s10 = scalar_lea.vmem %s958_s2, 16  ;;  %s23533_s4 = smov [#allocation10]  }
  0xb9   : > { %p23179_p8 = scmp.ne.s32.totalorder %s958_s2, %s23178_s10  ;;  %s23182_s27 = sshll.u32 %s23533_s4, 4  ;;  %s23183_s27 = int_to_ptr.vmem [resolvable:$false] %s23182_s27 }
  0xba   : > { %s23184_s11 = scalar_lea.vmem %s23183_s27, 32  ;;  %p23185_p13 = scmp.lt.s32.totalorder %s958_s2, %s23183_s27 }
  0xbb   : > { %p23180_p9 = pnand %p23179_p8, %p23733_p4  ;;  %p23186_p7 = scmp.lt.s32.totalorder %s23184_s11, %s23178_s10 }
  0xbd   : > { %p23181_p12 = pneg %p23180_p9  ;;  %p23187_p11 = por %p23186_p7, %p23185_p13 }
  0xbf   : > { %p23188_p0 = pnand %p23187_p11, %p23181_p12 }
  0xc1   : > { %23191 = shalt.err (!%p23188_p0)
}
  0xc2   : > { %22778 = dma.hbm_to_vmem [thread:$0]  (%p23733_p4), %s955_s28, 16, %s958_s2, %s23797_s12  }
  0xc3   : > { %s28617_s17 = sld [smem:[#allocation72_spill]]  ;;  %s967_s8 = scalar_lea.vmem [#allocation11], %s23780_s6 }
  0xc4   : > { %s974_s5 = sshll.u32 %s967_s8, 4  ;;  %s28618_s18 = sld [smem:[#allocation73_spill]]  ;;  %s975_s5 = int_to_ptr.vmem [resolvable:$true] %s974_s5 }
  0xc9   : > { %s23902_s0 = scalar_lea.hbm %s28617_s17, %s23878_s14  ;;  %s23196_s11 = scalar_lea.hbm %s28617_s17, 32 }
  0xca   : > { %s23909_s4 = scalar_lea.hbm %s28618_s18, %s23878_s14  ;;  %s23192_s27 = scalar_lea.hbm %s23902_s0, 16 }
  0xcb   : > { %p23193_p1 = scmp.ne.s32.totalorder %s23902_s0, %s23192_s27  ;;  %p23197_p6 = scmp.lt.s32.totalorder %s23902_s0, %s28617_s17 }
  0xcc   : > { %p23198_p5 = scmp.lt.s32.totalorder %s23196_s11, %s23192_s27 }
  0xcd   : > { %p23194_p3 = pnand %p23193_p1, %p23733_p4 }
  0xce   : > { %p23199_p8 = por %p23198_p5, %p23197_p6 }
  0xcf   : > { %p23195_p2 = pneg %p23194_p3 }
  0xd1   : > { %p23200_p9 = pnand %p23199_p8, %p23195_p2 }
  0xd3   : > { %23203 = shalt.err (!%p23200_p9)
}
  0xd4   : > { %s23204_s8 = scalar_lea.vmem %s975_s5, 16  ;;  %s23534_s30 = smov [#allocation11]  }
  0xd5   : > { %p23205_p12 = scmp.ne.s32.totalorder %s975_s5, %s23204_s8  ;;  %s23208_s10 = sshll.u32 %s23534_s30, 4  ;;  %s23209_s10 = int_to_ptr.vmem [resolvable:$false] %s23208_s10 }
  0xd6   : > { %s23210_s15 = scalar_lea.vmem %s23209_s10, 32  ;;  %p23211_p11 = scmp.lt.s32.totalorder %s975_s5, %s23209_s10 }
  0xd7   : > { %p23206_p13 = pnand %p23205_p12, %p23733_p4  ;;  %p23212_p0 = scmp.lt.s32.totalorder %s23210_s15, %s23204_s8 }
  0xd9   : > { %p23207_p7 = pneg %p23206_p13  ;;  %p23213_p1 = por %p23212_p0, %p23211_p11 }
  0xdb   : > { %p23214_p3 = pnand %p23213_p1, %p23207_p7 }
  0xdd   : > { %23217 = shalt.err (!%p23214_p3)
}
  0xde   : > { %22779 = dma.hbm_to_vmem [thread:$0]  (%p23733_p4), %s23902_s0, 16, %s975_s5, %s23797_s12  }
  0xdf   : > { %s984_s27 = scalar_lea.vmem [#allocation12], %s23780_s6  ;;  %s28619_s19 = sld [smem:[#allocation74_spill]] }
  0xe0   : > { %s991_s2 = sshll.u32 %s984_s27, 4  ;;  %s23218_s9 = scalar_lea.hbm %s23909_s4, 16  ;;  %s992_s2 = int_to_ptr.vmem [resolvable:$true] %s991_s2 }
  0xe1   : > { %p23219_p2 = scmp.ne.s32.totalorder %s23909_s4, %s23218_s9  ;;  %s23222_s30 = scalar_lea.hbm %s28618_s18, 32 }
  0xe2   : > { %p23223_p8 = scmp.lt.s32.totalorder %s23909_s4, %s28618_s18  ;;  %p23224_p9 = scmp.lt.s32.totalorder %s23222_s30, %s23218_s9 }
  0xe3   : > { %p23220_p6 = pnand %p23219_p2, %p23733_p4 }
  0xe4   : > { %p23225_p12 = por %p23224_p9, %p23223_p8 }
  0xe5   : > { %s23933_s15 = scalar_lea.hbm %s28619_s19, %s23878_s14  ;;  %p23221_p5 = pneg %p23220_p6 }
  0xe7   : > { %p23226_p13 = pnand %p23225_p12, %p23221_p5 }
  0xe9   : > { %23229 = shalt.err (!%p23226_p13)
}
  0xea   : > { %s23230_s0 = scalar_lea.vmem %s992_s2, 16  ;;  %s23535_s5 = smov [#allocation12]  }
  0xeb   : > { %p23231_p7 = scmp.ne.s32.totalorder %s992_s2, %s23230_s0  ;;  %s23234_s27 = sshll.u32 %s23535_s5, 4  ;;  %s23235_s27 = int_to_ptr.vmem [resolvable:$false] %s23234_s27 }
  0xec   : > { %s23236_s28 = scalar_lea.vmem %s23235_s27, 32  ;;  %p23237_p1 = scmp.lt.s32.totalorder %s992_s2, %s23235_s27 }
  0xed   : > { %p23232_p11 = pnand %p23231_p7, %p23733_p4  ;;  %p23238_p3 = scmp.lt.s32.totalorder %s23236_s28, %s23230_s0 }
  0xef   : > { %p23233_p0 = pneg %p23232_p11  ;;  %p23239_p2 = por %p23238_p3, %p23237_p1 }
  0xf1   : > { %p23240_p6 = pnand %p23239_p2, %p23233_p0 }
  0xf3   : > { %23243 = shalt.err (!%p23240_p6)
}
  0xf4   : > { %22780 = dma.hbm_to_vmem [thread:$0]  (%p23733_p4), %s23909_s4, 16, %s992_s2, %s23797_s12  }
  0xf5   : > { %s1001_s16 = scalar_lea.vmem [#allocation13], %s23780_s6  ;;  %s28620_s20 = sld [smem:[#allocation75_spill]] }
  0xf6   : > { %s1008_s11 = sshll.u32 %s1001_s16, 4  ;;  %s23244_s30 = scalar_lea.hbm %s23933_s15, 16  ;;  %s1009_s11 = int_to_ptr.vmem [resolvable:$true] %s1008_s11 }
  0xf7   : > { %p23245_p5 = scmp.ne.s32.totalorder %s23933_s15, %s23244_s30  ;;  %s23248_s5 = scalar_lea.hbm %s28619_s19, 32 }
  0xf8   : > { %p23249_p12 = scmp.lt.s32.totalorder %s23933_s15, %s28619_s19  ;;  %p23250_p13 = scmp.lt.s32.totalorder %s23248_s5, %s23244_s30 }
  0xf9   : > { %p23246_p8 = pnand %p23245_p5, %p23733_p4 }
  0xfa   : > { %p23251_p7 = por %p23250_p13, %p23249_p12 }
  0xfb   : > { %s23957_s8 = scalar_lea.hbm %s28620_s20, %s23878_s14  ;;  %p23247_p9 = pneg %p23246_p8 }
  0xfd   : > { %p23252_p11 = pnand %p23251_p7, %p23247_p9 }
  0xff   : > { %23255 = shalt.err (!%p23252_p11)
}
 0x100   : > { %s23256_s4 = scalar_lea.vmem %s1009_s11, 16  ;;  %s23536_s2 = smov [#allocation13]  }
 0x101   : > { %p23257_p0 = scmp.ne.s32.totalorder %s1009_s11, %s23256_s4  ;;  %s23260_s16 = sshll.u32 %s23536_s2, 4  ;;  %s23261_s16 = int_to_ptr.vmem [resolvable:$false] %s23260_s16 }
 0x102   : > { %s23262_s9 = scalar_lea.vmem %s23261_s16, 32  ;;  %p23263_p2 = scmp.lt.s32.totalorder %s1009_s11, %s23261_s16 }
 0x103   : > { %p23258_p1 = pnand %p23257_p0, %p23733_p4  ;;  %p23264_p6 = scmp.lt.s32.totalorder %s23262_s9, %s23256_s4 }
 0x105   : > { %p23259_p3 = pneg %p23258_p1  ;;  %p23265_p5 = por %p23264_p6, %p23263_p2 }
 0x107   : > { %p23266_p8 = pnand %p23265_p5, %p23259_p3 }
 0x109   : > { %23269 = shalt.err (!%p23266_p8)
}
 0x10a   : > { %22781 = dma.hbm_to_vmem [thread:$0]  (%p23733_p4), %s23933_s15, 16, %s1009_s11, %s23797_s12  }
 0x10b   : > { %s1018_s3 = scalar_lea.vmem [#allocation14], %s23780_s6  ;;  %s28621_s21 = sld [smem:[#allocation76_spill]] }
 0x10c   : > { %s1025_s30 = sshll.u32 %s1018_s3, 4  ;;  %s23270_s27 = scalar_lea.hbm %s23957_s8, 16  ;;  %s1026_s30 = int_to_ptr.vmem [resolvable:$true] %s1025_s30 }
 0x10d   : > { %p23271_p9 = scmp.ne.s32.totalorder %s23957_s8, %s23270_s27  ;;  %s23274_s2 = scalar_lea.hbm %s28620_s20, 32 }
 0x10e   : > { %p23275_p7 = scmp.lt.s32.totalorder %s23957_s8, %s28620_s20  ;;  %p23276_p11 = scmp.lt.s32.totalorder %s23274_s2, %s23270_s27 }
 0x10f   : > { %p23272_p12 = pnand %p23271_p9, %p23733_p4 }
 0x110   : > { %p23277_p0 = por %p23276_p11, %p23275_p7 }
 0x111   : > { %s23981_s5 = scalar_lea.hbm %s28621_s21, %s23878_s14  ;;  %p23273_p13 = pneg %p23272_p12 }
 0x113   : > { %p23278_p1 = pnand %p23277_p0, %p23273_p13 }
 0x115   : > { %23281 = shalt.err (!%p23278_p1)
}
 0x116   : > { %s23282_s15 = scalar_lea.vmem %s1026_s30, 16  ;;  %s23537_s11 = smov [#allocation14]  }
 0x117   : > { %p23283_p3 = scmp.ne.s32.totalorder %s1026_s30, %s23282_s15  ;;  %s23286_s3 = sshll.u32 %s23537_s11, 4  ;;  %s23287_s3 = int_to_ptr.vmem [resolvable:$false] %s23286_s3 }
 0x118   : > { %s23288_s10 = scalar_lea.vmem %s23287_s3, 32  ;;  %p23289_p5 = scmp.lt.s32.totalorder %s1026_s30, %s23287_s3 }
 0x119   : > { %p23284_p2 = pnand %p23283_p3, %p23733_p4  ;;  %p23290_p8 = scmp.lt.s32.totalorder %s23288_s10, %s23282_s15 }
 0x11b   : > { %p23285_p6 = pneg %p23284_p2  ;;  %p23291_p9 = por %p23290_p8, %p23289_p5 }
 0x11d   : > { %p23292_p12 = pnand %p23291_p9, %p23285_p6 }
 0x11f   : > { %23295 = shalt.err (!%p23292_p12)
}
 0x120   : > { %22782 = dma.hbm_to_vmem [thread:$0]  (%p23733_p4), %s23957_s8, 16, %s1026_s30, %s23797_s12  }
 0x121   : > { %s1035_s0 = scalar_lea.vmem [#allocation15], %s23780_s6  ;;  %s28622_s22 = sld [smem:[#allocation77_spill]] }
 0x122   : > { %s1042_s27 = sshll.u32 %s1035_s0, 4  ;;  %s23296_s16 = scalar_lea.hbm %s23981_s5, 16  ;;  %s1043_s27 = int_to_ptr.vmem [resolvable:$true] %s1042_s27 }
 0x123   : > { %p23297_p13 = scmp.ne.s32.totalorder %s23981_s5, %s23296_s16  ;;  %s23300_s11 = scalar_lea.hbm %s28621_s21, 32 }
 0x124   : > { %p23301_p0 = scmp.lt.s32.totalorder %s23981_s5, %s28621_s21  ;;  %p23302_p1 = scmp.lt.s32.totalorder %s23300_s11, %s23296_s16 }
 0x125   : > { %p23298_p7 = pnand %p23297_p13, %p23733_p4 }
 0x126   : > { %p23303_p3 = por %p23302_p1, %p23301_p0 }
 0x127   : > { %s24005_s2 = scalar_lea.hbm %s28622_s22, %s23878_s14  ;;  %p23299_p11 = pneg %p23298_p7 }
 0x129   : > { %p23304_p2 = pnand %p23303_p3, %p23299_p11 }
 0x12b   : > { %23307 = shalt.err (!%p23304_p2)
}
 0x12c   : > { %s23308_s8 = scalar_lea.vmem %s1043_s27, 16  ;;  %s23538_s30 = smov [#allocation15]  }
 0x12d   : > { %p23309_p6 = scmp.ne.s32.totalorder %s1043_s27, %s23308_s8  ;;  %s23312_s0 = sshll.u32 %s23538_s30, 4  ;;  %s23313_s0 = int_to_ptr.vmem [resolvable:$false] %s23312_s0 }
 0x12e   : > { %s23314_s28 = scalar_lea.vmem %s23313_s0, 32  ;;  %p23315_p9 = scmp.lt.s32.totalorder %s1043_s27, %s23313_s0 }
 0x12f   : > { %p23310_p5 = pnand %p23309_p6, %p23733_p4  ;;  %p23316_p12 = scmp.lt.s32.totalorder %s23314_s28, %s23308_s8 }
 0x131   : > { %p23311_p8 = pneg %p23310_p5  ;;  %p23317_p13 = por %p23316_p12, %p23315_p9 }
 0x133   : > { %p23318_p7 = pnand %p23317_p13, %p23311_p8 }
 0x135   : > { %23321 = shalt.err (!%p23318_p7)
}
 0x136   : > { %22783 = dma.hbm_to_vmem [thread:$0]  (%p23733_p4), %s23981_s5, 16, %s1043_s27, %s23797_s12  }
 0x137   : > { %s1052_s4 = scalar_lea.vmem [#allocation16], %s23780_s6  ;;  %s28623_s23 = sld [smem:[#allocation78_spill]] }
 0x138   : > { %s1059_s16 = sshll.u32 %s1052_s4, 4  ;;  %s23322_s3 = scalar_lea.hbm %s24005_s2, 16  ;;  %s1060_s16 = int_to_ptr.vmem [resolvable:$true] %s1059_s16 }
 0x139   : > { %p23323_p11 = scmp.ne.s32.totalorder %s24005_s2, %s23322_s3  ;;  %s23326_s30 = scalar_lea.hbm %s28622_s22, 32 }
 0x13a   : > { %p23327_p3 = scmp.lt.s32.totalorder %s24005_s2, %s28622_s22  ;;  %p23328_p2 = scmp.lt.s32.totalorder %s23326_s30, %s23322_s3 }
 0x13b   : > { %p23324_p0 = pnand %p23323_p11, %p23733_p4 }
 0x13c   : > { %p23329_p6 = por %p23328_p2, %p23327_p3 }
 0x13d   : > { %s24029_s11 = scalar_lea.hbm %s28623_s23, %s23878_s14  ;;  %p23325_p1 = pneg %p23324_p0 }
 0x13f   : > { %p23330_p5 = pnand %p23329_p6, %p23325_p1 }
 0x141   : > { %23333 = shalt.err (!%p23330_p5)
}
 0x142   : > { %s23334_s5 = scalar_lea.vmem %s1060_s16, 16  ;;  %s23539_s27 = smov [#allocation16]  }
 0x143   : > { %p23335_p8 = scmp.ne.s32.totalorder %s1060_s16, %s23334_s5  ;;  %s23338_s4 = sshll.u32 %s23539_s27, 4  ;;  %s23339_s4 = int_to_ptr.vmem [resolvable:$false] %s23338_s4 }
 0x144   : > { %s23340_s9 = scalar_lea.vmem %s23339_s4, 32  ;;  %p23341_p13 = scmp.lt.s32.totalorder %s1060_s16, %s23339_s4 }
 0x145   : > { %p23336_p9 = pnand %p23335_p8, %p23733_p4  ;;  %p23342_p7 = scmp.lt.s32.totalorder %s23340_s9, %s23334_s5 }
 0x147   : > { %p23337_p12 = pneg %p23336_p9  ;;  %p23343_p11 = por %p23342_p7, %p23341_p13 }
 0x149   : > { %p23344_p0 = pnand %p23343_p11, %p23337_p12 }
 0x14b   : > { %23347 = shalt.err (!%p23344_p0)
}
 0x14c   : > { %22784 = dma.hbm_to_vmem [thread:$0]  (%p23733_p4), %s24005_s2, 16, %s1060_s16, %s23797_s12  }
 0x14d   : > { %s1069_s15 = scalar_lea.vmem [#allocation17], %s23780_s6  ;;  %s24053_s30 = scalar_lea.hbm %s28494_s24, %s23878_s14 }
 0x14e   : > { %s1076_s3 = sshll.u32 %s1069_s15, 4  ;;  %s23348_s0 = scalar_lea.hbm %s24029_s11, 16  ;;  %s1077_s3 = int_to_ptr.vmem [resolvable:$true] %s1076_s3 }
 0x14f   : > { %p23349_p1 = scmp.ne.s32.totalorder %s24029_s11, %s23348_s0  ;;  %s23352_s27 = scalar_lea.hbm %s28623_s23, 32 }
 0x150   : > { %p23353_p6 = scmp.lt.s32.totalorder %s24029_s11, %s28623_s23  ;;  %p23354_p5 = scmp.lt.s32.totalorder %s23352_s27, %s23348_s0 }
 0x151   : > { %p23350_p3 = pnand %p23349_p1, %p23733_p4 }
 0x152   : > { %p23355_p8 = por %p23354_p5, %p23353_p6 }
 0x153   : > { %p23351_p2 = pneg %p23350_p3 }
 0x155   : > { %p23356_p9 = pnand %p23355_p8, %p23351_p2 }
 0x157   : > { %23359 = shalt.err (!%p23356_p9)
}
 0x158   : > { %s23360_s2 = scalar_lea.vmem %s1077_s3, 16  ;;  %s23540_s16 = smov [#allocation17]  }
 0x159   : > { %p23361_p12 = scmp.ne.s32.totalorder %s1077_s3, %s23360_s2  ;;  %s23364_s15 = sshll.u32 %s23540_s16, 4  ;;  %s23365_s15 = int_to_ptr.vmem [resolvable:$false] %s23364_s15 }
 0x15a   : > { %s23366_s10 = scalar_lea.vmem %s23365_s15, 32  ;;  %p23367_p11 = scmp.lt.s32.totalorder %s1077_s3, %s23365_s15 }
 0x15b   : > { %p23362_p13 = pnand %p23361_p12, %p23733_p4  ;;  %p23368_p0 = scmp.lt.s32.totalorder %s23366_s10, %s23360_s2 }
 0x15d   : > { %p23363_p7 = pneg %p23362_p13  ;;  %p23369_p1 = por %p23368_p0, %p23367_p11 }
 0x15f   : > { %p23370_p3 = pnand %p23369_p1, %p23363_p7 }
 0x161   : > { %23373 = shalt.err (!%p23370_p3)
}
 0x162   : > { %22785 = dma.hbm_to_vmem [thread:$0]  (%p23733_p4), %s24029_s11, 16, %s1077_s3, %s23797_s12  }
 0x163   : > { %s1086_s8 = scalar_lea.vmem [#allocation18], %s23780_s6  ;;  %s24077_s27 = scalar_lea.hbm %s28495_s25, %s23878_s14 }
 0x164   : > { %s1093_s0 = sshll.u32 %s1086_s8, 4  ;;  %s23374_s4 = scalar_lea.hbm %s24053_s30, 16  ;;  %s1094_s0 = int_to_ptr.vmem [resolvable:$true] %s1093_s0 }
 0x165   : > { %p23375_p2 = scmp.ne.s32.totalorder %s24053_s30, %s23374_s4  ;;  %s23378_s16 = scalar_lea.hbm %s28494_s24, 32 }
 0x166   : > { %p23379_p8 = scmp.lt.s32.totalorder %s24053_s30, %s28494_s24  ;;  %p23380_p9 = scmp.lt.s32.totalorder %s23378_s16, %s23374_s4 }
 0x167   : > { %p23376_p6 = pnand %p23375_p2, %p23733_p4 }
 0x168   : > { %p23381_p12 = por %p23380_p9, %p23379_p8 }
 0x169   : > { %p23377_p5 = pneg %p23376_p6 }
 0x16b   : > { %p23382_p13 = pnand %p23381_p12, %p23377_p5 }
 0x16d   : > { %23385 = shalt.err (!%p23382_p13)
}
 0x16e   : > { %s23386_s11 = scalar_lea.vmem %s1094_s0, 16  ;;  %s23541_s14 = smov [#allocation18]  }
 0x16f   : > { %p23387_p7 = scmp.ne.s32.totalorder %s1094_s0, %s23386_s11  ;;  %s23390_s3 = sshll.u32 %s23541_s14, 4  ;;  %s23391_s3 = int_to_ptr.vmem [resolvable:$false] %s23390_s3 }
 0x170   : > { %s23392_s8 = scalar_lea.vmem %s23391_s3, 32  ;;  %p23393_p1 = scmp.lt.s32.totalorder %s1094_s0, %s23391_s3 }
 0x171   : > { %p23388_p11 = pnand %p23387_p7, %p23733_p4  ;;  %p23394_p3 = scmp.lt.s32.totalorder %s23392_s8, %s23386_s11 }
 0x173   : > { %p23389_p0 = pneg %p23388_p11  ;;  %p23395_p2 = por %p23394_p3, %p23393_p1 }
 0x175   : > { %p23396_p6 = pnand %p23395_p2, %p23389_p0 }
 0x177   : > { %23399 = shalt.err (!%p23396_p6)
}
 0x178   : > { %22786 = dma.hbm_to_vmem [thread:$0]  (%p23733_p4), %s24053_s30, 16, %s1094_s0, %s23797_s12  }
 0x179   : > { %s1103_s28 = scalar_lea.vmem [#allocation19], %s23780_s6  ;;  %s24101_s2 = scalar_lea.hbm %s28496_s26, %s23786_s1 }
 0x17a   : > { %s1110_s5 = sshll.u32 %s1103_s28, 4  ;;  %s23400_s16 = scalar_lea.hbm %s24077_s27, 16  ;;  %s1111_s5 = int_to_ptr.vmem [resolvable:$true] %s1110_s5 }
 0x17b   : > { %p23401_p5 = scmp.ne.s32.totalorder %s24077_s27, %s23400_s16  ;;  %s23404_s11 = scalar_lea.hbm %s28495_s25, 32 }
 0x17c   : > { %p23405_p12 = scmp.lt.s32.totalorder %s24077_s27, %s28495_s25  ;;  %p23406_p13 = scmp.lt.s32.totalorder %s23404_s11, %s23400_s16 }
 0x17d   : > { %p23402_p8 = pnand %p23401_p5, %p23733_p4 }
 0x17e   : > { %p23407_p7 = por %p23406_p13, %p23405_p12 }
 0x17f   : > { %p23403_p9 = pneg %p23402_p8 }
 0x181   : > { %p23408_p11 = pnand %p23407_p7, %p23403_p9 }
 0x183   : > { %23411 = shalt.err (!%p23408_p11)
}
 0x184   : > { %s23412_s6 = scalar_lea.vmem %s1111_s5, 16  ;;  %s23542_s1 = smov [#allocation19]  }
 0x185   : > { %p23413_p0 = scmp.ne.s32.totalorder %s1111_s5, %s23412_s6  ;;  %s23416_s30 = sshll.u32 %s23542_s1, 4  ;;  %s23417_s30 = int_to_ptr.vmem [resolvable:$false] %s23416_s30 }
 0x186   : > { %s23418_s0 = scalar_lea.vmem %s23417_s30, 32  ;;  %p23419_p2 = scmp.lt.s32.totalorder %s1111_s5, %s23417_s30 }
 0x187   : > { %p23414_p1 = pnand %p23413_p0, %p23733_p4  ;;  %p23420_p6 = scmp.lt.s32.totalorder %s23418_s0, %s23412_s6 }
 0x189   : > { %p23415_p3 = pneg %p23414_p1  ;;  %p23421_p5 = por %p23420_p6, %p23419_p2 }
 0x18b   : > { %p23422_p8 = pnand %p23421_p5, %p23415_p3 }
 0x18d   : > { %23425 = shalt.err (!%p23422_p8)
}
 0x18e   : > { %s28624_s8 = sld [smem:[#allocation33_spill]]  ;;  %s23426_s9 = scalar_lea.hbm %s24101_s2, 512 }
 0x18f   : > { %22787 = dma.hbm_to_vmem [thread:$0]  (%p23733_p4), %s24077_s27, 16, %s1111_s5, %s23797_s12  }
 0x190   : > { %p23427_p9 = scmp.ne.s32.totalorder %s24101_s2, %s23426_s9  ;;  %s23430_s10 = scalar_lea.hbm %s28496_s26, 1024 }
 0x191   : > { %p23431_p7 = scmp.lt.s32.totalorder %s24101_s2, %s28496_s26  ;;  %p23432_p11 = scmp.lt.s32.totalorder %s23430_s10, %s23426_s9 }
 0x192   : > { %p23428_p12 = pnand %p23427_p9, %p23733_p4 }
 0x193   : > { %p23433_p0 = por %p23432_p11, %p23431_p7 }
 0x194   : > { %s1121_s28 = scalar_lea.vmem [#allocation20], %s28624_s8  ;;  %p23429_p13 = pneg %p23428_p12 }
 0x195   : > { %s1128_s4 = sshll.u32 %s1121_s28, 4  ;;  %s1129_s4 = int_to_ptr.vmem [resolvable:$true] %s1128_s4 }
 0x196   : > { %p23434_p1 = pnand %p23433_p0, %p23429_p13 }
 0x198   : > { %23437 = shalt.err (!%p23434_p1)
}
 0x199   : > { %s23438_s27 = scalar_lea.vmem %s1129_s4, 512  ;;  %s23543_s5 = smov [#allocation20]  }
 0x19a   : > { %p23439_p3 = scmp.ne.s32.totalorder %s1129_s4, %s23438_s27  ;;  %s23442_s3 = sshll.u32 %s23543_s5, 4  ;;  %s23443_s3 = int_to_ptr.vmem [resolvable:$false] %s23442_s3 }
 0x19b   : > { %s23444_s6 = scalar_lea.vmem %s23443_s3, 1024  ;;  %p23445_p5 = scmp.lt.s32.totalorder %s1129_s4, %s23443_s3 }
 0x19c   : > { %p23440_p2 = pnand %p23439_p3, %p23733_p4  ;;  %p23446_p8 = scmp.lt.s32.totalorder %s23444_s6, %s23438_s27 }
 0x19e   : > { %p23441_p6 = pneg %p23440_p2  ;;  %p23447_p9 = por %p23446_p8, %p23445_p5 }
 0x1a0   : > { %p23448_p12 = pnand %p23447_p9, %p23441_p6 }
 0x1a2   : > { %23451 = shalt.err (!%p23448_p12)
}
 0x1a3   : > { %22788 = dma.hbm_to_vmem [thread:$0]  (%p23733_p4), %s24101_s2, 512, %s1129_s4, %s23797_s12, %s28614_s7, %s28614_s7, %s28613_s13  }
 0x1a4 PF: > { %1148 = sbr.rel (%p23747_p10) target bundleno = 5278 (0x149e), region = 132 }
 0x1a9   : > { %s28626_s30 = sld [smem:[#allocation28_spill]] }
 0x1af   : > { %p28627_p13 = scmp.eq.s32.totalorder %s28626_s30, 0 }
 0x1b1   : > { %23493 = dma.done.wait (%p28627_p13), [#allocation3], 384   ;;  %p28628_p7 = pmov %p28627_p13 }
 0x1b3   : > { %23495 = vsyncadd (%p28628_p7), [#allocation3], 4294966912  ;;  %p28629_p11 = pmov %p28628_p7 }
 0x1b4   : > { %p28630_p0 = pmov %p28628_p7 }
 0x1b5   : > { %23497 = dma.done.wait (%p28629_p11), [#allocation6], 512  }
 0x1b6   : > { %23499 = vsyncadd (%p28630_p0), [#allocation6], 4294966784  ;;  %s28631_s29 = sld [smem:[#allocation26_spill]]  ;;  %s1158_s12 = sand.u32 1, %s28626_s30  }
 0x1b7   : > { %s28632_s0 = sld [smem:[#allocation31_spill]]  ;;  %s1159_s2 = scalar_lea.sflag [#allocation3], %s1158_s12 }
 0x1bc   : > { %s24153_s13 = sand.u32 1, %s28631_s29  }
 0x1bd   : > { %s24156_s7 = sshll.u32 %s24153_s13, 5  ;;  %p28633_p4 = scmp.ne.s32.totalorder %s28632_s0, 0 }
 0x1be   : > { %s24159_s8 = scalar_lea.vmem [#allocation7], %s24156_s7 }
 0x1bf   : > { %23501 = dma.done.wait (%p28633_p4), %s1159_s2, 2208  }
 0x1c0   : > { %23503 = vsyncadd (%p28633_p4), %s1159_s2, 4294965088  ;;  %p1434_p10 = scmp.lt.s32.totalorder %s28626_s30, 1  ;;  %s28635_s27 = sld [smem:[#allocation59_spill]] }
 0x1c1   : > { %s28636_s1 = sld [smem:[#allocation60_spill]]  ;;  %s24218_s6 = scalar_lea.vmem [#allocation8], %s24156_s7 }
 0x1c2   : > { %s24167_s28 = scalar_select %p1434_p10, %s28626_s30, 1 }
 0x1c3   : > { %s28637_s2 = sld [smem:[#allocation61_spill]]  ;;  %s24221_s18 = scalar_lea.vmem [#allocation9], %s24156_s7 }
 0x1c4   : > { %s19237_s4 = sshll.u32 %s24167_s28, 5  ;;  %s28638_s15 = sld [smem:[#allocation62_spill]] }
 0x1c5   : > { %s28642_s16 = sld [smem:[#allocation67_spill]]  ;;  %s19242_s22 = sshll.u32 %s24167_s28, 7 }
 0x1c6   : > { %s24177_s5 = scalar_lea.vmem %s28635_s27, %s19237_s4  ;;  %s28643_s10 = sld [smem:[#allocation79_spill]] }
 0x1c7   : > { %s24182_s29 = scalar_lea.vmem %s28636_s1, %s19237_s4  ;;  %s1188_s1 = scalar_lea.vmem [#allocation10], %s24153_s13 }
 0x1c8   : > { %s1220_s20 = scalar_lea.vmem [#allocation14], %s24153_s13  ;;  %s1228_s19 = scalar_lea.vmem [#allocation15], %s24153_s13 }
 0x1c9   : > { %s24187_s17 = scalar_lea.vmem %s28637_s2, %s19237_s4  ;;  %s1236_s21 = scalar_lea.vmem [#allocation16], %s24153_s13 }
 0x1ca   : > { %s24192_s11 = scalar_lea.vmem %s28638_s15, %s19237_s4  ;;  %s1244_s9 = scalar_lea.vmem [#allocation17], %s24153_s13 }
 0x1cb   : > { %s24209_s15 = scalar_lea.vmem %s28642_s16, %s19237_s4  ;;  %s1252_s4 = scalar_lea.vmem [#allocation18], %s24153_s13 }
 0x1cc   : > { %s24215_s3 = scalar_lea.vmem %s28643_s10, %s19242_s22  ;;  %s24234_s23 = scalar_lea.vmem [#allocation20], %s24156_s7 }
 0x1cd   : > { %p28644_p1 = scmp.ne.s32.totalorder %s28626_s30, 0 }
 0x1ce   : > { %s28645_s27 = sld [smem:[#allocation55_spill]] (!%p28644_p1) }
 0x1cf   : > { %1479 = sbr.rel (%p28644_p1) target bundleno = 471 (0x1d7), region = 200 }
 0x1d4   : > { %v1480_v0 = vld [vmem:[%s28645_s27] sm:$0xff]  ;;  %vm1484_vm0 = vcmask 261120   ;;  %v1481_v1 = vld [vmem:[%s28645_s27 + $0x8] sm:$0xff]  ;;  %v1482_v2 = vld [vmem:[%s28645_s27 + $0x10] sm:$0xff] }
 0x1d5   : > { %1485 = vst.msk [vmem:[#allocation21] sm:$0xff] %vm1484_vm0, %v1480_v0  ;;  %1486 = vst.msk [vmem:[#allocation21 + $0x8] sm:$0xff] %vm1484_vm0, %v1481_v1  ;;  %v1483_v3 = vld [vmem:[%s28645_s27 + $0x18] sm:$0xff] }
 0x1d6   : > { %1487 = vst.msk [vmem:[#allocation21 + $0x10] sm:$0xff] %vm1484_vm0, %v1482_v2  ;;  %1488 = vst.msk [vmem:[#allocation21 + $0x18] sm:$0xff] %vm1484_vm0, %v1483_v3 }
 0x1d7 PF: > { %v1503_v4 = vld [vmem:[%s24177_s5 + $0x18] sm:$0xff]  ;;  %v1502_v5 = vld [vmem:[%s24177_s5 + $0x10] sm:$0xff]  ;;  %v1501_v6 = vld [vmem:[%s24177_s5 + $0x8] sm:$0xff]  ;;  %vm1511_vm1 = vcmask 261120   ;;  %vm3488_vm2 = vcmask 64512   ;;  %s28648_s2 = sld [smem:[#allocation64_spill]] }
 0x1d8   : > { %v24253_v7 = vand.u32 4294901760, %v1503_v4  ;;  %v24255_v8 = vand.u32 4294901760, %v1502_v5  ;;  %v24257_v9 = vand.u32 4294901760, %v1501_v6  ;;  %v1500_v10 = vld [vmem:[%s24177_s5] sm:$0xff]  ;;  %v2173_v56 = vld [vmem:[%s24182_s29 + $0x18] sm:$0xff]  ;;  %v2172_v58 = vld [vmem:[%s24182_s29 + $0x10] sm:$0xff] }
 0x1d9   : > { %v24260_v13 = vand.u32 4294901760, %v1500_v10  ;;  %v24353_v57 = vand.u32 4294901760, %v2173_v56  ;;  %v24362_v59 = vand.u32 4294901760, %v2172_v58  ;;  %v2171_v60 = vld [vmem:[%s24182_s29 + $0x8] sm:$0xff]  ;;  %v2170_v62 = vld [vmem:[%s24182_s29] sm:$0xff]  ;;  %s28646_s5 = sld [smem:[#allocation63_spill]] }
 0x1da   : > { %20503 = vmatprep.subr.mxu0 %v24253_v7  ;;  %v1659_v18 = vsub.f32 %v1503_v4, %v24253_v7  ;;  %v1666_v21 = vsub.f32 %v1502_v5, %v24255_v8  ;;  %v1673_v22 = vsub.f32 %v1501_v6, %v24257_v9  ;;  %v24373_v63 = vand.u32 4294901760, %v2171_v60  ;;  %s23544_s22 = smov 120   ;;  %s23545_s14 = smov 112  }
 0x1db   : > { %20504 = vmatpush3.msra.mxu0 %v24253_v7  ;;  %v1680_v25 = vsub.f32 %v1500_v10, %v24260_v13  ;;  %v2316_v61 = vsub.f32 %v2173_v56, %v24353_v57  ;;  %v2323_v0 = vsub.f32 %v2172_v58, %v24362_v59  ;;  %v24380_v1 = vand.u32 4294901760, %v2170_v62  ;;  %s23546_s10 = smov 104   ;;  %s28650_s30 = sld [smem:[#allocation65_spill]] }
 0x1dc   : > { %v1489_v11 = vld [vmem:[#allocation21] sm:$0xff]  ;;  %v1490_v12 = vld [vmem:[#allocation21 + $0x8] sm:$0xff]  ;;  %20505 = vmatprep.subr.mxu0 %v24255_v8  ;;  %v24277_v26 = vand.u32 4294901760, %v1659_v18  ;;  %v24285_v29 = vand.u32 4294901760, %v1666_v21  ;;  %v24289_v30 = vand.u32 4294901760, %v1673_v22  ;;  %v2330_v3 = vsub.f32 %v2171_v60, %v24373_v63  ;;  %s23548_s0 = smov 16  }
 0x1dd   : > { %v1513_v14 = vsel %vm1511_vm1, %v1489_v11, 0  ;;  %v1516_v15 = vsel %vm1511_vm1, %v1490_v12, 0  ;;  %v1491_v16 = vld [vmem:[#allocation21 + $0x10] sm:$0xff]  ;;  %v1492_v17 = vld [vmem:[#allocation21 + $0x18] sm:$0xff]  ;;  %20506 = vmatpush3.msra.mxu0 %v24255_v8  ;;  %v24295_v33 = vand.u32 4294901760, %v1680_v25  ;;  %v24382_v2 = vand.u32 4294901760, %v2316_v61  ;;  %s28649_s16 = scalar_lea.vmem %s28648_s2, %s24167_s28 }
 0x1de   : > { %v24266_v19 = vand.u32 4294901760, %v1513_v14  ;;  %v24268_v20 = vand.u32 4294901760, %v1516_v15  ;;  %v1519_v23 = vsel %vm1511_vm1, %v1491_v16, 0  ;;  %v1522_v24 = vsel %vm1511_vm1, %v1492_v17, 0  ;;  %20507 = vmatprep.subr.mxu0 %v24257_v9  ;;  %v2826_v16 = vld [vmem:[%s24187_s17 + $0x18] sm:$0xff] }
 0x1df   : > { %v24291_v31 = vand.u32 4294901760, %v1519_v23  ;;  %v24293_v32 = vand.u32 4294901760, %v1522_v24  ;;  %v1661_v34 = vsub.f32 %v1659_v18, %v24277_v26  ;;  %v1668_v37 = vsub.f32 %v1666_v21, %v24285_v29  ;;  %20508 = vmatpush3.msra.mxu0 %v24257_v9  ;;  %s28647_s29 = scalar_lea.vmem %s28646_s5, %s24167_s28 }
 0x1e0   : > { %v24280_v27 = vsub.f32 %v1513_v14, %v24266_v19  ;;  %v24283_v28 = vsub.f32 %v1516_v15, %v24268_v20  ;;  %20525 = vmatprep.mubr.f32.mxu1 %v24266_v19  ;;  %v1675_v38 = vsub.f32 %v1673_v22, %v24289_v30  ;;  %20509 = vmatprep.subr.mxu0 %v24260_v13  ;;  %v24391_v4 = vand.u32 4294901760, %v2323_v0 }
 0x1e1   : > { %v24309_v39 = vsub.f32 %v1519_v23, %v24291_v31  ;;  %v24312_v40 = vsub.f32 %v1522_v24, %v24293_v32  ;;  %v1662_v41 = vand.u32 4294901760, %v1661_v34  ;;  %v1669_v44 = vand.u32 4294901760, %v1668_v37  ;;  %20510 = vmatpush3.msra.mxu0 %v24260_v13  ;;  %v2824_v23 = vld [vmem:[%s24187_s17 + $0x8] sm:$0xff]  ;;  %v2823_v34 = vld [vmem:[%s24187_s17] sm:$0xff]  ;;  %s28651_s5 = scalar_lea.vmem %s28650_s30, %s24167_s28 }
 0x1e2   : > { %v24300_v35 = vand.u32 4294901760, %v24280_v27  ;;  %v24303_v36 = vand.u32 4294901760, %v24283_v28  ;;  %v1682_v47 = vsub.f32 %v1680_v25, %v24295_v33  ;;  %20531 = vmatprep.subr.mxu0 %v1659_v18  ;;  %v1676_v50 = vand.u32 4294901760, %v1675_v38 }
 0x1e3   : > { %v24321_v45 = vand.u32 4294901760, %v24309_v39  ;;  %v24324_v46 = vand.u32 4294901760, %v24312_v40  ;;  %20517 = vmatprep.subr.mxu1 %v1662_v41  ;;  %v2318_v5 = vsub.f32 %v2316_v61, %v24382_v2  ;;  %v2337_v6 = vsub.f32 %v2170_v62, %v24380_v1 }
 0x1e4   : > { %v1596_v42 = vsub.f32 %v24280_v27, %v24300_v35  ;;  %v1606_v43 = vsub.f32 %v24283_v28, %v24303_v36  ;;  %20518 = vmatpush3.msra.mxu1 %v1662_v41  ;;  %v1683_v55 = vand.u32 4294901760, %v1682_v47  ;;  %v24467_v17 = vand.u32 4294901760, %v2826_v16 }
 0x1e5   : > { %v1616_v51 = vsub.f32 %v24309_v39, %v24321_v45  ;;  %v1626_v52 = vsub.f32 %v24312_v40, %v24324_v46  ;;  %20519 = vmatprep.subr.mxu1 %v1669_v44  ;;  %v2319_v10 = vand.u32 4294901760, %v2318_v5  ;;  %v2338_v11 = vand.u32 4294901760, %v2337_v6 }
 0x1e6   : > { %v24327_v48 = vand.u32 4294901760, %v1596_v42  ;;  %v24329_v49 = vand.u32 4294901760, %v1606_v43  ;;  %20520 = vmatpush3.msra.mxu1 %v1669_v44  ;;  %v2868_v37 = vand.u32 4294901760, %v2823_v34  ;;  %vm8741_vm3 = vcmask 130048  }
 0x1e7   : > { %v24337_v53 = vand.u32 4294901760, %v1616_v51  ;;  %v24339_v54 = vand.u32 4294901760, %v1626_v52  ;;  %20521 = vmatprep.subr.mxu1 %v1676_v50  ;;  %v2339_v14 = vsub.f32 %v2337_v6, %v2338_v11  ;;  %vm8746_vm4 = vcmask 195584  }
 0x1e8   : > { %20511 = vmatprep.mubr.f32.mxu0 %v24327_v48  ;;  %20522 = vmatpush3.msra.mxu1 %v1676_v50  ;;  %v2990_v43 = vsub.f32 %v2823_v34, %v2868_v37  ;;  %vm23551_vm5 = vmmov 0   ;;  %vm14010_vm6 = vcmask 1043456   ;;  %vm13821_vm7 = vcmask 162816  }
 0x1e9   : > { %20512 = vmatmul.mubr.f32.vlgmr.msra.gmra.mxu0 %v24329_v49  ;;  %20523 = vmatprep.subr.mxu1 %v1683_v55  ;;  %v2340_v15 = vand.u32 4294901760, %v2339_v14 }
 0x1ea   : > { %20532 = vmatpush3.msra.mxu0 %v1659_v18  ;;  %20514 = vmatprep.mubr.f32.mxu0 %v24337_v53  ;;  %v2825_v18 = vld [vmem:[%s24187_s17 + $0x10] sm:$0xff] }
 0x1eb   : > { %20533 = vmatprep.subr.mxu0 %v1666_v21  ;;  %20524 = vmatpush3.msra.mxu1 %v1683_v55 }
 0x1ec   : > { %20534 = vmatpush3.msra.mxu0 %v1666_v21  ;;  %20526 = vmatmul.mubr.f32.vlgmr.msra.gmra.mxu1 %v24268_v20  ;;  %v2969_v21 = vsub.f32 %v2826_v16, %v24467_v17 }
 0x1ed   : > { %20515 = vmatmul.mubr.f32.gmra.mxu0 %v24339_v54  ;;  %20535 = vmatprep.subr.mxu0 %v1673_v22 }
 0x1ee   : > { %20536 = vmatpush3.msra.mxu0 %v1673_v22  ;;  %20545 = vmatprep.subr.mxu1 %v24253_v7  ;;  %v24472_v22 = vand.u32 4294901760, %v2825_v18  ;;  %v24477_v24 = vand.u32 4294901760, %v2969_v21 }
 0x1ef   : > { %20537 = vmatprep.subr.mxu0 %v1680_v25  ;;  %20539 = vmatprep.mubr.f32.mxu0 %v24280_v27 }
 0x1f0   : > { %20538 = vmatpush3.msra.mxu0 %v1680_v25  ;;  %20546 = vmatpush3.msra.mxu1 %v24253_v7  ;;  %v2976_v25 = vsub.f32 %v2825_v18, %v24472_v22 }
 0x1f1   : > { %20540 = vmatmul.mubr.f32.vlgmr.msra.gmra.mxu0 %v24283_v28  ;;  %20547 = vmatprep.subr.mxu1 %v24255_v8 }
 0x1f2   : > { %20559 = vmatprep.subr.mxu0 %v24277_v26  ;;  %20528 = vmatprep.mubr.f32.mxu1 %v24291_v31 }
 0x1f3   : > { %20548 = vmatpush3.msra.mxu1 %v24255_v8  ;;  %20560 = vmatpush3.msra.mxu0 %v24277_v26  ;;  %v24480_v26 = vand.u32 4294901760, %v2824_v23 }
 0x1f4   : > { %20529 = vmatmul.mubr.f32.gmra.mxu1 %v24293_v32  ;;  %20549 = vmatprep.subr.mxu1 %v24257_v9 }
 0x1f5   : > { %20561 = vmatprep.subr.mxu0 %v24285_v29  ;;  %20542 = vmatprep.mubr.f32.mxu0 %v24309_v39 }
 0x1f6   : > { %20550 = vmatpush3.msra.mxu1 %v24257_v9  ;;  %20562 = vmatpush3.msra.mxu0 %v24285_v29  ;;  %v2971_v29 = vsub.f32 %v2969_v21, %v24477_v24 }
 0x1f7   : > { %20551 = vmatprep.subr.mxu1 %v24260_v13  ;;  %20543 = vmatmul.mubr.f32.gmra.mxu0 %v24312_v40 }
 0x1f8   : > { %20563 = vmatprep.subr.mxu0 %v24289_v30  ;;  %20552 = vmatpush3.msra.mxu1 %v24260_v13  ;;  %v2972_v38 = vand.u32 4294901760, %v2971_v29 }
 0x1f9   : > { %20553 = vmatprep.mubr.f32.mxu1 %v24300_v35  ;;  %20564 = vmatpush3.msra.mxu0 %v24289_v30  ;;  %v24485_v30 = vand.u32 4294901760, %v2976_v25 }
 0x1fa   : > { %20554 = vmatmul.mubr.f32.vlgmr.msra.gmra.mxu1 %v24303_v36  ;;  %20565 = vmatprep.subr.mxu0 %v24295_v33 }
 0x1fb   : > { %20573 = vmatprep.subr.mxu1 %v24253_v7  ;;  %20566 = vmatpush3.msra.mxu0 %v24295_v33  ;;  %v2983_v33 = vsub.f32 %v2824_v23, %v24480_v26  ;;  %v2978_v41 = vsub.f32 %v2976_v25, %v24485_v30  ;;  %v19216_v23 = vld [vmem:[%s28649_s16] ss:$0 sm:$0xff]  ;;  %s28668_s16 = sld [smem:[#allocation66_spill]] }
 0x1fc   : > { %20567 = vmatprep.mubr.f32.mxu0 %v24266_v19  ;;  %20574 = vmatpush3.msra.mxu1 %v24253_v7  ;;  %v24401_v7 = vand.u32 4294901760, %v2330_v3 }
 0x1fd   : > { %20568 = vmatmul.mubr.f32.vlgmr.msra.gmra.mxu0 %v24268_v20  ;;  %20575 = vmatprep.subr.mxu1 %v24255_v8  ;;  %v24492_v42 = vand.u32 4294901760, %v2983_v33  ;;  %v2979_v44 = vand.u32 4294901760, %v2978_v41 }
 0x1fe   : > { %20587 = vmatprep.subr.mxu0 %v24353_v57  ;;  %20556 = vmatprep.mubr.f32.mxu1 %v24321_v45  ;;  %v2332_v12 = vsub.f32 %v2330_v3, %v24401_v7 }
 0x1ff   : > { %20576 = vmatpush3.msra.mxu1 %v24255_v8  ;;  %20588 = vmatpush3.msra.mxu0 %v24353_v57  ;;  %v2325_v8 = vsub.f32 %v2323_v0, %v24391_v4  ;;  %v2985_v47 = vsub.f32 %v2983_v33, %v24492_v42 }
 0x200   : > { %20557 = vmatmul.mubr.f32.gmra.mxu1 %v24324_v46  ;;  %20577 = vmatprep.subr.mxu1 %v24257_v9 }
 0x201   : > { %20589 = vmatprep.subr.mxu0 %v24362_v59  ;;  %20570 = vmatprep.mubr.f32.mxu0 %v24291_v31  ;;  %v2986_v50 = vand.u32 4294901760, %v2985_v47  ;;  %s28669_s7 = scalar_lea.vmem %s28668_s16, %s24167_s28 }
 0x202   : > { %20578 = vmatpush3.msra.mxu1 %v24257_v9  ;;  %20590 = vmatpush3.msra.mxu0 %v24362_v59  ;;  %v2326_v9 = vand.u32 4294901760, %v2325_v8 }
 0x203   : > { %20579 = vmatprep.subr.mxu1 %v24260_v13  ;;  %20571 = vmatmul.mubr.f32.gmra.mxu0 %v24293_v32 }
 0x204   : > { %20591 = vmatprep.subr.mxu0 %v24373_v63  ;;  %20580 = vmatpush3.msra.mxu1 %v24260_v13  ;;  %v2333_v13 = vand.u32 4294901760, %v2332_v12 }
 0x205   : > { %20581 = vmatprep.mubr.f32.mxu1 %v24266_v19  ;;  %20592 = vmatpush3.msra.mxu0 %v24373_v63 }
 0x206   : > { %20582 = vmatmul.mubr.f32.vlgmr.msra.gmra.mxu1 %v24268_v20  ;;  %20593 = vmatprep.subr.mxu0 %v24380_v1 }
 0x207   : > { %20601 = vmatprep.subr.mxu1 %v2319_v10  ;;  %20594 = vmatpush3.msra.mxu0 %v24380_v1 }
 0x208   : > { %20595 = vmatprep.mubr.f32.mxu0 %v24327_v48  ;;  %20602 = vmatpush3.msra.mxu1 %v2319_v10 }
 0x209   : > { %20596 = vmatmul.mubr.f32.vlgmr.msra.gmra.mxu0 %v24329_v49  ;;  %20603 = vmatprep.subr.mxu1 %v2326_v9 }
 0x20a   : > { %20615 = vmatprep.subr.mxu0 %v2316_v61  ;;  %20584 = vmatprep.mubr.f32.mxu1 %v24291_v31 }
 0x20b   : > { %20604 = vmatpush3.msra.mxu1 %v2326_v9  ;;  %20616 = vmatpush3.msra.mxu0 %v2316_v61 }
 0x20c   : > { %20585 = vmatmul.mubr.f32.gmra.mxu1 %v24293_v32  ;;  %20605 = vmatprep.subr.mxu1 %v2333_v13 }
 0x20d   : > { %20617 = vmatprep.subr.mxu0 %v2323_v0  ;;  %20598 = vmatprep.mubr.f32.mxu0 %v24337_v53 }
 0x20e   : > { %20606 = vmatpush3.msra.mxu1 %v2333_v13  ;;  %20618 = vmatpush3.msra.mxu0 %v2323_v0 }
 0x20f   : > { %20607 = vmatprep.subr.mxu1 %v2340_v15  ;;  %20599 = vmatmul.mubr.f32.gmra.mxu0 %v24339_v54 }
 0x210   : > { %20619 = vmatprep.subr.mxu0 %v2330_v3  ;;  %20608 = vmatpush3.msra.mxu1 %v2340_v15 }
 0x211   : > { %20609 = vmatprep.mubr.f32.mxu1 %v24266_v19  ;;  %20620 = vmatpush3.msra.mxu0 %v2330_v3 }
 0x212   : > { %20610 = vmatmul.mubr.f32.vlgmr.msra.gmra.mxu1 %v24268_v20  ;;  %20621 = vmatprep.subr.mxu0 %v2337_v6 }
 0x213   : > { %20629 = vmatprep.subr.mxu1 %v24353_v57  ;;  %20622 = vmatpush3.msra.mxu0 %v2337_v6 }
 0x214   : > { %20623 = vmatprep.mubr.f32.mxu0 %v24280_v27  ;;  %20630 = vmatpush3.msra.mxu1 %v24353_v57 }
 0x215   : > { %20624 = vmatmul.mubr.f32.vlgmr.msra.gmra.mxu0 %v24283_v28  ;;  %20631 = vmatprep.subr.mxu1 %v24362_v59 }
 0x216   : > { %20643 = vmatprep.subr.mxu0 %v24382_v2  ;;  %20612 = vmatprep.mubr.f32.mxu1 %v24291_v31 }
 0x217   : > { %20632 = vmatpush3.msra.mxu1 %v24362_v59  ;;  %20644 = vmatpush3.msra.mxu0 %v24382_v2 }
 0x218   : > { %20613 = vmatmul.mubr.f32.gmra.mxu1 %v24293_v32  ;;  %20633 = vmatprep.subr.mxu1 %v24373_v63 }
 0x219   : > { %20645 = vmatprep.subr.mxu0 %v24391_v4  ;;  %20626 = vmatprep.mubr.f32.mxu0 %v24309_v39 }
 0x21a   : > { %20634 = vmatpush3.msra.mxu1 %v24373_v63  ;;  %20646 = vmatpush3.msra.mxu0 %v24391_v4 }
 0x21b   : > { %20635 = vmatprep.subr.mxu1 %v24380_v1  ;;  %20627 = vmatmul.mubr.f32.gmra.mxu0 %v24312_v40 }
 0x21c   : > { %20647 = vmatprep.subr.mxu0 %v24401_v7  ;;  %20636 = vmatpush3.msra.mxu1 %v24380_v1 }
 0x21d   : > { %20637 = vmatprep.mubr.f32.mxu1 %v24300_v35  ;;  %20648 = vmatpush3.msra.mxu0 %v24401_v7 }
 0x21e   : > { %20638 = vmatmul.mubr.f32.vlgmr.msra.gmra.mxu1 %v24303_v36  ;;  %20649 = vmatprep.subr.mxu0 %v2338_v11 }
 0x21f   : > { %20657 = vmatprep.subr.mxu1 %v24353_v57  ;;  %20650 = vmatpush3.msra.mxu0 %v2338_v11 }
 0x220   : > { %20651 = vmatprep.mubr.f32.mxu0 %v24266_v19  ;;  %20658 = vmatpush3.msra.mxu1 %v24353_v57 }
 0x221   : > { %20652 = vmatmul.mubr.f32.vlgmr.msra.gmra.mxu0 %v24268_v20  ;;  %20659 = vmatprep.subr.mxu1 %v24362_v59 }
 0x222   : > { %20640 = vmatprep.mubr.f32.mxu1 %v24321_v45  ;;  %20660 = vmatpush3.msra.mxu1 %v24362_v59 }
 0x223   : > { %20654 = vmatprep.mubr.f32.mxu0 %v24291_v31  ;;  %20641 = vmatmul.mubr.f32.gmra.mxu1 %v24324_v46 }
 0x224   : > { %20661 = vmatprep.subr.mxu1 %v24373_v63  ;;  %20665 = vmatprep.mubr.f32.mxu1 %v24266_v19 }
 0x225   : > { %20662 = vmatpush3.msra.mxu1 %v24373_v63  ;;  %20655 = vmatmul.mubr.f32.gmra.mxu0 %v24293_v32 }
 0x226   : > { %20663 = vmatprep.subr.mxu1 %v24380_v1  ;;  %20679 = vmatprep.mubr.f32.mxu0 %v24327_v48  ;;  %v2991_v48 = vand.u32 4294901760, %v2990_v43 }
 0x227   : > { %20664 = vmatpush3.msra.mxu1 %v24380_v1  ;;  %20671 = vmatprep.subr.mxu0 %v24467_v17 }
 0x228   : > { %20666 = vmatmul.mubr.f32.vlgmr.msra.gmra.mxu1 %v24268_v20  ;;  %20672 = vmatpush3.msra.mxu0 %v24467_v17  ;;  %v2992_v51 = vsub.f32 %v2990_v43, %v2991_v48 }
 0x229   : > { %20668 = vmatprep.mubr.f32.mxu1 %v24291_v31  ;;  %20673 = vmatprep.subr.mxu0 %v24472_v22 }
 0x22a   : > { %20674 = vmatpush3.msra.mxu0 %v24472_v22  ;;  %20685 = vmatprep.subr.mxu1 %v2972_v38  ;;  %v2993_v52 = vand.u32 4294901760, %v2992_v51 }
 0x22b   : > { %20675 = vmatprep.subr.mxu0 %v24480_v26  ;;  %20686 = vmatpush3.msra.mxu1 %v2972_v38 }
 0x22c   : > { %20669 = vmatmul.mubr.f32.gmra.mxu1 %v24293_v32  ;;  %20676 = vmatpush3.msra.mxu0 %v24480_v26 }
 0x22d   : > { %20693 = vmatprep.mubr.f32.mxu1 %v24266_v19  ;;  %20677 = vmatprep.subr.mxu0 %v2868_v37 }
 0x22e   : > { %20678 = vmatpush3.msra.mxu0 %v2868_v37  ;;  %20687 = vmatprep.subr.mxu1 %v2979_v44 }
 0x22f   : > { %20680 = vmatmul.mubr.f32.vlgmr.msra.gmra.mxu0 %v24329_v49  ;;  %20699 = vmatprep.subr.mxu0 %v2969_v21 }
 0x230   : > { %20688 = vmatpush3.msra.mxu1 %v2979_v44  ;;  %20700 = vmatpush3.msra.mxu0 %v2969_v21 }
 0x231   : > { %20689 = vmatprep.subr.mxu1 %v2986_v50  ;;  %20701 = vmatprep.subr.mxu0 %v2976_v25 }
 0x232   : > { %20690 = vmatpush3.msra.mxu1 %v2986_v50  ;;  %20682 = vmatprep.mubr.f32.mxu0 %v24337_v53  ;;  %v19215_v53 = vld [vmem:[%s28647_s29] ss:$0 sm:$0xff]  ;;  %s23547_s29 = smov 8  }
 0x233   : > { %20702 = vmatpush3.msra.mxu0 %v2976_v25  ;;  %20691 = vmatprep.subr.mxu1 %v2993_v52 }
 0x234   : > { %20683 = vmatmul.mubr.f32.gmra.mxu0 %v24339_v54  ;;  %20692 = vmatpush3.msra.mxu1 %v2993_v52 }
 0x235   : > { %20703 = vmatprep.subr.mxu0 %v2983_v33  ;;  %20694 = vmatmul.mubr.f32.vlgmr.msra.gmra.mxu1 %v24268_v20 }
 0x236   : > { %20713 = vmatprep.subr.mxu1 %v24467_v17  ;;  %20696 = vmatprep.mubr.f32.mxu1 %v24291_v31 }
 0x237   : > { %20714 = vmatpush3.msra.mxu1 %v24467_v17  ;;  %20704 = vmatpush3.msra.mxu0 %v2983_v33 }
 0x238   : > { %20715 = vmatprep.subr.mxu1 %v24472_v22  ;;  %20705 = vmatprep.subr.mxu0 %v2990_v43 }
 0x239   : > { %20716 = vmatpush3.msra.mxu1 %v24472_v22  ;;  %20706 = vmatpush3.msra.mxu0 %v2990_v43 }
 0x23a   : > { %20697 = vmatmul.mubr.f32.gmra.mxu1 %v24293_v32  ;;  %20717 = vmatprep.subr.mxu1 %v24480_v26 }
 0x23b   : > { %20718 = vmatpush3.msra.mxu1 %v24480_v26  ;;  %20721 = vmatprep.mubr.f32.mxu1 %v24300_v35 }
 0x23c   : > { %20719 = vmatprep.subr.mxu1 %v2868_v37  ;;  %20707 = vmatprep.mubr.f32.mxu0 %v24280_v27 }
 0x23d   : > { %20720 = vmatpush3.msra.mxu1 %v2868_v37  ;;  %20708 = vmatmul.mubr.f32.vlgmr.msra.gmra.mxu0 %v24283_v28 }
 0x23e   : > { %20722 = vmatmul.mubr.f32.vlgmr.msra.gmra.mxu1 %v24303_v36  ;;  %20741 = vmatprep.subr.mxu1 %v24467_v17 }
 0x23f   : > { %20742 = vmatpush3.msra.mxu1 %v24467_v17  ;;  %20724 = vmatprep.mubr.f32.mxu1 %v24321_v45 }
 0x240   : > { %20743 = vmatprep.subr.mxu1 %v24472_v22  ;;  %20727 = vmatprep.subr.mxu0 %v24477_v24 }
 0x241   : > { %20744 = vmatpush3.msra.mxu1 %v24472_v22  ;;  %20728 = vmatpush3.msra.mxu0 %v24477_v24 }
 0x242   : > { %20725 = vmatmul.mubr.f32.gmra.mxu1 %v24324_v46  ;;  %20745 = vmatprep.subr.mxu1 %v24480_v26 }
 0x243   : > { %20746 = vmatpush3.msra.mxu1 %v24480_v26  ;;  %20749 = vmatprep.mubr.f32.mxu1 %v24266_v19 }
 0x244   : > { %20747 = vmatprep.subr.mxu1 %v2868_v37  ;;  %20729 = vmatprep.subr.mxu0 %v24485_v30 }
 0x245   : > { %20748 = vmatpush3.msra.mxu1 %v2868_v37  ;;  %20710 = vmatprep.mubr.f32.mxu0 %v24309_v39 }
 0x246   : > { %20750 = vmatmul.mubr.f32.vlgmr.msra.gmra.mxu1 %v24268_v20  ;;  %20730 = vmatpush3.msra.mxu0 %v24485_v30 }
 0x247   : > { %20752 = vmatprep.mubr.f32.mxu1 %v24291_v31  ;;  %20711 = vmatmul.mubr.f32.gmra.mxu0 %v24312_v40 }
 0x248   : > { %20731 = vmatprep.subr.mxu0 %v24492_v42  ;;  %20735 = vmatprep.mubr.f32.mxu0 %v24266_v19 }
 0x249   : > { %20732 = vmatpush3.msra.mxu0 %v24492_v42 }
 0x24a   : > { %20753 = vmatmul.mubr.f32.gmra.mxu1 %v24293_v32  ;;  %20733 = vmatprep.subr.mxu0 %v2991_v48 }
 0x24b   : > { %20734 = vmatpush3.msra.mxu0 %v2991_v48 }
 0x24c   : > { %20736 = vmatmul.mubr.f32.vlgmr.msra.gmra.mxu0 %v24268_v20 }
 0x24d   : > { %20738 = vmatprep.mubr.f32.mxu0 %v24291_v31 }
 0x250   : > { %20739 = vmatmul.mubr.f32.gmra.mxu0 %v24293_v32 }
 0x2a9   : > { %v20513_v27 = vpop.f32.mrf.mxu0 }
 0x2aa   : > { %v1610_v21 = vadd.f32 %v20513_v27, %v19215_v53 }
 0x2ab   : > { %v1599_v28 = vpop.f32.mrf.mxu0 }
 0x2ac   : > { %v20527_v39 = vpop.f32.mrf.mxu1  ;;  %v1600_v55 = vadd.f32 %v19215_v53, %v1599_v28 }
 0x2ad   : > { %v20516_v35 = vpop.f32.mrf.mxu0  ;;  %v1727_v33 = vadd.f32 %v20527_v39, %v1610_v21 }
 0x2ae   : > { %v1720_v40 = vpop.f32.mrf.mxu1  ;;  %v1630_v30 = vadd.f32 %v20516_v35, %v19215_v53 }
 0x2af   : > { %v1619_v36 = vpop.f32.mrf.mxu0  ;;  %v1721_v56 = vadd.f32 %v1720_v40, %v1600_v55 }
 0x2b0   : > { %v1620_v25 = vadd.f32 %v19215_v53, %v1619_v36 }
 0x2b1   : > { %v20541_v45 = vpop.f32.mrf.mxu0 }
 0x2b2   : > { %v1826_v42 = vadd.f32 %v20541_v45, %v1727_v33 }
 0x2b3   : > { %v1818_v19 = vpop.f32.mrf.mxu0 }
 0x2b4   : > { %v20530_v46 = vpop.f32.mrf.mxu1  ;;  %v1819_v60 = vadd.f32 %v1818_v19, %v1721_v56 }
 0x2b5   : > { %v1739_v43 = vadd.f32 %v20530_v46, %v1630_v30 }
 0x2b6   : > { %v1732_v49 = vpop.f32.mrf.mxu1 }
 0x2b7   : > { %v20544_v20 = vpop.f32.mrf.mxu0  ;;  %v1733_v37 = vadd.f32 %v1732_v49, %v1620_v25 }
 0x2b8   : > { %v1840_v19 = vadd.f32 %v20544_v20, %v1739_v43 }
 0x2b9   : > { %v1832_v54 = vpop.f32.mrf.mxu0 }
 0x2ba   : > { %v20555_v31 = vpop.f32.mrf.mxu1  ;;  %v1833_v48 = vadd.f32 %v1832_v54, %v1733_v37 }
 0x2bb   : > { %v1925_v27 = vadd.f32 %v20555_v31, %v1826_v42 }
 0x2bc   : > { %v1916_v32 = vpop.f32.mrf.mxu1 }
 0x2bd   : > { %v20569_v57 = vpop.f32.mrf.mxu0  ;;  %v1917_v62 = vadd.f32 %v1916_v32, %v1819_v60 }
 0x2be   : > { %v2030_v49 = vadd.f32 %v20569_v57, %v1925_v27 }
 0x2bf   : > { %v2023_v59 = vpop.f32.mrf.mxu0 }
 0x2c0   : > { %v20558_v58 = vpop.f32.mrf.mxu1  ;;  %v2024_v2 = vadd.f32 %v2023_v59, %v1917_v62 }
 0x2c1   : > { %v1941_v32 = vadd.f32 %v20558_v58, %v1840_v19 }
 0x2c2   : > { %v1932_v61 = vpop.f32.mrf.mxu1 }
 0x2c3   : > { %v24540_v63 = vpop.f32.mrf.mxu0  ;;  %v1933_v28 = vadd.f32 %v1932_v61, %v1833_v48 }
 0x2c4   : > { %v2042_v20 = vadd.f32 %v24540_v63, %v1941_v32 }
 0x2c5   : > { %v2035_v0 = vpop.f32.mrf.mxu0 }
 0x2c6   : > { %v20583_v1 = vpop.f32.mrf.mxu1  ;;  %v2036_v59 = vadd.f32 %v2035_v0, %v1933_v28 }
 0x2c7   : > { %v2123_v62 = vadd.f32 %v20583_v1, %v2030_v49 }
 0x2c8   : > { %v2116_v3 = vpop.f32.mrf.mxu1 }
 0x2c9   : > { %v2117_v4 = vadd.f32 %v2116_v3, %v2024_v2  ;;  %v20597_v5 = vpop.f32.mrf.mxu0  ;;  %v24564_v57 = vmul.f32 0.35355338, %v2123_v62 }
 0x2ca   : > { %v2267_v34 = vadd.f32 %v20597_v5, %v19216_v23 }
 0x2cb   : > { %v24542_v6 = vmul.f32 0.35355338, %v2117_v4  ;;  %v2256_v8 = vpop.f32.mrf.mxu0 }
 0x2cc   : > { %v24544_v7 = vpop.f32.mrf.mxu1  ;;  %v2257_v50 = vadd.f32 %v19216_v23, %v2256_v8 }
 0x2cd   : > { %v3489_v10 = vsel %vm3488_vm2, %v24542_v6, 0  ;;  %v2135_v58 = vadd.f32 %v24544_v7, %v2042_v20  ;;  %v3491_v7 = vsel %vm3488_vm2, %v24564_v57, 0 }
 0x2ce   : > { %v2128_v11 = vpop.f32.mrf.mxu1  ;;  %v24548_v12 = vand.u32 4294901760, %v3489_v10  ;;  %v24595_v37 = vand.u32 4294901760, %v3491_v7 }
 0x2cf   : > { %v20600_v9 = vpop.f32.mrf.mxu0  ;;  %v2129_v3 = vadd.f32 %v2128_v11, %v2036_v59 }
 0x2d0   : > { %20777 = vmatprep.mubr.f32.mxu1 %v24548_v12  ;;  %v24552_v14 = vsub.f32 %v3489_v10, %v24548_v12  ;;  %v2287_v44 = vadd.f32 %v20600_v9, %v19216_v23 }
 0x2d1   : > { %v2276_v13 = vpop.f32.mrf.mxu0 }
 0x2d2   : > { %v20611_v15 = vpop.f32.mrf.mxu1  ;;  %v3576_v16 = vand.u32 4294901760, %v24552_v14  ;;  %v2277_v55 = vadd.f32 %v19216_v23, %v2276_v13  ;;  %v24579_v23 = vmul.f32 0.35355338, %v2135_v58 }
 0x2d3   : > { %v2384_v47 = vadd.f32 %v20611_v15, %v2267_v34  ;;  %v24569_v15 = vmul.f32 0.35355338, %v2129_v3 }
 0x2d4   : > { %v2377_v17 = vpop.f32.mrf.mxu1  ;;  %v3577_v18 = vsub.f32 %v24552_v14, %v3576_v16  ;;  %v3495_v42 = vsel %vm3488_vm2, %v24579_v23, 0 }
 0x2d5   : > { %v20625_v22 = vpop.f32.mrf.mxu0  ;;  %v2378_v36 = vadd.f32 %v2377_v17, %v2257_v50  ;;  %v24622_v27 = vand.u32 4294901760, %v3495_v42 }
 0x2d6   : > { %v3578_v24 = vand.u32 4294901760, %v3577_v18  ;;  %v2483_v35 = vadd.f32 %v20625_v22, %v2384_v47 }
 0x2d7   : > { %v2475_v29 = vpop.f32.mrf.mxu0 }
 0x2d8   : > { %v20614_v26 = vpop.f32.mrf.mxu1  ;;  %20763 = vmatprep.mubr.f32.mxu0 %v3578_v24  ;;  %v2476_v60 = vadd.f32 %v2475_v29, %v2378_v36  ;;  %v3493_v29 = vsel %vm3488_vm2, %v24569_v15, 0 }
 0x2d9   : > { %v2396_v39 = vadd.f32 %v20614_v26, %v2287_v44  ;;  %v24605_v44 = vand.u32 4294901760, %v3493_v29 }
 0x2da   : > { %v2389_v38 = vpop.f32.mrf.mxu1 }
 0x2db   : > { %v20628_v41 = vpop.f32.mrf.mxu0  ;;  %v2390_v56 = vadd.f32 %v2389_v38, %v2277_v55 }
 0x2dc   : > { %v2497_v2 = vadd.f32 %v20628_v41, %v2396_v39 }
 0x2dd   : > { %v2489_v51 = vpop.f32.mrf.mxu0 }
 0x2de   : > { %v20639_v52 = vpop.f32.mrf.mxu1  ;;  %v2490_v5 = vadd.f32 %v2489_v51, %v2390_v56  ;;  %v24651_v56 = vsub.f32 %v3495_v42, %v24622_v27 }
 0x2df   : > { %v2582_v45 = vadd.f32 %v20639_v52, %v2483_v35  ;;  %v24620_v52 = vsub.f32 %v3491_v7, %v24595_v37 }
 0x2e0   : > { %v2573_v40 = vpop.f32.mrf.mxu1  ;;  %v3606_v62 = vand.u32 4294901760, %v24651_v56 }
 0x2e1   : > { %v20653_v53 = vpop.f32.mrf.mxu0  ;;  %v2574_v31 = vadd.f32 %v2573_v40, %v2476_v60  ;;  %v24631_v40 = vsub.f32 %v3493_v29, %v24605_v44  ;;  %v3586_v32 = vand.u32 4294901760, %v24620_v52 }
 0x2e2   : > { %v2687_v8 = vadd.f32 %v20653_v53, %v2582_v45 }
 0x2e3   : > { %v2680_v46 = vpop.f32.mrf.mxu0  ;;  %v20642_v54 = vpop.f32.mrf.mxu1  ;;  %v3596_v45 = vand.u32 4294901760, %v24631_v40 }
 0x2e4   : > { %v2598_v10 = vadd.f32 %v20642_v54, %v2497_v2  ;;  %v2681_v1 = vadd.f32 %v2680_v46, %v2574_v31  ;;  %v3587_v54 = vsub.f32 %v24620_v52, %v3586_v32 }
 0x2e5   : > { %v2589_v61 = vpop.f32.mrf.mxu1  ;;  %v20656_v4 = vpop.f32.mrf.mxu0  ;;  %v3597_v2 = vsub.f32 %v24631_v40, %v3596_v45 }
 0x2e6   : > { %v2590_v13 = vadd.f32 %v2589_v61, %v2490_v5  ;;  %v2699_v18 = vadd.f32 %v20656_v4, %v2598_v10  ;;  %v3588_v61 = vand.u32 4294901760, %v3587_v54  ;;  %v3607_v4 = vsub.f32 %v24651_v56, %v3606_v62 }
 0x2e7   : > { %v2692_v11 = vpop.f32.mrf.mxu0  ;;  %v3598_v20 = vand.u32 4294901760, %v3597_v2 }
 0x2e8   : > { %v20667_v9 = vpop.f32.mrf.mxu1  ;;  %v2693_v24 = vadd.f32 %v2692_v11, %v2590_v13 }
 0x2e9   : > { %v24567_v0 = vadd.f32 %v20667_v9, %v2687_v8  ;;  %v3608_v8 = vand.u32 4294901760, %v3607_v4 }
 0x2ea   : > { %v2773_v17 = vpop.f32.mrf.mxu1 }
 0x2eb   : > { %2801 = vrot.lane.b32.xlu1 %v24567_v0, %s23544_s22  ;;  %v3499_v63 = vsel %vm3488_vm2, %v24567_v0, 0  ;;  %v24575_v21 = vadd.f32 %v2773_v17, %v2681_v1 }
 0x2ec   : > { %v20670_v22 = vpop.f32.mrf.mxu1  ;;  %v24585_v30 = vand.u32 4294901760, %v3499_v63 }
 0x2ed   : > { %v24581_v25 = vadd.f32 %v20670_v22, %v2699_v18  ;;  %v3497_v38 = vsel %vm3488_vm2, %v24575_v21, 0 }
 0x2ee   : > { %v2785_v26 = vpop.f32.mrf.mxu1  ;;  %v24612_v50 = vsub.f32 %v3499_v63, %v24585_v30  ;;  %v24614_v51 = vand.u32 4294901760, %v3497_v38 }
 0x2ef   : > { %v3503_v33 = vsel %vm3488_vm2, %v24581_v25, 0  ;;  %v24589_v34 = vadd.f32 %v2785_v26, %v2693_v24  ;;  %2805 = vrot.lane.b32.xlu0 %v24581_v25, %s23544_s22  ;;  %2799 = vrot.lane.b32.xlu1 %v24575_v21, %s23544_s22 }
 0x2f0   : > { %v24599_v41 = vand.u32 4294901760, %v3503_v33  ;;  %v24637_v35 = vsub.f32 %v3497_v38, %v24614_v51  ;;  %v24643_v39 = vand.u32 4294901760, %v24612_v50 }
 0x2f1   : > { %v3501_v43 = vsel %vm3488_vm2, %v24589_v34, 0 }
 0x2f2   : > { %v3640_v47 = vsub.f32 %v3503_v33, %v24599_v41  ;;  %v24608_v48 = vand.u32 4294901760, %v3501_v43  ;;  %20755 = vmatprep.subr.mxu0 %v24599_v41  ;;  %v3656_v59 = vsub.f32 %v24612_v50, %v24643_v39  ;;  %v24658_v60 = vand.u32 4294901760, %v24637_v35 }
 0x2f3   : > { %20756 = vmatpush3.xpose.msra.mxu0 %v24599_v41  ;;  %2803 = vrot.lane.b32.xlu0 %v24589_v34, %s23544_s22 }
 0x2f4   : > { %v3647_v28 = vsub.f32 %v3501_v43, %v24608_v48  ;;  %2148 = vrot.lane.b32.xlu1 %v24564_v57, %s23544_s22  ;;  %20757 = vmatprep.subr.mxu0 %v24608_v48  ;;  %v24628_v36 = vand.u32 4294901760, %v3640_v47  ;;  %v3657_v3 = vand.u32 4294901760, %v3656_v59  ;;  %v3663_v31 = vsub.f32 %v24637_v35, %v24658_v60 }
 0x2f5   : > { %v20695_v9 = vpop.f32.mrf.mxu1 }
 0x2f6   : > { %v3642_v19 = vsub.f32 %v3640_v47, %v24628_v36  ;;  %v24634_v55 = vand.u32 4294901760, %v3647_v28  ;;  %v3664_v5 = vand.u32 4294901760, %v3663_v31 }
 0x2f7   : > { %20758 = vmatpush3.xpose.msra.mxu0 %v24608_v48  ;;  %2146 = vrot.lane.b32.xlu0 %v24542_v6, %s23544_s22  ;;  %v3030_v13 = vpop.f32.mrf.mxu1 }
 0x2f8   : > { %2152 = vrot.lane.b32.xlu1 %v24579_v23, %s23544_s22  ;;  %20759 = vmatprep.subr.mxu0 %v24585_v30  ;;  %v3643_v53 = vand.u32 4294901760, %v3642_v19  ;;  %v3649_v49 = vsub.f32 %v3647_v28, %v24634_v55 }
 0x2fa   : > { %20769 = vmatprep.subr.mxu1 %v3643_v53  ;;  %v3650_v46 = vand.u32 4294901760, %v3649_v49  ;;  %v20698_v1 = vpop.f32.mrf.mxu1 }
 0x2fb   : > { %20760 = vmatpush3.xpose.msra.mxu0 %v24585_v30  ;;  %20770 = vmatpush3.xpose.msra.mxu1 %v3643_v53 }
 0x2fc   : > { %2811 = vrot.lane.b32.xlu1 %v24589_v34, %s23545_s14  ;;  %2150 = vrot.lane.b32.xlu0 %v24569_v15, %s23544_s22  ;;  %v3042_v18 = vpop.f32.mrf.mxu1 }
 0x2fd   : > { %20761 = vmatprep.subr.mxu0 %v24614_v51  ;;  %20771 = vmatprep.subr.mxu1 %v3650_v46 }
 0x2fe   : > { %v20723_v7 = vpop.f32.mrf.mxu1 }
 0x2ff   : > { %20772 = vmatpush3.xpose.msra.mxu1 %v3650_v46  ;;  %20762 = vmatpush3.xpose.msra.mxu0 %v24614_v51 }
 0x300   : > { %2807 = vrot.lane.b32.xlu1 %v24575_v21, %s23545_s14  ;;  %2813 = vrot.lane.b32.xlu0 %v24581_v25, %s23545_s14  ;;  %v3226_v26 = vpop.f32.mrf.mxu1 }
 0x301   : > { %20773 = vmatprep.subr.mxu1 %v3657_v3  ;;  %20783 = vmatprep.subr.mxu0 %v3640_v47 }
 0x302   : > { %20764 = vmatmul.mubr.f32.vlgmr.msra.gmra.mxu0 %v3588_v61 }
 0x303   : > { %20774 = vmatpush3.xpose.msra.mxu1 %v3657_v3  ;;  %20766 = vmatprep.mubr.f32.mxu0 %v3598_v20 }
 0x304   : > { %2156 = vrot.lane.b32.xlu1 %v24564_v57, %s23545_s14  ;;  %2809 = vrot.lane.b32.xlu0 %v24567_v0, %s23545_s14 }
 0x305   : > { %20784 = vmatpush3.xpose.msra.mxu0 %v3640_v47  ;;  %20775 = vmatprep.subr.mxu1 %v3664_v5 }
 0x306   : > { %20785 = vmatprep.subr.mxu0 %v3647_v28  ;;  %20767 = vmatmul.mubr.f32.gmra.mxu0 %v3608_v8 }
 0x307   : > { %20776 = vmatpush3.xpose.msra.mxu1 %v3664_v5  ;;  %20791 = vmatprep.mubr.f32.mxu0 %v24552_v14  ;;  %v20681_v14 = vpop.f32.mrf.mxu0 }
 0x308   : > { %2160 = vrot.lane.b32.xlu1 %v24579_v23, %s23545_s14  ;;  %2154 = vrot.lane.b32.xlu0 %v24542_v6, %s23545_s14 }
 0x309   : > { %20786 = vmatpush3.xpose.msra.mxu0 %v3647_v28  ;;  %20797 = vmatprep.subr.mxu1 %v24599_v41  ;;  %v2909_v10 = vpop.f32.mrf.mxu0 }
 0x30a   : > { %20787 = vmatprep.subr.mxu0 %v24612_v50  ;;  %20778 = vmatmul.mubr.f32.vlgmr.msra.gmra.mxu1 %v24595_v37 }
 0x30b   : > { %20780 = vmatprep.mubr.f32.mxu1 %v24605_v44  ;;  %20798 = vmatpush3.xpose.msra.mxu1 %v24599_v41  ;;  %v20684_v58 = vpop.f32.mrf.mxu0 }
 0x30c   : > { %2819 = vrot.lane.b32.xlu1 %v24589_v34, %s23546_s10  ;;  %2158 = vrot.lane.b32.xlu0 %v24569_v15, %s23545_s14  ;;  %v20726_v34 = vpop.f32.mrf.mxu1 }
 0x30d   : > { %20788 = vmatpush3.xpose.msra.mxu0 %v24612_v50  ;;  %20799 = vmatprep.subr.mxu1 %v24608_v48 }
 0x30e   : > { %20789 = vmatprep.subr.mxu0 %v24637_v35  ;;  %20781 = vmatmul.mubr.f32.gmra.mxu1 %v24622_v27  ;;  %v3242_v42 = vpop.f32.mrf.mxu1 }
 0x30f   : > { %20800 = vmatpush3.xpose.msra.mxu1 %v24608_v48  ;;  %20805 = vmatprep.mubr.f32.mxu1 %v3576_v16  ;;  %v19217_v16 = vld [vmem:[%s28651_s5] ss:$0 sm:$0xff] }
 0x310   : > { %2815 = vrot.lane.b32.xlu1 %v24575_v21, %s23546_s10  ;;  %2821 = vrot.lane.b32.xlu0 %v24581_v25, %s23546_s10  ;;  %v2940_v11 = vadd.f32 %v20684_v58, %v19217_v16  ;;  %v20751_v50 = vpop.f32.mrf.mxu1 }
 0x311   : > { %20790 = vmatpush3.xpose.msra.mxu0 %v24637_v35  ;;  %20801 = vmatprep.subr.mxu1 %v24585_v30 }
 0x312   : > { %20811 = vmatprep.subr.mxu0 %v24628_v36 }
 0x313   : > { %20802 = vmatpush3.xpose.msra.mxu1 %v24585_v30 }
 0x314   : > { %20792 = vmatmul.mubr.f32.vlgmr.msra.gmra.mxu0 %v24620_v52  ;;  %2164 = vrot.lane.b32.xlu1 %v24564_v57, %s23546_s10  ;;  %v2910_v57 = vadd.f32 %v19217_v16, %v2909_v10 }
 0x315   : > { %2817 = vrot.lane.b32.xlu0 %v24567_v0, %s23546_s10  ;;  %20794 = vmatprep.mubr.f32.mxu0 %v24631_v40 }
 0x316   : > { %20812 = vmatpush3.xpose.msra.mxu0 %v24628_v36  ;;  %20803 = vmatprep.subr.mxu1 %v24614_v51  ;;  %v3031_v17 = vadd.f32 %v3030_v13, %v2910_v57 }
 0x317   : > { %20813 = vmatprep.subr.mxu0 %v24634_v55  ;;  %20804 = vmatpush3.xpose.msra.mxu1 %v24614_v51 }
 0x318   : > { %20795 = vmatmul.mubr.f32.gmra.mxu0 %v24651_v56  ;;  %2168 = vrot.lane.b32.xlu1 %v24579_v23, %s23546_s10  ;;  %v3049_v23 = vadd.f32 %v20698_v1, %v2940_v11 }
 0x319   : > { %2162 = vrot.lane.b32.xlu0 %v24542_v6, %s23546_s10  ;;  %20819 = vmatprep.mubr.f32.mxu0 %v24548_v12  ;;  %v2920_v6 = vadd.f32 %v20681_v14, %v19217_v16 }
 0x31a   : > { %20814 = vmatpush3.xpose.msra.mxu0 %v24634_v55  ;;  %20825 = vmatprep.subr.mxu1 %v24599_v41 }
 0x31b   : > { %20815 = vmatprep.subr.mxu0 %v24643_v39  ;;  %20806 = vmatmul.mubr.f32.vlgmr.msra.gmra.mxu1 %v3586_v32  ;;  %v3037_v0 = vadd.f32 %v20695_v9, %v2920_v6 }
 0x31c   : > { %20808 = vmatprep.mubr.f32.mxu1 %v3596_v45  ;;  %20826 = vmatpush3.xpose.msra.mxu1 %v24599_v41 }
 0x31d   : > { %2166 = vrot.lane.b32.xlu0 %v24569_v15, %s23546_s10  ;;  %20827 = vmatprep.subr.mxu1 %v24608_v48  ;;  %v2929_v15 = vpop.f32.mrf.mxu0 }
 0x31e   : > { %20816 = vmatpush3.xpose.msra.mxu0 %v24643_v39  ;;  %v2930_v21 = vadd.f32 %v19217_v16, %v2929_v15 }
 0x31f   : > { %20817 = vmatprep.subr.mxu0 %v24658_v60  ;;  %20809 = vmatmul.mubr.f32.gmra.mxu1 %v3606_v62  ;;  %v20709_v63 = vpop.f32.mrf.mxu0 }
 0x320   : > { %20828 = vmatpush3.xpose.msra.mxu1 %v24608_v48  ;;  %20833 = vmatprep.mubr.f32.mxu1 %v24548_v12  ;;  %v3136_v22 = vadd.f32 %v20709_v63, %v3037_v0  ;;  %v3043_v29 = vadd.f32 %v3042_v18, %v2930_v21 }
 0x321   : > { %20829 = vmatprep.subr.mxu1 %v24585_v30  ;;  %v3128_v12 = vpop.f32.mrf.mxu0 }
 0x322   : > { %20818 = vmatpush3.xpose.msra.mxu0 %v24658_v60  ;;  %v3129_v24 = vadd.f32 %v3128_v12, %v3031_v17  ;;  %v3235_v33 = vadd.f32 %v20723_v7, %v3136_v22 }
 0x323   : > { %v20712_v25 = vpop.f32.mrf.mxu0 }
 0x324   : > { %20830 = vmatpush3.xpose.msra.mxu1 %v24585_v30  ;;  %v3150_v38 = vadd.f32 %v20712_v25, %v3049_v23  ;;  %v3227_v41 = vadd.f32 %v3226_v26, %v3129_v24 }
 0x325   : > { %20820 = vmatmul.mubr.f32.vlgmr.msra.gmra.mxu0 %v24595_v37  ;;  %20831 = vmatprep.subr.mxu1 %v24614_v51  ;;  %v3142_v30 = vpop.f32.mrf.mxu0 }
 0x326   : > { %20822 = vmatprep.mubr.f32.mxu0 %v24605_v44  ;;  %v3143_v47 = vadd.f32 %v3142_v30, %v3043_v29  ;;  %v3251_v28 = vadd.f32 %v20726_v34, %v3150_v38 }
 0x327   : > { %v20737_v43 = vpop.f32.mrf.mxu0 }
 0x328   : > { %20832 = vmatpush3.xpose.msra.mxu1 %v24614_v51  ;;  %v3340_v48 = vadd.f32 %v20737_v43, %v3235_v33  ;;  %v3243_v40 = vadd.f32 %v3242_v42, %v3143_v47 }
 0x329   : > { %20823 = vmatmul.mubr.f32.gmra.mxu0 %v24622_v27  ;;  %v3333_v52 = vpop.f32.mrf.mxu0 }
 0x32a   : > { %v24763_v51 = vadd.f32 %v20751_v50, %v3340_v48  ;;  %v3334_v36 = vadd.f32 %v3333_v52, %v3227_v41 }
 0x32b   : > { %20834 = vmatmul.mubr.f32.vlgmr.msra.gmra.mxu1 %v24595_v37  ;;  %v20740_v19 = vpop.f32.mrf.mxu0  ;;  %v3426_v37 = vpop.f32.mrf.mxu1 }
 0x32c   : > { %20836 = vmatprep.mubr.f32.mxu1 %v24605_v44  ;;  %28652 = vst [vmem:[#allocation34_spill] sm:$0xff] %v24763_v51  ;;  %3454 = vrot.lane.b32.xlu1 %v24763_v51, %s23544_s22  ;;  %v3352_v55 = vadd.f32 %v20740_v19, %v3251_v28  ;;  %v24768_v35 = vadd.f32 %v3426_v37, %v3334_v36 }
 0x32d   : > { %v3345_v44 = vpop.f32.mrf.mxu0  ;;  %v20754_v39 = vpop.f32.mrf.mxu1 }
 0x32e   : > { %v3346_v53 = vadd.f32 %v3345_v44, %v3243_v40  ;;  %v24770_v49 = vadd.f32 %v20754_v39, %v3352_v55 }
 0x32f   : > { %20837 = vmatmul.mubr.f32.gmra.mxu1 %v24622_v27  ;;  %v3438_v32 = vpop.f32.mrf.mxu1 }
 0x330   : > { %28653 = vst [vmem:[#allocation35_spill] sm:$0xff] %v24770_v49  ;;  %3452 = vrot.lane.b32.xlu1 %v24768_v35, %s23544_s22  ;;  %v24774_v56 = vadd.f32 %v3438_v32, %v3346_v53 }
 0x332   : > { %28654 = vst [vmem:[#allocation36_spill] sm:$0xff] %v24774_v56  ;;  %3456 = vrot.lane.b32.xlu0 %v24774_v56, %s23544_s22 }
 0x334   : > { %3458 = vrot.lane.b32.xlu1 %v24770_v49, %s23544_s22 }
 0x35d   : > { %v2802_v27 = vpop.permute.xlu1 %2801 }
 0x35e   : > { %v4129_v45 = vsel %vm3488_vm2, %v2802_v27, 0 }
 0x35f   : > { %v24781_v46 = vand.u32 4294901760, %v4129_v45 }
 0x361   : > { %v2806_v59 = vpop.permute.xlu0 %2805  ;;  %v2800_v60 = vpop.permute.xlu1 %2799  ;;  %v24788_v3 = vsub.f32 %v4129_v45, %v24781_v46 }
 0x362   : > { %v4133_v54 = vsel %vm3488_vm2, %v2806_v59, 0  ;;  %v4127_v62 = vsel %vm3488_vm2, %v2800_v60, 0 }
 0x363   : > { %v24785_v2 = vand.u32 4294901760, %v4133_v54  ;;  %v24793_v61 = vand.u32 4294901760, %v4127_v62  ;;  %v24814_v13 = vand.u32 4294901760, %v24788_v3 }
 0x365   : > { %v24791_v31 = vsub.f32 %v4133_v54, %v24785_v2  ;;  %v2804_v4 = vpop.permute.xlu0 %2803  ;;  %20839 = vmatprep.subr.mxu0 %v24785_v2  ;;  %v24807_v10 = vsub.f32 %v4127_v62, %v24793_v61  ;;  %v4286_v23 = vsub.f32 %v24788_v3, %v24814_v13 }
 0x366   : > { %v4131_v20 = vsel %vm3488_vm2, %v2804_v4, 0  ;;  %v2149_v5 = vpop.permute.xlu1 %2148  ;;  %20840 = vmatpush3.xpose.msra.mxu0 %v24785_v2 }
 0x367   : > { %v24798_v8 = vand.u32 4294901760, %v4131_v20  ;;  %v4121_v14 = vsel %vm3488_vm2, %v2149_v5, 0  ;;  %v24802_v16 = vand.u32 4294901760, %v24791_v31  ;;  %v24836_v24 = vand.u32 4294901760, %v24807_v10 }
 0x368   : > { %v24804_v6 = vand.u32 4294901760, %v4121_v14  ;;  %v4287_v41 = vand.u32 4294901760, %v4286_v23 }
 0x369   : > { %v4277_v9 = vsub.f32 %v4131_v20, %v24798_v8  ;;  %v2147_v57 = vpop.permute.xlu0 %2146  ;;  %20841 = vmatprep.subr.mxu0 %v24798_v8  ;;  %v4272_v58 = vsub.f32 %v24791_v31, %v24802_v16  ;;  %v4293_v43 = vsub.f32 %v24807_v10, %v24836_v24 }
 0x36a   : > { %v24817_v0 = vsub.f32 %v4121_v14, %v24804_v6  ;;  %v2153_v15 = vpop.permute.xlu1 %2152  ;;  %v4119_v1 = vsel %vm3488_vm2, %v2147_v57, 0  ;;  %20842 = vmatpush3.xpose.msra.mxu0 %v24798_v8 }
 0x36b   : > { %v4125_v11 = vsel %vm3488_vm2, %v2153_v15, 0  ;;  %v24822_v17 = vand.u32 4294901760, %v4119_v1  ;;  %20843 = vmatprep.subr.mxu0 %v24781_v46  ;;  %v4273_v18 = vand.u32 4294901760, %v4272_v58  ;;  %v24825_v63 = vand.u32 4294901760, %v4277_v9 }
 0x36c   : > { %v4216_v21 = vand.u32 4294901760, %v24817_v0  ;;  %v24828_v22 = vand.u32 4294901760, %v4125_v11  ;;  %v4294_v36 = vand.u32 4294901760, %v4293_v43 }
 0x36d   : > { %v4205_v12 = vsub.f32 %v4119_v1, %v24822_v17  ;;  %20853 = vmatprep.subr.mxu1 %v4273_v18  ;;  %20861 = vmatprep.mubr.f32.mxu1 %v24822_v17  ;;  %v4279_v7 = vsub.f32 %v4277_v9, %v24825_v63 }
 0x36e   : > { %v24839_v25 = vsub.f32 %v4125_v11, %v24828_v22  ;;  %v2151_v26 = vpop.permute.xlu0 %2150  ;;  %20844 = vmatpush3.xpose.msra.mxu0 %v24781_v46  ;;  %20854 = vmatpush3.xpose.msra.mxu1 %v4273_v18  ;;  %v4217_v34 = vsub.f32 %v24817_v0, %v4216_v21  ;;  %v2812_v53 = vpop.permute.xlu1 %2811 }
 0x36f   : > { %v4123_v29 = vsel %vm3488_vm2, %v2151_v26, 0  ;;  %20845 = vmatprep.subr.mxu0 %v24793_v61  ;;  %v4280_v33 = vand.u32 4294901760, %v4279_v7  ;;  %v4206_v30 = vand.u32 4294901760, %v4205_v12  ;;  %v4761_v60 = vsel %vm3488_vm2, %v2812_v53, 0 }
 0x370   : > { %v24847_v38 = vand.u32 4294901760, %v4123_v29  ;;  %v4236_v47 = vand.u32 4294901760, %v24839_v25  ;;  %v4218_v52 = vand.u32 4294901760, %v4217_v34 }
 0x371   : > { %20855 = vmatprep.subr.mxu1 %v4280_v33  ;;  %v4207_v42 = vsub.f32 %v4205_v12, %v4206_v30 }
 0x372   : > { %v24853_v48 = vsub.f32 %v4123_v29, %v24847_v38  ;;  %20846 = vmatpush3.xpose.msra.mxu0 %v24793_v61  ;;  %20856 = vmatpush3.xpose.msra.mxu1 %v4280_v33  ;;  %v4237_v40 = vsub.f32 %v24839_v25, %v4236_v47  ;;  %v2814_v37 = vpop.permute.xlu0 %2813  ;;  %v2808_v45 = vpop.permute.xlu1 %2807 }
 0x373   : > { %20857 = vmatprep.subr.mxu1 %v4287_v41  ;;  %20867 = vmatprep.subr.mxu0 %v24791_v31  ;;  %v4208_v50 = vand.u32 4294901760, %v4207_v42  ;;  %v4763_v27 = vsel %vm3488_vm2, %v2814_v37, 0 }
 0x374   : > { %v4226_v28 = vand.u32 4294901760, %v24853_v48  ;;  %v4238_v44 = vand.u32 4294901760, %v4237_v40  ;;  %v24884_v54 = vand.u32 4294901760, %v4763_v27 }
 0x375   : > { %20847 = vmatprep.mubr.f32.mxu0 %v4208_v50 }
 0x376   : > { %20848 = vmatmul.mubr.f32.vlgmr.msra.gmra.mxu0 %v4218_v52  ;;  %20858 = vmatpush3.xpose.msra.mxu1 %v4287_v41  ;;  %v4227_v19 = vsub.f32 %v24853_v48, %v4226_v28  ;;  %v2810_v39 = vpop.permute.xlu0 %2809  ;;  %v2157_v4 = vpop.permute.xlu1 %2156 }
 0x377   : > { %20868 = vmatpush3.xpose.msra.mxu0 %v24791_v31  ;;  %20859 = vmatprep.subr.mxu1 %v4294_v36  ;;  %v24897_v31 = vsub.f32 %v4763_v27, %v24884_v54  ;;  %v4759_v20 = vsel %vm3488_vm2, %v2810_v39, 0 }
 0x378   : > { %20869 = vmatprep.subr.mxu0 %v4277_v9  ;;  %v4228_v55 = vand.u32 4294901760, %v4227_v19 }
 0x379   : > { %v24919_v57 = vand.u32 4294901760, %v24897_v31 }
 0x37a   : > { %20850 = vmatprep.mubr.f32.mxu0 %v4228_v55  ;;  %20860 = vmatpush3.xpose.msra.mxu1 %v4294_v36  ;;  %v2155_v32 = vpop.permute.xlu0 %2154 }
 0x37b   : > { %20851 = vmatmul.mubr.f32.gmra.mxu0 %v4238_v44  ;;  %20881 = vmatprep.subr.mxu1 %v24785_v2  ;;  %v4749_v59 = vsel %vm3488_vm2, %v2155_v32, 0 }
 0x37c   : > { %20870 = vmatpush3.xpose.msra.mxu0 %v4277_v9  ;;  %20875 = vmatprep.mubr.f32.mxu0 %v4205_v12  ;;  %v24887_v62 = vand.u32 4294901760, %v4749_v59  ;;  %v24913_v9 = vand.u32 4294901760, %v4759_v20 }
 0x37d   : > { %20871 = vmatprep.subr.mxu0 %v24788_v3  ;;  %20862 = vmatmul.mubr.f32.vlgmr.msra.gmra.mxu1 %v24804_v6 }
 0x37e   : > { %20864 = vmatprep.mubr.f32.mxu1 %v24847_v38  ;;  %20882 = vmatpush3.xpose.msra.mxu1 %v24785_v2  ;;  %v24904_v5 = vsub.f32 %v4749_v59, %v24887_v62 }
 0x37f   : > { %20883 = vmatprep.subr.mxu1 %v24798_v8 }
 0x380   : > { %20872 = vmatpush3.xpose.msra.mxu0 %v24788_v3  ;;  %v24892_v3 = vand.u32 4294901760, %v4761_v60  ;;  %v4836_v58 = vand.u32 4294901760, %v24904_v5 }
 0x381   : > { %20873 = vmatprep.subr.mxu0 %v24807_v10  ;;  %20865 = vmatmul.mubr.f32.gmra.mxu1 %v24828_v22 }
 0x382   : > { %20884 = vmatpush3.xpose.msra.mxu1 %v24798_v8  ;;  %20889 = vmatprep.mubr.f32.mxu1 %v4206_v30  ;;  %v24909_v14 = vsub.f32 %v4761_v60, %v24892_v3 }
 0x383   : > { %20885 = vmatprep.subr.mxu1 %v24781_v46 }
 0x384   : > { %20874 = vmatpush3.xpose.msra.mxu0 %v24807_v10  ;;  %v4757_v10 = vsel %vm3488_vm2, %v2808_v45, 0  ;;  %v24931_v1 = vand.u32 4294901760, %v24909_v14 }
 0x385   : > { %20895 = vmatprep.subr.mxu0 %v24802_v16  ;;  %v24927_v15 = vand.u32 4294901760, %v4757_v10 }
 0x386   : > { %20886 = vmatpush3.xpose.msra.mxu1 %v24781_v46  ;;  %v4909_v7 = vsub.f32 %v24909_v14, %v24931_v1 }
 0x387   : > { %20876 = vmatmul.mubr.f32.vlgmr.msra.gmra.mxu0 %v24817_v0  ;;  %20887 = vmatprep.subr.mxu1 %v24793_v61  ;;  %v24951_v12 = vsub.f32 %v4757_v10, %v24927_v15 }
 0x388   : > { %20878 = vmatprep.mubr.f32.mxu0 %v24853_v48  ;;  %20896 = vmatpush3.xpose.msra.mxu0 %v24802_v16  ;;  %v2159_v16 = vpop.permute.xlu0 %2158  ;;  %v4910_v33 = vand.u32 4294901760, %v4909_v7 }
 0x389   : > { %20897 = vmatprep.subr.mxu0 %v24825_v63  ;;  %v4753_v0 = vsel %vm3488_vm2, %v2159_v16, 0  ;;  %v24981_v41 = vand.u32 4294901760, %v24951_v12 }
 0x38a   : > { %20888 = vmatpush3.xpose.msra.mxu1 %v24793_v61 }
 0x38b   : > { %20879 = vmatmul.mubr.f32.gmra.mxu0 %v24839_v25  ;;  %20909 = vmatprep.subr.mxu1 %v24785_v2 }
 0x38c   : > { %20898 = vmatpush3.xpose.msra.mxu0 %v24825_v63  ;;  %20903 = vmatprep.mubr.f32.mxu0 %v24822_v17  ;;  %v24942_v63 = vand.u32 4294901760, %v4753_v0  ;;  %v2822_v36 = vpop.permute.xlu0 %2821 }
 0x38d   : > { %20899 = vmatprep.subr.mxu0 %v24814_v13  ;;  %20890 = vmatmul.mubr.f32.vlgmr.msra.gmra.mxu1 %v4216_v21  ;;  %v4837_v21 = vsub.f32 %v24904_v5, %v4836_v58  ;;  %v5393_v44 = vsel %vm3488_vm2, %v2822_v36, 0 }
 0x38e   : > { %20892 = vmatprep.mubr.f32.mxu1 %v4226_v28  ;;  %20910 = vmatpush3.xpose.msra.mxu1 %v24785_v2  ;;  %v4751_v2 = vsel %vm3488_vm2, %v2157_v4, 0  ;;  %v24967_v26 = vsub.f32 %v4753_v0, %v24942_v63  ;;  %v25030_v27 = vand.u32 4294901760, %v5393_v44 }
 0x38f   : > { %20911 = vmatprep.subr.mxu1 %v24798_v8  ;;  %v24933_v11 = vand.u32 4294901760, %v4751_v2  ;;  %v4838_v29 = vand.u32 4294901760, %v4837_v21 }
 0x390   : > { %20900 = vmatpush3.xpose.msra.mxu0 %v24814_v13  ;;  %v2161_v13 = vpop.permute.xlu1 %2160  ;;  %v4856_v42 = vand.u32 4294901760, %v24967_v26  ;;  %v2818_v19 = vpop.permute.xlu0 %2817  ;;  %v25043_v60 = vsub.f32 %v5393_v44, %v25030_v27 }
 0x391   : > { %20901 = vmatprep.subr.mxu0 %v24836_v24  ;;  %20893 = vmatmul.mubr.f32.gmra.mxu1 %v4236_v47  ;;  %v4755_v18 = vsel %vm3488_vm2, %v2161_v13, 0  ;;  %v4923_v47 = vsub.f32 %v24951_v12, %v24981_v41  ;;  %v5389_v4 = vsel %vm3488_vm2, %v2818_v19, 0 }
 0x392   : > { %20912 = vmatpush3.xpose.msra.mxu1 %v24798_v8  ;;  %20917 = vmatprep.mubr.f32.mxu1 %v24822_v17  ;;  %v24936_v8 = vsub.f32 %v4759_v20, %v24913_v9  ;;  %v4902_v17 = vsub.f32 %v24897_v31, %v24919_v57  ;;  %v24960_v23 = vand.u32 4294901760, %v4755_v18  ;;  %v4857_v48 = vsub.f32 %v24967_v26, %v4856_v42 }
 0x393   : > { %20913 = vmatprep.subr.mxu1 %v24781_v46  ;;  %v25061_v10 = vand.u32 4294901760, %v5389_v4 }
 0x394   : > { %20902 = vmatpush3.xpose.msra.mxu0 %v24836_v24  ;;  %v4903_v24 = vand.u32 4294901760, %v4902_v17  ;;  %v24964_v25 = vand.u32 4294901760, %v24936_v8  ;;  %v24974_v34 = vsub.f32 %v4755_v18, %v24960_v23  ;;  %v4858_v28 = vand.u32 4294901760, %v4857_v48  ;;  %v2820_v37 = vpop.permute.xlu1 %2819  ;;  %v2163_v55 = vpop.permute.xlu0 %2162 }
 0x395   : > { %20923 = vmatprep.subr.mxu0 %v24884_v54  ;;  %v5379_v53 = vsel %vm3488_vm2, %v2163_v55, 0  ;;  %v5391_v32 = vsel %vm3488_vm2, %v2820_v37, 0 }
 0x396   : > { %20914 = vmatpush3.xpose.msra.mxu1 %v24781_v46  ;;  %v24958_v46 = vsub.f32 %v4751_v2, %v24933_v11  ;;  %v25033_v45 = vand.u32 4294901760, %v5379_v53  ;;  %v25038_v59 = vand.u32 4294901760, %v5391_v32 }
 0x397   : > { %20904 = vmatmul.mubr.f32.vlgmr.msra.gmra.mxu0 %v24804_v6  ;;  %20915 = vmatprep.subr.mxu1 %v24793_v61 }
 0x398   : > { %20906 = vmatprep.mubr.f32.mxu0 %v24847_v38  ;;  %20924 = vmatpush3.xpose.msra.mxu0 %v24884_v54  ;;  %v4846_v30 = vand.u32 4294901760, %v24958_v46  ;;  %v2816_v39 = vpop.permute.xlu1 %2815  ;;  %v25050_v20 = vsub.f32 %v5379_v53, %v25033_v45 }
 0x399   : > { %20925 = vmatprep.subr.mxu0 %v24892_v3  ;;  %v5387_v16 = vsel %vm3488_vm2, %v2816_v39, 0 }
 0x39a   : > { %20916 = vmatpush3.xpose.msra.mxu1 %v24793_v61  ;;  %v4916_v61 = vsub.f32 %v24936_v8, %v24964_v25  ;;  %v4847_v43 = vsub.f32 %v24958_v46, %v4846_v30  ;;  %v5466_v2 = vand.u32 4294901760, %v25050_v20  ;;  %v25075_v0 = vand.u32 4294901760, %v5387_v16 }
 0x39b   : > { %20907 = vmatmul.mubr.f32.gmra.mxu0 %v24828_v22  ;;  %20937 = vmatprep.subr.mxu1 %v4903_v24 }
 0x39c   : > { %20926 = vmatpush3.xpose.msra.mxu0 %v24892_v3  ;;  %20931 = vmatprep.mubr.f32.mxu0 %v4838_v29  ;;  %v4848_v50 = vand.u32 4294901760, %v4847_v43  ;;  %v5467_v21 = vsub.f32 %v25050_v20, %v5466_v2 }
 0x39d   : > { %20927 = vmatprep.subr.mxu0 %v24913_v9  ;;  %20918 = vmatmul.mubr.f32.vlgmr.msra.gmra.mxu1 %v24804_v6  ;;  %v4917_v6 = vand.u32 4294901760, %v4916_v61 }
 0x39e   : > { %20920 = vmatprep.mubr.f32.mxu1 %v24847_v38  ;;  %20938 = vmatpush3.xpose.msra.mxu1 %v4903_v24  ;;  %v4866_v38 = vand.u32 4294901760, %v24974_v34 }
 0x39f   : > { %20939 = vmatprep.subr.mxu1 %v4910_v33 }
 0x3a0   : > { %20928 = vmatpush3.xpose.msra.mxu0 %v24913_v9  ;;  %v4867_v52 = vsub.f32 %v24974_v34, %v4866_v38 }
 0x3a1   : > { %20929 = vmatprep.subr.mxu0 %v24927_v15  ;;  %20921 = vmatmul.mubr.f32.gmra.mxu1 %v24828_v22  ;;  %v4924_v22 = vand.u32 4294901760, %v4923_v47 }
 0x3a2   : > { %20940 = vmatpush3.xpose.msra.mxu1 %v4910_v33  ;;  %20945 = vmatprep.mubr.f32.mxu1 %v24887_v62  ;;  %v4868_v40 = vand.u32 4294901760, %v4867_v52  ;;  %v5468_v33 = vand.u32 4294901760, %v5467_v21  ;;  %v25190_v21 = vld [vmem:[#allocation5 + $0x10] sm:$0xff] }
 0x3a3   : > { %20941 = vmatprep.subr.mxu1 %v4917_v6 }
 0x3a4   : > { %20930 = vmatpush3.xpose.msra.mxu0 %v24927_v15 }
 0x3a5   : > { %20951 = vmatprep.subr.mxu0 %v24897_v31 }
 0x3a6   : > { %20942 = vmatpush3.xpose.msra.mxu1 %v4917_v6 }
 0x3a7   : > { %20932 = vmatmul.mubr.f32.vlgmr.msra.gmra.mxu0 %v4848_v50  ;;  %20943 = vmatprep.subr.mxu1 %v4924_v22 }
 0x3a8   : > { %20934 = vmatprep.mubr.f32.mxu0 %v4858_v28  ;;  %20952 = vmatpush3.xpose.msra.mxu0 %v24897_v31  ;;  %v2165_v31 = vpop.permute.xlu1 %2164 }
 0x3a9   : > { %20953 = vmatprep.subr.mxu0 %v24909_v14 }
 0x3aa   : > { %20944 = vmatpush3.xpose.msra.mxu1 %v4924_v22 }
 0x3ab   : > { %20935 = vmatmul.mubr.f32.gmra.mxu0 %v4868_v40  ;;  %20965 = vmatprep.subr.mxu1 %v24884_v54 }
 0x3ac   : > { %20954 = vmatpush3.xpose.msra.mxu0 %v24909_v14  ;;  %20959 = vmatprep.mubr.f32.mxu0 %v24904_v5  ;;  %v25057_v5 = vsub.f32 %v5391_v32, %v25038_v59  ;;  %v2167_v14 = vpop.permute.xlu0 %2166  ;;  %v25166_v32 = vld [vmem:[#allocation5 + $0x8] sm:$0xff] }
 0x3ad   : > { %20955 = vmatprep.subr.mxu0 %v24936_v8  ;;  %20946 = vmatmul.mubr.f32.vlgmr.msra.gmra.mxu1 %v24933_v11  ;;  %v5383_v13 = vsel %vm3488_vm2, %v2167_v14, 0  ;;  %v25179_v14 = vld [vmem:[#allocation5 + $0x18] sm:$0xff] }
 0x3ae   : > { %20948 = vmatprep.mubr.f32.mxu1 %v24942_v63  ;;  %20966 = vmatpush3.xpose.msra.mxu1 %v24884_v54  ;;  %v25090_v18 = vand.u32 4294901760, %v5383_v13 }
 0x3af   : > { %20967 = vmatprep.subr.mxu1 %v24892_v3 }
 0x3b0   : > { %20956 = vmatpush3.xpose.msra.mxu0 %v24936_v8  ;;  %v25117_v29 = vsub.f32 %v5383_v13, %v25090_v18 }
 0x3b1   : > { %20957 = vmatprep.subr.mxu0 %v24951_v12  ;;  %20949 = vmatmul.mubr.f32.gmra.mxu1 %v24960_v23 }
 0x3b2   : > { %20968 = vmatpush3.xpose.msra.mxu1 %v24892_v3  ;;  %20973 = vmatprep.mubr.f32.mxu1 %v4836_v58  ;;  %v2169_v58 = vpop.permute.xlu1 %2168  ;;  %v5486_v43 = vand.u32 4294901760, %v25117_v29 }
 0x3b3   : > { %20969 = vmatprep.subr.mxu1 %v24913_v9  ;;  %v5385_v17 = vsel %vm3488_vm2, %v2169_v58, 0 }
 0x3b4   : > { %20958 = vmatpush3.xpose.msra.mxu0 %v24951_v12  ;;  %v25099_v12 = vsub.f32 %v5387_v16, %v25075_v0  ;;  %v5487_v50 = vsub.f32 %v25117_v29, %v5486_v43 }
 0x3b5   : > { %20979 = vmatprep.subr.mxu0 %v24919_v57 }
 0x3b6   : > { %20970 = vmatpush3.xpose.msra.mxu1 %v24913_v9  ;;  %v5488_v40 = vand.u32 4294901760, %v5487_v50 }
 0x3b7   : > { %20960 = vmatmul.mubr.f32.vlgmr.msra.gmra.mxu0 %v24958_v46  ;;  %20971 = vmatprep.subr.mxu1 %v24927_v15  ;;  %v25108_v46 = vand.u32 4294901760, %v5385_v17 }
 0x3b8   : > { %20962 = vmatprep.mubr.f32.mxu0 %v24967_v26  ;;  %20980 = vmatpush3.xpose.msra.mxu0 %v24919_v57  ;;  %v25067_v57 = vand.u32 4294901760, %v25043_v60 }
 0x3b9   : > { %20981 = vmatprep.subr.mxu0 %v24931_v1  ;;  %v25124_v61 = vsub.f32 %v5385_v17, %v25108_v46 }
 0x3ba   : > { %20972 = vmatpush3.xpose.msra.mxu1 %v24927_v15 }
 0x3bb   : > { %20963 = vmatmul.mubr.f32.gmra.mxu0 %v24974_v34  ;;  %20993 = vmatprep.subr.mxu1 %v24884_v54  ;;  %v5496_v48 = vand.u32 4294901760, %v25124_v61 }
 0x3bc   : > { %20982 = vmatpush3.xpose.msra.mxu0 %v24931_v1  ;;  %20987 = vmatprep.mubr.f32.mxu0 %v24887_v62  ;;  %v25079_v1 = vand.u32 4294901760, %v25057_v5 }
 0x3bd   : > { %20983 = vmatprep.subr.mxu0 %v24964_v25  ;;  %20974 = vmatmul.mubr.f32.vlgmr.msra.gmra.mxu1 %v4846_v30  ;;  %v5497_v36 = vsub.f32 %v25124_v61, %v5496_v48 }
 0x3be   : > { %20976 = vmatprep.mubr.f32.mxu1 %v4856_v42  ;;  %20994 = vmatpush3.xpose.msra.mxu1 %v24884_v54  ;;  %v5381_v54 = vsel %vm3488_vm2, %v2165_v31, 0  ;;  %v5539_v7 = vsub.f32 %v25057_v5, %v25079_v1  ;;  %v25133_v42 = vand.u32 4294901760, %v25099_v12  ;;  %v25170_v31 = vld [vmem:[#allocation5] sm:$0xff] }
 0x3bf   : > { %20995 = vmatprep.subr.mxu1 %v24892_v3  ;;  %v25081_v8 = vand.u32 4294901760, %v5381_v54  ;;  %v5498_v55 = vand.u32 4294901760, %v5497_v36 }
 0x3c0   : > { %20984 = vmatpush3.xpose.msra.mxu0 %v24964_v25  ;;  %v5540_v30 = vand.u32 4294901760, %v5539_v7 }
 0x3c1   : > { %20985 = vmatprep.subr.mxu0 %v24981_v41  ;;  %20977 = vmatmul.mubr.f32.gmra.mxu1 %v4866_v38 }
 0x3c2   : > { %20996 = vmatpush3.xpose.msra.mxu1 %v24892_v3  ;;  %21001 = vmatprep.mubr.f32.mxu1 %v24887_v62  ;;  %v25084_v3 = vsub.f32 %v5389_v4, %v25061_v10  ;;  %v5532_v62 = vsub.f32 %v25043_v60, %v25067_v57  ;;  %v25110_v24 = vpop.f32.mrf.mxu0 }
 0x3c3   : > { %20997 = vmatprep.subr.mxu1 %v24913_v9 }
 0x3c4   : > { %20986 = vmatpush3.xpose.msra.mxu0 %v24981_v41  ;;  %v5533_v25 = vand.u32 4294901760, %v5532_v62  ;;  %v25114_v26 = vand.u32 4294901760, %v25084_v3  ;;  %v25126_v41 = vpop.f32.mrf.mxu0 }
 0x3c5   : > { %21007 = vmatprep.subr.mxu0 %v25030_v27 }
 0x3c6   : > { %20998 = vmatpush3.xpose.msra.mxu1 %v24913_v9  ;;  %v25106_v9 = vsub.f32 %v5381_v54, %v25081_v8  ;;  %v3581_v54 = vadd.f32 %v25126_v41, %v25170_v31 }
 0x3c7   : > { %20988 = vmatmul.mubr.f32.vlgmr.msra.gmra.mxu0 %v24933_v11  ;;  %20999 = vmatprep.subr.mxu1 %v24927_v15 }
 0x3c8   : > { %20990 = vmatprep.mubr.f32.mxu0 %v24942_v63  ;;  %21008 = vmatpush3.xpose.msra.mxu0 %v25030_v27  ;;  %v5476_v34 = vand.u32 4294901760, %v25106_v9 }
 0x3c9   : > { %21009 = vmatprep.subr.mxu0 %v25038_v59 }
 0x3ca   : > { %21000 = vmatpush3.xpose.msra.mxu1 %v24927_v15  ;;  %v5546_v15 = vsub.f32 %v25084_v3, %v25114_v26  ;;  %v20779_v6 = vpop.f32.mrf.mxu1  ;;  %v5477_v47 = vsub.f32 %v25106_v9, %v5476_v34 }
 0x3cb   : > { %20991 = vmatmul.mubr.f32.gmra.mxu0 %v24960_v23  ;;  %21021 = vmatprep.subr.mxu1 %v5533_v25 }
 0x3cc   : > { %21010 = vmatpush3.xpose.msra.mxu0 %v25038_v59  ;;  %21015 = vmatprep.mubr.f32.mxu0 %v5468_v33  ;;  %v5547_v38 = vand.u32 4294901760, %v5546_v15  ;;  %v3701_v22 = vpop.f32.mrf.mxu1  ;;  %v5478_v52 = vand.u32 4294901760, %v5477_v47  ;;  %v25197_v15 = vand.u32 4294901760, %v24770_v49 }
 0x3cd   : > { %21011 = vmatprep.subr.mxu0 %v25061_v10  ;;  %21002 = vmatmul.mubr.f32.vlgmr.msra.gmra.mxu1 %v24933_v11  ;;  %v20768_v11 = vpop.f32.mrf.mxu0  ;;  %v3702_v17 = vadd.f32 %v3701_v22, %v3581_v54 }
 0x3ce   : > { %21004 = vmatprep.mubr.f32.mxu1 %v24942_v63  ;;  %21022 = vmatpush3.xpose.msra.mxu1 %v5533_v25  ;;  %v5553_v63 = vsub.f32 %v25099_v12, %v25133_v42  ;;  %v20782_v19 = vpop.f32.mrf.mxu1  ;;  %v3611_v62 = vadd.f32 %v20768_v11, %v25179_v14 }
 0x3cf   : > { %21023 = vmatprep.subr.mxu1 %v5540_v30  ;;  %v25151_v28 = vpop.f32.mrf.mxu0 }
 0x3d0   : > { %21012 = vmatpush3.xpose.msra.mxu0 %v25061_v10  ;;  %v3713_v44 = vpop.f32.mrf.mxu1  ;;  %v3720_v7 = vadd.f32 %v20782_v19, %v3611_v62 }
 0x3d1   : > { %21013 = vmatprep.subr.mxu0 %v25075_v0  ;;  %21005 = vmatmul.mubr.f32.gmra.mxu1 %v24960_v23  ;;  %v5554_v23 = vand.u32 4294901760, %v5553_v63 }
 0x3d2   : > { %21024 = vmatpush3.xpose.msra.mxu1 %v5540_v30  ;;  %21029 = vmatprep.mubr.f32.mxu1 %v25033_v45 }
 0x3d3   : > { %21025 = vmatprep.subr.mxu1 %v5547_v38 }
 0x3d4   : > { %21014 = vmatpush3.xpose.msra.mxu0 %v25075_v0  ;;  %v20793_v37 = vpop.f32.mrf.mxu0 }
 0x3d5   : > { %21035 = vmatprep.subr.mxu0 %v25043_v60 }
 0x3d6   : > { %21026 = vmatpush3.xpose.msra.mxu1 %v5547_v38  ;;  %v3799_v39 = vpop.f32.mrf.mxu0 }
 0x3d7   : > { %21016 = vmatmul.mubr.f32.vlgmr.msra.gmra.mxu0 %v5478_v52  ;;  %21027 = vmatprep.subr.mxu1 %v5554_v23 }
 0x3d8   : > { %21018 = vmatprep.mubr.f32.mxu0 %v5488_v40  ;;  %21036 = vmatpush3.xpose.msra.mxu0 %v25043_v60  ;;  %v20796_v60 = vpop.f32.mrf.mxu0 }
 0x3d9   : > { %21037 = vmatprep.subr.mxu0 %v25057_v5  ;;  %v3821_v33 = vadd.f32 %v20796_v60, %v3720_v7 }
 0x3da   : > { %21028 = vmatpush3.xpose.msra.mxu1 %v5554_v23  ;;  %v3813_v16 = vpop.f32.mrf.mxu0  ;;  %v25218_v23 = vand.u32 4294901760, %v24774_v56 }
 0x3db   : > { %21019 = vmatmul.mubr.f32.gmra.mxu0 %v5498_v55  ;;  %21049 = vmatprep.subr.mxu1 %v25030_v27  ;;  %v20807_v53 = vpop.f32.mrf.mxu1  ;;  %v25237_v55 = vand.u32 4294901760, %v24768_v35 }
 0x3dc   : > { %21038 = vmatpush3.xpose.msra.mxu0 %v25057_v5  ;;  %21043 = vmatprep.mubr.f32.mxu0 %v25050_v20  ;;  %v3591_v5 = vadd.f32 %v25110_v24, %v25166_v32  ;;  %v3800_v24 = vadd.f32 %v3799_v39, %v3702_v17  ;;  %v25246_v39 = vsub.f32 %v24774_v56, %v25218_v23 }
 0x3dd   : > { %21039 = vmatprep.subr.mxu0 %v25084_v3  ;;  %21030 = vmatmul.mubr.f32.vlgmr.msra.gmra.mxu1 %v25081_v8  ;;  %v3897_v4 = vpop.f32.mrf.mxu1 }
 0x3de   : > { %21032 = vmatprep.mubr.f32.mxu1 %v25090_v18  ;;  %21050 = vmatpush3.xpose.msra.mxu1 %v25030_v27  ;;  %v3708_v58 = vadd.f32 %v20779_v6, %v3591_v5  ;;  %v3898_v30 = vadd.f32 %v3897_v4, %v3800_v24  ;;  %v3601_v6 = vadd.f32 %v25151_v28, %v25190_v21 }
 0x3df   : > { %21051 = vmatprep.subr.mxu1 %v25038_v59  ;;  %v20810_v13 = vpop.f32.mrf.mxu1 }
 0x3e0   : > { %21040 = vmatpush3.xpose.msra.mxu0 %v25084_v3  ;;  %v3807_v20 = vadd.f32 %v20793_v37, %v3708_v58  ;;  %v3714_v50 = vadd.f32 %v3713_v44, %v3601_v6 }
 0x3e1   : > { %21041 = vmatprep.subr.mxu0 %v25099_v12  ;;  %21033 = vmatmul.mubr.f32.gmra.mxu1 %v25108_v46  ;;  %v3913_v25 = vpop.f32.mrf.mxu1 }
 0x3e2   : > { %21052 = vmatpush3.xpose.msra.mxu1 %v25038_v59  ;;  %21057 = vmatprep.mubr.f32.mxu1 %v5466_v2  ;;  %v3814_v36 = vadd.f32 %v3813_v16, %v3714_v50 }
 0x3e3   : > { %21053 = vmatprep.subr.mxu1 %v25061_v10 }
 0x3e4   : > { %21042 = vmatpush3.xpose.msra.mxu0 %v25099_v12  ;;  %v3906_v12 = vadd.f32 %v20807_v53, %v3807_v20  ;;  %v3914_v19 = vadd.f32 %v3913_v25, %v3814_v36  ;;  %v25268_v53 = vsub.f32 %v24768_v35, %v25237_v55 }
 0x3e5   : > { %v20821_v3 = vpop.f32.mrf.mxu0  ;;  %21063 = vmatprep.subr.mxu0 %v25067_v57 }
 0x3e6   : > { %21054 = vmatpush3.xpose.msra.mxu1 %v25061_v10  ;;  %v4011_v41 = vadd.f32 %v20821_v3, %v3906_v12  ;;  %28657 = vst [vmem:[#allocation39_spill] sm:$0xff] %v25268_v53  ;;  %v25285_v16 = vand.u32 4294901760, %v25268_v53 }
 0x3e7   : > { %v4004_v2 = vpop.f32.mrf.mxu0  ;;  %21044 = vmatmul.mubr.f32.vlgmr.msra.gmra.mxu0 %v25106_v9  ;;  %21055 = vmatprep.subr.mxu1 %v25075_v0  ;;  %v25223_v9 = vsub.f32 %v24770_v49, %v25197_v15 }
 0x3e8   : > { %21046 = vmatprep.mubr.f32.mxu0 %v25117_v29  ;;  %21064 = vmatpush3.xpose.msra.mxu0 %v25067_v57  ;;  %v3922_v57 = vadd.f32 %v20810_v13, %v3821_v33  ;;  %v4005_v38 = vadd.f32 %v4004_v2, %v3898_v30  ;;  %28659 = vst [vmem:[#allocation41_spill] sm:$0xff] %v25285_v16 }
 0x3e9   : > { %21065 = vmatprep.subr.mxu0 %v25079_v1  ;;  %v20824_v47 = vpop.f32.mrf.mxu0  ;;  %v6355_v13 = vsub.f32 %v25268_v53, %v25285_v16 }
 0x3ea   : > { %21056 = vmatpush3.xpose.msra.mxu1 %v25075_v0  ;;  %v4023_v52 = vadd.f32 %v20824_v47, %v3922_v57 }
 0x3eb   : > { %21047 = vmatmul.mubr.f32.gmra.mxu0 %v25124_v61  ;;  %v20835_v11 = vpop.f32.mrf.mxu1  ;;  %21077 = vmatprep.subr.mxu1 %v25030_v27  ;;  %v6356_v3 = vand.u32 4294901760, %v6355_v13 }
 0x3ec   : > { %v25203_v63 = vadd.f32 %v20835_v11, %v4011_v41  ;;  %21066 = vmatpush3.xpose.msra.mxu0 %v25079_v1  ;;  %21071 = vmatprep.mubr.f32.mxu0 %v25033_v45 }
 0x3ed   : > { %21067 = vmatprep.subr.mxu0 %v25114_v26  ;;  %v4097_v22 = vpop.f32.mrf.mxu1  ;;  %21058 = vmatmul.mubr.f32.vlgmr.msra.gmra.mxu1 %v5476_v34  ;;  %v4016_v34 = vpop.f32.mrf.mxu0 }
 0x3ee   : > { %v25210_v28 = vadd.f32 %v4097_v22, %v4005_v38  ;;  %21060 = vmatprep.mubr.f32.mxu1 %v5486_v43  ;;  %21078 = vmatpush3.xpose.msra.mxu1 %v25030_v27  ;;  %v6012_v1 = vsel %vm1511_vm1, %v25203_v63, -inf  ;;  %v25231_v43 = vand.u32 4294901760, %v24763_v51  ;;  %v4017_v44 = vadd.f32 %v4016_v34, %v3914_v19 }
 0x3ef   : > { %v20838_v40 = vpop.f32.mrf.mxu1  ;;  %6013 = vmax.xlane.f32.xlu1 %v6012_v1  ;;  %21079 = vmatprep.subr.mxu1 %v25038_v59 }
 0x3f0   : > { %v25225_v29 = vadd.f32 %v20838_v40, %v4023_v52  ;;  %21068 = vmatpush3.xpose.msra.mxu0 %v25114_v26  ;;  %v6009_v27 = vsel %vm1511_vm1, %v25210_v28, -inf  ;;  %v25242_v26 = vand.u32 4294901760, %v25223_v9 }
 0x3f1   : > { %21069 = vmatprep.subr.mxu0 %v25133_v42  ;;  %6010 = vmax.xlane.f32.xlu0 %v6009_v27  ;;  %v4109_v37 = vpop.f32.mrf.mxu1 }
 0x3f2   : > { %21061 = vmatmul.mubr.f32.gmra.mxu1 %v5496_v48  ;;  %28655 = vst [vmem:[#allocation37_spill] sm:$0xff] %v25242_v26  ;;  %v6018_v61 = vsel %vm1511_vm1, %v25225_v29, -inf  ;;  %v25252_v48 = vadd.f32 %v4109_v37, %v4017_v44 }
 0x3f3   : > { %21080 = vmatpush3.xpose.msra.mxu1 %v25038_v59  ;;  %21085 = vmatprep.mubr.f32.mxu1 %v25033_v45  ;;  %v25257_v45 = vsub.f32 %v24763_v51, %v25231_v43  ;;  %v6334_v59 = vsub.f32 %v25223_v9, %v25242_v26 }
 0x3f4   : > { %21070 = vmatpush3.xpose.msra.mxu0 %v25133_v42  ;;  %21081 = vmatprep.subr.mxu1 %v25061_v10  ;;  %v25264_v42 = vand.u32 4294901760, %v25246_v39 }
 0x3f5   : > { %21091 = vmatprep.subr.mxu0 %v25197_v15  ;;  %6019 = vmax.xlane.f32.xlu0 %v6018_v61  ;;  %v25277_v60 = vand.u32 4294901760, %v25257_v45  ;;  %v6335_v4 = vand.u32 4294901760, %v6334_v59 }
 0x3f6   : > { %28656 = vst [vmem:[#allocation38_spill] sm:$0xff] %v25264_v42  ;;  %v6341_v5 = vsub.f32 %v25246_v39, %v25264_v42 }
 0x3f7   : > { %21072 = vmatmul.mubr.f32.vlgmr.msra.gmra.mxu0 %v25081_v8  ;;  %21082 = vmatpush3.xpose.msra.mxu1 %v25061_v10  ;;  %v6015_v10 = vsel %vm1511_vm1, %v25252_v48, -inf  ;;  %28658 = vst [vmem:[#allocation40_spill] sm:$0xff] %v25277_v60  ;;  %v6348_v54 = vsub.f32 %v25257_v45, %v25277_v60 }
 0x3f8   : > { %21074 = vmatprep.mubr.f32.mxu0 %v25090_v18  ;;  %21092 = vmatpush3.msra.mxu0 %v25197_v15  ;;  %v6342_v58 = vand.u32 4294901760, %v6341_v5 }
 0x3f9   : > { %21083 = vmatprep.subr.mxu1 %v25075_v0  ;;  %21093 = vmatprep.subr.mxu0 %v25218_v23 }
 0x3fa   : > { %21094 = vmatpush3.msra.mxu0 %v25218_v23  ;;  %6016 = vmax.xlane.f32.xlu0 %v6015_v10 }
 0x3fb   : > { %21075 = vmatmul.mubr.f32.gmra.mxu0 %v25108_v46  ;;  %21095 = vmatprep.subr.mxu0 %v25231_v43 }
 0x3fc   : > { %21084 = vmatpush3.xpose.msra.mxu1 %v25075_v0  ;;  %21096 = vmatpush3.msra.mxu0 %v25231_v43  ;;  %v6349_v0 = vand.u32 4294901760, %v6348_v54 }
 0x3fd   : > { %21097 = vmatprep.subr.mxu0 %v25237_v55  ;;  %21105 = vmatprep.subr.mxu1 %v6335_v4 }
 0x3fe   : > { %21098 = vmatpush3.msra.mxu0 %v25237_v55 }
 0x3ff   : > { %21086 = vmatmul.mubr.f32.vlgmr.msra.gmra.mxu1 %v25081_v8  ;;  %21119 = vmatprep.subr.mxu0 %v25223_v9 }
 0x400   : > { %21088 = vmatprep.mubr.f32.mxu1 %v25090_v18  ;;  %21106 = vmatpush3.msra.mxu1 %v6335_v4 }
 0x401   : > { %21107 = vmatprep.subr.mxu1 %v6342_v58 }
 0x402   : > { %21108 = vmatpush3.msra.mxu1 %v6342_v58 }
 0x403   : > { %21089 = vmatmul.mubr.f32.gmra.mxu1 %v25108_v46  ;;  %21109 = vmatprep.subr.mxu1 %v6349_v0 }
 0x404   : > { %21110 = vmatpush3.msra.mxu1 %v6349_v0 }
 0x405   : > { %21111 = vmatprep.subr.mxu1 %v6356_v3 }
 0x406   : > { %21112 = vmatpush3.msra.mxu1 %v6356_v3 }
 0x407   : > { %21133 = vmatprep.subr.mxu1 %v25197_v15 }
 0x436   : > { %v20849_v8 = vpop.f32.mrf.mxu0 }
 0x437   : > { %v4221_v41 = vadd.f32 %v20849_v8, %v25166_v32 }
 0x438   : > { %v4210_v62 = vpop.f32.mrf.mxu0 }
 0x439   : > { %v4211_v47 = vadd.f32 %v4210_v62, %v25170_v31 }
 0x43b   : > { %v20852_v20 = vpop.f32.mrf.mxu0 }
 0x43c   : > { %v4241_v50 = vadd.f32 %v20852_v20, %v25179_v14 }
 0x43d   : > { %v20863_v17 = vpop.f32.mrf.mxu1  ;;  %v4230_v7 = vpop.f32.mrf.mxu0 }
 0x43e   : > { %v4338_v11 = vadd.f32 %v20863_v17, %v4221_v41  ;;  %v4231_v36 = vadd.f32 %v4230_v7, %v25190_v21 }
 0x43f   : > { %v4331_v2 = vpop.f32.mrf.mxu1 }
 0x440   : > { %v4332_v22 = vadd.f32 %v4331_v2, %v4211_v47 }
 0x441   : > { %v20866_v18 = vpop.f32.mrf.mxu1 }
 0x442   : > { %v4350_v40 = vadd.f32 %v20866_v18, %v4241_v50 }
 0x443   : > { %v4343_v12 = vpop.f32.mrf.mxu1 }
 0x444   : > { %v4344_v44 = vadd.f32 %v4343_v12, %v4231_v36 }
 0x447   : > { %v20877_v24 = vpop.f32.mrf.mxu0 }
 0x448   : > { %v4437_v52 = vadd.f32 %v20877_v24, %v4338_v11 }
 0x449   : > { %v4429_v25 = vpop.f32.mrf.mxu0 }
 0x44a   : > { %v4430_v34 = vadd.f32 %v4429_v25, %v4332_v22  ;;  %v25326_v22 = vpop.permute.xlu0 %3456 }
 0x44b   : > { %v20880_v30 = vpop.f32.mrf.mxu0 }
 0x44c   : > { %v4451_v61 = vadd.f32 %v20880_v30, %v4350_v40 }
 0x44d   : > { %v20891_v33 = vpop.f32.mrf.mxu1  ;;  %v4443_v6 = vpop.f32.mrf.mxu0 }
 0x44e   : > { %v4536_v27 = vadd.f32 %v20891_v33, %v4437_v52  ;;  %v4444_v5 = vadd.f32 %v4443_v6, %v4344_v44 }
 0x44f   : > { %v4527_v46 = vpop.f32.mrf.mxu1 }
 0x450   : > { %v4528_v59 = vadd.f32 %v4527_v46, %v4430_v34  ;;  %v25320_v46 = vpop.permute.xlu1 %3454 }
 0x451   : > { %v20894_v57 = vpop.f32.mrf.mxu1 }
 0x452   : > { %v4552_v54 = vadd.f32 %v20894_v57, %v4451_v61 }
 0x453   : > { %v4543_v19 = vpop.f32.mrf.mxu1 }
 0x454   : > { %v4544_v8 = vadd.f32 %v4543_v19, %v4444_v5  ;;  %v25322_v6 = vpop.permute.xlu1 %3452 }
 0x457   : > { %v20905_v38 = vpop.f32.mrf.mxu0 }
 0x458   : > { %v4641_v10 = vadd.f32 %v20905_v38, %v4536_v27  ;;  %v25324_v57 = vpop.permute.xlu1 %3458 }
 0x459   : > { %v4634_v1 = vpop.f32.mrf.mxu0 }
 0x45a   : > { %v4635_v58 = vadd.f32 %v4634_v1, %v4528_v59 }
 0x45b   : > { %v20908_v37 = vpop.f32.mrf.mxu0 }
 0x45c   : > { %v4653_v62 = vadd.f32 %v20908_v37, %v4552_v54 }
 0x45d   : > { %v20919_v4 = vpop.f32.mrf.mxu1  ;;  %v4646_v0 = vpop.f32.mrf.mxu0 }
 0x45e   : > { %v25304_v13 = vadd.f32 %v20919_v4, %v4641_v10  ;;  %v4647_v7 = vadd.f32 %v4646_v0, %v4544_v8 }
 0x45f   : > { %v4727_v3 = vpop.f32.mrf.mxu1 }
 0x460   : > { %v25306_v17 = vadd.f32 %v4727_v3, %v4635_v58  ;;  %v6024_v20 = vsel %vm1511_vm1, %v25304_v13, -inf }
 0x461   : > { %v20922_v2 = vpop.f32.mrf.mxu1  ;;  %6025 = vmax.xlane.f32.xlu0 %v6024_v20 }
 0x462   : > { %v25310_v18 = vadd.f32 %v20922_v2, %v4653_v62  ;;  %v6021_v24 = vsel %vm1511_vm1, %v25306_v17, -inf }
 0x463   : > { %v4739_v12 = vpop.f32.mrf.mxu1  ;;  %6022 = vmax.xlane.f32.xlu1 %v6021_v24 }
 0x464   : > { %v25314_v25 = vadd.f32 %v4739_v12, %v4647_v7  ;;  %v6030_v33 = vsel %vm1511_vm1, %v25310_v18, -inf }
 0x465   : > { %6031 = vmax.xlane.f32.xlu0 %v6030_v33 }
 0x466   : > { %v6027_v30 = vsel %vm1511_vm1, %v25314_v25, -inf }
 0x467   : > { %6028 = vmax.xlane.f32.xlu1 %v6027_v30  ;;  %v20933_v41 = vpop.f32.mrf.mxu0 }
 0x468   : > { %v4851_v62 = vadd.f32 %v20933_v41, %v25166_v32 }
 0x469   : > { %v4840_v47 = vpop.f32.mrf.mxu0 }
 0x46b   : > { %v20936_v38 = vpop.f32.mrf.mxu0 }
 0x46d   : > { %v20947_v11 = vpop.f32.mrf.mxu1  ;;  %v25328_v52 = vpop.f32.mrf.mxu0 }
 0x46e   : > { %v4968_v7 = vadd.f32 %v20947_v11, %v4851_v62 }
 0x46f   : > { %v4961_v50 = vpop.f32.mrf.mxu1 }
 0x471   : > { %v20950_v36 = vpop.f32.mrf.mxu1 }
 0x473   : > { %v25332_v44 = vpop.f32.mrf.mxu1 }
 0x477   : > { %v20961_v34 = vpop.f32.mrf.mxu0 }
 0x478   : > { %v6014_v1 = vpop.xlane.xlu1 %6013  ;;  %v5067_v12 = vadd.f32 %v20961_v34, %v4968_v7 }
 0x479   : > { %v6058_v40 = vsub.f32 %v25203_v63, %v6014_v1  ;;  %v5059_v59 = vpop.f32.mrf.mxu0  ;;  %v4841_v1 = vadd.f32 %v4840_v47, %v25170_v31 }
 0x47a   : > { %v6011_v27 = vpop.xlane.xlu0 %6010 }
 0x47b   : > { %v6075_v19 = vmul.f32 1.442695, %v6058_v40  ;;  %v6057_v37 = vsub.f32 %v25210_v28, %v6011_v27  ;;  %v20964_v58 = vpop.f32.mrf.mxu0 }
 0x47d   : > { %22872 = vpow2.f32 %v6075_v19  ;;  %v6073_v61 = vmul.f32 1.442695, %v6057_v37  ;;  %v20975_v4 = vpop.f32.mrf.mxu1  ;;  %v25336_v8 = vpop.f32.mrf.mxu0  ;;  %v4962_v37 = vadd.f32 %v4961_v50, %v4841_v1 }
 0x47e   : > { %v6020_v10 = vpop.xlane.xlu0 %6019  ;;  %v5166_v27 = vadd.f32 %v20975_v4, %v5067_v12 }
 0x47f   : > { %22874 = vpow2.f32 %v6073_v61  ;;  %v6060_v5 = vsub.f32 %v25225_v29, %v6020_v10  ;;  %v5157_v0 = vpop.f32.mrf.mxu1  ;;  %v4871_v29 = vadd.f32 %v20936_v38, %v25179_v14 }
 0x481   : > { %v6079_v54 = vmul.f32 1.442695, %v6060_v5  ;;  %v20978_v20 = vpop.f32.mrf.mxu1  ;;  %v4980_v41 = vadd.f32 %v20950_v36, %v4871_v29  ;;  %v5060_v5 = vadd.f32 %v5059_v59, %v4962_v37 }
 0x483   : > { %22876 = vpow2.f32 %v6079_v54  ;;  %v6017_v63 = vpop.xlane.xlu0 %6016  ;;  %v25342_v33 = vpop.f32.mrf.mxu1  ;;  %v5081_v38 = vadd.f32 %v20964_v58, %v4980_v41  ;;  %v5158_v36 = vadd.f32 %v5157_v0, %v5060_v5 }
 0x484   : > { %v6059_v3 = vsub.f32 %v25252_v48, %v6017_v63 }
 0x485   : > { %v5182_v63 = vadd.f32 %v20978_v20, %v5081_v38 }
 0x486   : > { %v6077_v28 = vmul.f32 1.442695, %v6059_v3 }
 0x487   : > { %v20989_v2 = vpop.f32.mrf.mxu0 }
 0x488   : > { %22878 = vpow2.f32 %v6077_v28  ;;  %v5271_v34 = vadd.f32 %v20989_v2, %v5166_v27 }
 0x489   : > { %v5264_v40 = vpop.f32.mrf.mxu0 }
 0x48a   : > { %v25339_v24 = vpop.eup %22872  ;;  %v5265_v62 = vadd.f32 %v5264_v40, %v5158_v36 }
 0x48b   : > { %v6108_v30 = vsel %vm1511_vm1, %v25339_v24, 0.0  ;;  %v20992_v54 = vpop.f32.mrf.mxu0 }
 0x48c   : > { %v25346_v48 = vpop.eup %22874  ;;  %6109 = vadd.xlane.f32.xlu0 %v6108_v30  ;;  %v5283_v28 = vadd.f32 %v20992_v54, %v5182_v63 }
 0x48d   : > { %v21003_v19 = vpop.f32.mrf.mxu1  ;;  %v6105_v11 = vsel %vm1511_vm1, %v25346_v48, 0.0  ;;  %v5276_v29 = vpop.f32.mrf.mxu0 }
 0x48e   : > { %6106 = vadd.xlane.f32.xlu1 %v6105_v11  ;;  %v25353_v3 = vadd.f32 %v21003_v19, %v5271_v34 }
 0x48f   : > { %v5357_v61 = vpop.f32.mrf.mxu1 }
 0x490   : > { %v25351_v10 = vpop.eup %22876  ;;  %v6036_v2 = vsel %vm1511_vm1, %v25353_v3, -inf  ;;  %v25363_v59 = vadd.f32 %v5357_v61, %v5265_v62 }
 0x491   : > { %v6114_v47 = vsel %vm1511_vm1, %v25351_v10, 0.0  ;;  %v21006_v4 = vpop.f32.mrf.mxu1 }
 0x492   : > { %6115 = vadd.xlane.f32.xlu0 %v6114_v47  ;;  %v25359_v58 = vadd.f32 %v21006_v4, %v5283_v28  ;;  %v6033_v7 = vsel %vm1511_vm1, %v25363_v59, -inf  ;;  %v4861_v4 = vadd.f32 %v25328_v52, %v25190_v21 }
 0x493   : > { %v5369_v12 = vpop.f32.mrf.mxu1 }
 0x494   : > { %v6042_v0 = vsel %vm1511_vm1, %v25359_v58, -inf }
 0x495   : > { %v25357_v50 = vpop.eup %22878 }
 0x496   : > { %6037 = vmax.xlane.f32.xlu0 %v6036_v2  ;;  %v6111_v20 = vsel %vm1511_vm1, %v25357_v50, 0.0 }
 0x497   : > { %6112 = vadd.xlane.f32.xlu1 %v6111_v20  ;;  %v21017_v30 = vpop.f32.mrf.mxu0  ;;  %v4974_v20 = vadd.f32 %v25332_v44, %v4861_v4 }
 0x498   : > { %v5481_v36 = vadd.f32 %v21017_v30, %v25166_v32 }
 0x499   : > { %v5470_v40 = vpop.f32.mrf.mxu0 }
 0x49a   : > { %6043 = vmax.xlane.f32.xlu0 %v6042_v0  ;;  %v5471_v51 = vadd.f32 %v5470_v40, %v25170_v31 }
 0x49b   : > { %6034 = vmax.xlane.f32.xlu1 %v6033_v7  ;;  %v21020_v27 = vpop.f32.mrf.mxu0 }
 0x49c   : > { %v5501_v7 = vadd.f32 %v21020_v27, %v25179_v14 }
 0x49d   : > { %v21031_v1 = vpop.f32.mrf.mxu1  ;;  %v5490_v11 = vpop.f32.mrf.mxu0 }
 0x49e   : > { %v5598_v2 = vadd.f32 %v21031_v1, %v5481_v36  ;;  %v5491_v44 = vadd.f32 %v5490_v11, %v25190_v21 }
 0x49f   : > { %v5591_v41 = vpop.f32.mrf.mxu1 }
 0x4a0   : > { %v5592_v30 = vadd.f32 %v5591_v41, %v5471_v51 }
 0x4a1   : > { %v21034_v19 = vpop.f32.mrf.mxu1 }
 0x4a2   : > { %v5610_v60 = vadd.f32 %v21034_v19, %v5501_v7 }
 0x4a3   : > { %v5603_v37 = vpop.f32.mrf.mxu1 }
 0x4a4   : > { %v5604_v31 = vadd.f32 %v5603_v37, %v5491_v44 }
 0x4a7   : > { %v21045_v38 = vpop.f32.mrf.mxu0 }
 0x4a9   : > { %v5689_v61 = vpop.f32.mrf.mxu0 }
 0x4aa   : > { %v5690_v36 = vadd.f32 %v5689_v61, %v5592_v30 }
 0x4ab   : > { %v21048_v54 = vpop.f32.mrf.mxu0 }
 0x4ac   : > { %3468 = vrot.lane.b32.xlu1 %v24774_v56, %s23545_s14  ;;  %v5074_v56 = vadd.f32 %v25336_v8, %v4974_v20  ;;  %v5711_v26 = vadd.f32 %v21048_v54, %v5610_v60 }
 0x4ad   : > { %v21059_v34 = vpop.f32.mrf.mxu1  ;;  %v5703_v47 = vpop.f32.mrf.mxu0 }
 0x4ae   : > { %v5174_v32 = vadd.f32 %v25342_v33, %v5074_v56 }
 0x4af   : > { %v5787_v5 = vpop.f32.mrf.mxu1 }
 0x4b0   : > { %3470 = vrot.lane.b32.xlu0 %v24770_v49, %s23545_s14  ;;  %v5697_v49 = vadd.f32 %v21045_v38, %v5598_v2  ;;  %v5277_v1 = vadd.f32 %v5276_v29, %v5174_v32  ;;  %v5788_v40 = vadd.f32 %v5787_v5, %v5690_v36  ;;  %v5704_v38 = vadd.f32 %v5703_v47, %v5604_v31 }
 0x4b2   : > { %v21062_v63 = vpop.f32.mrf.mxu1  ;;  %v5796_v42 = vadd.f32 %v21059_v34, %v5697_v49  ;;  %v25386_v8 = vadd.f32 %v5369_v12, %v5277_v1 }
 0x4b3   : > { %v5812_v14 = vadd.f32 %v21062_v63, %v5711_v26 }
 0x4b4   : > { %v5803_v28 = vpop.f32.mrf.mxu1  ;;  %v6039_v26 = vsel %vm1511_vm1, %v25386_v8, -inf }
 0x4b5   : > { %v5804_v21 = vadd.f32 %v5803_v28, %v5704_v38 }
 0x4b7   : > { %v21073_v62 = vpop.f32.mrf.mxu0 }
 0x4b8   : > { %v5901_v53 = vadd.f32 %v21073_v62, %v5796_v42 }
 0x4b9   : > { %v5894_v16 = vpop.f32.mrf.mxu0 }
 0x4ba   : > { %v5895_v56 = vadd.f32 %v5894_v16, %v5788_v40 }
 0x4bb   : > { %v21076_v4 = vpop.f32.mrf.mxu0 }
 0x4bc   : > { %v5913_v49 = vadd.f32 %v21076_v4, %v5812_v14 }
 0x4bd   : > { %v5906_v51 = vpop.f32.mrf.mxu0 }
 0x4be   : > { %v5907_v29 = vadd.f32 %v5906_v51, %v5804_v21 }
 0x4bf   : > { %v21087_v0 = vpop.f32.mrf.mxu1 }
 0x4c0   : > { %v25384_v27 = vadd.f32 %v21087_v0, %v5901_v53 }
 0x4c1   : > { %v5987_v52 = vpop.f32.mrf.mxu1 }
 0x4c2   : > { %v6048_v42 = vsel %vm1511_vm1, %v25384_v27, -inf  ;;  %v25392_v60 = vadd.f32 %v5987_v52, %v5895_v56 }
 0x4c3   : > { %v21090_v19 = vpop.f32.mrf.mxu1 }
 0x4c4   : > { %v25388_v33 = vadd.f32 %v21090_v19, %v5913_v49  ;;  %v6045_v41 = vsel %vm1511_vm1, %v25392_v60, -inf }
 0x4c5   : > { %v5999_v53 = vpop.f32.mrf.mxu1 }
 0x4c6   : > { %v6054_v12 = vsel %vm1511_vm1, %v25388_v33, -inf  ;;  %v25398_v16 = vadd.f32 %v5999_v53, %v5907_v29 }
 0x4c8   : > { %v6051_v11 = vsel %vm1511_vm1, %v25398_v16, -inf }
 0x4cf   : > { %6049 = vmax.xlane.f32.xlu0 %v6048_v42 }
 0x4d0   : > { %6040 = vmax.xlane.f32.xlu1 %v6039_v26 }
 0x4d3   : > { %6055 = vmax.xlane.f32.xlu0 %v6054_v12 }
 0x4d4   : > { %6046 = vmax.xlane.f32.xlu1 %v6045_v41 }
 0x4d8   : > { %6052 = vmax.xlane.f32.xlu1 %v6051_v11 }
 0x4ea   : > { %v6026_v37 = vpop.xlane.xlu0 %6025 }
 0x4eb   : > { %v6062_v34 = vsub.f32 %v25304_v13, %v6026_v37 }
 0x4ec   : > { %v6023_v61 = vpop.xlane.xlu1 %6022 }
 0x4ed   : > { %v6083_v5 = vmul.f32 1.442695, %v6062_v34  ;;  %v6061_v54 = vsub.f32 %v25306_v17, %v6023_v61 }
 0x4ee   : > { %v6032_v63 = vpop.xlane.xlu0 %6031 }
 0x4ef   : > { %22880 = vpow2.f32 %v6083_v5  ;;  %v6081_v47 = vmul.f32 1.442695, %v6061_v54  ;;  %v6064_v28 = vsub.f32 %v25310_v18, %v6032_v63 }
 0x4f0   : > { %v6029_v62 = vpop.xlane.xlu1 %6028 }
 0x4f1   : > { %22882 = vpow2.f32 %v6081_v47  ;;  %v6087_v2 = vmul.f32 1.442695, %v6064_v28  ;;  %v6063_v20 = vsub.f32 %v25314_v25, %v6029_v62 }
 0x4f3   : > { %22884 = vpow2.f32 %v6087_v2  ;;  %v6085_v0 = vmul.f32 1.442695, %v6063_v20  ;;  %v25463_v20 = vand.u32 4294901760, %v25324_v57 }
 0x4f5   : > { %22886 = vpow2.f32 %v6085_v0 }
 0x4fc   : > { %v25408_v7 = vpop.eup %22880 }
 0x4fd   : > { %v6120_v13 = vsel %vm1511_vm1, %v25408_v7, 0.0 }
 0x4fe   : > { %v25412_v32 = vpop.eup %22882  ;;  %6121 = vadd.xlane.f32.xlu0 %v6120_v13 }
 0x4ff   : > { %v6117_v17 = vsel %vm1511_vm1, %v25412_v32, 0.0 }
 0x500   : > { %v25416_v18 = vpop.eup %22884  ;;  %6118 = vadd.xlane.f32.xlu1 %v6117_v17 }
 0x501   : > { %v6126_v25 = vsel %vm1511_vm1, %v25416_v18, 0.0 }
 0x502   : > { %v25420_v30 = vpop.eup %22886  ;;  %6127 = vadd.xlane.f32.xlu0 %v6126_v25 }
 0x503   : > { %v6123_v52 = vsel %vm1511_vm1, %v25420_v30, 0.0 }
 0x504   : > { %6124 = vadd.xlane.f32.xlu1 %v6123_v52 }
 0x515   : > { %v6110_v1 = vpop.xlane.xlu0 %6109  ;;  %3464 = vrot.lane.b32.xlu1 %v24768_v35, %s23545_s14 }
 0x516   : > { %22888 = vrcp.f32 %v6110_v1  ;;  %v25481_v1 = vsub.f32 %v25324_v57, %v25463_v20 }
 0x517   : > { %v6107_v44 = vpop.xlane.xlu1 %6106 }
 0x518   : > { %22890 = vrcp.f32 %v6107_v44  ;;  %v25484_v44 = vand.u32 4294901760, %v25326_v22 }
 0x51b   : > { %v6116_v36 = vpop.xlane.xlu0 %6115 }
 0x51c   : > { %22892 = vrcp.f32 %v6116_v36 }
 0x51f   : > { %v6038_v4 = vpop.xlane.xlu0 %6037 }
 0x520   : > { %v6113_v14 = vpop.xlane.xlu1 %6112  ;;  %v6066_v31 = vsub.f32 %v25353_v3, %v6038_v4 }
 0x521   : > { %22894 = vrcp.f32 %v6113_v14 }
 0x522   : > { %v6091_v40 = vmul.f32 1.442695, %v6066_v31  ;;  %v25493_v31 = vand.u32 4294901760, %v25320_v46 }
 0x523   : > { %v22889_v19 = vpop.eup %22888  ;;  %v6044_v49 = vpop.xlane.xlu0 %6043 }
 0x524   : > { %22896 = vpow2.f32 %v6091_v40  ;;  %v6035_v38 = vpop.xlane.xlu1 %6034  ;;  %v6170_v56 = vmul.f32 %v22889_v19, %v25339_v24  ;;  %v6068_v21 = vsub.f32 %v25359_v58, %v6044_v49  ;;  %v25504_v49 = vand.u32 4294901760, %v25481_v1 }
 0x525   : > { %v22891_v51 = vpop.eup %22890  ;;  %v6065_v42 = vsub.f32 %v25363_v59, %v6035_v38 }
 0x526   : > { %v6169_v26 = vmul.f32 %v22891_v51, %v25346_v48  ;;  %v6189_v53 = vsel %vm1511_vm1, %v6170_v56, 0  ;;  %v6095_v37 = vmul.f32 1.442695, %v6068_v21  ;;  %v28660_v56 = vld [vmem:[#allocation39_spill] sm:$0xff] }
 0x527   : > { %v6089_v29 = vmul.f32 1.442695, %v6065_v42  ;;  %v25432_v12 = vand.u32 4294901760, %v6189_v53  ;;  %v6960_v42 = vsub.f32 %v25481_v1, %v25504_v49 }
 0x528   : > { %v6186_v3 = vsel %vm1511_vm1, %v6169_v26, 0 }
 0x529   : > { %v22893_v41 = vpop.eup %22892  ;;  %22898 = vpow2.f32 %v6089_v29  ;;  %v25435_v11 = vand.u32 4294901760, %v6186_v3  ;;  %v25438_v24 = vsub.f32 %v6189_v53, %v25432_v12  ;;  %v6961_v26 = vand.u32 4294901760, %v6960_v42 }
 0x52a   : > { %v6172_v59 = vmul.f32 %v22893_v41, %v25351_v10  ;;  %22900 = vpow2.f32 %v6095_v37 }
 0x52b   : > { %21113 = vmatprep.mubr.f32.mxu1 %v25435_v11  ;;  %v25443_v48 = vsub.f32 %v6186_v3, %v25435_v11  ;;  %v6278_v58 = vand.u32 4294901760, %v25438_v24  ;;  %v28662_v3 = vld [vmem:[#allocation38_spill] sm:$0xff] }
 0x52c   : > { %21114 = vmatmul.mubr.f32.vlgmr.msra.gmra.mxu1 %v25432_v12  ;;  %v6195_v34 = vsel %vm1511_vm1, %v6172_v59, 0  ;;  %v28664_v59 = vld [vmem:[#allocation41_spill] sm:$0xff] }
 0x52d   : > { %21134 = vmatpush3.msra.mxu1 %v25197_v15  ;;  %v6268_v61 = vand.u32 4294901760, %v25443_v48  ;;  %v25451_v10 = vand.u32 4294901760, %v6195_v34  ;;  %v6279_v47 = vsub.f32 %v25438_v24, %v6278_v58 }
 0x52e   : > { %v22895_v5 = vpop.eup %22894  ;;  %21135 = vmatprep.subr.mxu1 %v25218_v23 }
 0x52f   : > { %21136 = vmatpush3.msra.mxu1 %v25218_v23  ;;  %v6269_v54 = vsub.f32 %v25443_v48, %v6268_v61  ;;  %v6171_v63 = vmul.f32 %v22895_v5, %v25357_v50  ;;  %v25471_v13 = vsub.f32 %v6195_v34, %v25451_v10  ;;  %v6280_v17 = vand.u32 4294901760, %v6279_v47 }
 0x530   : > { %21137 = vmatprep.subr.mxu1 %v25231_v43 }
 0x531   : > { %v25458_v28 = vpop.eup %22896  ;;  %21138 = vmatpush3.msra.mxu1 %v25231_v43  ;;  %v6270_v62 = vand.u32 4294901760, %v6269_v54  ;;  %v6192_v2 = vsel %vm1511_vm1, %v6171_v63, 0  ;;  %v6298_v4 = vand.u32 4294901760, %v25471_v13 }
 0x532   : > { %21139 = vmatprep.subr.mxu1 %v25237_v55  ;;  %v25466_v0 = vand.u32 4294901760, %v6192_v2  ;;  %v6132_v50 = vsel %vm1511_vm1, %v25458_v28, 0.0 }
 0x533   : > { %21140 = vmatpush3.msra.mxu1 %v25237_v55  ;;  %21099 = vmatprep.mubr.f32.mxu0 %v6270_v62  ;;  %v6299_v19 = vsub.f32 %v25471_v13, %v6298_v4 }
 0x534   : > { %21116 = vmatprep.mubr.f32.mxu1 %v25466_v0  ;;  %21161 = vmatprep.subr.mxu1 %v25197_v15  ;;  %v6287_v25 = vsub.f32 %v6192_v2, %v25466_v0 }
 0x535   : > { %6133 = vadd.xlane.f32.xlu0 %v6132_v50  ;;  %21100 = vmatmul.mubr.f32.vlgmr.msra.gmra.mxu0 %v6280_v17 }
 0x536   : > { %v25477_v52 = vpop.eup %22898  ;;  %21117 = vmatmul.mubr.f32.gmra.mxu1 %v25451_v10  ;;  %21120 = vmatpush3.msra.mxu0 %v25223_v9  ;;  %v6288_v36 = vand.u32 4294901760, %v6287_v25  ;;  %v25499_v9 = vsub.f32 %v25326_v22, %v25484_v44  ;;  %v25515_v22 = vsub.f32 %v25320_v46, %v25493_v31 }
 0x537   : > { %21121 = vmatprep.subr.mxu0 %v25246_v39  ;;  %21141 = vmatprep.mubr.f32.mxu1 %v6268_v61  ;;  %v6129_v14 = vsel %vm1511_vm1, %v25477_v52, 0.0  ;;  %v25506_v38 = vpop.eup %22900 }
 0x538   : > { %21122 = vmatpush3.msra.mxu0 %v25246_v39  ;;  %v6289_v57 = vsub.f32 %v6287_v25, %v6288_v36  ;;  %v25509_v39 = vand.u32 4294901760, %v25322_v6  ;;  %v6138_v51 = vsel %vm1511_vm1, %v25506_v38, 0.0  ;;  %v25526_v46 = vand.u32 4294901760, %v25499_v9 }
 0x539   : > { %21123 = vmatprep.subr.mxu0 %v25257_v45  ;;  %6130 = vadd.xlane.f32.xlu0 %v6129_v14 }
 0x53a   : > { %21124 = vmatpush3.msra.mxu0 %v25257_v45  ;;  %21142 = vmatmul.mubr.f32.vlgmr.msra.gmra.mxu1 %v6278_v58  ;;  %v6290_v40 = vand.u32 4294901760, %v6289_v57  ;;  %v28661_v45 = vld [vmem:[#allocation37_spill] sm:$0xff]  ;;  %v25530_v21 = vsub.f32 %v25322_v6, %v25509_v39  ;;  %v6967_v6 = vsub.f32 %v25499_v9, %v25526_v46 }
 0x53b   : > { %21162 = vmatpush3.msra.mxu1 %v25197_v15  ;;  %21125 = vmatprep.subr.mxu0 %v28660_v56  ;;  %v6300_v15 = vand.u32 4294901760, %v6299_v19 }
 0x53c   : > { %21144 = vmatprep.mubr.f32.mxu1 %v6288_v36  ;;  %21163 = vmatprep.subr.mxu1 %v25218_v23  ;;  %v25544_v53 = vand.u32 4294901760, %v25530_v21  ;;  %v6968_v29 = vand.u32 4294901760, %v6967_v6 }
 0x53d   : > { %21126 = vmatpush3.msra.mxu0 %v28660_v56  ;;  %21164 = vmatpush3.msra.mxu1 %v25218_v23  ;;  %v25534_v23 = vand.u32 4294901760, %v25515_v22 }
 0x53e   : > { %21102 = vmatprep.mubr.f32.mxu0 %v6290_v40  ;;  %21147 = vmatprep.subr.mxu0 %v28661_v45 }
 0x53f   : > { %21165 = vmatprep.subr.mxu1 %v25231_v43  ;;  %6139 = vadd.xlane.f32.xlu0 %v6138_v51 }
 0x540   : > { %21103 = vmatmul.mubr.f32.gmra.mxu0 %v6300_v15  ;;  %21145 = vmatmul.mubr.f32.gmra.mxu1 %v6298_v4  ;;  %v28666_v4 = vld [vmem:[#allocation36_spill] sm:$0xff] }
 0x541   : > { %21166 = vmatpush3.msra.mxu1 %v25231_v43  ;;  %21127 = vmatprep.mubr.f32.mxu0 %v25443_v48  ;;  %v6974_v43 = vsub.f32 %v25515_v22, %v25534_v23  ;;  %v25570_v48 = vpop.permute.xlu0 %3470 }
 0x542   : > { %21167 = vmatprep.subr.mxu1 %v25237_v55  ;;  %21169 = vmatprep.mubr.f32.mxu1 %v25435_v11 }
 0x543   : > { %21168 = vmatpush3.msra.mxu1 %v25237_v55  ;;  %v6981_v55 = vsub.f32 %v25530_v21, %v25544_v53  ;;  %v6975_v41 = vand.u32 4294901760, %v6974_v43 }
 0x544   : > { %21189 = vmatprep.subr.mxu1 %v6961_v26  ;;  %21128 = vmatmul.mubr.f32.vlgmr.msra.gmra.mxu0 %v25438_v24  ;;  %v28663_v24 = vld [vmem:[#allocation40_spill] sm:$0xff] }
 0x545   : > { %21148 = vmatpush3.msra.mxu0 %v28661_v45  ;;  %21170 = vmatmul.mubr.f32.vlgmr.msra.gmra.mxu1 %v25432_v12  ;;  %v6982_v37 = vand.u32 4294901760, %v6981_v55  ;;  %v28667_v45 = vld [vmem:[#allocation35_spill] sm:$0xff] }
 0x546   : > { %21190 = vmatpush3.msra.mxu1 %v6961_v26  ;;  %21130 = vmatprep.mubr.f32.mxu0 %v6287_v25 }
 0x547   : > { %21149 = vmatprep.subr.mxu0 %v28662_v3  ;;  %21172 = vmatprep.mubr.f32.mxu1 %v25466_v0 }
 0x548   : > { %21191 = vmatprep.subr.mxu1 %v6968_v29  ;;  %21150 = vmatpush3.msra.mxu0 %v28662_v3 }
 0x549   : > { %21192 = vmatpush3.msra.mxu1 %v6968_v29  ;;  %21151 = vmatprep.subr.mxu0 %v28663_v24 }
 0x54a   : > { %21193 = vmatprep.subr.mxu1 %v6975_v41  ;;  %21131 = vmatmul.mubr.f32.gmra.mxu0 %v25471_v13 }
 0x54b   : > { %21152 = vmatpush3.msra.mxu0 %v28663_v24  ;;  %21173 = vmatmul.mubr.f32.gmra.mxu1 %v25451_v10 }
 0x54c   : > { %21194 = vmatpush3.msra.mxu1 %v6975_v41  ;;  %21153 = vmatprep.subr.mxu0 %v28664_v59 }
 0x54d   : > { %21155 = vmatprep.mubr.f32.mxu0 %v25435_v11  ;;  %21195 = vmatprep.subr.mxu1 %v6982_v37  ;;  %v25574_v11 = vpop.permute.xlu1 %3468 }
 0x54e   : > { %21154 = vmatpush3.msra.mxu0 %v28664_v59  ;;  %21196 = vmatpush3.msra.mxu1 %v6982_v37 }
 0x54f   : > { %21175 = vmatprep.subr.mxu0 %v25463_v20  ;;  %21217 = vmatprep.subr.mxu1 %v25463_v20 }
 0x550   : > { %21156 = vmatmul.mubr.f32.vlgmr.msra.gmra.mxu0 %v25432_v12  ;;  %v28665_v12 = vld [vmem:[#allocation34_spill] sm:$0xff] }
 0x551   : > { %21176 = vmatpush3.msra.mxu0 %v25463_v20  ;;  %21158 = vmatprep.mubr.f32.mxu0 %v25466_v0 }
 0x552   : > { %21177 = vmatprep.subr.mxu0 %v25484_v44 }
 0x553   : > { %21178 = vmatpush3.msra.mxu0 %v25484_v44 }
 0x554   : > { %21179 = vmatprep.subr.mxu0 %v25493_v31  ;;  %21159 = vmatmul.mubr.f32.gmra.mxu0 %v25451_v10 }
 0x555   : > { %21180 = vmatpush3.msra.mxu0 %v25493_v31  ;;  %3466 = vrot.lane.b32.xlu0 %v28665_v12, %s23545_s14 }
 0x556   : > { %21181 = vmatprep.subr.mxu0 %v25509_v39 }
 0x557   : > { %21182 = vmatpush3.msra.mxu0 %v25509_v39 }
 0x558   : > { %21203 = vmatprep.subr.mxu0 %v25481_v1  ;;  %v6050_v58 = vpop.xlane.xlu0 %6049 }
 0x559   : > { %v6041_v34 = vpop.xlane.xlu1 %6040  ;;  %v6070_v5 = vsub.f32 %v25384_v27, %v6050_v58 }
 0x55a   : > { %v6067_v61 = vsub.f32 %v25386_v8, %v6041_v34 }
 0x55b   : > { %v6099_v62 = vmul.f32 1.442695, %v6070_v5 }
 0x55c   : > { %v6093_v10 = vmul.f32 1.442695, %v6067_v61  ;;  %v6056_v54 = vpop.xlane.xlu0 %6055 }
 0x55d   : > { %v6047_v63 = vpop.xlane.xlu1 %6046  ;;  %v6072_v2 = vsub.f32 %v25388_v33, %v6056_v54 }
 0x55e   : > { %22902 = vpow2.f32 %v6093_v10  ;;  %v6069_v47 = vsub.f32 %v25392_v60, %v6047_v63  ;;  %v25637_v10 = vand.u32 4294901760, %v25570_v48 }
 0x55f   : > { %v6103_v50 = vmul.f32 1.442695, %v6072_v2 }
 0x560   : > { %v6097_v0 = vmul.f32 1.442695, %v6069_v47 }
 0x561   : > { %v6053_v14 = vpop.xlane.xlu1 %6052 }
 0x562   : > { %22904 = vpow2.f32 %v6097_v0  ;;  %v6071_v51 = vsub.f32 %v25398_v16, %v6053_v14 }
 0x563   : > { %22906 = vpow2.f32 %v6099_v62 }
 0x564   : > { %22908 = vpow2.f32 %v6103_v50  ;;  %v6101_v42 = vmul.f32 1.442695, %v6071_v51  ;;  %v25649_v50 = vand.u32 4294901760, %v25574_v11 }
 0x56b   : > { %v25586_v13 = vpop.eup %22902 }
 0x56c   : > { %v6135_v8 = vsel %vm1511_vm1, %v25586_v13, 0.0 }
 0x56d   : > { %6136 = vadd.xlane.f32.xlu1 %v6135_v8  ;;  %v25653_v8 = vsub.f32 %v25570_v48, %v25637_v10  ;;  %v25664_v48 = vsub.f32 %v25574_v11, %v25649_v50 }
 0x56f   : > { %v25590_v27 = vpop.eup %22904 }
 0x570   : > { %v25592_v17 = vpop.eup %22906  ;;  %v6141_v60 = vsel %vm1511_vm1, %v25590_v27, 0.0 }
 0x571   : > { %6142 = vadd.xlane.f32.xlu1 %v6141_v60  ;;  %v6144_v33 = vsel %vm1511_vm1, %v25592_v17, 0.0  ;;  %v25598_v25 = vpop.eup %22908 }
 0x572   : > { %v6150_v36 = vsel %vm1511_vm1, %v25598_v25, 0.0 }
 0x574   : > { %6145 = vadd.xlane.f32.xlu0 %v6144_v33 }
 0x578   : > { %6151 = vadd.xlane.f32.xlu0 %v6150_v36 }
 0x582   : > { %3480 = vrot.lane.b32.xlu1 %v28666_v4, %s23546_s10 }
 0x586   : > { %3478 = vrot.lane.b32.xlu1 %v28665_v12, %s23546_s10 }
 0x587   : > { %v6122_v57 = vpop.xlane.xlu0 %6121 }
 0x588   : > { %22910 = vrcp.f32 %v6122_v57  ;;  %v25669_v57 = vand.u32 4294901760, %v25653_v8 }
 0x589   : > { %v6119_v40 = vpop.xlane.xlu1 %6118 }
 0x58a   : > { %22912 = vrcp.f32 %v6119_v40  ;;  %v25681_v40 = vand.u32 4294901760, %v25664_v48 }
 0x58b   : > { %v6128_v19 = vpop.xlane.xlu0 %6127 }
 0x58c   : > { %22914 = vrcp.f32 %v6128_v19 }
 0x58d   : > { %v6125_v56 = vpop.xlane.xlu1 %6124 }
 0x58e   : > { %3482 = vrot.lane.b32.xlu0 %v28667_v45, %s23546_s10  ;;  %22916 = vrcp.f32 %v6125_v56 }
 0x58f   : > { %22918 = vpow2.f32 %v6101_v42 }
 0x595   : > { %v22911_v15 = vpop.eup %22910 }
 0x596   : > { %v6174_v26 = vmul.f32 %v22911_v15, %v25408_v7 }
 0x597   : > { %v22913_v6 = vpop.eup %22912 }
 0x598   : > { %v6173_v43 = vmul.f32 %v22913_v6, %v25412_v32  ;;  %v6815_v29 = vsel %vm1511_vm1, %v6174_v26, 0 }
 0x599   : > { %v22915_v3 = vpop.eup %22914  ;;  %v25612_v55 = vand.u32 4294901760, %v6815_v29 }
 0x59a   : > { %v6812_v41 = vsel %vm1511_vm1, %v6173_v43, 0  ;;  %v6176_v24 = vmul.f32 %v22915_v3, %v25416_v18 }
 0x59b   : > { %v22917_v37 = vpop.eup %22916  ;;  %v25616_v59 = vand.u32 4294901760, %v6812_v41  ;;  %v25619_v16 = vsub.f32 %v6815_v29, %v25612_v55 }
 0x59c   : > { %v6175_v7 = vmul.f32 %v22917_v37, %v25420_v30  ;;  %v6821_v32 = vsel %vm1511_vm1, %v6176_v24, 0  ;;  %v25657_v36 = vpop.eup %22918 }
 0x59d   : > { %21197 = vmatprep.mubr.f32.mxu1 %v25616_v59  ;;  %v25624_v12 = vand.u32 4294901760, %v6821_v32  ;;  %v6893_v58 = vsub.f32 %v6812_v41, %v25616_v59  ;;  %v6904_v34 = vand.u32 4294901760, %v25619_v16 }
 0x59e   : > { %21198 = vmatmul.mubr.f32.vlgmr.msra.gmra.mxu1 %v25612_v55  ;;  %v6818_v18 = vsel %vm1511_vm1, %v6175_v7, 0 }
 0x59f   : > { %21218 = vmatpush3.msra.mxu1 %v25463_v20  ;;  %v25631_v61 = vand.u32 4294901760, %v6818_v18  ;;  %v6894_v5 = vand.u32 4294901760, %v6893_v58  ;;  %v25634_v30 = vsub.f32 %v6821_v32, %v25624_v12  ;;  %v6905_v54 = vsub.f32 %v25619_v16, %v6904_v34 }
 0x5a0   : > { %21219 = vmatprep.subr.mxu1 %v25484_v44 }
 0x5a1   : > { %21220 = vmatpush3.msra.mxu1 %v25484_v44  ;;  %21200 = vmatprep.mubr.f32.mxu1 %v25631_v61  ;;  %v6895_v63 = vsub.f32 %v6893_v58, %v6894_v5  ;;  %v6913_v47 = vsub.f32 %v6818_v18, %v25631_v61  ;;  %v6924_v0 = vand.u32 4294901760, %v25634_v30  ;;  %v6906_v60 = vand.u32 4294901760, %v6905_v54 }
 0x5a2   : > { %21221 = vmatprep.subr.mxu1 %v25493_v31  ;;  %21201 = vmatmul.mubr.f32.gmra.mxu1 %v25624_v12 }
 0x5a3   : > { %21222 = vmatpush3.msra.mxu1 %v25493_v31  ;;  %21225 = vmatprep.mubr.f32.mxu1 %v6894_v5  ;;  %v6896_v62 = vand.u32 4294901760, %v6895_v63  ;;  %v6914_v2 = vand.u32 4294901760, %v6913_v47  ;;  %v6925_v14 = vsub.f32 %v25634_v30, %v6924_v0 }
 0x5a4   : > { %21223 = vmatprep.subr.mxu1 %v25509_v39 }
 0x5a5   : > { %21224 = vmatpush3.msra.mxu1 %v25509_v39  ;;  %21183 = vmatprep.mubr.f32.mxu0 %v6896_v62  ;;  %v6915_v33 = vsub.f32 %v6913_v47, %v6914_v2  ;;  %v6926_v11 = vand.u32 4294901760, %v6925_v14 }
 0x5a6   : > { %21245 = vmatprep.subr.mxu1 %v25463_v20  ;;  %21184 = vmatmul.mubr.f32.vlgmr.msra.gmra.mxu0 %v6906_v60 }
 0x5a7   : > { %21204 = vmatpush3.msra.mxu0 %v25481_v1  ;;  %21226 = vmatmul.mubr.f32.vlgmr.msra.gmra.mxu1 %v6904_v34  ;;  %v6916_v4 = vand.u32 4294901760, %v6915_v33  ;;  %v6147_v1 = vsel %vm1511_vm1, %v25657_v36, 0.0 }
 0x5a8   : > { %21246 = vmatpush3.msra.mxu1 %v25463_v20  ;;  %21205 = vmatprep.subr.mxu0 %v25499_v9  ;;  %v7586_v20 = vsub.f32 %v25653_v8, %v25669_v57 }
 0x5a9   : > { %21228 = vmatprep.mubr.f32.mxu1 %v6914_v2  ;;  %21247 = vmatprep.subr.mxu1 %v25484_v44 }
 0x5aa   : > { %6148 = vadd.xlane.f32.xlu1 %v6147_v1  ;;  %21206 = vmatpush3.msra.mxu0 %v25499_v9  ;;  %v7593_v9 = vsub.f32 %v25664_v48, %v25681_v40 }
 0x5ab   : > { %21248 = vmatpush3.msra.mxu1 %v25484_v44  ;;  %21186 = vmatprep.mubr.f32.mxu0 %v6916_v4  ;;  %v7587_v44 = vand.u32 4294901760, %v7586_v20 }
 0x5ac   : > { %21207 = vmatprep.subr.mxu0 %v25515_v22  ;;  %21249 = vmatprep.subr.mxu1 %v25493_v31 }
 0x5ad   : > { %21187 = vmatmul.mubr.f32.gmra.mxu0 %v6926_v11  ;;  %21229 = vmatmul.mubr.f32.gmra.mxu1 %v6924_v0 }
 0x5ae   : > { %21208 = vmatpush3.msra.mxu0 %v25515_v22  ;;  %21250 = vmatpush3.msra.mxu1 %v25493_v31  ;;  %v7594_v31 = vand.u32 4294901760, %v7593_v9  ;;  %v3465_v22 = vpop.permute.xlu1 %3464 }
 0x5af   : > { %21209 = vmatprep.subr.mxu0 %v25530_v21  ;;  %21211 = vmatprep.mubr.f32.mxu0 %v6893_v58 }
 0x5b0   : > { %21251 = vmatprep.subr.mxu1 %v25509_v39  ;;  %21253 = vmatprep.mubr.f32.mxu1 %v25616_v59 }
 0x5b1   : > { %21210 = vmatpush3.msra.mxu0 %v25530_v21  ;;  %21252 = vmatpush3.msra.mxu1 %v25509_v39 }
 0x5b2   : > { %21231 = vmatprep.subr.mxu0 %v25504_v49  ;;  %21273 = vmatprep.subr.mxu1 %v7587_v44 }
 0x5b3   : > { %21212 = vmatmul.mubr.f32.vlgmr.msra.gmra.mxu0 %v25619_v16  ;;  %21254 = vmatmul.mubr.f32.vlgmr.msra.gmra.mxu1 %v25612_v55 }
 0x5b4   : > { %21232 = vmatpush3.msra.mxu0 %v25504_v49  ;;  %21274 = vmatpush3.msra.mxu1 %v7587_v44 }
 0x5b5   : > { %21214 = vmatprep.mubr.f32.mxu0 %v6913_v47  ;;  %21233 = vmatprep.subr.mxu0 %v25526_v46 }
 0x5b6   : > { %21256 = vmatprep.mubr.f32.mxu1 %v25631_v61  ;;  %21275 = vmatprep.subr.mxu1 %v7594_v31 }
 0x5b7   : > { %21234 = vmatpush3.msra.mxu0 %v25526_v46  ;;  %21276 = vmatpush3.msra.mxu1 %v7594_v31 }
 0x5b8   : > { %21235 = vmatprep.subr.mxu0 %v25534_v23  ;;  %21215 = vmatmul.mubr.f32.gmra.mxu0 %v25634_v30 }
 0x5b9   : > { %21236 = vmatpush3.msra.mxu0 %v25534_v23  ;;  %21257 = vmatmul.mubr.f32.gmra.mxu1 %v25624_v12 }
 0x5ba   : > { %21237 = vmatprep.subr.mxu0 %v25544_v53  ;;  %21239 = vmatprep.mubr.f32.mxu0 %v25616_v59 }
 0x5bb   : > { %21238 = vmatpush3.msra.mxu0 %v25544_v53  ;;  %3476 = vrot.lane.b32.xlu1 %v24768_v35, %s23546_s10  ;;  %v25715_v35 = vand.u32 4294901760, %v3465_v22 }
 0x5bc   : > { %21259 = vmatprep.subr.mxu0 %v25637_v10  ;;  %21240 = vmatmul.mubr.f32.vlgmr.msra.gmra.mxu0 %v25612_v55 }
 0x5bd   : > { %21260 = vmatpush3.msra.mxu0 %v25637_v10  ;;  %21242 = vmatprep.mubr.f32.mxu0 %v25631_v61  ;;  %v7605_v21 = vsub.f32 %v3465_v22, %v25715_v35 }
 0x5be   : > { %21261 = vmatprep.subr.mxu0 %v25649_v50  ;;  %v6134_v49 = vpop.xlane.xlu0 %6133 }
 0x5bf   : > { %21262 = vmatpush3.msra.mxu0 %v25649_v50  ;;  %22920 = vrcp.f32 %v6134_v49  ;;  %v25723_v51 = vand.u32 4294901760, %v7605_v21 }
 0x5c0   : > { %21243 = vmatmul.mubr.f32.gmra.mxu0 %v25624_v12 }
 0x5c1   : > { %v7607_v55 = vsub.f32 %v7605_v21, %v25723_v51 }
 0x5c2   : > { %v6131_v39 = vpop.xlane.xlu0 %6130 }
 0x5c3   : > { %22922 = vrcp.f32 %v6131_v39  ;;  %v7608_v59 = vand.u32 4294901760, %v7607_v55 }
 0x5c8   : > { %v6140_v46 = vpop.xlane.xlu0 %6139 }
 0x5c9   : > { %22924 = vrcp.f32 %v6140_v46 }
 0x5cc   : > { %v22921_v23 = vpop.eup %22920  ;;  %v3467_v53 = vpop.permute.xlu0 %3466 }
 0x5cd   : > { %v25718_v19 = vand.u32 4294901760, %v3467_v53  ;;  %v6178_v56 = vmul.f32 %v22921_v23, %v25458_v28 }
 0x5cf   : > { %v7598_v45 = vsub.f32 %v3467_v53, %v25718_v19  ;;  %21263 = vmatprep.subr.mxu0 %v25718_v19  ;;  %v7441_v15 = vsel %vm1511_vm1, %v6178_v56, 0 }
 0x5d0   : > { %v22923_v42 = vpop.eup %22922  ;;  %21264 = vmatpush3.msra.mxu0 %v25718_v19  ;;  %v25727_v26 = vand.u32 4294901760, %v7441_v15 }
 0x5d1   : > { %21265 = vmatprep.subr.mxu0 %v25715_v35  ;;  %v25730_v6 = vand.u32 4294901760, %v7598_v45  ;;  %v6177_v43 = vmul.f32 %v22923_v42, %v25477_v52 }
 0x5d2   : > { %21266 = vmatpush3.msra.mxu0 %v25715_v35  ;;  %v25735_v28 = vsub.f32 %v7441_v15, %v25727_v26 }
 0x5d3   : > { %21287 = vmatprep.subr.mxu0 %v25653_v8  ;;  %v7600_v29 = vsub.f32 %v7598_v45, %v25730_v6  ;;  %v7438_v3 = vsel %vm1511_vm1, %v6177_v43, 0 }
 0x5d4   : > { %v25741_v41 = vand.u32 4294901760, %v7438_v3  ;;  %v7530_v37 = vand.u32 4294901760, %v25735_v28 }
 0x5d5   : > { %v7601_v24 = vand.u32 4294901760, %v7600_v29 }
 0x5d6   : > { %21281 = vmatprep.mubr.f32.mxu1 %v25741_v41  ;;  %v25746_v52 = vsub.f32 %v7438_v3, %v25741_v41  ;;  %v7531_v7 = vsub.f32 %v25735_v28, %v7530_v37  ;;  %v22925_v63 = vpop.eup %22924 }
 0x5d7   : > { %21277 = vmatprep.subr.mxu1 %v7601_v24  ;;  %v6180_v62 = vmul.f32 %v22925_v63, %v25506_v38 }
 0x5d8   : > { %21278 = vmatpush3.msra.mxu1 %v7601_v24  ;;  %v7520_v16 = vand.u32 4294901760, %v25746_v52  ;;  %v7532_v58 = vand.u32 4294901760, %v7531_v7 }
 0x5d9   : > { %21279 = vmatprep.subr.mxu1 %v7608_v59  ;;  %v7447_v33 = vsel %vm1511_vm1, %v6180_v62, 0 }
 0x5da   : > { %21280 = vmatpush3.msra.mxu1 %v7608_v59  ;;  %v7521_v32 = vsub.f32 %v25746_v52, %v7520_v16  ;;  %v25781_v11 = vand.u32 4294901760, %v7447_v33 }
 0x5db   : > { %21282 = vmatmul.mubr.f32.vlgmr.msra.gmra.mxu1 %v25727_v26  ;;  %21301 = vmatprep.subr.mxu1 %v25637_v10 }
 0x5dc   : > { %21302 = vmatpush3.msra.mxu1 %v25637_v10  ;;  %v7522_v12 = vand.u32 4294901760, %v7521_v32  ;;  %v25787_v22 = vsub.f32 %v7447_v33, %v25781_v11 }
 0x5dd   : > { %21303 = vmatprep.subr.mxu1 %v25649_v50 }
 0x5de   : > { %21304 = vmatpush3.msra.mxu1 %v25649_v50  ;;  %21267 = vmatprep.mubr.f32.mxu0 %v7522_v12  ;;  %v7550_v43 = vand.u32 4294901760, %v25787_v22 }
 0x5df   : > { %21305 = vmatprep.subr.mxu1 %v25718_v19  ;;  %21268 = vmatmul.mubr.f32.vlgmr.msra.gmra.mxu0 %v7532_v58 }
 0x5e0   : > { %21306 = vmatpush3.msra.mxu1 %v25718_v19  ;;  %21288 = vmatpush3.msra.mxu0 %v25653_v8 }
 0x5e1   : > { %21307 = vmatprep.subr.mxu1 %v25715_v35  ;;  %21289 = vmatprep.subr.mxu0 %v25664_v48 }
 0x5e2   : > { %21308 = vmatpush3.msra.mxu1 %v25715_v35  ;;  %21290 = vmatpush3.msra.mxu0 %v25664_v48 }
 0x5e3   : > { %21329 = vmatprep.subr.mxu1 %v25637_v10  ;;  %21291 = vmatprep.subr.mxu0 %v7598_v45 }
 0x5e4   : > { %21292 = vmatpush3.msra.mxu0 %v7598_v45 }
 0x5e5   : > { %21293 = vmatprep.subr.mxu0 %v7605_v21 }
 0x5e6   : > { %21294 = vmatpush3.msra.mxu0 %v7605_v21 }
 0x5e7   : > { %21315 = vmatprep.subr.mxu0 %v25669_v57 }
 0x5ec   : > { %v21115_v34 = vpop.f32.mrf.mxu1 }
 0x5ee   : > { %v25769_v18 = vpop.f32.mrf.mxu1 }
 0x5f5   : > { %v21101_v61 = vpop.f32.mrf.mxu0 }
 0x5f6   : > { %v6400_v5 = vadd.f32 %v21115_v34, %v21101_v61  ;;  %v21118_v30 = vpop.f32.mrf.mxu1  ;;  %v6137_v54 = vpop.xlane.xlu1 %6136  ;;  %v7551_v61 = vsub.f32 %v25787_v22, %v7550_v43 }
 0x5f7   : > { %22926 = vrcp.f32 %v6137_v54  ;;  %v25774_v60 = vpop.f32.mrf.mxu0 }
 0x5f8   : > { %v25771_v47 = vpop.f32.mrf.mxu1  ;;  %v7552_v33 = vand.u32 4294901760, %v7551_v61 }
 0x5fa   : > { %v6143_v2 = vpop.xlane.xlu1 %6142  ;;  %v21143_v0 = vpop.f32.mrf.mxu1 }
 0x5fb   : > { %22928 = vrcp.f32 %v6143_v2 }
 0x5fc   : > { %v25777_v14 = vpop.f32.mrf.mxu1 }
 0x5fd   : > { %v6146_v8 = vpop.xlane.xlu0 %6145 }
 0x5fe   : > { %v3481_v20 = vpop.permute.xlu1 %3480  ;;  %22930 = vrcp.f32 %v6146_v8 }
 0x5ff   : > { %v25796_v42 = vand.u32 4294901760, %v3481_v20 }
 0x600   : > { %v21104_v4 = vpop.f32.mrf.mxu0  ;;  %v21146_v46 = vpop.f32.mrf.mxu1 }
 0x601   : > { %v6412_v48 = vadd.f32 %v21118_v30, %v21104_v4  ;;  %v25779_v1 = vpop.xlane.xlu0 %6151  ;;  %v25814_v58 = vsub.f32 %v3481_v20, %v25796_v42 }
 0x602   : > { %v25783_v44 = vpop.f32.mrf.mxu0  ;;  %v3479_v45 = vpop.permute.xlu1 %3478  ;;  %22932 = vrcp.f32 %v25779_v1 }
 0x603   : > { %v25799_v29 = vpop.f32.mrf.mxu1  ;;  %v25806_v59 = vand.u32 4294901760, %v3479_v45  ;;  %v25829_v4 = vand.u32 4294901760, %v25814_v58 }
 0x604   : > { %v22927_v38 = vpop.eup %22926  ;;  %v21129_v9 = vpop.f32.mrf.mxu0 }
 0x605   : > { %v6499_v31 = vadd.f32 %v21129_v9, %v6400_v5  ;;  %v3483_v49 = vpop.permute.xlu0 %3482  ;;  %v6179_v39 = vmul.f32 %v22927_v38, %v25586_v13  ;;  %v21171_v5 = vpop.f32.mrf.mxu1  ;;  %v25822_v62 = vsub.f32 %v3479_v45, %v25806_v59  ;;  %v8219_v8 = vsub.f32 %v25814_v58, %v25829_v4 }
 0x606   : > { %v25789_v21 = vand.u32 4294901760, %v3483_v49  ;;  %v25791_v23 = vpop.f32.mrf.mxu0 }
 0x607   : > { %v6598_v53 = vadd.f32 %v21143_v0, %v6499_v31  ;;  %v7444_v56 = vsel %vm1511_vm1, %v6179_v39, 0  ;;  %v25843_v38 = vand.u32 4294901760, %v25822_v62 }
 0x608   : > { %v25794_v15 = vand.u32 4294901760, %v7444_v56  ;;  %v25802_v13 = vsub.f32 %v3483_v49, %v25789_v21  ;;  %v22929_v24 = vpop.eup %22928 }
 0x609   : > { %v6181_v63 = vmul.f32 %v22929_v24, %v25590_v27 }
 0x60a   : > { %v21132_v3 = vpop.f32.mrf.mxu0  ;;  %21284 = vmatprep.mubr.f32.mxu1 %v25794_v15  ;;  %v7539_v55 = vsub.f32 %v7444_v56, %v25794_v15  ;;  %v25818_v54 = vand.u32 4294901760, %v25802_v13 }
 0x60b   : > { %v6513_v7 = vadd.f32 %v21132_v3, %v6412_v48  ;;  %21285 = vmatmul.mubr.f32.gmra.mxu1 %v25781_v11  ;;  %v25831_v48 = vpop.f32.mrf.mxu1 }
 0x60c   : > { %v25809_v32 = vpop.f32.mrf.mxu0  ;;  %21309 = vmatprep.mubr.f32.mxu1 %v7520_v16  ;;  %v7540_v12 = vand.u32 4294901760, %v7539_v55 }
 0x60d   : > { %v6614_v34 = vadd.f32 %v21146_v46, %v6513_v7  ;;  %v21174_v49 = vpop.f32.mrf.mxu1 }
 0x60e   : > { %v7541_v30 = vsub.f32 %v7539_v55, %v7540_v12 }
 0x60f   : > { %21310 = vmatmul.mubr.f32.vlgmr.msra.gmra.mxu1 %v7530_v37  ;;  %v8212_v37 = vsub.f32 %v25802_v13, %v25818_v54 }
 0x610   : > { %v21157_v16 = vpop.f32.mrf.mxu0  ;;  %21330 = vmatpush3.msra.mxu1 %v25637_v10  ;;  %21312 = vmatprep.mubr.f32.mxu1 %v7540_v12  ;;  %v7542_v2 = vand.u32 4294901760, %v7541_v30  ;;  %v8064_v10 = vsel %vm1511_vm1, %v6181_v63, 0 }
 0x611   : > { %v6703_v0 = vadd.f32 %v21157_v16, %v6598_v53  ;;  %21331 = vmatprep.subr.mxu1 %v25649_v50  ;;  %v25850_v31 = vand.u32 4294901760, %v8064_v10  ;;  %v8213_v39 = vand.u32 4294901760, %v8212_v37 }
 0x612   : > { %v25833_v27 = vpop.f32.mrf.mxu0  ;;  %21332 = vmatpush3.msra.mxu1 %v25649_v50  ;;  %21270 = vmatprep.mubr.f32.mxu0 %v7542_v2 }
 0x613   : > { %v25839_v20 = vadd.f32 %v21171_v5, %v6703_v0  ;;  %21333 = vmatprep.subr.mxu1 %v25718_v19  ;;  %21271 = vmatmul.mubr.f32.gmra.mxu0 %v7552_v33  ;;  %v25862_v53 = vsub.f32 %v8064_v10, %v25850_v31 }
 0x614   : > { %v21160_v9 = vpop.f32.mrf.mxu0  ;;  %21313 = vmatmul.mubr.f32.gmra.mxu1 %v7550_v43  ;;  %21295 = vmatprep.mubr.f32.mxu0 %v25746_v52  ;;  %v8220_v52 = vand.u32 4294901760, %v8219_v8 }
 0x615   : > { %v6715_v50 = vadd.f32 %v21160_v9, %v6614_v34  ;;  %21334 = vmatpush3.msra.mxu1 %v25718_v19  ;;  %21337 = vmatprep.mubr.f32.mxu1 %v25741_v41  ;;  %v8226_v19 = vsub.f32 %v25822_v62, %v25843_v38 }
 0x616   : > { %21335 = vmatprep.subr.mxu1 %v25715_v35 }
 0x617   : > { %v25853_v46 = vadd.f32 %v21174_v49, %v6715_v50  ;;  %21336 = vmatpush3.msra.mxu1 %v25715_v35  ;;  %21296 = vmatmul.mubr.f32.vlgmr.msra.gmra.mxu0 %v25735_v28  ;;  %v8227_v35 = vand.u32 4294901760, %v8226_v19  ;;  %v22931_v28 = vpop.eup %22930 }
 0x618   : > { %21357 = vmatprep.subr.mxu1 %v8213_v39  ;;  %21316 = vmatpush3.msra.mxu0 %v25669_v57  ;;  %v8146_v57 = vand.u32 4294901760, %v25862_v53  ;;  %v22933_v45 = vpop.eup %22932 }
 0x619   : > { %21338 = vmatmul.mubr.f32.vlgmr.msra.gmra.mxu1 %v25727_v26  ;;  %21298 = vmatprep.mubr.f32.mxu0 %v7539_v55  ;;  %v6184_v43 = vmul.f32 %v22933_v45, %v25598_v25 }
 0x61a   : > { %21358 = vmatpush3.msra.mxu1 %v8213_v39  ;;  %21317 = vmatprep.subr.mxu0 %v25681_v40 }
 0x61b   : > { %21340 = vmatprep.mubr.f32.mxu1 %v25794_v15  ;;  %21359 = vmatprep.subr.mxu1 %v8220_v52  ;;  %v8073_v24 = vsel %vm1511_vm1, %v6184_v43, 0 }
 0x61c   : > { %21318 = vmatpush3.msra.mxu0 %v25681_v40  ;;  %21360 = vmatpush3.msra.mxu1 %v8220_v52  ;;  %v8147_v40 = vsub.f32 %v25862_v53, %v8146_v57  ;;  %v25906_v34 = vand.u32 4294901760, %v8073_v24 }
 0x61d   : > { %21319 = vmatprep.subr.mxu0 %v25730_v6  ;;  %21361 = vmatprep.subr.mxu1 %v8227_v35 }
 0x61e   : > { %21299 = vmatmul.mubr.f32.gmra.mxu0 %v25787_v22  ;;  %21341 = vmatmul.mubr.f32.gmra.mxu1 %v25781_v11 }
 0x61f   : > { %21320 = vmatpush3.msra.mxu0 %v25730_v6  ;;  %21362 = vmatpush3.msra.mxu1 %v8227_v35  ;;  %v6182_v6 = vmul.f32 %v22931_v28, %v25592_v17 }
 0x620   : > { %21321 = vmatprep.subr.mxu0 %v25723_v51  ;;  %21323 = vmatprep.mubr.f32.mxu0 %v25741_v41  ;;  %v8148_v41 = vand.u32 4294901760, %v8147_v40 }
 0x621   : > { %21365 = vmatprep.mubr.f32.mxu1 %v25850_v31  ;;  %21322 = vmatpush3.msra.mxu0 %v25723_v51  ;;  %v8067_v51 = vsel %vm1511_vm1, %v6182_v6, 0 }
 0x622   : > { %21343 = vmatprep.subr.mxu0 %v25789_v21  ;;  %21324 = vmatmul.mubr.f32.vlgmr.msra.gmra.mxu0 %v25727_v26  ;;  %v25891_v17 = vand.u32 4294901760, %v8067_v51 }
 0x623   : > { %21344 = vmatpush3.msra.mxu0 %v25789_v21  ;;  %21326 = vmatprep.mubr.f32.mxu0 %v25794_v15 }
 0x624   : > { %21345 = vmatprep.subr.mxu0 %v25796_v42  ;;  %v25894_v26 = vsub.f32 %v8067_v51, %v25891_v17 }
 0x625   : > { %21346 = vmatpush3.msra.mxu0 %v25796_v42 }
 0x626   : > { %21347 = vmatprep.subr.mxu0 %v25806_v59  ;;  %21327 = vmatmul.mubr.f32.gmra.mxu0 %v25781_v11  ;;  %v8156_v22 = vand.u32 4294901760, %v25894_v26 }
 0x627   : > { %21348 = vmatpush3.msra.mxu0 %v25806_v59  ;;  %21351 = vmatprep.mubr.f32.mxu0 %v8148_v41 }
 0x628   : > { %v8157_v15 = vsub.f32 %v25894_v26, %v8156_v22 }
 0x62a   : > { %v8158_v55 = vand.u32 4294901760, %v8157_v15 }
 0x633   : > { %v6149_v56 = vpop.xlane.xlu1 %6148 }
 0x634   : > { %22934 = vrcp.f32 %v6149_v56 }
 0x637   : > { %v3477_v11 = vpop.permute.xlu1 %3476 }
 0x638   : > { %v8109_v3 = vand.u32 4294901760, %v3477_v11 }
 0x63a   : > { %v8231_v1 = vsub.f32 %v3477_v11, %v8109_v3  ;;  %21349 = vmatprep.subr.mxu0 %v8109_v3 }
 0x63b   : > { %21350 = vmatpush3.msra.mxu0 %v8109_v3 }
 0x63c   : > { %21352 = vmatmul.mubr.f32.vlgmr.msra.gmra.mxu0 %v8158_v55  ;;  %21371 = vmatprep.subr.mxu0 %v25802_v13  ;;  %v25901_v7 = vand.u32 4294901760, %v8231_v1 }
 0x63d   : > { %21372 = vmatpush3.msra.mxu0 %v25802_v13  ;;  %v8175_v13 = vsub.f32 %v8073_v24, %v25906_v34 }
 0x63e   : > { %21373 = vmatprep.subr.mxu0 %v25814_v58  ;;  %v8233_v12 = vsub.f32 %v8231_v1, %v25901_v7 }
 0x63f   : > { %21374 = vmatpush3.msra.mxu0 %v25814_v58  ;;  %v8176_v63 = vand.u32 4294901760, %v8175_v13 }
 0x640   : > { %21375 = vmatprep.subr.mxu0 %v25822_v62  ;;  %v8234_v25 = vand.u32 4294901760, %v8233_v12 }
 0x641   : > { %v22935_v61 = vpop.eup %22934  ;;  %21376 = vmatpush3.msra.mxu0 %v25822_v62  ;;  %v8177_v16 = vsub.f32 %v8175_v13, %v8176_v63 }
 0x642   : > { %21363 = vmatprep.subr.mxu1 %v8234_v25  ;;  %21377 = vmatprep.subr.mxu0 %v8231_v1  ;;  %v6183_v5 = vmul.f32 %v22935_v61, %v25657_v36 }
 0x643   : > { %21364 = vmatpush3.msra.mxu1 %v8234_v25  ;;  %21378 = vmatpush3.msra.mxu0 %v8231_v1  ;;  %v8178_v33 = vand.u32 4294901760, %v8177_v16 }
 0x644   : > { %21366 = vmatmul.mubr.f32.vlgmr.msra.gmra.mxu1 %v25891_v17  ;;  %21385 = vmatprep.subr.mxu1 %v25789_v21  ;;  %v8070_v58 = vsel %vm1511_vm1, %v6183_v5, 0 }
 0x645   : > { %21399 = vmatprep.subr.mxu0 %v25818_v54  ;;  %21386 = vmatpush3.msra.mxu1 %v25789_v21  ;;  %v8164_v30 = vand.u32 4294901760, %v8070_v58 }
 0x646   : > { %21387 = vmatprep.subr.mxu1 %v25796_v42 }
 0x647   : > { %21368 = vmatprep.mubr.f32.mxu1 %v8164_v30  ;;  %21388 = vmatpush3.msra.mxu1 %v25796_v42  ;;  %v8165_v36 = vsub.f32 %v8070_v58, %v8164_v30 }
 0x648   : > { %21369 = vmatmul.mubr.f32.gmra.mxu1 %v25906_v34  ;;  %21389 = vmatprep.subr.mxu1 %v25806_v59 }
 0x649   : > { %21390 = vmatpush3.msra.mxu1 %v25806_v59  ;;  %21393 = vmatprep.mubr.f32.mxu1 %v8146_v57  ;;  %v8166_v62 = vand.u32 4294901760, %v8165_v36 }
 0x64a   : > { %21391 = vmatprep.subr.mxu1 %v8109_v3 }
 0x64b   : > { %21392 = vmatpush3.msra.mxu1 %v8109_v3  ;;  %v8167_v2 = vsub.f32 %v8165_v36, %v8166_v62 }
 0x64c   : > { %21394 = vmatmul.mubr.f32.vlgmr.msra.gmra.mxu1 %v8156_v22  ;;  %21413 = vmatprep.subr.mxu1 %v25789_v21 }
 0x64d   : > { %21396 = vmatprep.mubr.f32.mxu1 %v8166_v62  ;;  %21414 = vmatpush3.msra.mxu1 %v25789_v21  ;;  %v8168_v0 = vand.u32 4294901760, %v8167_v2  ;;  %v25944_v21 = vpop.f32.mrf.mxu1 }
 0x64e   : > { %21415 = vmatprep.subr.mxu1 %v25796_v42 }
 0x64f   : > { %21354 = vmatprep.mubr.f32.mxu0 %v8168_v0  ;;  %21416 = vmatpush3.msra.mxu1 %v25796_v42 }
 0x650   : > { %21355 = vmatmul.mubr.f32.gmra.mxu0 %v8178_v33  ;;  %21397 = vmatmul.mubr.f32.gmra.mxu1 %v8176_v63 }
 0x651   : > { %21417 = vmatprep.subr.mxu1 %v25806_v59  ;;  %21379 = vmatprep.mubr.f32.mxu0 %v25862_v53 }
 0x652   : > { %21418 = vmatpush3.msra.mxu1 %v25806_v59  ;;  %21421 = vmatprep.mubr.f32.mxu1 %v25850_v31 }
 0x653   : > { %21419 = vmatprep.subr.mxu1 %v8109_v3 }
 0x654   : > { %21420 = vmatpush3.msra.mxu1 %v8109_v3  ;;  %21380 = vmatmul.mubr.f32.vlgmr.msra.gmra.mxu0 %v25894_v26 }
 0x655   : > { %21400 = vmatpush3.msra.mxu0 %v25818_v54  ;;  %21422 = vmatmul.mubr.f32.vlgmr.msra.gmra.mxu1 %v25891_v17 }
 0x656   : > { %21382 = vmatprep.mubr.f32.mxu0 %v8165_v36  ;;  %21401 = vmatprep.subr.mxu0 %v25829_v4 }
 0x657   : > { %21424 = vmatprep.mubr.f32.mxu1 %v8164_v30  ;;  %21402 = vmatpush3.msra.mxu0 %v25829_v4  ;;  %v25948_v4 = vpop.f32.mrf.mxu0 }
 0x658   : > { %21403 = vmatprep.subr.mxu0 %v25843_v38  ;;  %21383 = vmatmul.mubr.f32.gmra.mxu0 %v8175_v13 }
 0x659   : > { %21404 = vmatpush3.msra.mxu0 %v25843_v38  ;;  %21425 = vmatmul.mubr.f32.gmra.mxu1 %v25906_v34 }
 0x65a   : > { %21405 = vmatprep.subr.mxu0 %v25901_v7  ;;  %21407 = vmatprep.mubr.f32.mxu0 %v25850_v31 }
 0x65b   : > { %21406 = vmatpush3.msra.mxu0 %v25901_v7 }
 0x65c   : > { %21408 = vmatmul.mubr.f32.vlgmr.msra.gmra.mxu0 %v25891_v17 }
 0x65d   : > { %21410 = vmatprep.mubr.f32.mxu0 %v8164_v30 }
 0x65e   : > { %v21199_v42 = vpop.f32.mrf.mxu1 }
 0x660   : > { %21411 = vmatmul.mubr.f32.gmra.mxu0 %v25906_v34  ;;  %v7019_v59 = vpop.f32.mrf.mxu1 }
 0x662   : > { %v21202_v54 = vpop.f32.mrf.mxu1 }
 0x664   : > { %v7031_v37 = vpop.f32.mrf.mxu1 }
 0x666   : > { %v21185_v10 = vpop.f32.mrf.mxu0 }
 0x667   : > { %v21227_v38 = vpop.f32.mrf.mxu1  ;;  %v7026_v52 = vadd.f32 %v21199_v42, %v21185_v10 }
 0x668   : > { %v6898_v9 = vpop.f32.mrf.mxu0 }
 0x669   : > { %v7215_v50 = vpop.f32.mrf.mxu1  ;;  %v7020_v35 = vadd.f32 %v7019_v59, %v6898_v9 }
 0x66d   : > { %v21188_v8 = vpop.f32.mrf.mxu0  ;;  %v21230_v49 = vpop.f32.mrf.mxu1 }
 0x66e   : > { %v7038_v6 = vadd.f32 %v21202_v54, %v21188_v8 }
 0x66f   : > { %v6918_v31 = vpop.f32.mrf.mxu0  ;;  %v7231_v19 = vpop.f32.mrf.mxu1 }
 0x670   : > { %v7032_v17 = vadd.f32 %v7031_v37, %v6918_v31 }
 0x673   : > { %v21213_v39 = vpop.f32.mrf.mxu0  ;;  %v21255_v28 = vpop.f32.mrf.mxu1 }
 0x674   : > { %v7125_v57 = vadd.f32 %v21213_v39, %v7026_v52 }
 0x675   : > { %v7117_v53 = vpop.f32.mrf.mxu0  ;;  %v7415_v56 = vpop.f32.mrf.mxu1 }
 0x676   : > { %v7118_v41 = vadd.f32 %v7117_v53, %v7020_v35  ;;  %v7224_v22 = vadd.f32 %v21227_v38, %v7125_v57  ;;  %v8754_v57 = vld [vmem:[%s24192_s11 + $0x18] sm:$0xff] }
 0x678   : > { %v21216_v40 = vpop.f32.mrf.mxu0  ;;  %v7216_v43 = vadd.f32 %v7215_v50, %v7118_v41  ;;  %v25955_v41 = vand.u32 4294901760, %v8754_v57 }
 0x679   : > { %v7139_v26 = vadd.f32 %v21216_v40, %v7038_v6  ;;  %v21258_v7 = vpop.f32.mrf.mxu1 }
 0x67a   : > { %v7131_v51 = vpop.f32.mrf.mxu0  ;;  %21427 = vmatprep.subr.mxu0 %v25955_v41 }
 0x67b   : > { %v7132_v15 = vadd.f32 %v7131_v51, %v7032_v17  ;;  %v7240_v24 = vadd.f32 %v21230_v49, %v7139_v26  ;;  %v7427_v30 = vpop.f32.mrf.mxu1  ;;  %21428 = vmatpush3.msra.mxu0 %v25955_v41 }
 0x67c   : > { %v21241_v45 = vpop.f32.mrf.mxu0 }
 0x67d   : > { %v7329_v11 = vadd.f32 %v21241_v45, %v7224_v22  ;;  %v7232_v61 = vadd.f32 %v7231_v19, %v7132_v15  ;;  %v25958_v45 = vsub.f32 %v8754_v57, %v25955_v41 }
 0x67e   : > { %v7322_v3 = vpop.f32.mrf.mxu0 }
 0x67f   : > { %v7422_v1 = vadd.f32 %v21255_v28, %v7329_v11  ;;  %v7323_v55 = vadd.f32 %v7322_v3, %v7216_v43 }
 0x680   : > { %v21244_v12 = vpop.f32.mrf.mxu0 }
 0x681   : > { %v7416_v34 = vadd.f32 %v7415_v56, %v7323_v55  ;;  %v7341_v25 = vadd.f32 %v21244_v12, %v7240_v24  ;;  %8695 = vrot.lane.b32.xlu1 %v7422_v1, %s23547_s29  ;;  %v25963_v1 = vand.u32 4294901760, %v25958_v45 }
 0x682   : > { %v7334_v5 = vpop.f32.mrf.mxu0 }
 0x683   : > { %v7434_v13 = vadd.f32 %v21258_v7, %v7341_v25  ;;  %v7335_v58 = vadd.f32 %v7334_v5, %v7232_v61  ;;  %8693 = vrot.lane.b32.xlu0 %v7416_v34, %s23547_s29  ;;  %v8911_v25 = vsub.f32 %v25958_v45, %v25963_v1 }
 0x685   : > { %v7428_v63 = vadd.f32 %v7427_v30, %v7335_v58  ;;  %8699 = vrot.lane.b32.xlu1 %v7434_v13, %s23547_s29  ;;  %v8912_v58 = vand.u32 4294901760, %v8911_v25 }
 0x687   : > { %8697 = vrot.lane.b32.xlu0 %v7428_v63, %s23547_s29  ;;  %21441 = vmatprep.subr.mxu1 %v8912_v58 }
 0x688   : > { %21442 = vmatpush3.msra.mxu1 %v8912_v58 }
 0x69b   : > { %v21283_v36 = vpop.f32.mrf.mxu1 }
 0x69d   : > { %v7645_v62 = vpop.f32.mrf.mxu1 }
 0x69f   : > { %v21269_v2 = vpop.f32.mrf.mxu0 }
 0x6a0   : > { %v7652_v8 = vadd.f32 %v21283_v36, %v21269_v2 }
 0x6a1   : > { %v7524_v42 = vpop.f32.mrf.mxu0 }
 0x6a2   : > { %v7646_v31 = vadd.f32 %v7645_v62, %v7524_v42 }
 0x6cb   : > { %v21286_v16 = vpop.f32.mrf.mxu1 }
 0x6cd   : > { %v7657_v0 = vpop.f32.mrf.mxu1 }
 0x6cf   : > { %v21311_v33 = vpop.f32.mrf.mxu1 }
 0x6d1   : > { %v7841_v59 = vpop.f32.mrf.mxu1 }
 0x6d3   : > { %v21272_v54 = vpop.f32.mrf.mxu0 }
 0x6d4   : > { %v21314_v10 = vpop.f32.mrf.mxu1  ;;  %v7664_v52 = vadd.f32 %v21286_v16, %v21272_v54 }
 0x6d5   : > { %v7544_v37 = vpop.f32.mrf.mxu0 }
 0x6d6   : > { %v7857_v9 = vpop.f32.mrf.mxu1  ;;  %v7658_v28 = vadd.f32 %v7657_v0, %v7544_v37 }
 0x6d7   : > { %v21297_v38 = vpop.f32.mrf.mxu0 }
 0x6d8   : > { %v7751_v49 = vadd.f32 %v21297_v38, %v7652_v8  ;;  %v8753_v38 = vld [vmem:[%s24192_s11 + $0x10] sm:$0xff] }
 0x6d9   : > { %v7743_v50 = vpop.f32.mrf.mxu0  ;;  %v21339_v39 = vpop.f32.mrf.mxu1 }
 0x6da   : > { %v7744_v53 = vadd.f32 %v7743_v50, %v7646_v31  ;;  %v7850_v6 = vadd.f32 %v21311_v33, %v7751_v49  ;;  %v8752_v31 = vld [vmem:[%s24192_s11 + $0x8] sm:$0xff] }
 0x6db   : > { %v8041_v51 = vpop.f32.mrf.mxu1 }
 0x6dc   : > { %v7842_v56 = vadd.f32 %v7841_v59, %v7744_v53  ;;  %v8751_v53 = vld [vmem:[%s24192_s11] sm:$0xff]  ;;  %s23549_s11 = smov 24  }
 0x6de   : > { %v21300_v19 = vpop.f32.mrf.mxu0  ;;  %v21342_v55 = vpop.f32.mrf.mxu1 }
 0x6df   : > { %v7765_v40 = vadd.f32 %v21300_v19, %v7664_v52  ;;  %v25978_v19 = vand.u32 4294901760, %v8752_v31 }
 0x6e0   : > { %v7757_v35 = vpop.f32.mrf.mxu0  ;;  %v8053_v30 = vpop.f32.mrf.mxu1 }
 0x6e1   : > { %v7758_v26 = vadd.f32 %v7757_v35, %v7658_v28  ;;  %v7866_v3 = vadd.f32 %v21314_v10, %v7765_v40  ;;  %v25987_v40 = vsub.f32 %v8752_v31, %v25978_v19 }
 0x6e2   : > { %v21325_v17 = vpop.f32.mrf.mxu0 }
 0x6e3   : > { %v7955_v22 = vadd.f32 %v21325_v17, %v7850_v6  ;;  %v7858_v34 = vadd.f32 %v7857_v9, %v7758_v26  ;;  %v25972_v9 = vand.u32 4294901760, %v8753_v38  ;;  %v25990_v17 = vand.u32 4294901760, %v8751_v53 }
 0x6e4   : > { %v7948_v15 = vpop.f32.mrf.mxu0 }
 0x6e5   : > { %v8048_v11 = vadd.f32 %v21339_v39, %v7955_v22  ;;  %v7949_v43 = vadd.f32 %v7948_v15, %v7842_v56  ;;  %v25976_v39 = vsub.f32 %v8753_v38, %v25972_v9  ;;  %21429 = vmatprep.subr.mxu0 %v25972_v9  ;;  %v25996_v15 = vand.u32 4294901760, %v25987_v40 }
 0x6e6   : > { %v21328_v24 = vpop.f32.mrf.mxu0  ;;  %21430 = vmatpush3.msra.mxu0 %v25972_v9 }
 0x6e7   : > { %v8042_v7 = vadd.f32 %v8041_v51, %v7949_v43  ;;  %v7967_v12 = vadd.f32 %v21328_v24, %v7866_v3  ;;  %8711 = vrot.lane.b32.xlu1 %v8048_v11, %s23548_s0  ;;  %v25984_v28 = vand.u32 4294901760, %v25976_v39  ;;  %21431 = vmatprep.subr.mxu0 %v25978_v19  ;;  %v25999_v3 = vsub.f32 %v8751_v53, %v25990_v17 }
 0x6e8   : > { %v7960_v61 = vpop.f32.mrf.mxu0  ;;  %21432 = vmatpush3.msra.mxu0 %v25978_v19 }
 0x6e9   : > { %v8060_v5 = vadd.f32 %v21342_v55, %v7967_v12  ;;  %v7961_v13 = vadd.f32 %v7960_v61, %v7858_v34  ;;  %8709 = vrot.lane.b32.xlu0 %v8042_v7, %s23548_s0  ;;  %v8918_v56 = vsub.f32 %v25976_v39, %v25984_v28  ;;  %21433 = vmatprep.subr.mxu0 %v25990_v17  ;;  %v26006_v61 = vand.u32 4294901760, %v25999_v3 }
 0x6ea   : > { %v8925_v12 = vsub.f32 %v25987_v40, %v25996_v15  ;;  %21434 = vmatpush3.msra.mxu0 %v25990_v17 }
 0x6eb   : > { %v8054_v63 = vadd.f32 %v8053_v30, %v7961_v13  ;;  %8715 = vrot.lane.b32.xlu1 %v8060_v5, %s23548_s0  ;;  %v8919_v7 = vand.u32 4294901760, %v8918_v56  ;;  %21455 = vmatprep.subr.mxu0 %v25958_v45 }
 0x6ec   : > { %v8926_v30 = vand.u32 4294901760, %v8925_v12 }
 0x6ed   : > { %8713 = vrot.lane.b32.xlu0 %v8054_v63, %s23548_s0  ;;  %21443 = vmatprep.subr.mxu1 %v8919_v7 }
 0x6ee   : > { %21444 = vmatpush3.msra.mxu1 %v8919_v7 }
 0x6ef   : > { %21445 = vmatprep.subr.mxu1 %v8926_v30 }
 0x6f0   : > { %21446 = vmatpush3.msra.mxu1 %v8926_v30 }
 0x6f5   : > { %v8694_v53 = vpop.permute.xlu0 %8693 }
 0x6fc   : > { %v21353_v2 = vpop.f32.mrf.mxu0 }
 0x6fe   : > { %v8150_v42 = vpop.f32.mrf.mxu0 }
 0x704   : > { %v21367_v36 = vpop.f32.mrf.mxu1 }
 0x705   : > { %v8278_v49 = vadd.f32 %v21367_v36, %v21353_v2  ;;  %v8932_v36 = vsub.f32 %v25999_v3, %v26006_v61 }
 0x706   : > { %v8271_v62 = vpop.f32.mrf.mxu1 }
 0x707   : > { %v8272_v35 = vadd.f32 %v8271_v62, %v8150_v42  ;;  %v8933_v42 = vand.u32 4294901760, %v8932_v36 }
 0x708   : > { %v21370_v16 = vpop.f32.mrf.mxu1 }
 0x709   : > { %21447 = vmatprep.subr.mxu1 %v8933_v42 }
 0x70a   : > { %v8283_v0 = vpop.f32.mrf.mxu1  ;;  %21448 = vmatpush3.msra.mxu1 %v8933_v42 }
 0x70b   : > { %21469 = vmatprep.subr.mxu1 %v25955_v41 }
 0x70c   : > { %v21395_v33 = vpop.f32.mrf.mxu1 }
 0x70e   : > { %v8467_v59 = vpop.f32.mrf.mxu1 }
 0x710   : > { %v21356_v54 = vpop.f32.mrf.mxu0  ;;  %v21398_v37 = vpop.f32.mrf.mxu1 }
 0x711   : > { %v8290_v26 = vadd.f32 %v21370_v16, %v21356_v54 }
 0x712   : > { %v8170_v10 = vpop.f32.mrf.mxu0  ;;  %v8483_v50 = vpop.f32.mrf.mxu1 }
 0x713   : > { %v8284_v11 = vadd.f32 %v8283_v0, %v8170_v10 }
 0x714   : > { %v21381_v8 = vpop.f32.mrf.mxu0 }
 0x715   : > { %v8377_v57 = vadd.f32 %v21381_v8, %v8278_v49  ;;  %v21423_v6 = vpop.f32.mrf.mxu1 }
 0x716   : > { %v8369_v52 = vpop.f32.mrf.mxu0 }
 0x717   : > { %v8370_v22 = vadd.f32 %v8369_v52, %v8272_v35  ;;  %v8476_v24 = vadd.f32 %v21395_v33, %v8377_v57  ;;  %v8667_v34 = vpop.f32.mrf.mxu1  ;;  %v8696_v52 = vpop.permute.xlu1 %8695 }
 0x718   : > { %v21384_v51 = vpop.f32.mrf.mxu0  ;;  %v8698_v57 = vpop.permute.xlu0 %8697 }
 0x719   : > { %v8391_v55 = vadd.f32 %v21384_v51, %v8290_v26  ;;  %v8468_v58 = vadd.f32 %v8467_v59, %v8370_v22  ;;  %v21426_v0 = vpop.f32.mrf.mxu1  ;;  %v6406_v26 = vadd.f32 %v25771_v47, %v25783_v44  ;;  %v8738_v47 = vsel %vm3488_vm2, %v25839_v20, %v8696_v52 }
 0x71a   : > { %v8383_v43 = vpop.f32.mrf.mxu0 }
 0x71b   : > { %v8384_v5 = vadd.f32 %v8383_v43, %v8284_v11  ;;  %v8492_v2 = vadd.f32 %v21398_v37, %v8391_v55  ;;  %v8679_v49 = vpop.f32.mrf.mxu1  ;;  %v8700_v35 = vpop.permute.xlu1 %8699  ;;  %v6506_v56 = vadd.f32 %v25809_v32, %v6406_v26 }
 0x71c   : > { %v21409_v25 = vpop.f32.mrf.mxu0 }
 0x71d   : > { %v8581_v13 = vadd.f32 %v21409_v25, %v8476_v24  ;;  %v8484_v59 = vadd.f32 %v8483_v50, %v8384_v5  ;;  %v6394_v50 = vadd.f32 %v25769_v18, %v25774_v60  ;;  %v6606_v24 = vadd.f32 %v25799_v29, %v6506_v56 }
 0x71e   : > { %v8574_v63 = vpop.f32.mrf.mxu0 }
 0x71f   : > { %v8674_v62 = vadd.f32 %v21423_v6, %v8581_v13  ;;  %v8575_v16 = vadd.f32 %v8574_v63, %v8468_v58  ;;  %v6492_v6 = vadd.f32 %v25791_v23, %v6394_v50  ;;  %v6709_v60 = vadd.f32 %v25948_v4, %v6606_v24 }
 0x720   : > { %v21412_v33 = vpop.f32.mrf.mxu0 }
 0x721   : > { %v8668_v54 = vadd.f32 %v8667_v34, %v8575_v16  ;;  %v8593_v10 = vadd.f32 %v21412_v33, %v8492_v2  ;;  %8727 = vrot.lane.b32.xlu1 %v8674_v62, %s23549_s11  ;;  %v6590_v11 = vadd.f32 %v25777_v14, %v6492_v6  ;;  %v6802_v34 = vadd.f32 %v25944_v21, %v6709_v60 }
 0x722   : > { %v8586_v38 = vpop.f32.mrf.mxu0 }
 0x723   : > { %v8686_v8 = vadd.f32 %v21426_v0, %v8593_v10  ;;  %v8587_v31 = vadd.f32 %v8586_v38, %v8484_v59  ;;  %8725 = vrot.lane.b32.xlu0 %v8668_v54, %s23549_s11  ;;  %v6697_v43 = vadd.f32 %v25833_v27, %v6590_v11  ;;  %v8739_v58 = vsel %vm3488_vm2, %v6802_v34, %v8698_v57 }
 0x725   : > { %v8680_v37 = vadd.f32 %v8679_v49, %v8587_v31  ;;  %8731 = vrot.lane.b32.xlu1 %v8686_v8, %s23549_s11  ;;  %v6790_v18 = vadd.f32 %v25831_v48, %v6697_v43  ;;  %v8740_v48 = vsel %vm3488_vm2, %v25853_v46, %v8700_v35 }
 0x727   : > { %8729 = vrot.lane.b32.xlu0 %v8680_v37, %s23549_s11  ;;  %v8737_v14 = vsel %vm3488_vm2, %v6790_v18, %v8694_v53 }
 0x759   : > { %v8712_v51 = vpop.permute.xlu1 %8711 }
 0x75a   : > { %v8743_v44 = vsel %vm8741_vm3, %v8738_v47, %v8712_v51 }
 0x75b   : > { %v8710_v22 = vpop.permute.xlu0 %8709 }
 0x75c   : > { %v8742_v27 = vsel %vm8741_vm3, %v8737_v14, %v8710_v22 }
 0x75d   : > { %v8716_v55 = vpop.permute.xlu1 %8715 }
 0x75e   : > { %v8745_v25 = vsel %vm8741_vm3, %v8740_v48, %v8716_v55 }
 0x75f   : > { %v8714_v7 = vpop.permute.xlu0 %8713 }
 0x760   : > { %v8744_v36 = vsel %vm8741_vm3, %v8739_v58, %v8714_v7 }
 0x793   : > { %v8728_v23 = vpop.permute.xlu1 %8727 }
 0x794   : > { %v8748_v32 = vsel %vm8746_vm4, %v8743_v44, %v8728_v23 }
 0x795   : > { %v8766_v29 = vsel %vm1511_vm1, %v8748_v32, 0  ;;  %v8726_v12 = vpop.permute.xlu0 %8725 }
 0x796   : > { %v26037_v4 = vand.u32 4294901760, %v8766_v29  ;;  %v8747_v20 = vsel %vm8746_vm4, %v8742_v27, %v8726_v12 }
 0x797   : > { %v8763_v5 = vsel %vm1511_vm1, %v8747_v20, 0  ;;  %v8732_v13 = vpop.permute.xlu1 %8731 }
 0x798   : > { %v8854_v30 = vsub.f32 %v8766_v29, %v26037_v4  ;;  %v26044_v63 = vand.u32 4294901760, %v8763_v5  ;;  %v8750_v21 = vsel %vm8746_vm4, %v8745_v25, %v8732_v13 }
 0x799   : > { %v8772_v46 = vsel %vm1511_vm1, %v8750_v21, 0  ;;  %v8730_v62 = vpop.permute.xlu0 %8729 }
 0x79a   : > { %v8855_v16 = vand.u32 4294901760, %v8854_v30  ;;  %v8844_v2 = vsub.f32 %v8763_v5, %v26044_v63  ;;  %v26050_v0 = vand.u32 4294901760, %v8772_v46  ;;  %v8749_v33 = vsel %vm8746_vm4, %v8744_v36, %v8730_v62  ;;  %21449 = vmatprep.mubr.f32.mxu1 %v26044_v63  ;;  %v23032_v62 = vld [vmem:[#allocation21 + $0x8] sm:$0xff] }
 0x79b   : > { %v8769_v42 = vsel %vm1511_vm1, %v8749_v33, 0  ;;  %21450 = vmatmul.mubr.f32.vlgmr.msra.gmra.mxu1 %v26037_v4 }
 0x79c   : > { %v8874_v54 = vsub.f32 %v8772_v46, %v26050_v0  ;;  %v8863_v10 = vand.u32 4294901760, %v8769_v42  ;;  %21470 = vmatpush3.msra.mxu1 %v25955_v41  ;;  %v8845_v59 = vand.u32 4294901760, %v8844_v2  ;;  %v8856_v38 = vsub.f32 %v8854_v30, %v8855_v16 }
 0x79d   : > { %21471 = vmatprep.subr.mxu1 %v25972_v9 }
 0x79e   : > { %v8875_v8 = vand.u32 4294901760, %v8874_v54  ;;  %v8864_v31 = vsub.f32 %v8769_v42, %v8863_v10  ;;  %21452 = vmatprep.mubr.f32.mxu1 %v8863_v10  ;;  %21472 = vmatpush3.msra.mxu1 %v25972_v9  ;;  %v8846_v49 = vsub.f32 %v8844_v2, %v8845_v59  ;;  %v8857_v53 = vand.u32 4294901760, %v8856_v38  ;;  %v23033_v42 = vld [vmem:[#allocation21] sm:$0xff] }
 0x79f   : > { %21453 = vmatmul.mubr.f32.gmra.mxu1 %v26050_v0  ;;  %21473 = vmatprep.subr.mxu1 %v25978_v19 }
 0x7a0   : > { %21474 = vmatpush3.msra.mxu1 %v25978_v19  ;;  %21477 = vmatprep.mubr.f32.mxu1 %v8845_v59  ;;  %v8847_v37 = vand.u32 4294901760, %v8846_v49  ;;  %v8865_v52 = vand.u32 4294901760, %v8864_v31  ;;  %v8876_v50 = vsub.f32 %v8874_v54, %v8875_v8 }
 0x7a1   : > { %21475 = vmatprep.subr.mxu1 %v25990_v17 }
 0x7a2   : > { %21435 = vmatprep.mubr.f32.mxu0 %v8847_v37  ;;  %21476 = vmatpush3.msra.mxu1 %v25990_v17  ;;  %v8866_v35 = vsub.f32 %v8864_v31, %v8865_v52  ;;  %v8877_v6 = vand.u32 4294901760, %v8876_v50 }
 0x7a3   : > { %21436 = vmatmul.mubr.f32.vlgmr.msra.gmra.mxu0 %v8857_v53  ;;  %21478 = vmatmul.mubr.f32.vlgmr.msra.gmra.mxu1 %v8855_v16 }
 0x7a4   : > { %21497 = vmatprep.subr.mxu1 %v25955_v41  ;;  %21456 = vmatpush3.msra.mxu0 %v25958_v45  ;;  %v8867_v57 = vand.u32 4294901760, %v8866_v35 }
 0x7a5   : > { %21480 = vmatprep.mubr.f32.mxu1 %v8865_v52  ;;  %21498 = vmatpush3.msra.mxu1 %v25955_v41  ;;  %v23035_v52 = vld [vmem:[#allocation21 + $0x18] sm:$0xff] }
 0x7a6   : > { %21457 = vmatprep.subr.mxu0 %v25976_v39  ;;  %21499 = vmatprep.subr.mxu1 %v25972_v9 }
 0x7a7   : > { %21438 = vmatprep.mubr.f32.mxu0 %v8867_v57  ;;  %21458 = vmatpush3.msra.mxu0 %v25976_v39 }
 0x7a8   : > { %21500 = vmatpush3.msra.mxu1 %v25972_v9  ;;  %21439 = vmatmul.mubr.f32.gmra.mxu0 %v8877_v6 }
 0x7a9   : > { %21459 = vmatprep.subr.mxu0 %v25987_v40  ;;  %21481 = vmatmul.mubr.f32.gmra.mxu1 %v8875_v8 }
 0x7aa   : > { %21501 = vmatprep.subr.mxu1 %v25978_v19  ;;  %21460 = vmatpush3.msra.mxu0 %v25987_v40 }
 0x7ab   : > { %21463 = vmatprep.mubr.f32.mxu0 %v8844_v2  ;;  %21502 = vmatpush3.msra.mxu1 %v25978_v19 }
 0x7ac   : > { %21505 = vmatprep.mubr.f32.mxu1 %v26044_v63  ;;  %21461 = vmatprep.subr.mxu0 %v25999_v3 }
 0x7ad   : > { %21503 = vmatprep.subr.mxu1 %v25990_v17  ;;  %21462 = vmatpush3.msra.mxu0 %v25999_v3 }
 0x7ae   : > { %21504 = vmatpush3.msra.mxu1 %v25990_v17  ;;  %21464 = vmatmul.mubr.f32.vlgmr.msra.gmra.mxu0 %v8854_v30 }
 0x7af   : > { %21483 = vmatprep.subr.mxu0 %v25963_v1  ;;  %21506 = vmatmul.mubr.f32.vlgmr.msra.gmra.mxu1 %v26037_v4 }
 0x7b0   : > { %21466 = vmatprep.mubr.f32.mxu0 %v8864_v31  ;;  %21484 = vmatpush3.msra.mxu0 %v25963_v1  ;;  %v23034_v31 = vld [vmem:[#allocation21 + $0x10] sm:$0xff] }
 0x7b1   : > { %21508 = vmatprep.mubr.f32.mxu1 %v8863_v10  ;;  %21485 = vmatprep.subr.mxu0 %v25984_v28 }
 0x7b2   : > { %21486 = vmatpush3.msra.mxu0 %v25984_v28 }
 0x7b3   : > { %21467 = vmatmul.mubr.f32.gmra.mxu0 %v8874_v54  ;;  %21487 = vmatprep.subr.mxu0 %v25996_v15 }
 0x7b4   : > { %21509 = vmatmul.mubr.f32.gmra.mxu1 %v26050_v0  ;;  %21488 = vmatpush3.msra.mxu0 %v25996_v15  ;;  %v19218_v15 = vld [vmem:[%s28669_s7] ss:$0 sm:$0xff] }
 0x7b5   : > { %21491 = vmatprep.mubr.f32.mxu0 %v26044_v63  ;;  %21489 = vmatprep.subr.mxu0 %v26006_v61 }
 0x7b6   : > { %21490 = vmatpush3.msra.mxu0 %v26006_v61 }
 0x7b7   : > { %21492 = vmatmul.mubr.f32.vlgmr.msra.gmra.mxu0 %v26037_v4 }
 0x7b8   : > { %21494 = vmatprep.mubr.f32.mxu0 %v8863_v10 }
 0x7bb   : > { %21495 = vmatmul.mubr.f32.gmra.mxu0 %v26050_v0 }
 0x85b   : > { %v21451_v41 = vpop.f32.mrf.mxu1 }
 0x85d   : > { %v8970_v45 = vpop.f32.mrf.mxu1 }
 0x85f   : > { %v21454_v1 = vpop.f32.mrf.mxu1 }
 0x861   : > { %v8982_v9 = vpop.f32.mrf.mxu1 }
 0x863   : > { %v21437_v39 = vpop.f32.mrf.mxu0  ;;  %v21479_v19 = vpop.f32.mrf.mxu1 }
 0x864   : > { %v8860_v51 = vadd.f32 %v21437_v39, %v19218_v15 }
 0x865   : > { %v8849_v28 = vpop.f32.mrf.mxu0  ;;  %v9166_v40 = vpop.f32.mrf.mxu1 }
 0x866   : > { %v8850_v26 = vadd.f32 %v19218_v15, %v8849_v28  ;;  %v8977_v43 = vadd.f32 %v21451_v41, %v8860_v51 }
 0x868   : > { %v21440_v17 = vpop.f32.mrf.mxu0  ;;  %v8971_v18 = vadd.f32 %v8970_v45, %v8850_v26 }
 0x869   : > { %v21482_v61 = vpop.f32.mrf.mxu1  ;;  %v8880_v11 = vadd.f32 %v21440_v17, %v19218_v15 }
 0x86a   : > { %v8869_v3 = vpop.f32.mrf.mxu0 }
 0x86b   : > { %v9182_v56 = vpop.f32.mrf.mxu1  ;;  %v8870_v24 = vadd.f32 %v19218_v15, %v8869_v3  ;;  %v8989_v23 = vadd.f32 %v21454_v1, %v8880_v11 }
 0x86d   : > { %v8983_v27 = vadd.f32 %v8982_v9, %v8870_v24  ;;  %v9473_v24 = vld [vmem:[%s24209_s15 + $0x10] sm:$0xff] }
 0x86e   : > { %v21465_v22 = vpop.f32.mrf.mxu0 }
 0x86f   : > { %v9076_v7 = vadd.f32 %v21465_v22, %v8977_v43  ;;  %v21507_v60 = vpop.f32.mrf.mxu1  ;;  %v9474_v43 = vld [vmem:[%s24209_s15 + $0x18] sm:$0xff] }
 0x870   : > { %v9068_v55 = vpop.f32.mrf.mxu0 }
 0x871   : > { %v9069_v44 = vadd.f32 %v9068_v55, %v8971_v18  ;;  %v9175_v29 = vadd.f32 %v21479_v19, %v9076_v7  ;;  %v9366_v12 = vpop.f32.mrf.mxu1  ;;  %v26124_v55 = vand.u32 4294901760, %v9474_v43  ;;  %v26130_v18 = vand.u32 4294901760, %v9473_v24 }
 0x873   : > { %v21468_v47 = vpop.f32.mrf.mxu0  ;;  %v9167_v20 = vadd.f32 %v9166_v40, %v9069_v44  ;;  %v26128_v7 = vsub.f32 %v9474_v43, %v26124_v55  ;;  %21511 = vmatprep.subr.mxu0 %v26124_v55 }
 0x874   : > { %v9090_v32 = vadd.f32 %v21468_v47, %v8989_v23  ;;  %v21510_v30 = vpop.f32.mrf.mxu1  ;;  %v9471_v47 = vld [vmem:[%s24209_s15] sm:$0xff]  ;;  %21512 = vmatpush3.msra.mxu0 %v26124_v55 }
 0x875   : > { %v9082_v14 = vpop.f32.mrf.mxu0  ;;  %v26137_v23 = vand.u32 4294901760, %v9471_v47  ;;  %21513 = vmatprep.subr.mxu0 %v26130_v18 }
 0x876   : > { %v9083_v48 = vadd.f32 %v9082_v14, %v8983_v27  ;;  %v9191_v58 = vadd.f32 %v21482_v61, %v9090_v32  ;;  %v9378_v10 = vpop.f32.mrf.mxu1  ;;  %v26141_v14 = vand.u32 4294901760, %v26128_v7  ;;  %v26144_v32 = vsub.f32 %v9473_v24, %v26130_v18  ;;  %21514 = vmatpush3.msra.mxu0 %v26130_v18 }
 0x877   : > { %v21493_v34 = vpop.f32.mrf.mxu0 }
 0x878   : > { %v9280_v4 = vadd.f32 %v21493_v34, %v9175_v29  ;;  %v9183_v46 = vadd.f32 %v9182_v56, %v9083_v48  ;;  %v26151_v29 = vsub.f32 %v9471_v47, %v26137_v23  ;;  %v26157_v34 = vand.u32 4294901760, %v26144_v32 }
 0x879   : > { %v9273_v25 = vpop.f32.mrf.mxu0 }
 0x87a   : > { %v9373_v5 = vadd.f32 %v21507_v60, %v9280_v4  ;;  %v9274_v13 = vadd.f32 %v9273_v25, %v9167_v20  ;;  %v9472_v60 = vld [vmem:[%s24209_s15 + $0x8] sm:$0xff]  ;;  %v26164_v4 = vand.u32 4294901760, %v26151_v29  ;;  %v9638_v25 = vsub.f32 %v26144_v32, %v26157_v34  ;;  %s28673_s15 = sld [smem:[#allocation58_spill]] }
 0x87b   : > { %v21496_v63 = vpop.f32.mrf.mxu0  ;;  %v26135_v44 = vand.u32 4294901760, %v9472_v60 }
 0x87c   : > { %v9367_v21 = vadd.f32 %v9366_v12, %v9274_v13  ;;  %v9292_v36 = vadd.f32 %v21496_v63, %v9191_v58  ;;  %v9391_v16 = vadd.f32 %v23032_v62, %v9373_v5  ;;  %v9631_v12 = vsub.f32 %v26128_v7, %v26141_v14 }
 0x87d   : > { %v9285_v2 = vpop.f32.mrf.mxu0  ;;  %v26148_v27 = vsub.f32 %v9472_v60, %v26135_v44  ;;  %21515 = vmatprep.subr.mxu0 %v26135_v44  ;;  %v9652_v13 = vsub.f32 %v26151_v29, %v26164_v4  ;;  %v9639_v58 = vand.u32 4294901760, %v9638_v25 }
 0x87e   : > { %v9286_v0 = vadd.f32 %v9285_v2, %v9183_v46  ;;  %v9397_v33 = vsel %vm1511_vm1, %v9391_v16, 0.0  ;;  %v9390_v54 = vadd.f32 %v23033_v42, %v9367_v21  ;;  %v9385_v59 = vadd.f32 %v21510_v30, %v9292_v36  ;;  %21516 = vmatpush3.msra.mxu0 %v26135_v44 }
 0x87f   : > { %9398 = vadd.xlane.f32.xlu1 %v9397_v33  ;;  %v26161_v48 = vand.u32 4294901760, %v26148_v27  ;;  %v9632_v20 = vand.u32 4294901760, %v9631_v12  ;;  %21517 = vmatprep.subr.mxu0 %v26137_v23  ;;  %v9653_v63 = vand.u32 4294901760, %v9652_v13 }
 0x880   : > { %v9379_v38 = vadd.f32 %v9378_v10, %v9286_v0  ;;  %v9394_v8 = vsel %vm1511_vm1, %v9390_v54, 0.0  ;;  %v9393_v53 = vadd.f32 %v23035_v52, %v9385_v59  ;;  %21518 = vmatpush3.msra.mxu0 %v26137_v23 }
 0x881   : > { %9395 = vadd.xlane.f32.xlu0 %v9394_v8  ;;  %v9645_v5 = vsub.f32 %v26148_v27, %v26161_v48  ;;  %21525 = vmatprep.subr.mxu1 %v9632_v20  ;;  %v19219_v8 = vld [vmem:[%s1220_s20] ss:$0 sm:$0xff]  ;;  %s28672_s20 = scalar_lea.vmem [#allocation12], %s24153_s13 }
 0x882   : > { %v9392_v49 = vadd.f32 %v23034_v31, %v9379_v38  ;;  %v9403_v35 = vsel %vm1511_vm1, %v9393_v53, 0.0  ;;  %21539 = vmatprep.subr.mxu0 %v26128_v7  ;;  %21526 = vmatpush3.msra.mxu1 %v9632_v20 }
 0x883   : > { %v9646_v30 = vand.u32 4294901760, %v9645_v5  ;;  %21527 = vmatprep.subr.mxu1 %v9639_v58  ;;  %v10143_v5 = vld [vmem:[%s24159_s8 + $0x18] sm:$0xff] }
 0x884   : > { %v9400_v37 = vsel %vm1511_vm1, %v9392_v49, 0.0  ;;  %21528 = vmatpush3.msra.mxu1 %v9639_v58 }
 0x885   : > { %9401 = vadd.xlane.f32.xlu0 %v9400_v37  ;;  %21529 = vmatprep.subr.mxu1 %v9646_v30  ;;  %v19220_v37 = vld [vmem:[%s1228_s19] ss:$0 sm:$0xff]  ;;  %s28671_s19 = scalar_lea.vmem [#allocation11], %s24153_s13 }
 0x886   : > { %21530 = vmatpush3.msra.mxu1 %v9646_v30 }
 0x887   : > { %21531 = vmatprep.subr.mxu1 %v9653_v63 }
 0x888   : > { %21532 = vmatpush3.msra.mxu1 %v9653_v63  ;;  %v26234_v63 = vand.u32 4294901760, %v10143_v5 }
 0x889   : > { %9404 = vadd.xlane.f32.xlu0 %v9403_v35  ;;  %21553 = vmatprep.subr.mxu1 %v26124_v55 }
 0x908   : > { %v9399_v50 = vpop.xlane.xlu1 %9398 }
 0x909   : > { %v9408_v57 = vmul.f32 0.03125, %v9399_v50 }
 0x90a   : > { %v9396_v6 = vpop.xlane.xlu0 %9395 }
 0x90b   : > { %v26103_v41 = vsub.f32 %v9391_v16, %v9408_v57  ;;  %v9407_v45 = vmul.f32 0.03125, %v9396_v6 }
 0x90d   : > { %v26105_v1 = vsub.f32 %v9390_v54, %v9407_v45  ;;  %v9416_v9 = vmul.f32 %v26103_v41, %v26103_v41 }
 0x90e   : > { %v9402_v39 = vpop.xlane.xlu0 %9401 }
 0x90f   : > { %v9409_v19 = vmul.f32 0.03125, %v9402_v39  ;;  %v9422_v28 = vsel %vm1511_vm1, %v9416_v9, 0.0  ;;  %v9415_v40 = vmul.f32 %v26105_v1, %v26105_v1 }
 0x910   : > { %9423 = vadd.xlane.f32.xlu0 %v9422_v28 }
 0x911   : > { %v26112_v17 = vsub.f32 %v9392_v49, %v9409_v19  ;;  %v9419_v15 = vsel %vm1511_vm1, %v9415_v40, 0.0 }
 0x912   : > { %9420 = vadd.xlane.f32.xlu1 %v9419_v15  ;;  %v9405_v3 = vpop.xlane.xlu0 %9404 }
 0x913   : > { %v9410_v61 = vmul.f32 0.03125, %v9405_v3  ;;  %v9417_v51 = vmul.f32 %v26112_v17, %v26112_v17 }
 0x915   : > { %v26117_v26 = vsub.f32 %v9393_v53, %v9410_v61  ;;  %v9425_v22 = vsel %vm1511_vm1, %v9417_v51, 0.0 }
 0x916   : > { %9426 = vadd.xlane.f32.xlu1 %v9425_v22 }
 0x917   : > { %v9418_v56 = vmul.f32 %v26117_v26, %v26117_v26 }
 0x919   : > { %v9428_v11 = vsel %vm1511_vm1, %v9418_v56, 0.0 }
 0x91a   : > { %9429 = vadd.xlane.f32.xlu0 %v9428_v11 }
 0x999   : > { %v9424_v21 = vpop.xlane.xlu0 %9423 }
 0x99a   : > { %v9432_v36 = vmul.f32 0.03125, %v9424_v21 }
 0x99b   : > { %v9421_v46 = vpop.xlane.xlu1 %9420 }
 0x99c   : > { %v9436_v62 = vadd.f32 1e-05, %v9432_v36  ;;  %v9431_v16 = vmul.f32 0.03125, %v9421_v46  ;;  %v10142_v46 = vld [vmem:[%s24159_s8 + $0x10] sm:$0xff] }
 0x99e   : > { %22936 = vrsqrt.f32 %v9436_v62  ;;  %v9435_v2 = vadd.f32 1e-05, %v9431_v16  ;;  %v1493_v16 = vld [vmem:[#allocation2] sm:$0xff] }
 0x99f   : > { %v9427_v0 = vpop.xlane.xlu1 %9426 }
 0x9a0   : > { %22938 = vrsqrt.f32 %v9435_v2  ;;  %v9433_v33 = vmul.f32 0.03125, %v9427_v0  ;;  %v26245_v2 = vsub.f32 %v10143_v5, %v26234_v63  ;;  %v10141_v0 = vld [vmem:[%s24159_s8 + $0x8] sm:$0xff] }
 0x9a1   : > { %v10753_v5 = vld [vmem:[%s24218_s6 + $0x8] sm:$0xff] }
 0x9a2   : > { %v9437_v42 = vadd.f32 1e-05, %v9433_v33 }
 0x9a3   : > { %v9430_v54 = vpop.xlane.xlu0 %9429 }
 0x9a4   : > { %22940 = vrsqrt.f32 %v9437_v42  ;;  %v9434_v10 = vmul.f32 0.03125, %v9430_v54  ;;  %v10152_v42 = vsel %vm1511_vm1, %v1493_v16, 0  ;;  %v10140_v54 = vld [vmem:[%s24159_s8] sm:$0xff] }
 0x9a6   : > { %v9438_v59 = vadd.f32 1e-05, %v9434_v10  ;;  %v10286_v10 = vand.u32 4294901760, %v26245_v2 }
 0x9a8   : > { %22942 = vrsqrt.f32 %v9438_v59  ;;  %v1494_v59 = vld [vmem:[#allocation2 + $0x8] sm:$0xff] }
 0x9ab   : > { %v22937_v38 = vpop.eup %22936 }
 0x9ac   : > { %v9444_v31 = vmul.f32 %v22937_v38, %v26103_v41  ;;  %v26269_v38 = vand.u32 4294901760, %v10140_v54 }
 0x9ad   : > { %v22939_v49 = vpop.eup %22938 }
 0x9ae   : > { %v9443_v52 = vmul.f32 %v22939_v49, %v26105_v1  ;;  %v9454_v53 = vmul.f32 %v19219_v8, %v9444_v31  ;;  %v1495_v49 = vld [vmem:[#allocation2 + $0x10] sm:$0xf] }
 0x9b0   : > { %v9453_v35 = vmul.f32 %v19219_v8, %v9443_v52  ;;  %v26183_v50 = vadd.f32 %v19220_v37, %v9454_v53  ;;  %v23550_v53 = vmov 0.0  }
 0x9b1   : > { %v22941_v57 = vpop.eup %22940 }
 0x9b2   : > { %v26185_v6 = vadd.f32 %v19220_v37, %v9453_v35  ;;  %v9486_v45 = vsel %vm1511_vm1, %v26183_v50, 0  ;;  %v9445_v9 = vmul.f32 %v22941_v57, %v26112_v17  ;;  %v10158_v57 = vsel %vm1511_vm1, %v1495_v49, 0 }
 0x9b3   : > { %v26190_v39 = vand.u32 4294901760, %v9486_v45 }
 0x9b4   : > { %v9483_v41 = vsel %vm1511_vm1, %v26185_v6, 0  ;;  %v9455_v19 = vmul.f32 %v19219_v8, %v9445_v9 }
 0x9b5   : > { %v22943_v28 = vpop.eup %22942  ;;  %v26194_v1 = vand.u32 4294901760, %v9483_v41  ;;  %v26197_v40 = vsub.f32 %v9486_v45, %v26190_v39 }
 0x9b6   : > { %v26199_v15 = vadd.f32 %v19220_v37, %v9455_v19  ;;  %v9446_v3 = vmul.f32 %v22943_v28, %v26117_v26  ;;  %v26320_v19 = vand.u32 4294901760, %v10158_v57 }
 0x9b7   : > { %21533 = vmatprep.mubr.f32.mxu1 %v26194_v1  ;;  %v9564_v17 = vsub.f32 %v9483_v41, %v26194_v1  ;;  %v9575_v61 = vand.u32 4294901760, %v26197_v40 }
 0x9b8   : > { %21534 = vmatmul.mubr.f32.vlgmr.msra.gmra.mxu1 %v26190_v39  ;;  %v9489_v51 = vsel %vm1511_vm1, %v26199_v15, 0  ;;  %v9456_v22 = vmul.f32 %v19219_v8, %v9446_v3  ;;  %v10155_v8 = vsel %vm1511_vm1, %v1494_v59, 0 }
 0x9b9   : > { %v26208_v56 = vand.u32 4294901760, %v9489_v51  ;;  %21554 = vmatpush3.msra.mxu1 %v26124_v55  ;;  %v9565_v11 = vand.u32 4294901760, %v9564_v17  ;;  %v9576_v43 = vsub.f32 %v26197_v40, %v9575_v61 }
 0x9ba   : > { %21555 = vmatprep.subr.mxu1 %v26130_v18  ;;  %v26212_v26 = vadd.f32 %v19220_v37, %v9456_v22  ;;  %v26293_v37 = vand.u32 4294901760, %v10155_v8 }
 0x9bb   : > { %21536 = vmatprep.mubr.f32.mxu1 %v26208_v56  ;;  %21556 = vmatpush3.msra.mxu1 %v26130_v18  ;;  %v9566_v24 = vsub.f32 %v9564_v17, %v9565_v11  ;;  %v26218_v60 = vsub.f32 %v9489_v51, %v26208_v56  ;;  %v9577_v13 = vand.u32 4294901760, %v9576_v43  ;;  %v10755_v43 = vld [vmem:[%s24218_s6 + $0x18] sm:$0xff] }
 0x9bc   : > { %28670 = vst [vmem:[#allocation39_spill] sm:$0xff] %v26212_v26  ;;  %v9492_v47 = vsel %vm1511_vm1, %v26212_v26, 0  ;;  %21557 = vmatprep.subr.mxu1 %v26135_v44  ;;  %v26313_v9 = vsub.f32 %v10155_v8, %v26293_v37 }
 0x9bd   : > { %v9567_v12 = vand.u32 4294901760, %v9566_v24  ;;  %v26223_v20 = vand.u32 4294901760, %v9492_v47  ;;  %21558 = vmatpush3.msra.mxu1 %v26135_v44  ;;  %v9585_v25 = vand.u32 4294901760, %v26218_v60  ;;  %v26393_v24 = vand.u32 4294901760, %v10755_v43 }
 0x9be   : > { %21559 = vmatprep.subr.mxu1 %v26137_v23 }
 0x9bf   : > { %21519 = vmatprep.mubr.f32.mxu0 %v9567_v12  ;;  %v26230_v58 = vsub.f32 %v9492_v47, %v26223_v20  ;;  %21537 = vmatmul.mubr.f32.gmra.mxu1 %v26223_v20  ;;  %v9586_v30 = vsub.f32 %v26218_v60, %v9585_v25 }
 0x9c0   : > { %21520 = vmatmul.mubr.f32.vlgmr.msra.gmra.mxu0 %v9577_v13  ;;  %21561 = vmatprep.mubr.f32.mxu1 %v9565_v11 }
 0x9c1   : > { %21560 = vmatpush3.msra.mxu1 %v26137_v23  ;;  %v9587_v21 = vand.u32 4294901760, %v9586_v30  ;;  %21540 = vmatpush3.msra.mxu0 %v26128_v7  ;;  %v9595_v36 = vand.u32 4294901760, %v26230_v58  ;;  %v26247_v7 = vand.u32 4294901760, %v10142_v46  ;;  %v26452_v30 = vand.u32 4294901760, %v10753_v5 }
 0x9c2   : > { %21581 = vmatprep.subr.mxu1 %v26124_v55  ;;  %21541 = vmatprep.subr.mxu0 %v26144_v32 }
 0x9c3   : > { %21522 = vmatprep.mubr.f32.mxu0 %v9587_v21  ;;  %21562 = vmatmul.mubr.f32.vlgmr.msra.gmra.mxu1 %v9575_v61  ;;  %v9596_v62 = vsub.f32 %v26230_v58, %v9595_v36 }
 0x9c4   : > { %21564 = vmatprep.mubr.f32.mxu1 %v9585_v25  ;;  %21582 = vmatpush3.msra.mxu1 %v26124_v55  ;;  %v26255_v55 = vand.u32 4294901760, %v10141_v0 }
 0x9c5   : > { %21583 = vmatprep.subr.mxu1 %v26130_v18  ;;  %21542 = vmatpush3.msra.mxu0 %v26144_v32  ;;  %v9597_v33 = vand.u32 4294901760, %v9596_v62  ;;  %v26262_v32 = vsub.f32 %v10142_v46, %v26247_v7 }
 0x9c6   : > { %21584 = vmatpush3.msra.mxu1 %v26130_v18  ;;  %21543 = vmatprep.subr.mxu0 %v26148_v27  ;;  %v26265_v18 = vand.u32 4294901760, %v10152_v42 }
 0x9c7   : > { %21523 = vmatmul.mubr.f32.gmra.mxu0 %v9597_v33  ;;  %21565 = vmatmul.mubr.f32.gmra.mxu1 %v9595_v36  ;;  %v10293_v31 = vand.u32 4294901760, %v26262_v32  ;;  %v26463_v36 = vsub.f32 %v10753_v5, %v26452_v30 }
 0x9c8   : > { %21585 = vmatprep.subr.mxu1 %v26135_v44  ;;  %21544 = vmatpush3.msra.mxu0 %v26148_v27  ;;  %v26274_v27 = vsub.f32 %v10141_v0, %v26255_v55 }
 0x9c9   : > { %21547 = vmatprep.mubr.f32.mxu0 %v9564_v17  ;;  %21586 = vmatpush3.msra.mxu1 %v26135_v44  ;;  %v10287_v44 = vsub.f32 %v26245_v2, %v10286_v10  ;;  %v10903_v16 = vand.u32 4294901760, %v26463_v36 }
 0x9ca   : > { %21589 = vmatprep.mubr.f32.mxu1 %v26194_v1  ;;  %21545 = vmatprep.subr.mxu0 %v26151_v29  ;;  %v10300_v52 = vand.u32 4294901760, %v26274_v27 }
 0x9cb   : > { %21587 = vmatprep.subr.mxu1 %v26137_v23  ;;  %21546 = vmatpush3.msra.mxu0 %v26151_v29  ;;  %v26286_v29 = vsub.f32 %v10152_v42, %v26265_v18  ;;  %v10288_v35 = vand.u32 4294901760, %v10287_v44  ;;  %v10904_v0 = vsub.f32 %v26463_v36, %v10903_v16 }
 0x9cc   : > { %21588 = vmatpush3.msra.mxu1 %v26137_v23  ;;  %21548 = vmatmul.mubr.f32.vlgmr.msra.gmra.mxu0 %v26197_v40  ;;  %v26291_v23 = vsub.f32 %v10140_v54, %v26269_v38  ;;  %v10301_v41 = vsub.f32 %v26274_v27, %v10300_v52  ;;  %v26333_v40 = vand.u32 4294901760, %v26313_v9 }
 0x9cd   : > { %21567 = vmatprep.subr.mxu0 %v26141_v14  ;;  %21590 = vmatmul.mubr.f32.vlgmr.msra.gmra.mxu1 %v26190_v39  ;;  %v26307_v45 = vand.u32 4294901760, %v26286_v29  ;;  %v10905_v42 = vand.u32 4294901760, %v10904_v0  ;;  %v19222_v0 = vld [vmem:[%s28671_s19] ss:$0 sm:$0xff] }
 0x9ce   : > { %21550 = vmatprep.mubr.f32.mxu0 %v26218_v60  ;;  %21568 = vmatpush3.msra.mxu0 %v26141_v14  ;;  %v10294_v14 = vsub.f32 %v26262_v32, %v10293_v31  ;;  %v10242_v61 = vsub.f32 %v26313_v9, %v26333_v40  ;;  %v26406_v60 = vsub.f32 %v10755_v43, %v26393_v24 }
 0x9cf   : > { %21592 = vmatprep.mubr.f32.mxu1 %v26208_v56  ;;  %21569 = vmatprep.subr.mxu0 %v26157_v34 }
 0x9d0   : > { %21570 = vmatpush3.msra.mxu0 %v26157_v34  ;;  %21612 = vmatprep.subr.mxu1 %v23550_v53  ;;  %v10307_v34 = vand.u32 4294901760, %v26291_v23  ;;  %v10295_v28 = vand.u32 4294901760, %v10294_v14  ;;  %v26360_v22 = vand.u32 4294901760, %v10242_v61  ;;  %v10889_v47 = vand.u32 4294901760, %v26406_v60 }
 0x9d1   : > { %21551 = vmatmul.mubr.f32.gmra.mxu0 %v26230_v58  ;;  %21571 = vmatprep.subr.mxu0 %v26161_v48 }
 0x9d2   : > { %21593 = vmatmul.mubr.f32.gmra.mxu1 %v26223_v20  ;;  %21572 = vmatpush3.msra.mxu0 %v26161_v48  ;;  %v10232_v48 = vsub.f32 %v26286_v29, %v26307_v45  ;;  %v10890_v12 = vsub.f32 %v26406_v60, %v10889_v47 }
 0x9d3   : > { %21575 = vmatprep.mubr.f32.mxu0 %v26194_v1  ;;  %21573 = vmatprep.subr.mxu0 %v26164_v4  ;;  %v10308_v1 = vsub.f32 %v26291_v23, %v10307_v34 }
 0x9d4   : > { %21574 = vmatpush3.msra.mxu0 %v26164_v4  ;;  %21613 = vmatpush3.msra.mxu1 %v10288_v35  ;;  %v10302_v4 = vand.u32 4294901760, %v10301_v41  ;;  %v26343_v3 = vand.u32 4294901760, %v10232_v48  ;;  %v10891_v13 = vand.u32 4294901760, %v10890_v12 }
 0x9d5   : > { %21576 = vmatmul.mubr.f32.vlgmr.msra.gmra.mxu0 %v26190_v39  ;;  %21595 = vmatprep.subr.mxu0 %v23550_v53  ;;  %v26338_v39 = vsub.f32 %v10158_v57, %v26320_v19  ;;  %v10309_v17 = vand.u32 4294901760, %v10308_v1 }
 0x9d6   : > { %21578 = vmatprep.mubr.f32.mxu0 %v26208_v56  ;;  %21596 = vmatpush3.msra.mxu0 %v26234_v63 }
 0x9d7   : > { %21597 = vmatprep.subr.mxu0 %v23550_v53  ;;  %21614 = vmatprep.subr.mxu1 %v23550_v53  ;;  %v26351_v51 = vand.u32 4294901760, %v26338_v39 }
 0x9d8   : > { %21598 = vmatpush3.msra.mxu0 %v26247_v7  ;;  %21615 = vmatpush3.msra.mxu1 %v10295_v28 }
 0x9d9   : > { %21579 = vmatmul.mubr.f32.gmra.mxu0 %v26223_v20  ;;  %21599 = vmatprep.subr.mxu0 %v23550_v53  ;;  %v10252_v56 = vsub.f32 %v26338_v39, %v26351_v51  ;;  %v10754_v20 = vld [vmem:[%s24218_s6 + $0x10] sm:$0xff] }
 0x9da   : > { %21600 = vmatpush3.msra.mxu0 %v26255_v55  ;;  %21616 = vmatprep.subr.mxu1 %v23550_v53  ;;  %v26440_v25 = vand.u32 4294901760, %v10754_v20 }
 0x9db   : > { %21601 = vmatprep.subr.mxu0 %v23550_v53  ;;  %21617 = vmatpush3.msra.mxu1 %v10302_v4  ;;  %v26376_v11 = vand.u32 4294901760, %v10252_v56 }
 0x9dc   : > { %21602 = vmatpush3.msra.mxu0 %v26269_v38  ;;  %21603 = vmatprep.mubr.msk.f32.mxu0 %vm23551_vm5, %v23550_v53  ;;  %v26450_v58 = vsub.f32 %v10754_v20, %v26440_v25 }
 0x9dd   : > { %21618 = vmatprep.subr.mxu1 %v23550_v53  ;;  %21604 = vmatmul.mubr.f32.vlgmr.msra.gmra.mxu0 %v26343_v3 }
 0x9de   : > { %21619 = vmatpush3.msra.mxu1 %v10309_v17  ;;  %21620 = vmatprep.mubr.msk.f32.mxu1 %vm23551_vm5, %v23550_v53  ;;  %v10896_v21 = vand.u32 4294901760, %v26450_v58 }
 0x9df   : > { %21629 = vmatprep.subr.mxu0 %v23550_v53  ;;  %21621 = vmatmul.mubr.f32.vlgmr.msra.gmra.mxu1 %v26265_v18 }
 0x9e0   : > { %21630 = vmatpush3.msra.mxu0 %v26245_v2  ;;  %21646 = vmatprep.subr.mxu1 %v23550_v53  ;;  %v10897_v62 = vsub.f32 %v26450_v58, %v10896_v21 }
 0x9e1   : > { %21606 = vmatprep.mubr.msk.f32.mxu0 %vm23551_vm5, %v23550_v53  ;;  %21631 = vmatprep.subr.mxu0 %v23550_v53 }
 0x9e2   : > { %21647 = vmatpush3.msra.mxu1 %v26234_v63  ;;  %21607 = vmatmul.mubr.f32.gmra.mxu0 %v26360_v22 }
 0x9e3   : > { %21623 = vmatprep.mubr.msk.f32.mxu1 %vm23551_vm5, %v23550_v53  ;;  %21632 = vmatpush3.msra.mxu0 %v26262_v32 }
 0x9e4   : > { %21624 = vmatmul.mubr.f32.gmra.mxu1 %v26293_v37  ;;  %21648 = vmatprep.subr.mxu1 %v23550_v53 }
 0x9e5   : > { %21633 = vmatprep.subr.mxu0 %v23550_v53  ;;  %21649 = vmatpush3.msra.mxu1 %v26247_v7 }
 0x9e6   : > { %21609 = vmatprep.mubr.msk.f32.mxu0 %vm23551_vm5, %v23550_v53  ;;  %21634 = vmatpush3.msra.mxu0 %v26274_v27 }
 0x9e7   : > { %21610 = vmatmul.mubr.f32.gmra.mxu0 %v26376_v11  ;;  %21626 = vmatprep.mubr.msk.f32.mxu1 %vm23551_vm5, %v23550_v53 }
 0x9e8   : > { %21650 = vmatprep.subr.mxu1 %v23550_v53  ;;  %21627 = vmatmul.mubr.f32.gmra.mxu1 %v26320_v19 }
 0x9e9   : > { %21635 = vmatprep.subr.mxu0 %v23550_v53  ;;  %21651 = vmatpush3.msra.mxu1 %v26255_v55 }
 0x9ea   : > { %21636 = vmatpush3.msra.mxu0 %v26291_v23  ;;  %21637 = vmatprep.mubr.msk.f32.mxu0 %vm23551_vm5, %v23550_v53  ;;  %v19221_v23 = vld [vmem:[%s1188_s1] ss:$0 sm:$0xff] }
 0x9eb   : > { %21652 = vmatprep.subr.mxu1 %v23550_v53  ;;  %21638 = vmatmul.mubr.f32.vlgmr.msra.gmra.mxu0 %v26286_v29 }
 0x9ec   : > { %21653 = vmatpush3.msra.mxu1 %v26269_v38  ;;  %21654 = vmatprep.mubr.msk.f32.mxu1 %vm23551_vm5, %v23550_v53 }
 0x9ed   : > { %21663 = vmatprep.subr.mxu0 %v23550_v53  ;;  %21655 = vmatmul.mubr.f32.vlgmr.msra.gmra.mxu1 %v26307_v45 }
 0x9ee   : > { %21664 = vmatpush3.msra.mxu0 %v10286_v10  ;;  %21680 = vmatprep.subr.mxu1 %v23550_v53 }
 0x9ef   : > { %21640 = vmatprep.mubr.msk.f32.mxu0 %vm23551_vm5, %v23550_v53  ;;  %21665 = vmatprep.subr.mxu0 %v23550_v53 }
 0x9f0   : > { %21681 = vmatpush3.msra.mxu1 %v26234_v63  ;;  %21641 = vmatmul.mubr.f32.gmra.mxu0 %v26313_v9  ;;  %v10752_v63 = vld [vmem:[%s24218_s6] sm:$0xff] }
 0x9f1   : > { %21657 = vmatprep.mubr.msk.f32.mxu1 %vm23551_vm5, %v23550_v53  ;;  %21666 = vmatpush3.msra.mxu0 %v10293_v31  ;;  %v26465_v46 = vand.u32 4294901760, %v10752_v63 }
 0x9f2   : > { %21658 = vmatmul.mubr.f32.gmra.mxu1 %v26333_v40  ;;  %21682 = vmatprep.subr.mxu1 %v23550_v53 }
 0x9f3   : > { %21667 = vmatprep.subr.mxu0 %v23550_v53  ;;  %21683 = vmatpush3.msra.mxu1 %v26247_v7  ;;  %v26476_v2 = vsub.f32 %v10752_v63, %v26465_v46  ;;  %v10898_v7 = vand.u32 4294901760, %v10897_v62 }
 0x9f4   : > { %21643 = vmatprep.mubr.msk.f32.mxu0 %vm23551_vm5, %v23550_v53  ;;  %21668 = vmatpush3.msra.mxu0 %v10300_v52 }
 0x9f5   : > { %21644 = vmatmul.mubr.f32.gmra.mxu0 %v26338_v39  ;;  %21660 = vmatprep.mubr.msk.f32.mxu1 %vm23551_vm5, %v23550_v53  ;;  %v10910_v33 = vand.u32 4294901760, %v26476_v2 }
 0x9f6   : > { %21684 = vmatprep.subr.mxu1 %v23550_v53  ;;  %21661 = vmatmul.mubr.f32.gmra.mxu1 %v26351_v51 }
 0x9f7   : > { %21669 = vmatprep.subr.mxu0 %v23550_v53  ;;  %21685 = vmatpush3.msra.mxu1 %v26255_v55  ;;  %v10911_v55 = vsub.f32 %v26476_v2, %v10910_v33 }
 0x9f8   : > { %21670 = vmatpush3.msra.mxu0 %v10307_v34  ;;  %21671 = vmatprep.mubr.msk.f32.mxu0 %vm23551_vm5, %v23550_v53 }
 0x9f9   : > { %21686 = vmatprep.subr.mxu1 %v23550_v53  ;;  %21672 = vmatmul.mubr.f32.vlgmr.msra.gmra.mxu0 %v26265_v18  ;;  %v10912_v54 = vand.u32 4294901760, %v10911_v55 }
 0x9fa   : > { %21687 = vmatpush3.msra.mxu1 %v26269_v38  ;;  %21688 = vmatprep.mubr.msk.f32.mxu1 %vm23551_vm5, %v23550_v53 }
 0x9fb   : > { %21689 = vmatmul.mubr.f32.vlgmr.msra.gmra.mxu1 %v26265_v18  ;;  %21674 = vmatprep.mubr.msk.f32.mxu0 %vm23551_vm5, %v23550_v53 }
 0x9fc   : > { %21691 = vmatprep.mubr.msk.f32.mxu1 %vm23551_vm5, %v23550_v53  ;;  %21714 = vmatprep.subr.mxu1 %v23550_v53 }
 0x9fd   : > { %21675 = vmatmul.mubr.f32.gmra.mxu0 %v26293_v37  ;;  %21715 = vmatpush3.msra.mxu1 %v10891_v13 }
 0x9fe   : > { %21677 = vmatprep.mubr.msk.f32.mxu0 %vm23551_vm5, %v23550_v53  ;;  %21716 = vmatprep.subr.mxu1 %v23550_v53 }
 0x9ff   : > { %21692 = vmatmul.mubr.f32.gmra.mxu1 %v26293_v37  ;;  %21697 = vmatprep.subr.mxu0 %v23550_v53 }
 0xa00   : > { %21694 = vmatprep.mubr.msk.f32.mxu1 %vm23551_vm5, %v23550_v53  ;;  %21698 = vmatpush3.msra.mxu0 %v26393_v24 }
 0xa01   : > { %21678 = vmatmul.mubr.f32.gmra.mxu0 %v26320_v19  ;;  %21717 = vmatpush3.msra.mxu1 %v10898_v7 }
 0xa02   : > { %21718 = vmatprep.subr.mxu1 %v23550_v53  ;;  %21699 = vmatprep.subr.mxu0 %v23550_v53 }
 0xa03   : > { %21695 = vmatmul.mubr.f32.gmra.mxu1 %v26320_v19  ;;  %21700 = vmatpush3.msra.mxu0 %v26440_v25 }
 0xa04   : > { %21719 = vmatpush3.msra.mxu1 %v10905_v42  ;;  %21722 = vmatprep.mubr.msk.f32.mxu1 %vm23551_vm5, %v23550_v53 }
 0xa05   : > { %21720 = vmatprep.subr.mxu1 %v23550_v53  ;;  %21701 = vmatprep.subr.mxu0 %v23550_v53 }
 0xa06   : > { %21721 = vmatpush3.msra.mxu1 %v10912_v54  ;;  %21702 = vmatpush3.msra.mxu0 %v26452_v30 }
 0xa07   : > { %21723 = vmatmul.mubr.f32.vlgmr.msra.gmra.mxu1 %v26265_v18  ;;  %21748 = vmatprep.subr.mxu1 %v23550_v53 }
 0xa08   : > { %21725 = vmatprep.mubr.msk.f32.mxu1 %vm23551_vm5, %v23550_v53  ;;  %21749 = vmatpush3.msra.mxu1 %v26393_v24 }
 0xa09   : > { %21703 = vmatprep.subr.mxu0 %v23550_v53  ;;  %21750 = vmatprep.subr.mxu1 %v23550_v53 }
 0xa0a   : > { %21704 = vmatpush3.msra.mxu0 %v26465_v46  ;;  %21705 = vmatprep.mubr.msk.f32.mxu0 %vm23551_vm5, %v23550_v53 }
 0xa0b   : > { %21726 = vmatmul.mubr.f32.gmra.mxu1 %v26293_v37  ;;  %21706 = vmatmul.mubr.f32.vlgmr.msra.gmra.mxu0 %v26343_v3 }
 0xa0c   : > { %21728 = vmatprep.mubr.msk.f32.mxu1 %vm23551_vm5, %v23550_v53  ;;  %21751 = vmatpush3.msra.mxu1 %v26440_v25 }
 0xa0d   : > { %21752 = vmatprep.subr.mxu1 %v23550_v53  ;;  %21708 = vmatprep.mubr.msk.f32.mxu0 %vm23551_vm5, %v23550_v53 }
 0xa0e   : > { %21753 = vmatpush3.msra.mxu1 %v26452_v30  ;;  %21731 = vmatprep.subr.mxu0 %v23550_v53 }
 0xa0f   : > { %21729 = vmatmul.mubr.f32.gmra.mxu1 %v26320_v19  ;;  %21754 = vmatprep.subr.mxu1 %v23550_v53 }
 0xa10   : > { %21755 = vmatpush3.msra.mxu1 %v26465_v46  ;;  %21756 = vmatprep.mubr.msk.f32.mxu1 %vm23551_vm5, %v23550_v53 }
 0xa11   : > { %21709 = vmatmul.mubr.f32.gmra.mxu0 %v26360_v22  ;;  %21782 = vmatprep.subr.mxu1 %v23550_v53 }
 0xa12   : > { %21732 = vmatpush3.msra.mxu0 %v26406_v60  ;;  %21711 = vmatprep.mubr.msk.f32.mxu0 %vm23551_vm5, %v23550_v53 }
 0xa13   : > { %21757 = vmatmul.mubr.f32.vlgmr.msra.gmra.mxu1 %v26307_v45  ;;  %21733 = vmatprep.subr.mxu0 %v23550_v53 }
 0xa14   : > { %21734 = vmatpush3.msra.mxu0 %v26450_v58  ;;  %21759 = vmatprep.mubr.msk.f32.mxu1 %vm23551_vm5, %v23550_v53 }
 0xa15   : > { %21712 = vmatmul.mubr.f32.gmra.mxu0 %v26376_v11  ;;  %21735 = vmatprep.subr.mxu0 %v23550_v53 }
 0xa16   : > { %21736 = vmatpush3.msra.mxu0 %v26463_v36  ;;  %21783 = vmatpush3.msra.mxu1 %v26393_v24 }
 0xa17   : > { %21760 = vmatmul.mubr.f32.gmra.mxu1 %v26333_v40  ;;  %21737 = vmatprep.subr.mxu0 %v23550_v53 }
 0xa18   : > { %21784 = vmatprep.subr.mxu1 %v23550_v53  ;;  %21738 = vmatpush3.msra.mxu0 %v26476_v2 }
 0xa19   : > { %21739 = vmatprep.mubr.msk.f32.mxu0 %vm23551_vm5, %v23550_v53  ;;  %21762 = vmatprep.mubr.msk.f32.mxu1 %vm23551_vm5, %v23550_v53 }
 0xa1a   : > { %21785 = vmatpush3.msra.mxu1 %v26440_v25  ;;  %21740 = vmatmul.mubr.f32.vlgmr.msra.gmra.mxu0 %v26286_v29 }
 0xa1b   : > { %21763 = vmatmul.mubr.f32.gmra.mxu1 %v26351_v51  ;;  %21786 = vmatprep.subr.mxu1 %v23550_v53 }
 0xa1c   : > { %21787 = vmatpush3.msra.mxu1 %v26452_v30  ;;  %21742 = vmatprep.mubr.msk.f32.mxu0 %vm23551_vm5, %v23550_v53 }
 0xa1d   : > { %21788 = vmatprep.subr.mxu1 %v23550_v53  ;;  %21790 = vmatprep.mubr.msk.f32.mxu1 %vm23551_vm5, %v23550_v53 }
 0xa1e   : > { %21789 = vmatpush3.msra.mxu1 %v26465_v46  ;;  %21743 = vmatmul.mubr.f32.gmra.mxu0 %v26313_v9 }
 0xa1f   : > { %21765 = vmatprep.subr.mxu0 %v23550_v53  ;;  %21791 = vmatmul.mubr.f32.vlgmr.msra.gmra.mxu1 %v26265_v18 }
 0xa20   : > { %21766 = vmatpush3.msra.mxu0 %v10889_v47  ;;  %21745 = vmatprep.mubr.msk.f32.mxu0 %vm23551_vm5, %v23550_v53 }
 0xa21   : > { %21767 = vmatprep.subr.mxu0 %v23550_v53  ;;  %21793 = vmatprep.mubr.msk.f32.mxu1 %vm23551_vm5, %v23550_v53 }
 0xa22   : > { %21768 = vmatpush3.msra.mxu0 %v10896_v21 }
 0xa23   : > { %21746 = vmatmul.mubr.f32.gmra.mxu0 %v26338_v39  ;;  %21769 = vmatprep.subr.mxu0 %v23550_v53 }
 0xa24   : > { %21794 = vmatmul.mubr.f32.gmra.mxu1 %v26293_v37  ;;  %21770 = vmatpush3.msra.mxu0 %v10903_v16 }
 0xa25   : > { %21771 = vmatprep.subr.mxu0 %v23550_v53  ;;  %21773 = vmatprep.mubr.msk.f32.mxu0 %vm23551_vm5, %v23550_v53 }
 0xa26   : > { %21772 = vmatpush3.msra.mxu0 %v10910_v33  ;;  %21796 = vmatprep.mubr.msk.f32.mxu1 %vm23551_vm5, %v23550_v53 }
 0xa27   : > { %21774 = vmatmul.mubr.f32.vlgmr.msra.gmra.mxu0 %v26265_v18 }
 0xa28   : > { %21797 = vmatmul.mubr.f32.gmra.mxu1 %v26320_v19  ;;  %21776 = vmatprep.mubr.msk.f32.mxu0 %vm23551_vm5, %v23550_v53 }
 0xa2b   : > { %21777 = vmatmul.mubr.f32.gmra.mxu0 %v26293_v37 }
 0xa2c   : > { %21779 = vmatprep.mubr.msk.f32.mxu0 %vm23551_vm5, %v23550_v53 }
 0xa2f   : > { %21780 = vmatmul.mubr.f32.gmra.mxu0 %v26320_v19 }
 0xa78   : > { %v21535_v10 = vpop.f32.mrf.mxu1 }
 0xa7a   : > { %v9690_v32 = vpop.f32.mrf.mxu1 }
 0xa7f   : > { %v26593_v59 = vpop.f32.mrf.mxu1 }
 0xa80   : > { %v21521_v38 = vpop.f32.mrf.mxu0 }
 0xa81   : > { %v9702_v27 = vpop.f32.mrf.mxu1  ;;  %v9580_v21 = vadd.f32 %v21521_v38, %v19221_v23 }
 0xa82   : > { %v9569_v8 = vpop.f32.mrf.mxu0 }
 0xa83   : > { %v26595_v18 = vpop.f32.mrf.mxu1  ;;  %v9570_v37 = vadd.f32 %v19221_v23, %v9569_v8  ;;  %v9697_v7 = vadd.f32 %v21535_v10, %v9580_v21 }
 0xa85   : > { %v9886_v44 = vpop.f32.mrf.mxu1  ;;  %v9691_v14 = vadd.f32 %v9690_v32, %v9570_v37 }
 0xa87   : > { %v21524_v31 = vpop.f32.mrf.mxu0  ;;  %v26597_v29 = vpop.f32.mrf.mxu1 }
 0xa88   : > { %v9600_v2 = vadd.f32 %v21524_v31, %v19221_v23 }
 0xa89   : > { %v9589_v49 = vpop.f32.mrf.mxu0  ;;  %v9902_v53 = vpop.f32.mrf.mxu1 }
 0xa8a   : > { %v9590_v62 = vadd.f32 %v19221_v23, %v9589_v49  ;;  %v9709_v37 = vadd.f32 %v26593_v59, %v9600_v2 }
 0xa8c   : > { %v21549_v52 = vpop.f32.mrf.mxu0  ;;  %v9703_v54 = vadd.f32 %v9702_v27, %v9590_v62 }
 0xa8d   : > { %v26601_v57 = vpop.f32.mrf.mxu1  ;;  %v9796_v55 = vadd.f32 %v21549_v52, %v9697_v7 }
 0xa8e   : > { %v9788_v35 = vpop.f32.mrf.mxu0 }
 0xa8f   : > { %v9789_v34 = vadd.f32 %v9788_v35, %v9691_v14  ;;  %v10086_v41 = vpop.f32.mrf.mxu1  ;;  %v9895_v49 = vadd.f32 %v26595_v18, %v9796_v55 }
 0xa91   : > { %v21552_v45 = vpop.f32.mrf.mxu0  ;;  %v9887_v28 = vadd.f32 %v9886_v44, %v9789_v34 }
 0xa92   : > { %v26603_v40 = vpop.f32.mrf.mxu1 }
 0xa93   : > { %v9802_v9 = vpop.f32.mrf.mxu0 }
 0xa94   : > { %v10098_v61 = vpop.f32.mrf.mxu1  ;;  %v9803_v35 = vadd.f32 %v9802_v9, %v9703_v54 }
 0xa95   : > { %v21577_v19 = vpop.f32.mrf.mxu0 }
 0xa96   : > { %v10000_v23 = vadd.f32 %v21577_v19, %v9895_v49 }
 0xa97   : > { %v9993_v48 = vpop.f32.mrf.mxu0 }
 0xa98   : > { %v9994_v1 = vadd.f32 %v9993_v48, %v9887_v28  ;;  %v9903_v28 = vadd.f32 %v9902_v53, %v9803_v35 }
 0xa99   : > { %v21580_v4 = vpop.f32.mrf.mxu0 }
 0xa9a   : > { %v10087_v39 = vadd.f32 %v10086_v41, %v9994_v1  ;;  %v9810_v41 = vadd.f32 %v21552_v45, %v9709_v37 }
 0xa9b   : > { %v10005_v3 = vpop.f32.mrf.mxu0 }
 0xa9c   : > { %v26605_v17 = vmul.f32 0.35355338, %v10087_v39 }
 0xa9d   : > { %v10235_v51 = vpop.f32.mrf.mxu0 }
 0xa9e   : > { %v11361_v22 = vsel %vm3488_vm2, %v26605_v17, 0  ;;  %v10236_v8 = vadd.f32 %v19222_v0, %v10235_v51  ;;  %v9911_v51 = vadd.f32 %v26597_v29, %v9810_v41 }
 0xa9f   : > { %v10346_v56 = vpop.f32.mrf.mxu1  ;;  %v21605_v11 = vpop.f32.mrf.mxu0  ;;  %v26609_v43 = vand.u32 4294901760, %v11361_v22 }
 0xaa0   : > { %v10347_v31 = vadd.f32 %v10346_v56, %v10236_v8  ;;  %v10012_v45 = vadd.f32 %v21580_v4, %v9911_v51 }
 0xaa1   : > { %v21622_v24 = vpop.f32.mrf.mxu1  ;;  %21817 = vmatprep.mubr.f32.mxu1 %v26609_v43  ;;  %v26613_v60 = vsub.f32 %v11361_v22, %v26609_v43  ;;  %v10006_v22 = vadd.f32 %v10005_v3, %v9903_v28 }
 0xaa2   : > { %v10245_v47 = vpop.f32.mrf.mxu0  ;;  %v10093_v24 = vadd.f32 %v26601_v57, %v10000_v23  ;;  %v10105_v29 = vadd.f32 %v26603_v40, %v10012_v45 }
 0xaa3   : > { %v11445_v12 = vand.u32 4294901760, %v26613_v60  ;;  %v10246_v38 = vadd.f32 %v19222_v0, %v10245_v47 }
 0xaa4   : > { %v10352_v20 = vpop.f32.mrf.mxu1  ;;  %v21608_v25 = vpop.f32.mrf.mxu0 }
 0xaa5   : > { %v11446_v5 = vsub.f32 %v26613_v60, %v11445_v12  ;;  %v10353_v1 = vadd.f32 %v10352_v20, %v10246_v38  ;;  %v10099_v25 = vadd.f32 %v10098_v61, %v10006_v22 }
 0xaa6   : > { %v21625_v13 = vpop.f32.mrf.mxu1 }
 0xaa7   : > { %v10255_v58 = vpop.f32.mrf.mxu0  ;;  %v11447_v30 = vand.u32 4294901760, %v11446_v5 }
 0xaa8   : > { %v10358_v63 = vpop.f32.mrf.mxu1  ;;  %v10256_v52 = vadd.f32 %v19222_v0, %v10255_v58  ;;  %v26625_v58 = vmul.f32 0.35355338, %v10093_v24 }
 0xaa9   : > { %v21611_v36 = vpop.f32.mrf.mxu0  ;;  %21805 = vmatprep.mubr.f32.mxu0 %v11447_v30 }
 0xaaa   : > { %v21628_v46 = vpop.f32.mrf.mxu1  ;;  %v10359_v18 = vadd.f32 %v10358_v63, %v10256_v52  ;;  %v26628_v36 = vmul.f32 0.35355338, %v10099_v25  ;;  %v11363_v62 = vsel %vm3488_vm2, %v26625_v58, 0 }
 0xaab   : > { %v10438_v16 = vpop.f32.mrf.mxu0 }
 0xaac   : > { %v10439_v27 = vadd.f32 %v10438_v16, %v10347_v31  ;;  %v26636_v16 = vmul.f32 0.35355338, %v10105_v29  ;;  %v11365_v54 = vsel %vm3488_vm2, %v26628_v36, 0 }
 0xaad   : > { %v10529_v33 = vpop.f32.mrf.mxu1  ;;  %v21639_v42 = vpop.f32.mrf.mxu0 }
 0xaae   : > { %v10530_v56 = vadd.f32 %v10529_v33, %v10439_v27  ;;  %v11367_v37 = vsel %vm3488_vm2, %v26636_v16, 0 }
 0xaaf   : > { %v21656_v32 = vpop.f32.mrf.mxu1 }
 0xab0   : > { %v10445_v44 = vpop.f32.mrf.mxu0  ;;  %v26646_v32 = vand.u32 4294901760, %v11363_v62 }
 0xab1   : > { %v10446_v9 = vadd.f32 %v10445_v44, %v10353_v1 }
 0xab2   : > { %v10537_v14 = vpop.f32.mrf.mxu1  ;;  %v21642_v34 = vpop.f32.mrf.mxu0  ;;  %v26664_v31 = vsub.f32 %v11363_v62, %v26646_v32 }
 0xab3   : > { %v10538_v5 = vadd.f32 %v10537_v14, %v10446_v9  ;;  %v26657_v34 = vand.u32 4294901760, %v11365_v54 }
 0xab4   : > { %v21659_v10 = vpop.f32.mrf.mxu1  ;;  %v11455_v27 = vand.u32 4294901760, %v26664_v31 }
 0xab5   : > { %v10452_v48 = vpop.f32.mrf.mxu0  ;;  %v26666_v10 = vand.u32 4294901760, %v11367_v37 }
 0xab6   : > { %v10545_v39 = vpop.f32.mrf.mxu1  ;;  %v10453_v20 = vadd.f32 %v10452_v48, %v10359_v18  ;;  %v26677_v48 = vsub.f32 %v11365_v54, %v26657_v34  ;;  %v11456_v24 = vsub.f32 %v26664_v31, %v11455_v27 }
 0xab7   : > { %v21645_v59 = vpop.f32.mrf.mxu0 }
 0xab8   : > { %v21662_v11 = vpop.f32.mrf.mxu1  ;;  %v10546_v46 = vadd.f32 %v10545_v39, %v10453_v20  ;;  %v26683_v39 = vsub.f32 %v11367_v37, %v26666_v10  ;;  %v11465_v59 = vand.u32 4294901760, %v26677_v48  ;;  %v11457_v25 = vand.u32 4294901760, %v11456_v24 }
 0xab9   : > { %v10628_v47 = vpop.f32.mrf.mxu0 }
 0xaba   : > { %v10629_v13 = vadd.f32 %v10628_v47, %v10530_v56  ;;  %v11475_v45 = vand.u32 4294901760, %v26683_v39  ;;  %v11466_v18 = vsub.f32 %v26677_v48, %v11465_v59 }
 0xabb   : > { %v10715_v19 = vpop.f32.mrf.mxu1  ;;  %v21673_v53 = vpop.f32.mrf.mxu0 }
 0xabc   : > { %v26630_v63 = vadd.f32 %v10715_v19, %v10629_v13  ;;  %v11476_v19 = vsub.f32 %v26683_v39, %v11475_v45  ;;  %v11467_v53 = vand.u32 4294901760, %v11466_v18 }
 0xabd   : > { %v21690_v3 = vpop.f32.mrf.mxu1  ;;  %v10634_v30 = vpop.f32.mrf.mxu0 }
 0xabe   : > { %v10635_v21 = vadd.f32 %v10634_v30, %v10538_v5  ;;  %v11369_v8 = vsel %vm3488_vm2, %v26630_v63, 0  ;;  %v11477_v20 = vand.u32 4294901760, %v11476_v19 }
 0xabf   : > { %v10721_v57 = vpop.f32.mrf.mxu1  ;;  %v21676_v4 = vpop.f32.mrf.mxu0  ;;  %v26659_v41 = vand.u32 4294901760, %v11369_v8 }
 0xac0   : > { %v26632_v61 = vadd.f32 %v10721_v57, %v10635_v21 }
 0xac1   : > { %v21693_v2 = vpop.f32.mrf.mxu1  ;;  %v10640_v7 = vpop.f32.mrf.mxu0  ;;  %v11525_v1 = vsub.f32 %v11369_v8, %v26659_v41 }
 0xac2   : > { %v11371_v40 = vsel %vm3488_vm2, %v26632_v61, 0  ;;  %v10641_v0 = vadd.f32 %v10640_v7, %v10546_v46  ;;  %10736 = vrot.lane.b32.xlu0 %v26632_v61, %s23544_s22 }
 0xac3   : > { %v26642_v33 = vand.u32 4294901760, %v11371_v40  ;;  %v10727_v42 = vpop.f32.mrf.mxu1  ;;  %v21679_v55 = vpop.f32.mrf.mxu0  ;;  %v26693_v11 = vand.u32 4294901760, %v11525_v1 }
 0xac4   : > { %v10728_v44 = vadd.f32 %v10727_v42, %v10641_v0 }
 0xac5   : > { %v21696_v35 = vpop.f32.mrf.mxu1  ;;  %v11518_v38 = vsub.f32 %v11371_v40, %v26642_v33  ;;  %v11527_v56 = vsub.f32 %v11525_v1, %v26693_v11 }
 0xac6   : > { %v11373_v14 = vsel %vm3488_vm2, %v10728_v44, 0  ;;  %10118 = vrot.lane.b32.xlu0 %v26625_v58, %s23544_s22  ;;  %10738 = vrot.lane.b32.xlu1 %v10728_v44, %s23544_s22 }
 0xac7   : > { %v26661_v49 = vand.u32 4294901760, %v11373_v14  ;;  %v26674_v28 = vand.u32 4294901760, %v11518_v38  ;;  %v11528_v5 = vand.u32 4294901760, %v11527_v56 }
 0xac9   : > { %v11511_v23 = vsub.f32 %v11373_v14, %v26661_v49  ;;  %21799 = vmatprep.subr.mxu0 %v26661_v49  ;;  %v11520_v22 = vsub.f32 %v11518_v38, %v26674_v28 }
 0xaca   : > { %10122 = vrot.lane.b32.xlu0 %v26636_v16, %s23544_s22  ;;  %10734 = vrot.lane.b32.xlu1 %v26630_v63, %s23544_s22 }
 0xacb   : > { %21800 = vmatpush3.xpose.msra.mxu0 %v26661_v49  ;;  %v11512_v52 = vand.u32 4294901760, %v11511_v23  ;;  %v11521_v47 = vand.u32 4294901760, %v11520_v22 }
 0xacc   : > { %21801 = vmatprep.subr.mxu0 %v26642_v33 }
 0xacd   : > { %v11513_v51 = vsub.f32 %v11511_v23, %v11512_v52 }
 0xace   : > { %10742 = vrot.lane.b32.xlu0 %v26632_v61, %s23545_s14  ;;  %10116 = vrot.lane.b32.xlu1 %v26605_v17, %s23544_s22 }
 0xacf   : > { %21802 = vmatpush3.xpose.msra.mxu0 %v26642_v33  ;;  %v11514_v9 = vand.u32 4294901760, %v11513_v51 }
 0xad0   : > { %21803 = vmatprep.subr.mxu0 %v26659_v41 }
 0xad1   : > { %21811 = vmatprep.subr.mxu1 %v11514_v9 }
 0xad2   : > { %21812 = vmatpush3.xpose.msra.mxu1 %v11514_v9  ;;  %10124 = vrot.lane.b32.xlu0 %v26605_v17, %s23545_s14 }
 0xad3   : > { %21804 = vmatpush3.xpose.msra.mxu0 %v26659_v41  ;;  %10120 = vrot.lane.b32.xlu1 %v26628_v36, %s23544_s22 }
 0xad4   : > { %21813 = vmatprep.subr.mxu1 %v11521_v47  ;;  %21823 = vmatprep.subr.mxu0 %v11511_v23 }
 0xad6   : > { %21806 = vmatmul.mubr.f32.vlgmr.msra.gmra.mxu0 %v11457_v25  ;;  %21814 = vmatpush3.xpose.msra.mxu1 %v11521_v47 }
 0xad7   : > { %21824 = vmatpush3.xpose.msra.mxu0 %v11511_v23  ;;  %10128 = vrot.lane.b32.xlu0 %v26628_v36, %s23545_s14 }
 0xad8   : > { %10744 = vrot.lane.b32.xlu1 %v10728_v44, %s23545_s14  ;;  %21808 = vmatprep.mubr.f32.mxu0 %v11467_v53 }
 0xad9   : > { %21815 = vmatprep.subr.mxu1 %v11528_v5  ;;  %21825 = vmatprep.subr.mxu0 %v11518_v38 }
 0xada   : > { %21809 = vmatmul.mubr.f32.gmra.mxu0 %v11477_v20  ;;  %21816 = vmatpush3.xpose.msra.mxu1 %v11528_v5 }
 0xadb   : > { %21826 = vmatpush3.xpose.msra.mxu0 %v11518_v38  ;;  %10750 = vrot.lane.b32.xlu0 %v10728_v44, %s23546_s10 }
 0xadc   : > { %10740 = vrot.lane.b32.xlu1 %v26630_v63, %s23545_s14  ;;  %21829 = vmatprep.mubr.f32.mxu0 %v26613_v60  ;;  %v10838_v60 = vpop.f32.mrf.mxu0 }
 0xadd   : > { %21827 = vmatprep.subr.mxu0 %v11525_v1  ;;  %21835 = vmatprep.subr.mxu1 %v26661_v49 }
 0xade   : > { %21818 = vmatmul.mubr.f32.vlgmr.msra.gmra.mxu1 %v26646_v32  ;;  %v21707_v13 = vpop.f32.mrf.mxu0 }
 0xadf   : > { %21828 = vmatpush3.xpose.msra.mxu0 %v11525_v1  ;;  %21836 = vmatpush3.xpose.msra.mxu1 %v26661_v49 }
 0xae0   : > { %10746 = vrot.lane.b32.xlu0 %v26630_v63, %s23546_s10  ;;  %10126 = vrot.lane.b32.xlu1 %v26625_v58, %s23545_s14  ;;  %v10848_v29 = vpop.f32.mrf.mxu0 }
 0xae1   : > { %21820 = vmatprep.mubr.f32.mxu1 %v26657_v34  ;;  %21837 = vmatprep.subr.mxu1 %v26642_v33 }
 0xae2   : > { %21847 = vmatprep.subr.mxu0 %v11512_v52  ;;  %21821 = vmatmul.mubr.f32.gmra.mxu1 %v26666_v10  ;;  %v21710_v30 = vpop.f32.mrf.mxu0 }
 0xae3   : > { %21830 = vmatmul.mubr.f32.vlgmr.msra.gmra.mxu0 %v26664_v31  ;;  %21838 = vmatpush3.xpose.msra.mxu1 %v26642_v33 }
 0xae4   : > { %10134 = vrot.lane.b32.xlu0 %v26625_v58, %s23546_s10  ;;  %10130 = vrot.lane.b32.xlu1 %v26636_v16, %s23545_s14 }
 0xae5   : > { %21832 = vmatprep.mubr.f32.mxu0 %v26677_v48  ;;  %21841 = vmatprep.mubr.f32.mxu1 %v11445_v12 }
 0xae6   : > { %21848 = vmatpush3.xpose.msra.mxu0 %v11512_v52  ;;  %21839 = vmatprep.subr.mxu1 %v26659_v41 }
 0xae7   : > { %21849 = vmatprep.subr.mxu0 %v26674_v28  ;;  %21833 = vmatmul.mubr.f32.gmra.mxu0 %v26683_v39 }
 0xae8   : > { %21840 = vmatpush3.xpose.msra.mxu1 %v26659_v41  ;;  %10138 = vrot.lane.b32.xlu0 %v26636_v16, %s23546_s10 }
 0xae9   : > { %10748 = vrot.lane.b32.xlu1 %v26632_v61, %s23546_s10  ;;  %21853 = vmatprep.mubr.f32.mxu0 %v26609_v43 }
 0xaea   : > { %21850 = vmatpush3.xpose.msra.mxu0 %v26674_v28  ;;  %21859 = vmatprep.subr.mxu1 %v26661_v49 }
 0xaeb   : > { %21851 = vmatprep.subr.mxu0 %v26693_v11  ;;  %21842 = vmatmul.mubr.f32.vlgmr.msra.gmra.mxu1 %v11455_v27 }
 0xaec   : > { %21844 = vmatprep.mubr.f32.mxu1 %v11465_v59  ;;  %21860 = vmatpush3.xpose.msra.mxu1 %v26661_v49 }
 0xaed   : > { %10132 = vrot.lane.b32.xlu1 %v26605_v17, %s23546_s10  ;;  %21861 = vmatprep.subr.mxu1 %v26642_v33  ;;  %v19223_v17 = vld [vmem:[%s28672_s20] ss:$0 sm:$0xff] }
 0xaee   : > { %21852 = vmatpush3.xpose.msra.mxu0 %v26693_v11  ;;  %v10839_v12 = vadd.f32 %v19223_v17, %v10838_v60  ;;  %v10849_v16 = vadd.f32 %v19223_v17, %v10848_v29 }
 0xaef   : > { %21845 = vmatmul.mubr.f32.gmra.mxu1 %v11475_v45 }
 0xaf0   : > { %21862 = vmatpush3.xpose.msra.mxu1 %v26642_v33  ;;  %21865 = vmatprep.mubr.f32.mxu1 %v26609_v43  ;;  %v10949_v43 = vpop.f32.mrf.mxu1 }
 0xaf1   : > { %21854 = vmatmul.mubr.f32.vlgmr.msra.gmra.mxu0 %v26646_v32  ;;  %10136 = vrot.lane.b32.xlu1 %v26628_v36, %s23546_s10  ;;  %v10950_v58 = vadd.f32 %v10949_v43, %v10839_v12  ;;  %v10858_v36 = vpop.f32.mrf.mxu0 }
 0xaf2   : > { %21856 = vmatprep.mubr.f32.mxu0 %v26657_v34  ;;  %21863 = vmatprep.subr.mxu1 %v26659_v41  ;;  %v21724_v3 = vpop.f32.mrf.mxu1  ;;  %v10859_v55 = vadd.f32 %v19223_v17, %v10858_v36 }
 0xaf3   : > { %v21713_v4 = vpop.f32.mrf.mxu0 }
 0xaf4   : > { %21864 = vmatpush3.xpose.msra.mxu1 %v26659_v41  ;;  %v10955_v21 = vpop.f32.mrf.mxu1 }
 0xaf5   : > { %21857 = vmatmul.mubr.f32.gmra.mxu0 %v26666_v10  ;;  %v11041_v63 = vpop.f32.mrf.mxu0  ;;  %v10956_v42 = vadd.f32 %v10955_v21, %v10849_v16 }
 0xaf6   : > { %v21727_v57 = vpop.f32.mrf.mxu1  ;;  %v11042_v62 = vadd.f32 %v11041_v63, %v10950_v58 }
 0xaf7   : > { %21866 = vmatmul.mubr.f32.vlgmr.msra.gmra.mxu1 %v26646_v32  ;;  %v21741_v2 = vpop.f32.mrf.mxu0 }
 0xaf8   : > { %21868 = vmatprep.mubr.f32.mxu1 %v26657_v34  ;;  %v10961_v46 = vpop.f32.mrf.mxu1 }
 0xaf9   : > { %v11048_v0 = vpop.f32.mrf.mxu0  ;;  %v10962_v37 = vadd.f32 %v10961_v46, %v10859_v55 }
 0xafa   : > { %v21730_v61 = vpop.f32.mrf.mxu1  ;;  %v11049_v35 = vadd.f32 %v11048_v0, %v10956_v42 }
 0xafb   : > { %21869 = vmatmul.mubr.f32.gmra.mxu1 %v26666_v10  ;;  %v21744_v54 = vpop.f32.mrf.mxu0 }
 0xafc   : > { %v11132_v7 = vpop.f32.mrf.mxu1 }
 0xafd   : > { %v11133_v40 = vadd.f32 %v11132_v7, %v11042_v62  ;;  %v11055_v8 = vpop.f32.mrf.mxu0 }
 0xafe   : > { %v21758_v33 = vpop.f32.mrf.mxu1  ;;  %v11056_v31 = vadd.f32 %v11055_v8, %v10962_v37 }
 0xaff   : > { %v21747_v38 = vpop.f32.mrf.mxu0 }
 0xb00   : > { %v11140_v32 = vpop.f32.mrf.mxu1 }
 0xb01   : > { %v11231_v34 = vpop.f32.mrf.mxu0  ;;  %v11141_v49 = vadd.f32 %v11140_v32, %v11049_v35 }
 0xb02   : > { %v21761_v44 = vpop.f32.mrf.mxu1  ;;  %v11232_v10 = vadd.f32 %v11231_v34, %v11133_v40 }
 0xb03   : > { %v21775_v23 = vpop.f32.mrf.mxu0 }
 0xb04   : > { %v11148_v14 = vpop.f32.mrf.mxu1 }
 0xb05   : > { %v11237_v1 = vpop.f32.mrf.mxu0  ;;  %v11149_v52 = vadd.f32 %v11148_v14, %v11056_v31 }
 0xb06   : > { %v21764_v41 = vpop.f32.mrf.mxu1  ;;  %v11238_v27 = vadd.f32 %v11237_v1, %v11141_v49 }
 0xb07   : > { %v21778_v51 = vpop.f32.mrf.mxu0 }
 0xb08   : > { %v11318_v28 = vpop.f32.mrf.mxu1 }
 0xb09   : > { %v26775_v48 = vadd.f32 %v11318_v28, %v11232_v10  ;;  %v11243_v9 = vpop.f32.mrf.mxu0 }
 0xb0a   : > { %v21792_v39 = vpop.f32.mrf.mxu1  ;;  %v11244_v11 = vadd.f32 %v11243_v9, %v11149_v52 }
 0xb0b   : > { %v21781_v45 = vpop.f32.mrf.mxu0 }
 0xb0c   : > { %v11324_v22 = vpop.f32.mrf.mxu1 }
 0xb0d   : > { %v26777_v59 = vadd.f32 %v11324_v22, %v11238_v27 }
 0xb0e   : > { %v21795_v24 = vpop.f32.mrf.mxu1 }
 0xb0f   : > { %11339 = vrot.lane.b32.xlu0 %v26777_v59, %s23544_s22 }
 0xb10   : > { %v11330_v47 = vpop.f32.mrf.mxu1 }
 0xb11   : > { %v26781_v18 = vadd.f32 %v11330_v47, %v11244_v11 }
 0xb12   : > { %v21798_v56 = vpop.f32.mrf.mxu1 }
 0xb13   : > { %11341 = vrot.lane.b32.xlu1 %v26781_v18, %s23544_s22 }
 0xb34   : > { %v10737_v25 = vpop.permute.xlu0 %10736 }
 0xb35   : > { %v11986_v19 = vsel %vm3488_vm2, %v10737_v25, 0 }
 0xb36   : > { %v26786_v53 = vand.u32 4294901760, %v11986_v19 }
 0xb38   : > { %v10119_v5 = vpop.permute.xlu0 %10118  ;;  %v10739_v20 = vpop.permute.xlu1 %10738  ;;  %v26789_v17 = vsub.f32 %v11986_v19, %v26786_v53 }
 0xb39   : > { %v11978_v60 = vsel %vm3488_vm2, %v10119_v5, 0  ;;  %v11988_v12 = vsel %vm3488_vm2, %v10739_v20, 0 }
 0xb3a   : > { %v26793_v13 = vand.u32 4294901760, %v11988_v12  ;;  %v26795_v43 = vand.u32 4294901760, %v11978_v60  ;;  %v26803_v36 = vand.u32 4294901760, %v26789_v17 }
 0xb3c   : > { %v12126_v58 = vsub.f32 %v11988_v12, %v26793_v13  ;;  %v10123_v29 = vpop.permute.xlu0 %10122  ;;  %v10735_v3 = vpop.permute.xlu1 %10734  ;;  %21871 = vmatprep.subr.mxu0 %v26793_v13  ;;  %v26811_v46 = vsub.f32 %v11978_v60, %v26795_v43  ;;  %v12135_v7 = vsub.f32 %v26789_v17, %v26803_v36 }
 0xb3d   : > { %v11982_v30 = vsel %vm3488_vm2, %v10123_v29, 0  ;;  %v11984_v21 = vsel %vm3488_vm2, %v10735_v3, 0  ;;  %21872 = vmatpush3.xpose.msra.mxu0 %v26793_v13 }
 0xb3e   : > { %v26805_v57 = vand.u32 4294901760, %v11984_v21  ;;  %21873 = vmatprep.subr.mxu0 %v26786_v53  ;;  %v26808_v4 = vand.u32 4294901760, %v12126_v58  ;;  %v26813_v63 = vand.u32 4294901760, %v11982_v30  ;;  %v12070_v0 = vand.u32 4294901760, %v26811_v46 }
 0xb3f   : > { %v12136_v8 = vand.u32 4294901760, %v12135_v7 }
 0xb40   : > { %v12140_v61 = vsub.f32 %v11984_v21, %v26805_v57  ;;  %v10117_v62 = vpop.permute.xlu1 %10116  ;;  %v12128_v16 = vsub.f32 %v12126_v58, %v26808_v4  ;;  %v26828_v55 = vsub.f32 %v11982_v30, %v26813_v63  ;;  %v12071_v38 = vsub.f32 %v26811_v46, %v12070_v0  ;;  %v10743_v27 = vpop.permute.xlu0 %10742 }
 0xb41   : > { %v11976_v2 = vsel %vm3488_vm2, %v10117_v62, 0  ;;  %21874 = vmatpush3.xpose.msra.mxu0 %v26786_v53  ;;  %v12601_v56 = vsel %vm3488_vm2, %v10743_v27, 0 }
 0xb42   : > { %v26821_v40 = vand.u32 4294901760, %v11976_v2  ;;  %21875 = vmatprep.subr.mxu0 %v26805_v57  ;;  %v12129_v33 = vand.u32 4294901760, %v12128_v16  ;;  %v26825_v42 = vand.u32 4294901760, %v12140_v61  ;;  %v12090_v34 = vand.u32 4294901760, %v26828_v55 }
 0xb43   : > { %v12072_v23 = vand.u32 4294901760, %v12071_v38  ;;  %v26868_v20 = vand.u32 4294901760, %v12601_v56 }
 0xb44   : > { %v12059_v54 = vsub.f32 %v11976_v2, %v26821_v40  ;;  %21889 = vmatprep.mubr.f32.mxu1 %v26821_v40  ;;  %21883 = vmatprep.subr.mxu1 %v12129_v33  ;;  %v12142_v44 = vsub.f32 %v12140_v61, %v26825_v42  ;;  %v12091_v1 = vsub.f32 %v26828_v55, %v12090_v34  ;;  %v10125_v9 = vpop.permute.xlu0 %10124 }
 0xb45   : > { %v10121_v32 = vpop.permute.xlu1 %10120  ;;  %21876 = vmatpush3.xpose.msra.mxu0 %v26805_v57  ;;  %21884 = vmatpush3.xpose.msra.mxu1 %v12129_v33  ;;  %v12591_v45 = vsel %vm3488_vm2, %v10125_v9, 0  ;;  %v26886_v3 = vsub.f32 %v12601_v56, %v26868_v20 }
 0xb46   : > { %v12060_v37 = vand.u32 4294901760, %v12059_v54  ;;  %v11980_v35 = vsel %vm3488_vm2, %v10121_v32, 0  ;;  %21895 = vmatprep.subr.mxu0 %v12126_v58  ;;  %21885 = vmatprep.subr.mxu1 %v12136_v8  ;;  %v12143_v31 = vand.u32 4294901760, %v12142_v44  ;;  %v12092_v22 = vand.u32 4294901760, %v12091_v1 }
 0xb47   : > { %v26838_v14 = vand.u32 4294901760, %v11980_v35  ;;  %v26861_v25 = vand.u32 4294901760, %v12591_v45  ;;  %v26912_v2 = vand.u32 4294901760, %v26886_v3 }
 0xb48   : > { %v12061_v41 = vsub.f32 %v12059_v54, %v12060_v37 }
 0xb49   : > { %v12079_v49 = vsub.f32 %v11980_v35, %v26838_v14  ;;  %21886 = vmatpush3.xpose.msra.mxu1 %v12136_v8  ;;  %v26875_v12 = vsub.f32 %v12591_v45, %v26861_v25 }
 0xb4a   : > { %v12062_v10 = vand.u32 4294901760, %v12061_v41  ;;  %21887 = vmatprep.subr.mxu1 %v12143_v31  ;;  %v10745_v39 = vpop.permute.xlu1 %10744 }
 0xb4b   : > { %v12080_v28 = vand.u32 4294901760, %v12079_v49  ;;  %v12603_v11 = vsel %vm3488_vm2, %v10745_v39, 0 }
 0xb4c   : > { %21877 = vmatprep.mubr.f32.mxu0 %v12062_v10  ;;  %v26855_v47 = vand.u32 4294901760, %v12603_v11 }
 0xb4d   : > { %21878 = vmatmul.mubr.f32.vlgmr.msra.gmra.mxu0 %v12072_v23  ;;  %v12081_v52 = vsub.f32 %v12079_v49, %v12080_v28  ;;  %21888 = vmatpush3.xpose.msra.mxu1 %v12143_v31 }
 0xb4e   : > { %21896 = vmatpush3.xpose.msra.mxu0 %v12126_v58  ;;  %21907 = vmatprep.subr.mxu1 %v26793_v13  ;;  %v10741_v24 = vpop.permute.xlu1 %10740  ;;  %v26865_v5 = vsub.f32 %v12603_v11, %v26855_v47 }
 0xb4f   : > { %21897 = vmatprep.subr.mxu0 %v26789_v17  ;;  %v12082_v51 = vand.u32 4294901760, %v12081_v52  ;;  %v12599_v60 = vsel %vm3488_vm2, %v10741_v24, 0 }
 0xb50   : > { %21890 = vmatmul.mubr.f32.vlgmr.msra.gmra.mxu1 %v26795_v43  ;;  %v26883_v29 = vand.u32 4294901760, %v26865_v5  ;;  %v26889_v21 = vand.u32 4294901760, %v12599_v60 }
 0xb51   : > { %21880 = vmatprep.mubr.f32.mxu0 %v12082_v51  ;;  %21892 = vmatprep.mubr.f32.mxu1 %v26838_v14 }
 0xb52   : > { %21881 = vmatmul.mubr.f32.gmra.mxu0 %v12092_v22  ;;  %21908 = vmatpush3.xpose.msra.mxu1 %v26793_v13  ;;  %v10127_v19 = vpop.permute.xlu1 %10126 }
 0xb53   : > { %21898 = vmatpush3.xpose.msra.mxu0 %v26789_v17  ;;  %21901 = vmatprep.mubr.f32.mxu0 %v12059_v54  ;;  %v10129_v17 = vpop.permute.xlu0 %10128  ;;  %v12593_v58 = vsel %vm3488_vm2, %v10127_v19, 0 }
 0xb54   : > { %21899 = vmatprep.subr.mxu0 %v12140_v61  ;;  %21909 = vmatprep.subr.mxu1 %v26786_v53  ;;  %v12595_v30 = vsel %vm3488_vm2, %v10129_v17, 0 }
 0xb55   : > { %21893 = vmatmul.mubr.f32.gmra.mxu1 %v26813_v63  ;;  %v26900_v62 = vand.u32 4294901760, %v12595_v30 }
 0xb56   : > { %21913 = vmatprep.mubr.f32.mxu1 %v12060_v37  ;;  %21910 = vmatpush3.xpose.msra.mxu1 %v26786_v53 }
 0xb57   : > { %21900 = vmatpush3.xpose.msra.mxu0 %v12140_v61  ;;  %21911 = vmatprep.subr.mxu1 %v26805_v57  ;;  %v26896_v61 = vand.u32 4294901760, %v12593_v58  ;;  %v26925_v33 = vsub.f32 %v12595_v30, %v26900_v62 }
 0xb58   : > { %21919 = vmatprep.subr.mxu0 %v26808_v4 }
 0xb59   : > { %v26917_v7 = vsub.f32 %v12593_v58, %v26896_v61  ;;  %v12695_v44 = vand.u32 4294901760, %v26925_v33 }
 0xb5a   : > { %21902 = vmatmul.mubr.f32.vlgmr.msra.gmra.mxu0 %v26811_v46  ;;  %21912 = vmatpush3.xpose.msra.mxu1 %v26805_v57  ;;  %v12675_v46 = vand.u32 4294901760, %v26875_v12 }
 0xb5b   : > { %21904 = vmatprep.mubr.f32.mxu0 %v12079_v49  ;;  %21920 = vmatpush3.xpose.msra.mxu0 %v26808_v4  ;;  %v10131_v4 = vpop.permute.xlu1 %10130  ;;  %v12685_v54 = vand.u32 4294901760, %v26917_v7 }
 0xb5c   : > { %21931 = vmatprep.subr.mxu1 %v26793_v13  ;;  %21921 = vmatprep.subr.mxu0 %v26803_v36  ;;  %v12597_v16 = vsel %vm3488_vm2, %v10131_v4, 0 }
 0xb5d   : > { %21914 = vmatmul.mubr.f32.vlgmr.msra.gmra.mxu1 %v12070_v0  ;;  %v12676_v0 = vsub.f32 %v26875_v12, %v12675_v46  ;;  %v12686_v35 = vsub.f32 %v26917_v7, %v12685_v54 }
 0xb5e   : > { %21905 = vmatmul.mubr.f32.gmra.mxu0 %v26828_v55  ;;  %21916 = vmatprep.mubr.f32.mxu1 %v12080_v28 }
 0xb5f   : > { %21925 = vmatprep.mubr.f32.mxu0 %v26821_v40  ;;  %21922 = vmatpush3.xpose.msra.mxu0 %v26803_v36  ;;  %v26907_v36 = vsub.f32 %v12599_v60, %v26889_v21  ;;  %v12677_v8 = vand.u32 4294901760, %v12676_v0  ;;  %v10749_v31 = vpop.permute.xlu1 %10748 }
 0xb60   : > { %21932 = vmatpush3.xpose.msra.mxu1 %v26793_v13  ;;  %21923 = vmatprep.subr.mxu0 %v26825_v42  ;;  %v12743_v13 = vsub.f32 %v26865_v5, %v26883_v29  ;;  %v13216_v39 = vsel %vm3488_vm2, %v10749_v31, 0 }
 0xb61   : > { %21933 = vmatprep.subr.mxu1 %v26786_v53  ;;  %21917 = vmatmul.mubr.f32.gmra.mxu1 %v12090_v34  ;;  %v26933_v55 = vand.u32 4294901760, %v26907_v36  ;;  %v12687_v34 = vand.u32 4294901760, %v12686_v35  ;;  %v26993_v11 = vand.u32 4294901760, %v13216_v39 }
 0xb62   : > { %21937 = vmatprep.mubr.f32.mxu1 %v26821_v40  ;;  %v26919_v40 = vand.u32 4294901760, %v12597_v16 }
 0xb63   : > { %21924 = vmatpush3.xpose.msra.mxu0 %v26825_v42  ;;  %v12750_v42 = vsub.f32 %v26886_v3, %v26912_v2  ;;  %v12757_v37 = vsub.f32 %v26907_v36, %v26933_v55  ;;  %v10133_v1 = vpop.permute.xlu1 %10132 }
 0xb64   : > { %21934 = vmatpush3.xpose.msra.mxu1 %v26786_v53  ;;  %21943 = vmatprep.subr.mxu0 %v26855_v47  ;;  %v12744_v53 = vand.u32 4294901760, %v12743_v13  ;;  %v26938_v32 = vsub.f32 %v12597_v16, %v26919_v40  ;;  %v13206_v27 = vsel %vm3488_vm2, %v10133_v1, 0  ;;  %v27120_v1 = vand.u32 4294901760, %v26777_v59 }
 0xb65   : > { %21935 = vmatprep.subr.mxu1 %v26805_v57  ;;  %v26985_v22 = vand.u32 4294901760, %v13206_v27 }
 0xb66   : > { %21926 = vmatmul.mubr.f32.vlgmr.msra.gmra.mxu0 %v26795_v43  ;;  %v12705_v38 = vand.u32 4294901760, %v26938_v32 }
 0xb67   : > { %21928 = vmatprep.mubr.f32.mxu0 %v26838_v14  ;;  %21944 = vmatpush3.xpose.msra.mxu0 %v26855_v47  ;;  %v10137_v45 = vpop.permute.xlu1 %10136  ;;  %v27000_v56 = vsub.f32 %v13206_v27, %v26985_v22 }
 0xb68   : > { %21936 = vmatpush3.xpose.msra.mxu1 %v26805_v57  ;;  %21945 = vmatprep.subr.mxu0 %v26868_v20  ;;  %v12751_v57 = vand.u32 4294901760, %v12750_v42  ;;  %v12706_v41 = vsub.f32 %v26938_v32, %v12705_v38  ;;  %v13210_v58 = vsel %vm3488_vm2, %v10137_v45, 0  ;;  %v27139_v45 = vand.u32 4294901760, %v26775_v48 }
 0xb69   : > { %21955 = vmatprep.subr.mxu1 %v12744_v53  ;;  %v27028_v4 = vand.u32 4294901760, %v13210_v58 }
 0xb6a   : > { %21929 = vmatmul.mubr.f32.gmra.mxu0 %v26813_v63  ;;  %v12707_v10 = vand.u32 4294901760, %v12706_v41 }
 0xb6b   : > { %21938 = vmatmul.mubr.f32.vlgmr.msra.gmra.mxu1 %v26795_v43  ;;  %21949 = vmatprep.mubr.f32.mxu0 %v12677_v8  ;;  %v12696_v43 = vsub.f32 %v26925_v33, %v12695_v44 }
 0xb6c   : > { %21940 = vmatprep.mubr.f32.mxu1 %v26838_v14  ;;  %21946 = vmatpush3.xpose.msra.mxu0 %v26868_v20  ;;  %v12758_v14 = vand.u32 4294901760, %v12757_v37 }
 0xb6d   : > { %21956 = vmatpush3.xpose.msra.mxu1 %v12744_v53  ;;  %21947 = vmatprep.subr.mxu0 %v26889_v21  ;;  %v12697_v49 = vand.u32 4294901760, %v12696_v43 }
 0xb6e   : > { %21957 = vmatprep.subr.mxu1 %v12751_v57 }
 0xb6f   : > { %21941 = vmatmul.mubr.f32.gmra.mxu1 %v26813_v63  ;;  %v10751_v63 = vpop.permute.xlu0 %10750 }
 0xb70   : > { %21961 = vmatprep.mubr.f32.mxu1 %v26861_v25  ;;  %21948 = vmatpush3.xpose.msra.mxu0 %v26889_v21  ;;  %v13218_v23 = vsel %vm3488_vm2, %v10751_v63, 0 }
 0xb71   : > { %21958 = vmatpush3.xpose.msra.mxu1 %v12751_v57  ;;  %21967 = vmatprep.subr.mxu0 %v26865_v5  ;;  %v26977_v52 = vand.u32 4294901760, %v13218_v23 }
 0xb72   : > { %21959 = vmatprep.subr.mxu1 %v12758_v14 }
 0xb73   : > { %21950 = vmatmul.mubr.f32.vlgmr.msra.gmra.mxu0 %v12687_v34  ;;  %v10747_v28 = vpop.permute.xlu0 %10746  ;;  %v26989_v9 = vsub.f32 %v13218_v23, %v26977_v52  ;;  %v14011_v34 = vsel %vm14010_vm6, %v26781_v18, 0 }
 0xb74   : > { %21952 = vmatprep.mubr.f32.mxu0 %v12697_v49  ;;  %21968 = vmatpush3.xpose.msra.mxu0 %v26865_v5  ;;  %v13214_v24 = vsel %vm3488_vm2, %v10747_v28, 0  ;;  %v27106_v63 = vand.u32 4294901760, %v14011_v34 }
 0xb75   : > { %21960 = vmatpush3.xpose.msra.mxu1 %v12758_v14  ;;  %21969 = vmatprep.subr.mxu0 %v26886_v3  ;;  %v27010_v5 = vand.u32 4294901760, %v26989_v9  ;;  %v27012_v17 = vand.u32 4294901760, %v13214_v24 }
 0xb76   : > { %21979 = vmatprep.subr.mxu1 %v26855_v47  ;;  %v27116_v23 = vsub.f32 %v14011_v34, %v27106_v63 }
 0xb77   : > { %21953 = vmatmul.mubr.f32.gmra.mxu0 %v12707_v10  ;;  %v10135_v51 = vpop.permute.xlu0 %10134 }
 0xb78   : > { %21962 = vmatmul.mubr.f32.vlgmr.msra.gmra.mxu1 %v26896_v61  ;;  %21973 = vmatprep.mubr.f32.mxu0 %v26875_v12  ;;  %v13208_v19 = vsel %vm3488_vm2, %v10135_v51, 0  ;;  %v27015_v12 = vsub.f32 %v13216_v39, %v26993_v11  ;;  %v27129_v39 = vld [vmem:[%s28673_s15 + $0x8] sm:$0xff] }
 0xb79   : > { %21964 = vmatprep.mubr.f32.mxu1 %v26900_v62  ;;  %21970 = vmatpush3.xpose.msra.mxu0 %v26886_v3  ;;  %v13290_v3 = vand.u32 4294901760, %v27000_v56 }
 0xb7a   : > { %21980 = vmatpush3.xpose.msra.mxu1 %v26855_v47  ;;  %21971 = vmatprep.subr.mxu0 %v26907_v36  ;;  %v27039_v16 = vand.u32 4294901760, %v27015_v12 }
 0xb7b   : > { %21981 = vmatprep.subr.mxu1 %v26868_v20  ;;  %v10139_v60 = vpop.permute.xlu0 %10138 }
 0xb7c   : > { %21965 = vmatmul.mubr.f32.gmra.mxu1 %v26919_v40  ;;  %v13212_v30 = vsel %vm3488_vm2, %v10139_v60, 0 }
 0xb7d   : > { %21985 = vmatprep.mubr.f32.mxu1 %v12675_v46  ;;  %21972 = vmatpush3.xpose.msra.mxu0 %v26907_v36  ;;  %v27034_v46 = vsub.f32 %v13214_v24, %v27012_v17  ;;  %v13291_v36 = vsub.f32 %v27000_v56, %v13290_v3  ;;  %v27133_v24 = vand.u32 4294901760, %v27116_v23 }
 0xb7e   : > { %21982 = vmatpush3.xpose.msra.mxu1 %v26868_v20  ;;  %21991 = vmatprep.subr.mxu0 %v26883_v29 }
 0xb7f   : > { %21983 = vmatprep.subr.mxu1 %v26889_v21  ;;  %v27060_v0 = vand.u32 4294901760, %v27034_v46  ;;  %v13292_v42 = vand.u32 4294901760, %v13291_v36  ;;  %v27180_v36 = vsub.f32 %v26775_v48, %v27139_v45 }
 0xb80   : > { %21974 = vmatmul.mubr.f32.vlgmr.msra.gmra.mxu0 %v26917_v7  ;;  %v13365_v7 = vsub.f32 %v27015_v12, %v27039_v16 }
 0xb81   : > { %21976 = vmatprep.mubr.f32.mxu0 %v26925_v33  ;;  %21992 = vmatpush3.xpose.msra.mxu0 %v26883_v29  ;;  %v27022_v29 = vand.u32 4294901760, %v13208_v19 }
 0xb82   : > { %21984 = vmatpush3.xpose.msra.mxu1 %v26889_v21  ;;  %21993 = vmatprep.subr.mxu0 %v26912_v2 }
 0xb83   : > { %22003 = vmatprep.subr.mxu1 %v26855_v47  ;;  %v27044_v13 = vsub.f32 %v13208_v19, %v27022_v29 }
 0xb84   : > { %21977 = vmatmul.mubr.f32.gmra.mxu0 %v26938_v32 }
 0xb85   : > { %21986 = vmatmul.mubr.f32.vlgmr.msra.gmra.mxu1 %v12685_v54  ;;  %21997 = vmatprep.mubr.f32.mxu0 %v26861_v25  ;;  %v13300_v33 = vand.u32 4294901760, %v27044_v13  ;;  %v13372_v54 = vsub.f32 %v27034_v46, %v27060_v0 }
 0xb86   : > { %21988 = vmatprep.mubr.f32.mxu1 %v12695_v44  ;;  %21994 = vmatpush3.xpose.msra.mxu0 %v26912_v2  ;;  %v27052_v2 = vsub.f32 %v13210_v58, %v27028_v4  ;;  %v14151_v58 = vsub.f32 %v27116_v23, %v27133_v24 }
 0xb87   : > { %22004 = vmatpush3.xpose.msra.mxu1 %v26855_v47  ;;  %21995 = vmatprep.subr.mxu0 %v26933_v55  ;;  %v13358_v47 = vsub.f32 %v26989_v9, %v27010_v5  ;;  %v13301_v32 = vsub.f32 %v27044_v13, %v13300_v33  ;;  %v13373_v44 = vand.u32 4294901760, %v13372_v54 }
 0xb88   : > { %22005 = vmatprep.subr.mxu1 %v26868_v20 }
 0xb89   : > { %21989 = vmatmul.mubr.f32.gmra.mxu1 %v12705_v38  ;;  %v13302_v57 = vand.u32 4294901760, %v13301_v32  ;;  %v27193_v32 = vand.u32 4294901760, %v27180_v36 }
 0xb8a   : > { %22009 = vmatprep.mubr.f32.mxu1 %v26861_v25  ;;  %21996 = vmatpush3.xpose.msra.mxu0 %v26933_v55  ;;  %v27046_v25 = vand.u32 4294901760, %v13212_v30  ;;  %v13310_v55 = vand.u32 4294901760, %v27052_v2 }
 0xb8b   : > { %22006 = vmatpush3.xpose.msra.mxu1 %v26868_v20  ;;  %22015 = vmatprep.subr.mxu0 %v26977_v52  ;;  %v13359_v20 = vand.u32 4294901760, %v13358_v47 }
 0xb8c   : > { %22007 = vmatprep.subr.mxu1 %v26889_v21  ;;  %v27065_v53 = vsub.f32 %v13212_v30, %v27046_v25  ;;  %v27165_v30 = vld [vmem:[%s28673_s15 + $0x18] sm:$0xff] }
 0xb8d   : > { %21998 = vmatmul.mubr.f32.vlgmr.msra.gmra.mxu0 %v26896_v61 }
 0xb8e   : > { %22000 = vmatprep.mubr.f32.mxu0 %v26900_v62  ;;  %22016 = vmatpush3.xpose.msra.mxu0 %v26977_v52  ;;  %v13320_v8 = vand.u32 4294901760, %v27065_v53 }
 0xb8f   : > { %22008 = vmatpush3.xpose.msra.mxu1 %v26889_v21  ;;  %22017 = vmatprep.subr.mxu0 %v26993_v11  ;;  %v13366_v21 = vand.u32 4294901760, %v13365_v7 }
 0xb90   : > { %22027 = vmatprep.subr.mxu1 %v13359_v20  ;;  %v13321_v37 = vsub.f32 %v27065_v53, %v13320_v8 }
 0xb91   : > { %22001 = vmatmul.mubr.f32.gmra.mxu0 %v26919_v40 }
 0xb92   : > { %22010 = vmatmul.mubr.f32.vlgmr.msra.gmra.mxu1 %v26896_v61  ;;  %22021 = vmatprep.mubr.f32.mxu0 %v13292_v42  ;;  %v13322_v38 = vand.u32 4294901760, %v13321_v37 }
 0xb93   : > { %22012 = vmatprep.mubr.f32.mxu1 %v26900_v62  ;;  %22018 = vmatpush3.xpose.msra.mxu0 %v26993_v11  ;;  %v13311_v62 = vsub.f32 %v27052_v2, %v13310_v55 }
 0xb94   : > { %22028 = vmatpush3.xpose.msra.mxu1 %v13359_v20  ;;  %22019 = vmatprep.subr.mxu0 %v27012_v17 }
 0xb95   : > { %22029 = vmatprep.subr.mxu1 %v13366_v21  ;;  %v13312_v35 = vand.u32 4294901760, %v13311_v62 }
 0xb96   : > { %22013 = vmatmul.mubr.f32.gmra.mxu1 %v26919_v40  ;;  %v27081_v61 = vpop.f32.mrf.mxu0 }
 0xb97   : > { %22033 = vmatprep.mubr.f32.mxu1 %v26985_v22  ;;  %22020 = vmatpush3.xpose.msra.mxu0 %v27012_v17  ;;  %v11460_v60 = vadd.f32 %v27081_v61, %v27129_v39 }
 0xb98   : > { %22030 = vmatpush3.xpose.msra.mxu1 %v13366_v21  ;;  %22039 = vmatprep.subr.mxu0 %v26989_v9  ;;  %v11449_v40 = vpop.f32.mrf.mxu0 }
 0xb99   : > { %22031 = vmatprep.subr.mxu1 %v13373_v44 }
 0xb9a   : > { %22022 = vmatmul.mubr.f32.vlgmr.msra.gmra.mxu0 %v13302_v57  ;;  %v27094_v43 = vpop.f32.mrf.mxu0 }
 0xb9b   : > { %22024 = vmatprep.mubr.f32.mxu0 %v13312_v35  ;;  %22040 = vmatpush3.xpose.msra.mxu0 %v26989_v9  ;;  %v11480_v7 = vadd.f32 %v27094_v43, %v27165_v30 }
 0xb9c   : > { %22032 = vmatpush3.xpose.msra.mxu1 %v13373_v44  ;;  %22041 = vmatprep.subr.mxu0 %v27015_v12  ;;  %v11469_v41 = vpop.f32.mrf.mxu0 }
 0xb9d   : > { %22051 = vmatprep.subr.mxu1 %v26977_v52 }
 0xb9e   : > { %v21819_v14 = vpop.f32.mrf.mxu1  ;;  %22025 = vmatmul.mubr.f32.gmra.mxu0 %v13322_v38 }
 0xb9f   : > { %22034 = vmatmul.mubr.f32.vlgmr.msra.gmra.mxu1 %v27022_v29  ;;  %22045 = vmatprep.mubr.f32.mxu0 %v27000_v56  ;;  %v27144_v56 = vld [vmem:[%s28673_s15] sm:$0xff]  ;;  %v11572_v47 = vadd.f32 %v21819_v14, %v11460_v60 }
 0xba0   : > { %22036 = vmatprep.mubr.f32.mxu1 %v27028_v4  ;;  %22042 = vmatpush3.xpose.msra.mxu0 %v27015_v12  ;;  %v11565_v49 = vpop.f32.mrf.mxu1 }
 0xba1   : > { %22052 = vmatpush3.xpose.msra.mxu1 %v26977_v52  ;;  %22043 = vmatprep.subr.mxu0 %v27034_v46 }
 0xba2   : > { %22053 = vmatprep.subr.mxu1 %v26993_v11  ;;  %v21822_v10 = vpop.f32.mrf.mxu1 }
 0xba3   : > { %22037 = vmatmul.mubr.f32.gmra.mxu1 %v27046_v25  ;;  %v21831_v31 = vpop.f32.mrf.mxu0  ;;  %v11584_v21 = vadd.f32 %v21822_v10, %v11480_v7 }
 0xba4   : > { %22057 = vmatprep.mubr.f32.mxu1 %v13290_v3  ;;  %22044 = vmatpush3.xpose.msra.mxu0 %v27034_v46  ;;  %v11577_v27 = vpop.f32.mrf.mxu1  ;;  %v11450_v3 = vadd.f32 %v11449_v40, %v27144_v56  ;;  %v11669_v20 = vadd.f32 %v21831_v31, %v11572_v47 }
 0xba5   : > { %22054 = vmatpush3.xpose.msra.mxu1 %v26993_v11  ;;  %22063 = vmatprep.subr.mxu0 %v27010_v5  ;;  %v11661_v28 = vpop.f32.mrf.mxu0 }
 0xba6   : > { %22055 = vmatprep.subr.mxu1 %v27012_v17 }
 0xba7   : > { %22046 = vmatmul.mubr.f32.vlgmr.msra.gmra.mxu0 %v27044_v13  ;;  %v21834_v51 = vpop.f32.mrf.mxu0 }
 0xba8   : > { %22048 = vmatprep.mubr.f32.mxu0 %v27052_v2  ;;  %22064 = vmatpush3.xpose.msra.mxu0 %v27010_v5  ;;  %v27151_v5 = vsub.f32 %v26777_v59, %v27120_v1  ;;  %v11566_v2 = vadd.f32 %v11565_v49, %v11450_v3  ;;  %v11683_v57 = vadd.f32 %v21834_v51, %v11584_v21 }
 0xba9   : > { %22056 = vmatpush3.xpose.msra.mxu1 %v27012_v17  ;;  %22065 = vmatprep.subr.mxu0 %v27039_v16  ;;  %v11675_v12 = vpop.f32.mrf.mxu0 }
 0xbaa   : > { %22075 = vmatprep.subr.mxu1 %v26977_v52  ;;  %v27176_v13 = vand.u32 4294901760, %v27151_v5  ;;  %v11662_v42 = vadd.f32 %v11661_v28, %v11566_v2 }
 0xbab   : > { %v21843_v9 = vpop.f32.mrf.mxu1  ;;  %22049 = vmatmul.mubr.f32.gmra.mxu0 %v27065_v53 }
 0xbac   : > { %22058 = vmatmul.mubr.f32.vlgmr.msra.gmra.mxu1 %v13300_v33  ;;  %22069 = vmatprep.mubr.f32.mxu0 %v26985_v22  ;;  %v14152_v33 = vand.u32 4294901760, %v14151_v58 }
 0xbad   : > { %22060 = vmatprep.mubr.f32.mxu1 %v13310_v55  ;;  %v11758_v19 = vpop.f32.mrf.mxu1  ;;  %22066 = vmatpush3.xpose.msra.mxu0 %v27039_v16  ;;  %v11767_v55 = vadd.f32 %v21843_v9, %v11669_v20 }
 0xbae   : > { %22076 = vmatpush3.xpose.msra.mxu1 %v26977_v52  ;;  %22067 = vmatprep.subr.mxu0 %v27060_v0  ;;  %v27172_v52 = vld [vmem:[%s28673_s15 + $0x10] sm:$0xff]  ;;  %v11759_v61 = vadd.f32 %v11758_v19, %v11662_v42 }
 0xbaf   : > { %22077 = vmatprep.subr.mxu1 %v26993_v11  ;;  %v21846_v46 = vpop.f32.mrf.mxu1  ;;  %v11470_v53 = vadd.f32 %v11469_v41, %v27172_v52 }
 0xbb0   : > { %22061 = vmatmul.mubr.f32.gmra.mxu1 %v13320_v8  ;;  %v11783_v34 = vadd.f32 %v21846_v46, %v11683_v57 }
 0xbb1   : > { %22081 = vmatprep.mubr.f32.mxu1 %v26985_v22  ;;  %v21855_v16 = vpop.f32.mrf.mxu0  ;;  %22068 = vmatpush3.xpose.msra.mxu0 %v27060_v0  ;;  %v11774_v54 = vpop.f32.mrf.mxu1  ;;  %v11578_v8 = vadd.f32 %v11577_v27, %v11470_v53 }
 0xbb2   : > { %22078 = vmatpush3.xpose.msra.mxu1 %v26993_v11  ;;  %22087 = vmatprep.subr.mxu0 %v27106_v63  ;;  %v14158_v11 = vsub.f32 %v27151_v5, %v27176_v13  ;;  %v11869_v62 = vadd.f32 %v21855_v16, %v11767_v55 }
 0xbb3   : > { %22079 = vmatprep.subr.mxu1 %v27012_v17  ;;  %v11862_v22 = vpop.f32.mrf.mxu0  ;;  %v11676_v37 = vadd.f32 %v11675_v12, %v11578_v8 }
 0xbb4   : > { %22070 = vmatmul.mubr.f32.vlgmr.msra.gmra.mxu0 %v27022_v29  ;;  %v11863_v40 = vadd.f32 %v11862_v22, %v11759_v61  ;;  %v14159_v38 = vand.u32 4294901760, %v14158_v11 }
 0xbb5   : > { %v21858_v0 = vpop.f32.mrf.mxu0  ;;  %22072 = vmatprep.mubr.f32.mxu0 %v27028_v4  ;;  %22088 = vmatpush3.msra.mxu0 %v27106_v63  ;;  %v11775_v41 = vadd.f32 %v11774_v54, %v11676_v37 }
 0xbb6   : > { %22080 = vmatpush3.xpose.msra.mxu1 %v27012_v17  ;;  %22089 = vmatprep.subr.mxu0 %v27120_v1  ;;  %v14165_v17 = vsub.f32 %v27180_v36, %v27193_v32  ;;  %v11881_v10 = vadd.f32 %v21858_v0, %v11783_v34 }
 0xbb7   : > { %22099 = vmatprep.subr.mxu1 %v14152_v33  ;;  %v21867_v44 = vpop.f32.mrf.mxu1  ;;  %22090 = vmatpush3.msra.mxu0 %v27120_v1  ;;  %v11874_v43 = vpop.f32.mrf.mxu0 }
 0xbb8   : > { %v27199_v35 = vadd.f32 %v21867_v44, %v11869_v62  ;;  %22073 = vmatmul.mubr.f32.gmra.mxu0 %v27046_v25  ;;  %22091 = vmatprep.subr.mxu0 %v27139_v45  ;;  %v11875_v28 = vadd.f32 %v11874_v43, %v11775_v41  ;;  %v14166_v51 = vand.u32 4294901760, %v14165_v17 }
 0xbb9   : > { %22082 = vmatmul.mubr.f32.vlgmr.msra.gmra.mxu1 %v27022_v29  ;;  %v11954_v14 = vpop.f32.mrf.mxu1  ;;  %22092 = vmatpush3.msra.mxu0 %v27139_v45 }
 0xbba   : > { %v27207_v49 = vadd.f32 %v11954_v14, %v11863_v40  ;;  %22084 = vmatprep.mubr.f32.mxu1 %v27028_v4  ;;  %v13825_v29 = vsel %vm13821_vm7, %v27199_v35, -inf  ;;  %22100 = vmatpush3.msra.mxu1 %v14152_v33 }
 0xbbb   : > { %v21870_v31 = vpop.f32.mrf.mxu1  ;;  %22111 = vmatprep.subr.mxu0 %v27116_v23  ;;  %22101 = vmatprep.subr.mxu1 %v14159_v38 }
 0xbbc   : > { %v13822_v27 = vsel %vm13821_vm7, %v27207_v49, -inf  ;;  %22102 = vmatpush3.msra.mxu1 %v14159_v38  ;;  %v27217_v4 = vadd.f32 %v21870_v31, %v11881_v10  ;;  %13826 = vmax.xlane.f32.xlu0 %v13825_v29 }
 0xbbd   : > { %22085 = vmatmul.mubr.f32.gmra.mxu1 %v27046_v25  ;;  %v11966_v9 = vpop.f32.mrf.mxu1  ;;  %22103 = vmatprep.subr.mxu1 %v14166_v51 }
 0xbbe   : > { %v27219_v19 = vadd.f32 %v11966_v9, %v11875_v28  ;;  %13823 = vmax.xlane.f32.xlu1 %v13822_v27  ;;  %22104 = vmatpush3.msra.mxu1 %v14166_v51  ;;  %v13831_v12 = vsel %vm13821_vm7, %v27217_v4, -inf }
 0xbbf   : > { %22123 = vmatprep.subr.mxu1 %v27106_v63 }
 0xbc0   : > { %v13828_v60 = vsel %vm13821_vm7, %v27219_v19, -inf }
 0xbc1   : > { %13829 = vmax.xlane.f32.xlu0 %v13828_v60 }
 0xbc2   : > { %13832 = vmax.xlane.f32.xlu1 %v13831_v12 }
 0xc0d   : > { %v21879_v25 = vpop.f32.mrf.mxu0 }
 0xc0e   : > { %v12075_v53 = vadd.f32 %v21879_v25, %v27129_v39 }
 0xc0f   : > { %v12064_v58 = vpop.f32.mrf.mxu0 }
 0xc10   : > { %v21891_v3 = vpop.f32.mrf.mxu1  ;;  %v12065_v21 = vadd.f32 %v12064_v58, %v27144_v56 }
 0xc11   : > { %v12187_v54 = vadd.f32 %v21891_v3, %v12075_v53 }
 0xc12   : > { %v21882_v47 = vpop.f32.mrf.mxu0  ;;  %v12180_v46 = vpop.f32.mrf.mxu1 }
 0xc13   : > { %v12095_v0 = vadd.f32 %v21882_v47, %v27165_v30  ;;  %v12181_v61 = vadd.f32 %v12180_v46, %v12065_v21 }
 0xc14   : > { %v12084_v16 = vpop.f32.mrf.mxu0 }
 0xc15   : > { %v21894_v2 = vpop.f32.mrf.mxu1  ;;  %v12085_v62 = vadd.f32 %v12084_v16, %v27172_v52 }
 0xc16   : > { %v12199_v37 = vadd.f32 %v21894_v2, %v12095_v0 }
 0xc17   : > { %v12192_v7 = vpop.f32.mrf.mxu1 }
 0xc18   : > { %v12193_v14 = vadd.f32 %v12192_v7, %v12085_v62  ;;  %v27246_v62 = vpop.permute.xlu0 %11339 }
 0xc1a   : > { %v21903_v20 = vpop.f32.mrf.mxu0 }
 0xc1b   : > { %v12284_v44 = vadd.f32 %v21903_v20, %v12187_v54 }
 0xc1c   : > { %v12276_v22 = vpop.f32.mrf.mxu0 }
 0xc1d   : > { %v21915_v33 = vpop.f32.mrf.mxu1  ;;  %v12277_v40 = vadd.f32 %v12276_v22, %v12181_v61 }
 0xc1e   : > { %v21906_v42 = vpop.f32.mrf.mxu0  ;;  %v12382_v38 = vadd.f32 %v21915_v33, %v12284_v44 }
 0xc1f   : > { %v12373_v55 = vpop.f32.mrf.mxu1  ;;  %v12298_v34 = vadd.f32 %v21906_v42, %v12199_v37  ;;  %v27248_v37 = vpop.permute.xlu1 %11341 }
 0xc20   : > { %v12290_v11 = vpop.f32.mrf.mxu0  ;;  %v12374_v41 = vadd.f32 %v12373_v55, %v12277_v40 }
 0xc21   : > { %v21918_v8 = vpop.f32.mrf.mxu1  ;;  %v12291_v28 = vadd.f32 %v12290_v11, %v12193_v14 }
 0xc22   : > { %v12398_v27 = vadd.f32 %v21918_v8, %v12298_v34 }
 0xc23   : > { %v12389_v43 = vpop.f32.mrf.mxu1 }
 0xc24   : > { %v12390_v25 = vadd.f32 %v12389_v43, %v12291_v28 }
 0xc26   : > { %v21927_v57 = vpop.f32.mrf.mxu0 }
 0xc27   : > { %v12484_v31 = vadd.f32 %v21927_v57, %v12382_v38 }
 0xc28   : > { %v12477_v17 = vpop.f32.mrf.mxu0 }
 0xc29   : > { %v12478_v51 = vadd.f32 %v12477_v17, %v12374_v41 }
 0xc2a   : > { %v21930_v29 = vpop.f32.mrf.mxu0 }
 0xc2b   : > { %v21939_v10 = vpop.f32.mrf.mxu1  ;;  %v12496_v58 = vadd.f32 %v21930_v29, %v12398_v27 }
 0xc2c   : > { %v27230_v9 = vadd.f32 %v21939_v10, %v12484_v31  ;;  %v12489_v60 = vpop.f32.mrf.mxu0 }
 0xc2d   : > { %v12569_v12 = vpop.f32.mrf.mxu1  ;;  %v12490_v16 = vadd.f32 %v12489_v60, %v12390_v25 }
 0xc2e   : > { %v27232_v3 = vadd.f32 %v12569_v12, %v12478_v51  ;;  %v13837_v47 = vsel %vm13821_vm7, %v27230_v9, -inf }
 0xc2f   : > { %v21942_v46 = vpop.f32.mrf.mxu1  ;;  %13838 = vmax.xlane.f32.xlu1 %v13837_v47 }
 0xc30   : > { %v27236_v2 = vadd.f32 %v21942_v46, %v12496_v58  ;;  %v13834_v20 = vsel %vm13821_vm7, %v27232_v3, -inf }
 0xc31   : > { %v12581_v7 = vpop.f32.mrf.mxu1  ;;  %13835 = vmax.xlane.f32.xlu0 %v13834_v20 }
 0xc32   : > { %v27240_v22 = vadd.f32 %v12581_v7, %v12490_v16  ;;  %v13843_v33 = vsel %vm13821_vm7, %v27236_v2, -inf }
 0xc33   : > { %13844 = vmax.xlane.f32.xlu1 %v13843_v33  ;;  %v21951_v53 = vpop.f32.mrf.mxu0 }
 0xc34   : > { %v13840_v42 = vsel %vm13821_vm7, %v27240_v22, -inf  ;;  %v12690_v41 = vadd.f32 %v21951_v53, %v27129_v39 }
 0xc35   : > { %13841 = vmax.xlane.f32.xlu0 %v13840_v42  ;;  %v12679_v55 = vpop.f32.mrf.mxu0 }
 0xc36   : > { %v12680_v29 = vadd.f32 %v12679_v55, %v27144_v56 }
 0xc37   : > { %v21954_v54 = vpop.f32.mrf.mxu0 }
 0xc38   : > { %v21963_v21 = vpop.f32.mrf.mxu1  ;;  %v12710_v12 = vadd.f32 %v21954_v54, %v27165_v30 }
 0xc39   : > { %v12699_v11 = vpop.f32.mrf.mxu0  ;;  %v12802_v28 = vadd.f32 %v21963_v21, %v12690_v41 }
 0xc3a   : > { %v12795_v0 = vpop.f32.mrf.mxu1 }
 0xc3b   : > { %v12796_v25 = vadd.f32 %v12795_v0, %v12680_v29 }
 0xc3c   : > { %v21966_v8 = vpop.f32.mrf.mxu1 }
 0xc3d   : > { %v12814_v20 = vadd.f32 %v21966_v8, %v12710_v12 }
 0xc3e   : > { %v12807_v44 = vpop.f32.mrf.mxu1 }
 0xc40   : > { %v21975_v61 = vpop.f32.mrf.mxu0 }
 0xc42   : > { %v12891_v57 = vpop.f32.mrf.mxu0 }
 0xc43   : > { %v12892_v7 = vadd.f32 %v12891_v57, %v12796_v25 }
 0xc44   : > { %v21978_v38 = vpop.f32.mrf.mxu0 }
 0xc45   : > { %v21987_v40 = vpop.f32.mrf.mxu1  ;;  %v13827_v43 = vpop.xlane.xlu0 %13826 }
 0xc46   : > { %v13871_v14 = vsub.f32 %v27199_v35, %v13827_v43  ;;  %v12905_v27 = vpop.f32.mrf.mxu0  ;;  %v12899_v35 = vadd.f32 %v21975_v61, %v12802_v28  ;;  %v12913_v43 = vadd.f32 %v21978_v38, %v12814_v20 }
 0xc47   : > { %v12988_v17 = vpop.f32.mrf.mxu1  ;;  %v13824_v34 = vpop.xlane.xlu1 %13823 }
 0xc48   : > { %v13870_v31 = vsub.f32 %v27207_v49, %v13824_v34  ;;  %v13888_v10 = vmul.f32 1.442695, %v13871_v14  ;;  %v12700_v49 = vadd.f32 %v12699_v11, %v27172_v52  ;;  %v12997_v53 = vadd.f32 %v21987_v40, %v12899_v35 }
 0xc49   : > { %v21990_v58 = vpop.f32.mrf.mxu1  ;;  %v12989_v14 = vadd.f32 %v12988_v17, %v12892_v7 }
 0xc4a   : > { %v13886_v51 = vmul.f32 1.442695, %v13870_v31  ;;  %v13830_v60 = vpop.xlane.xlu0 %13829  ;;  %22944 = vpow2.f32 %v13888_v10  ;;  %v12808_v21 = vadd.f32 %v12807_v44, %v12700_v49 }
 0xc4b   : > { %v13833_v47 = vpop.xlane.xlu1 %13832  ;;  %v13872_v46 = vsub.f32 %v27219_v19, %v13830_v60  ;;  %v13004_v54 = vpop.f32.mrf.mxu1 }
 0xc4c   : > { %v13873_v16 = vsub.f32 %v27217_v4, %v13833_v47  ;;  %22946 = vpow2.f32 %v13886_v51  ;;  %v12906_v19 = vadd.f32 %v12905_v27, %v12808_v21  ;;  %v13013_v4 = vadd.f32 %v21990_v58, %v12913_v43 }
 0xc4d   : > { %v21999_v33 = vpop.f32.mrf.mxu0  ;;  %v13890_v55 = vmul.f32 1.442695, %v13872_v46 }
 0xc4e   : > { %v13892_v42 = vmul.f32 1.442695, %v13873_v16  ;;  %v13099_v34 = vadd.f32 %v21999_v33, %v12997_v53  ;;  %v13005_v31 = vadd.f32 %v13004_v54, %v12906_v19 }
 0xc4f   : > { %v13092_v0 = vpop.f32.mrf.mxu0 }
 0xc50   : > { %22948 = vpow2.f32 %v13892_v42  ;;  %v13093_v11 = vadd.f32 %v13092_v0, %v12989_v14 }
 0xc51   : > { %v22002_v61 = vpop.f32.mrf.mxu0  ;;  %22950 = vpow2.f32 %v13890_v55 }
 0xc52   : > { %v22011_v41 = vpop.f32.mrf.mxu1  ;;  %v13111_v29 = vadd.f32 %v22002_v61, %v13013_v4 }
 0xc53   : > { %v27258_v8 = vadd.f32 %v22011_v41, %v13099_v34  ;;  %v13104_v57 = vpop.f32.mrf.mxu0 }
 0xc54   : > { %v13184_v40 = vpop.f32.mrf.mxu1  ;;  %v13105_v17 = vadd.f32 %v13104_v57, %v13005_v31 }
 0xc55   : > { %v27260_v10 = vadd.f32 %v13184_v40, %v13093_v11  ;;  %v13849_v44 = vsel %vm13821_vm7, %v27258_v8, -inf }
 0xc56   : > { %v22014_v38 = vpop.f32.mrf.mxu1  ;;  %13850 = vmax.xlane.f32.xlu1 %v13849_v44 }
 0xc57   : > { %v27264_v28 = vadd.f32 %v22014_v38, %v13111_v29  ;;  %v13846_v27 = vsel %vm13821_vm7, %v27260_v10, -inf  ;;  %v27272_v25 = vpop.eup %22944 }
 0xc58   : > { %v13196_v51 = vpop.f32.mrf.mxu1  ;;  %13847 = vmax.xlane.f32.xlu0 %v13846_v27  ;;  %v13921_v35 = vsel %vm13821_vm7, %v27272_v25, 0.0 }
 0xc59   : > { %v27268_v60 = vadd.f32 %v13196_v51, %v13105_v17  ;;  %v13855_v12 = vsel %vm13821_vm7, %v27264_v28, -inf  ;;  %v27276_v46 = vpop.eup %22946 }
 0xc5a   : > { %13856 = vmax.xlane.f32.xlu1 %v13855_v12  ;;  %v22023_v58 = vpop.f32.mrf.mxu0  ;;  %v13918_v7 = vsel %vm13821_vm7, %v27276_v46, 0.0 }
 0xc5b   : > { %v13852_v47 = vsel %vm13821_vm7, %v27268_v60, -inf  ;;  %v13305_v4 = vadd.f32 %v22023_v58, %v27129_v39 }
 0xc5c   : > { %13853 = vmax.xlane.f32.xlu0 %v13852_v47  ;;  %v13294_v49 = vpop.f32.mrf.mxu0 }
 0xc5d   : > { %v27280_v16 = vpop.eup %22948  ;;  %v13295_v11 = vadd.f32 %v13294_v49, %v27144_v56 }
 0xc5e   : > { %13922 = vadd.xlane.f32.xlu1 %v13921_v35  ;;  %v13927_v33 = vsel %vm13821_vm7, %v27280_v16, 0.0  ;;  %v27286_v53 = vpop.eup %22950  ;;  %v22026_v42 = vpop.f32.mrf.mxu0 }
 0xc5f   : > { %v22035_v20 = vpop.f32.mrf.mxu1  ;;  %v13924_v21 = vsel %vm13821_vm7, %v27286_v53, 0.0  ;;  %v13325_v29 = vadd.f32 %v22026_v42, %v27165_v30 }
 0xc60   : > { %13919 = vadd.xlane.f32.xlu0 %v13918_v7  ;;  %v13314_v54 = vpop.f32.mrf.mxu0  ;;  %v13417_v57 = vadd.f32 %v22035_v20, %v13305_v4 }
 0xc61   : > { %v13410_v55 = vpop.f32.mrf.mxu1  ;;  %v13315_v27 = vadd.f32 %v13314_v54, %v27172_v52 }
 0xc62   : > { %13928 = vadd.xlane.f32.xlu1 %v13927_v33  ;;  %v13411_v44 = vadd.f32 %v13410_v55, %v13295_v11 }
 0xc63   : > { %v22038_v0 = vpop.f32.mrf.mxu1 }
 0xc64   : > { %13925 = vadd.xlane.f32.xlu0 %v13924_v21  ;;  %v13429_v51 = vadd.f32 %v22038_v0, %v13325_v29 }
 0xc65   : > { %v13422_v14 = vpop.f32.mrf.mxu1 }
 0xc66   : > { %v13423_v33 = vadd.f32 %v13422_v14, %v13315_v27 }
 0xc67   : > { %v22047_v43 = vpop.f32.mrf.mxu0 }
 0xc68   : > { %v13514_v38 = vadd.f32 %v22047_v43, %v13417_v57 }
 0xc69   : > { %v13506_v34 = vpop.f32.mrf.mxu0 }
 0xc6a   : > { %v13507_v12 = vadd.f32 %v13506_v34, %v13411_v44 }
 0xc6b   : > { %v22050_v61 = vpop.f32.mrf.mxu0 }
 0xc6c   : > { %v22059_v19 = vpop.f32.mrf.mxu1  ;;  %v13528_v21 = vadd.f32 %v22050_v61, %v13429_v51 }
 0xc6d   : > { %v13520_v40 = vpop.f32.mrf.mxu0  ;;  %v13612_v47 = vadd.f32 %v22059_v19, %v13514_v38 }
 0xc6e   : > { %v13603_v41 = vpop.f32.mrf.mxu1  ;;  %v13521_v49 = vadd.f32 %v13520_v40, %v13423_v33 }
 0xc6f   : > { %v13604_v39 = vadd.f32 %v13603_v41, %v13507_v12 }
 0xc70   : > { %v22062_v31 = vpop.f32.mrf.mxu1 }
 0xc71   : > { %v13628_v20 = vadd.f32 %v22062_v31, %v13528_v21 }
 0xc72   : > { %v13619_v35 = vpop.f32.mrf.mxu1 }
 0xc73   : > { %v13620_v55 = vadd.f32 %v13619_v35, %v13521_v49 }
 0xc74   : > { %v22071_v17 = vpop.f32.mrf.mxu0 }
 0xc75   : > { %v13714_v58 = vadd.f32 %v22071_v17, %v13612_v47 }
 0xc76   : > { %v13707_v7 = vpop.f32.mrf.mxu0 }
 0xc77   : > { %v13708_v4 = vadd.f32 %v13707_v7, %v13604_v39 }
 0xc78   : > { %v22074_v26 = vpop.f32.mrf.mxu0 }
 0xc79   : > { %v22083_v56 = vpop.f32.mrf.mxu1  ;;  %v13726_v43 = vadd.f32 %v22074_v26, %v13628_v20 }
 0xc7a   : > { %v27294_v30 = vadd.f32 %v22083_v56, %v13714_v58  ;;  %v13719_v52 = vpop.f32.mrf.mxu0 }
 0xc7b   : > { %v13799_v42 = vpop.f32.mrf.mxu1  ;;  %v13720_v34 = vadd.f32 %v13719_v52, %v13620_v55 }
 0xc7c   : > { %v27296_v54 = vadd.f32 %v13799_v42, %v13708_v4  ;;  %v13861_v0 = vsel %vm13821_vm7, %v27294_v30, -inf }
 0xc7d   : > { %v22086_v14 = vpop.f32.mrf.mxu1  ;;  %13862 = vmax.xlane.f32.xlu1 %v13861_v0 }
 0xc7e   : > { %v27300_v19 = vadd.f32 %v22086_v14, %v13726_v43  ;;  %v13858_v61 = vsel %vm13821_vm7, %v27296_v54, -inf }
 0xc7f   : > { %v13811_v41 = vpop.f32.mrf.mxu1  ;;  %13859 = vmax.xlane.f32.xlu0 %v13858_v61 }
 0xc80   : > { %v27304_v11 = vadd.f32 %v13811_v41, %v13720_v34  ;;  %v13867_v26 = vsel %vm13821_vm7, %v27300_v19, -inf }
 0xc81   : > { %13868 = vmax.xlane.f32.xlu1 %v13867_v26 }
 0xc82   : > { %v13864_v57 = vsel %vm13821_vm7, %v27304_v11, -inf }
 0xc83   : > { %13865 = vmax.xlane.f32.xlu0 %v13864_v57 }
 0xc92   : > { %11337 = vrot.lane.b32.xlu1 %v26775_v48, %s23544_s22 }
 0xc99   : > { %11349 = vrot.lane.b32.xlu0 %v26781_v18, %s23545_s14 }
 0xcb8   : > { %v13839_v40 = vpop.xlane.xlu1 %13838 }
 0xcb9   : > { %v13875_v31 = vsub.f32 %v27230_v9, %v13839_v40 }
 0xcba   : > { %v13836_v29 = vpop.xlane.xlu0 %13835 }
 0xcbb   : > { %v13896_v44 = vmul.f32 1.442695, %v13875_v31  ;;  %v13874_v38 = vsub.f32 %v27232_v3, %v13836_v29 }
 0xcbc   : > { %v13845_v17 = vpop.xlane.xlu1 %13844 }
 0xcbd   : > { %22952 = vpow2.f32 %v13896_v44  ;;  %v13894_v27 = vmul.f32 1.442695, %v13874_v38  ;;  %v13877_v51 = vsub.f32 %v27236_v2, %v13845_v17 }
 0xcbe   : > { %v13842_v12 = vpop.xlane.xlu0 %13841 }
 0xcbf   : > { %22954 = vpow2.f32 %v13894_v27  ;;  %v13900_v47 = vmul.f32 1.442695, %v13877_v51  ;;  %v13876_v35 = vsub.f32 %v27240_v22, %v13842_v12 }
 0xcc1   : > { %22956 = vpow2.f32 %v13900_v47  ;;  %v13898_v7 = vmul.f32 1.442695, %v13876_v35 }
 0xcc3   : > { %22958 = vpow2.f32 %v13898_v7 }
 0xcca   : > { %v27318_v33 = vpop.eup %22952 }
 0xccb   : > { %v13933_v9 = vsel %vm13821_vm7, %v27318_v33, 0.0 }
 0xccc   : > { %v27322_v21 = vpop.eup %22954  ;;  %13934 = vadd.xlane.f32.xlu1 %v13933_v9 }
 0xccd   : > { %v13930_v3 = vsel %vm13821_vm7, %v27322_v21, 0.0 }
 0xcce   : > { %v27326_v2 = vpop.eup %22956  ;;  %13931 = vadd.xlane.f32.xlu0 %v13930_v3 }
 0xccf   : > { %v13939_v22 = vsel %vm13821_vm7, %v27326_v2, 0.0 }
 0xcd0   : > { %v27330_v39 = vpop.eup %22958  ;;  %13940 = vadd.xlane.f32.xlu1 %v13939_v22 }
 0xcd1   : > { %v13936_v58 = vsel %vm13821_vm7, %v27330_v39, 0.0 }
 0xcd2   : > { %13937 = vadd.xlane.f32.xlu0 %v13936_v58 }
 0xcdf   : > { %v13851_v56 = vpop.xlane.xlu1 %13850 }
 0xce0   : > { %v13879_v49 = vsub.f32 %v27258_v8, %v13851_v56 }
 0xce1   : > { %v13848_v20 = vpop.xlane.xlu0 %13847 }
 0xce2   : > { %v13904_v4 = vmul.f32 1.442695, %v13879_v49  ;;  %v13878_v42 = vsub.f32 %v27260_v10, %v13848_v20 }
 0xce3   : > { %v13857_v55 = vpop.xlane.xlu1 %13856 }
 0xce4   : > { %22960 = vpow2.f32 %v13904_v4  ;;  %v13902_v43 = vmul.f32 1.442695, %v13878_v42  ;;  %v13881_v52 = vsub.f32 %v27264_v28, %v13857_v55 }
 0xce5   : > { %v13854_v0 = vpop.xlane.xlu0 %13853 }
 0xce6   : > { %22962 = vpow2.f32 %v13902_v43  ;;  %v13908_v14 = vmul.f32 1.442695, %v13881_v52  ;;  %v13880_v34 = vsub.f32 %v27268_v60, %v13854_v0 }
 0xce7   : > { %v13923_v61 = vpop.xlane.xlu1 %13922 }
 0xce8   : > { %22964 = vpow2.f32 %v13908_v14  ;;  %v13906_v41 = vmul.f32 1.442695, %v13880_v34  ;;  %v27391_v34 = vand.u32 4294901760, %v27246_v62 }
 0xce9   : > { %22966 = vrcp.f32 %v13923_v61  ;;  %v13920_v26 = vpop.xlane.xlu0 %13919 }
 0xcea   : > { %22968 = vpow2.f32 %v13906_v41 }
 0xceb   : > { %22970 = vrcp.f32 %v13920_v26  ;;  %v13929_v8 = vpop.xlane.xlu1 %13928 }
 0xcec   : > { %22972 = vrcp.f32 %v13929_v8 }
 0xced   : > { %v13926_v10 = vpop.xlane.xlu0 %13925 }
 0xcee   : > { %22974 = vrcp.f32 %v13926_v10 }
 0xcf1   : > { %v27338_v57 = vpop.eup %22960 }
 0xcf2   : > { %v13945_v28 = vsel %vm13821_vm7, %v27338_v57, 0.0 }
 0xcf3   : > { %v27342_v40 = vpop.eup %22962  ;;  %13946 = vadd.xlane.f32.xlu0 %v13945_v28 }
 0xcf4   : > { %v13942_v29 = vsel %vm13821_vm7, %v27342_v40, 0.0 }
 0xcf5   : > { %v27344_v60 = vpop.eup %22964 }
 0xcf6   : > { %v22967_v31 = vpop.eup %22966  ;;  %v13951_v7 = vsel %vm13821_vm7, %v27344_v60, 0.0 }
 0xcf7   : > { %v27348_v44 = vpop.eup %22968  ;;  %v13983_v38 = vmul.f32 %v22967_v31, %v27272_v25  ;;  %13943 = vadd.xlane.f32.xlu0 %v13942_v29  ;;  %v14626_v25 = vsel %vm14010_vm6, %v27248_v37, 0  ;;  %v27405_v29 = vsub.f32 %v27246_v62, %v27391_v34 }
 0xcf8   : > { %v22971_v17 = vpop.eup %22970  ;;  %v13948_v27 = vsel %vm13821_vm7, %v27348_v44, 0.0  ;;  %v27376_v42 = vand.u32 4294901760, %v14626_v25 }
 0xcf9   : > { %v22973_v51 = vpop.eup %22972  ;;  %v14002_v12 = vsel %vm13821_vm7, %v13983_v38, 0  ;;  %13949 = vadd.xlane.f32.xlu1 %v13948_v27  ;;  %v13982_v47 = vmul.f32 %v22971_v17, %v27276_v46 }
 0xcfa   : > { %v27355_v35 = vand.u32 4294901760, %v14002_v12  ;;  %v13985_v9 = vmul.f32 %v22973_v51, %v27280_v16  ;;  %v27394_v61 = vsub.f32 %v14626_v25, %v27376_v42 }
 0xcfb   : > { %v22975_v3 = vpop.eup %22974  ;;  %13952 = vadd.xlane.f32.xlu0 %v13951_v7  ;;  %v13999_v22 = vsel %vm13821_vm7, %v13982_v47, 0 }
 0xcfc   : > { %v27364_v58 = vsub.f32 %v14002_v12, %v27355_v35  ;;  %v27366_v56 = vand.u32 4294901760, %v13999_v22  ;;  %v13984_v46 = vmul.f32 %v22975_v3, %v27286_v53  ;;  %v14008_v49 = vsel %vm13821_vm7, %v13985_v9, 0 }
 0xcfd   : > { %v27370_v20 = vand.u32 4294901760, %v14008_v49  ;;  %v27409_v27 = vand.u32 4294901760, %v27394_v61 }
 0xcfe   : > { %22105 = vmatprep.mubr.f32.mxu1 %v27366_v56  ;;  %v14005_v16 = vsel %vm13821_vm7, %v13984_v46, 0  ;;  %v14082_v37 = vsub.f32 %v13999_v22, %v27366_v56  ;;  %v14093_v4 = vand.u32 4294901760, %v27364_v58 }
 0xcff   : > { %22106 = vmatmul.mubr.f32.vlgmr.msra.gmra.mxu1 %v27355_v35  ;;  %v27379_v55 = vand.u32 4294901760, %v14005_v16  ;;  %v27382_v53 = vsub.f32 %v14008_v49, %v27370_v20  ;;  %v14766_v12 = vsub.f32 %v27394_v61, %v27409_v27 }
 0xd00   : > { %22124 = vmatpush3.msra.mxu1 %v27106_v63  ;;  %v14083_v43 = vand.u32 4294901760, %v14082_v37  ;;  %v14094_v52 = vsub.f32 %v27364_v58, %v14093_v4 }
 0xd01   : > { %22125 = vmatprep.subr.mxu1 %v27120_v1  ;;  %22108 = vmatprep.mubr.f32.mxu1 %v27379_v55  ;;  %v14102_v0 = vsub.f32 %v14005_v16, %v27379_v55  ;;  %v14113_v26 = vand.u32 4294901760, %v27382_v53 }
 0xd02   : > { %22126 = vmatpush3.msra.mxu1 %v27120_v1  ;;  %v14084_v14 = vsub.f32 %v14082_v37, %v14083_v43  ;;  %v14095_v10 = vand.u32 4294901760, %v14094_v52 }
 0xd03   : > { %22127 = vmatprep.subr.mxu1 %v27139_v45  ;;  %22109 = vmatmul.mubr.f32.gmra.mxu1 %v27370_v20  ;;  %v14103_v41 = vand.u32 4294901760, %v14102_v0  ;;  %v14114_v17 = vsub.f32 %v27382_v53, %v14113_v26 }
 0xd04   : > { %22128 = vmatpush3.msra.mxu1 %v27139_v45  ;;  %22129 = vmatprep.mubr.f32.mxu1 %v14083_v43  ;;  %v14085_v8 = vand.u32 4294901760, %v14084_v14 }
 0xd05   : > { %22147 = vmatprep.subr.mxu1 %v27106_v63  ;;  %v14104_v28 = vsub.f32 %v14102_v0, %v14103_v41  ;;  %v14115_v62 = vand.u32 4294901760, %v14114_v17 }
 0xd06   : > { %v27401_v31 = vpop.xlane.xlu1 %13862  ;;  %22093 = vmatprep.mubr.f32.mxu0 %v14085_v8 }
 0xd07   : > { %22094 = vmatmul.mubr.f32.vlgmr.msra.gmra.mxu0 %v14095_v10  ;;  %22130 = vmatmul.mubr.f32.vlgmr.msra.gmra.mxu1 %v14093_v4  ;;  %v14105_v38 = vand.u32 4294901760, %v14104_v28  ;;  %v13883_v25 = vsub.f32 %v27294_v30, %v27401_v31 }
 0xd08   : > { %22112 = vmatpush3.msra.mxu0 %v27116_v23  ;;  %22148 = vmatpush3.msra.mxu1 %v27106_v63  ;;  %v27422_v23 = vand.u32 4294901760, %v27405_v29 }
 0xd09   : > { %22113 = vmatprep.subr.mxu0 %v27151_v5  ;;  %22132 = vmatprep.mubr.f32.mxu1 %v14103_v41  ;;  %v13912_v22 = vmul.f32 1.442695, %v13883_v25 }
 0xd0a   : > { %v27414_v51 = vpop.xlane.xlu1 %13868  ;;  %22149 = vmatprep.subr.mxu1 %v27120_v1  ;;  %22114 = vmatpush3.msra.mxu0 %v27151_v5  ;;  %v14767_v5 = vand.u32 4294901760, %v14766_v12  ;;  %v14773_v47 = vsub.f32 %v27405_v29, %v27422_v23 }
 0xd0b   : > { %22150 = vmatpush3.msra.mxu1 %v27120_v1  ;;  %22096 = vmatprep.mubr.f32.mxu0 %v14105_v38  ;;  %22976 = vpow2.f32 %v13912_v22 }
 0xd0c   : > { %22115 = vmatprep.subr.mxu0 %v27180_v36  ;;  %22151 = vmatprep.subr.mxu1 %v27139_v45 }
 0xd0d   : > { %11345 = vrot.lane.b32.xlu1 %v26775_v48, %s23545_s14  ;;  %22097 = vmatmul.mubr.f32.gmra.mxu0 %v14115_v62 }
 0xd0e   : > { %22116 = vmatpush3.msra.mxu0 %v27180_v36  ;;  %22133 = vmatmul.mubr.f32.gmra.mxu1 %v14113_v26  ;;  %v11338_v63 = vpop.permute.xlu1 %11337 }
 0xd0f   : > { %22152 = vmatpush3.msra.mxu1 %v27139_v45  ;;  %v27430_v1 = vand.u32 4294901760, %v11338_v63  ;;  %22117 = vmatprep.mubr.f32.mxu0 %v14082_v37  ;;  %v14774_v45 = vand.u32 4294901760, %v14773_v47 }
 0xd10   : > { %22135 = vmatprep.subr.mxu0 %v27133_v24  ;;  %22153 = vmatprep.mubr.f32.mxu1 %v27366_v56 }
 0xd11   : > { %v27437_v7 = vsub.f32 %v11338_v63, %v27430_v1  ;;  %22171 = vmatprep.subr.mxu1 %v14767_v5  ;;  %22118 = vmatmul.mubr.f32.vlgmr.msra.gmra.mxu0 %v27364_v58  ;;  %v13885_v58 = vsub.f32 %v27300_v19, %v27414_v51 }
 0xd12   : > { %22136 = vmatpush3.msra.mxu0 %v27133_v24  ;;  %22154 = vmatmul.mubr.f32.vlgmr.msra.gmra.mxu1 %v27355_v35  ;;  %v13860_v24 = vpop.xlane.xlu0 %13859 }
 0xd13   : > { %22172 = vmatpush3.msra.mxu1 %v14767_v5  ;;  %22120 = vmatprep.mubr.f32.mxu0 %v14102_v0  ;;  %v27443_v36 = vand.u32 4294901760, %v27437_v7 }
 0xd14   : > { %22137 = vmatprep.subr.mxu0 %v27176_v13  ;;  %22156 = vmatprep.mubr.f32.mxu1 %v27379_v55 }
 0xd15   : > { %22173 = vmatprep.subr.mxu1 %v14774_v45  ;;  %22138 = vmatpush3.msra.mxu0 %v27176_v13  ;;  %v14780_v9 = vsub.f32 %v27437_v7, %v27443_v36  ;;  %v13882_v13 = vsub.f32 %v27296_v54, %v13860_v24  ;;  %v13916_v54 = vmul.f32 1.442695, %v13885_v58 }
 0xd16   : > { %22174 = vmatpush3.msra.mxu1 %v14774_v45  ;;  %11347 = vrot.lane.b32.xlu0 %v26777_v59, %s23545_s14 }
 0xd17   : > { %22139 = vmatprep.subr.mxu0 %v27193_v32  ;;  %22121 = vmatmul.mubr.f32.gmra.mxu0 %v27382_v53  ;;  %v14781_v3 = vand.u32 4294901760, %v14780_v9  ;;  %v13910_v30 = vmul.f32 1.442695, %v13882_v13 }
 0xd18   : > { %22140 = vmatpush3.msra.mxu0 %v27193_v32  ;;  %22157 = vmatmul.mubr.f32.gmra.mxu1 %v27370_v20  ;;  %v13866_v32 = vpop.xlane.xlu0 %13865 }
 0xd19   : > { %22141 = vmatprep.mubr.f32.mxu0 %v27366_v56  ;;  %22159 = vmatprep.subr.mxu0 %v27376_v42  ;;  %v13884_v19 = vsub.f32 %v27304_v11, %v13866_v32  ;;  %22978 = vpow2.f32 %v13910_v30  ;;  %v27474_v56 = vpop.eup %22976 }
 0xd1a   : > { %22175 = vmatprep.subr.mxu1 %v14781_v3  ;;  %22980 = vpow2.f32 %v13916_v54  ;;  %v13957_v49 = vsel %vm13821_vm7, %v27474_v56, 0.0 }
 0xd1b   : > { %22142 = vmatmul.mubr.f32.vlgmr.msra.gmra.mxu0 %v27355_v35  ;;  %22176 = vmatpush3.msra.mxu1 %v14781_v3  ;;  %v13914_v35 = vmul.f32 1.442695, %v13884_v19 }
 0xd1c   : > { %22160 = vmatpush3.msra.mxu0 %v27376_v42  ;;  %22144 = vmatprep.mubr.f32.mxu0 %v27379_v55  ;;  %v11350_v55 = vpop.permute.xlu0 %11349 }
 0xd1d   : > { %22161 = vmatprep.subr.mxu0 %v27391_v34  ;;  %22195 = vmatprep.subr.mxu1 %v27376_v42  ;;  %22982 = vpow2.f32 %v13914_v35 }
 0xd1e   : > { %22162 = vmatpush3.msra.mxu0 %v27391_v34 }
 0xd1f   : > { %22163 = vmatprep.subr.mxu0 %v27430_v1  ;;  %22145 = vmatmul.mubr.f32.gmra.mxu0 %v27370_v20 }
 0xd20   : > { %22164 = vmatpush3.msra.mxu0 %v27430_v1 }
 0xd21   : > { %22183 = vmatprep.subr.mxu0 %v27394_v61 }
 0xd26   : > { %v27476_v46 = vpop.eup %22978 }
 0xd27   : > { %v27480_v20 = vpop.eup %22980  ;;  %v13954_v11 = vsel %vm13821_vm7, %v27476_v46, 0.0 }
 0xd28   : > { %v13963_v16 = vsel %vm13821_vm7, %v27480_v20, 0.0 }
 0xd2a   : > { %v27486_v37 = vpop.eup %22982 }
 0xd2b   : > { %v13960_v4 = vsel %vm13821_vm7, %v27486_v37, 0.0 }
 0xd31   : > { %13958 = vadd.xlane.f32.xlu1 %v13957_v49 }
 0xd35   : > { %13955 = vadd.xlane.f32.xlu0 %v13954_v11  ;;  %13964 = vadd.xlane.f32.xlu1 %v13963_v16 }
 0xd39   : > { %13961 = vadd.xlane.f32.xlu0 %v13960_v4 }
 0xd46   : > { %11355 = vrot.lane.b32.xlu1 %v26777_v59, %s23546_s10 }
 0xd4a   : > { %11353 = vrot.lane.b32.xlu1 %v26775_v48, %s23546_s10 }
 0xd4f   : > { %11357 = vrot.lane.b32.xlu0 %v26781_v18, %s23546_s10  ;;  %v15241_v18 = vsel %vm14010_vm6, %v11350_v55, 0 }
 0xd50   : > { %v27509_v12 = vand.u32 4294901760, %v15241_v18 }
 0xd52   : > { %v27523_v24 = vsub.f32 %v15241_v18, %v27509_v12 }
 0xd54   : > { %v27533_v54 = vand.u32 4294901760, %v27523_v24 }
 0xd55   : > { %v13935_v53 = vpop.xlane.xlu1 %13934 }
 0xd56   : > { %22984 = vrcp.f32 %v13935_v53  ;;  %v15381_v49 = vsub.f32 %v27523_v24, %v27533_v54 }
 0xd57   : > { %v13932_v43 = vpop.xlane.xlu0 %13931 }
 0xd58   : > { %22986 = vrcp.f32 %v13932_v43 }
 0xd59   : > { %v13941_v52 = vpop.xlane.xlu1 %13940 }
 0xd5a   : > { %22988 = vrcp.f32 %v13941_v52 }
 0xd5b   : > { %v13938_v0 = vpop.xlane.xlu0 %13937 }
 0xd5c   : > { %22990 = vrcp.f32 %v13938_v0 }
 0xd63   : > { %v22985_v14 = vpop.eup %22984 }
 0xd64   : > { %v13987_v41 = vmul.f32 %v22985_v14, %v27318_v33 }
 0xd65   : > { %v22987_v26 = vpop.eup %22986 }
 0xd66   : > { %v14618_v59 = vsel %vm13821_vm7, %v13987_v41, 0  ;;  %v13986_v48 = vmul.f32 %v22987_v26, %v27322_v21 }
 0xd67   : > { %v22989_v8 = vpop.eup %22988  ;;  %v27499_v10 = vand.u32 4294901760, %v14618_v59 }
 0xd68   : > { %v14615_v28 = vsel %vm13821_vm7, %v13986_v48, 0  ;;  %v13989_v31 = vmul.f32 %v22989_v8, %v27326_v2 }
 0xd69   : > { %v22991_v38 = vpop.eup %22990  ;;  %v14707_v17 = vsub.f32 %v14618_v59, %v27499_v10  ;;  %v27505_v51 = vand.u32 4294901760, %v14615_v28 }
 0xd6a   : > { %v13988_v33 = vmul.f32 %v22991_v38, %v27330_v39  ;;  %v14624_v62 = vsel %vm13821_vm7, %v13989_v31, 0 }
 0xd6b   : > { %22177 = vmatprep.mubr.f32.mxu1 %v27505_v51  ;;  %v27512_v21 = vand.u32 4294901760, %v14624_v62  ;;  %v14697_v63 = vsub.f32 %v14615_v28, %v27505_v51  ;;  %v14708_v5 = vand.u32 4294901760, %v14707_v17 }
 0xd6c   : > { %22178 = vmatmul.mubr.f32.vlgmr.msra.gmra.mxu1 %v27499_v10  ;;  %v14621_v2 = vsel %vm13821_vm7, %v13988_v33, 0 }
 0xd6d   : > { %22196 = vmatpush3.msra.mxu1 %v27376_v42  ;;  %v27518_v47 = vand.u32 4294901760, %v14621_v2  ;;  %v14727_v39 = vsub.f32 %v14624_v62, %v27512_v21  ;;  %v14698_v45 = vand.u32 4294901760, %v14697_v63  ;;  %v14709_v9 = vsub.f32 %v14707_v17, %v14708_v5 }
 0xd6e   : > { %22197 = vmatprep.subr.mxu1 %v27391_v34 }
 0xd6f   : > { %22198 = vmatpush3.msra.mxu1 %v27391_v34  ;;  %22180 = vmatprep.mubr.f32.mxu1 %v27518_v47  ;;  %v14699_v3 = vsub.f32 %v14697_v63, %v14698_v45  ;;  %v14717_v25 = vsub.f32 %v14621_v2, %v27518_v47  ;;  %v14728_v13 = vand.u32 4294901760, %v14727_v39  ;;  %v14710_v32 = vand.u32 4294901760, %v14709_v9 }
 0xd70   : > { %22199 = vmatprep.subr.mxu1 %v27430_v1  ;;  %22181 = vmatmul.mubr.f32.gmra.mxu1 %v27512_v21 }
 0xd71   : > { %22200 = vmatpush3.msra.mxu1 %v27430_v1  ;;  %22201 = vmatprep.mubr.f32.mxu1 %v14698_v45  ;;  %v14700_v22 = vand.u32 4294901760, %v14699_v3  ;;  %v14718_v58 = vand.u32 4294901760, %v14717_v25  ;;  %v14729_v19 = vsub.f32 %v14727_v39, %v14728_v13 }
 0xd72   : > { %22219 = vmatprep.subr.mxu1 %v27376_v42 }
 0xd73   : > { %22165 = vmatprep.mubr.f32.mxu0 %v14700_v22  ;;  %v14719_v30 = vsub.f32 %v14717_v25, %v14718_v58  ;;  %v14730_v11 = vand.u32 4294901760, %v14729_v19 }
 0xd74   : > { %22166 = vmatmul.mubr.f32.vlgmr.msra.gmra.mxu0 %v14710_v32  ;;  %22202 = vmatmul.mubr.f32.vlgmr.msra.gmra.mxu1 %v14708_v5 }
 0xd75   : > { %22184 = vmatpush3.msra.mxu0 %v27394_v61  ;;  %22220 = vmatpush3.msra.mxu1 %v27376_v42  ;;  %v14720_v35 = vand.u32 4294901760, %v14719_v30  ;;  %v15382_v42 = vand.u32 4294901760, %v15381_v49 }
 0xd76   : > { %22185 = vmatprep.subr.mxu0 %v27405_v29  ;;  %22204 = vmatprep.mubr.f32.mxu1 %v14718_v58 }
 0xd77   : > { %22221 = vmatprep.subr.mxu1 %v27391_v34  ;;  %22186 = vmatpush3.msra.mxu0 %v27405_v29 }
 0xd78   : > { %22222 = vmatpush3.msra.mxu1 %v27391_v34  ;;  %22168 = vmatprep.mubr.f32.mxu0 %v14720_v35 }
 0xd79   : > { %22187 = vmatprep.subr.mxu0 %v27437_v7  ;;  %22223 = vmatprep.subr.mxu1 %v27430_v1 }
 0xd7a   : > { %22169 = vmatmul.mubr.f32.gmra.mxu0 %v14730_v11  ;;  %22205 = vmatmul.mubr.f32.gmra.mxu1 %v14728_v13 }
 0xd7b   : > { %22188 = vmatpush3.msra.mxu0 %v27437_v7  ;;  %22224 = vmatpush3.msra.mxu1 %v27430_v1 }
 0xd7c   : > { %22189 = vmatprep.mubr.f32.mxu0 %v14697_v63  ;;  %22207 = vmatprep.subr.mxu0 %v27409_v27  ;;  %v13947_v61 = vpop.xlane.xlu0 %13946 }
 0xd7d   : > { %22225 = vmatprep.mubr.f32.mxu1 %v27505_v51  ;;  %22243 = vmatprep.subr.mxu1 %v15382_v42  ;;  %22992 = vrcp.f32 %v13947_v61 }
 0xd7e   : > { %22190 = vmatmul.mubr.f32.vlgmr.msra.gmra.mxu0 %v14707_v17  ;;  %22226 = vmatmul.mubr.f32.vlgmr.msra.gmra.mxu1 %v27499_v10 }
 0xd7f   : > { %22208 = vmatpush3.msra.mxu0 %v27409_v27  ;;  %22244 = vmatpush3.msra.mxu1 %v15382_v42 }
 0xd80   : > { %22192 = vmatprep.mubr.f32.mxu0 %v14717_v25  ;;  %22209 = vmatprep.subr.mxu0 %v27422_v23  ;;  %v13944_v34 = vpop.xlane.xlu0 %13943 }
 0xd81   : > { %22228 = vmatprep.mubr.f32.mxu1 %v27518_v47  ;;  %22994 = vrcp.f32 %v13944_v34  ;;  %22210 = vmatpush3.msra.mxu0 %v27422_v23 }
 0xd82   : > { %v13950_v29 = vpop.xlane.xlu1 %13949  ;;  %22211 = vmatprep.subr.mxu0 %v27443_v36  ;;  %22193 = vmatmul.mubr.f32.gmra.mxu0 %v14727_v39 }
 0xd83   : > { %22996 = vrcp.f32 %v13950_v29  ;;  %22212 = vmatpush3.msra.mxu0 %v27443_v36  ;;  %22229 = vmatmul.mubr.f32.gmra.mxu1 %v27512_v21 }
 0xd84   : > { %22213 = vmatprep.mubr.f32.mxu0 %v27505_v51  ;;  %22231 = vmatprep.subr.mxu0 %v27509_v12  ;;  %v13953_v27 = vpop.xlane.xlu0 %13952 }
 0xd85   : > { %22998 = vrcp.f32 %v13953_v27 }
 0xd86   : > { %v11346_v1 = vpop.permute.xlu1 %11345  ;;  %22214 = vmatmul.mubr.f32.vlgmr.msra.gmra.mxu0 %v27499_v10 }
 0xd87   : > { %v27560_v7 = vand.u32 4294901760, %v11346_v1  ;;  %22232 = vmatpush3.msra.mxu0 %v27509_v12  ;;  %22216 = vmatprep.mubr.f32.mxu0 %v27518_v47 }
 0xd88   : > { %v11348_v23 = vpop.permute.xlu0 %11347 }
 0xd89   : > { %v27565_v36 = vsub.f32 %v11346_v1, %v27560_v7  ;;  %v27567_v16 = vand.u32 4294901760, %v11348_v23 }
 0xd8a   : > { %v22993_v4 = vpop.eup %22992  ;;  %22217 = vmatmul.mubr.f32.gmra.mxu0 %v27512_v21 }
 0xd8b   : > { %v13991_v55 = vmul.f32 %v22993_v4, %v27338_v57  ;;  %v15386_v53 = vsub.f32 %v11348_v23, %v27567_v16  ;;  %22233 = vmatprep.subr.mxu0 %v27567_v16  ;;  %v27574_v43 = vand.u32 4294901760, %v27565_v36 }
 0xd8c   : > { %22234 = vmatpush3.msra.mxu0 %v27567_v16 }
 0xd8d   : > { %v15233_v52 = vsel %vm13821_vm7, %v13991_v55, 0  ;;  %22235 = vmatprep.subr.mxu0 %v27560_v7  ;;  %v27579_v0 = vand.u32 4294901760, %v15386_v53  ;;  %v15395_v59 = vsub.f32 %v27565_v36, %v27574_v43 }
 0xd8e   : > { %v22995_v14 = vpop.eup %22994  ;;  %v27581_v41 = vand.u32 4294901760, %v15233_v52  ;;  %22236 = vmatpush3.msra.mxu0 %v27560_v7 }
 0xd8f   : > { %22255 = vmatprep.subr.mxu0 %v27523_v24  ;;  %v15388_v57 = vsub.f32 %v15386_v53, %v27579_v0  ;;  %v13990_v26 = vmul.f32 %v22995_v14, %v27342_v40  ;;  %v15396_v17 = vand.u32 4294901760, %v15395_v59 }
 0xd90   : > { %v22997_v48 = vpop.eup %22996  ;;  %v15322_v8 = vsub.f32 %v15233_v52, %v27581_v41 }
 0xd91   : > { %v15389_v10 = vand.u32 4294901760, %v15388_v57  ;;  %v15230_v18 = vsel %vm13821_vm7, %v13990_v26, 0  ;;  %v13992_v28 = vmul.f32 %v22997_v48, %v27348_v44 }
 0xd92   : > { %v22999_v31 = vpop.eup %22998  ;;  %v27592_v38 = vand.u32 4294901760, %v15230_v18  ;;  %v15323_v33 = vand.u32 4294901760, %v15322_v8 }
 0xd93   : > { %22245 = vmatprep.subr.mxu1 %v15389_v10  ;;  %v15236_v51 = vsel %vm13821_vm7, %v13992_v28, 0  ;;  %v13993_v40 = vmul.f32 %v22999_v31, %v27344_v60 }
 0xd94   : > { %22246 = vmatpush3.msra.mxu1 %v15389_v10  ;;  %22249 = vmatprep.mubr.f32.mxu1 %v27592_v38  ;;  %v15331_v62 = vand.u32 4294901760, %v15236_v51  ;;  %v15312_v21 = vsub.f32 %v15230_v18, %v27592_v38  ;;  %v15324_v47 = vsub.f32 %v15322_v8, %v15323_v33 }
 0xd95   : > { %22247 = vmatprep.subr.mxu1 %v15396_v17  ;;  %v15239_v63 = vsel %vm13821_vm7, %v13993_v40, 0 }
 0xd96   : > { %22248 = vmatpush3.msra.mxu1 %v15396_v17  ;;  %v15341_v44 = vand.u32 4294901760, %v15239_v63  ;;  %v15313_v5 = vand.u32 4294901760, %v15312_v21  ;;  %v15332_v2 = vsub.f32 %v15236_v51, %v15331_v62  ;;  %v15325_v13 = vand.u32 4294901760, %v15324_v47 }
 0xd97   : > { %22250 = vmatmul.mubr.f32.vlgmr.msra.gmra.mxu1 %v27581_v41  ;;  %22267 = vmatprep.subr.mxu1 %v27509_v12 }
 0xd98   : > { %22252 = vmatprep.mubr.f32.mxu1 %v15331_v62  ;;  %22268 = vmatpush3.msra.mxu1 %v27509_v12  ;;  %v15342_v60 = vsub.f32 %v15239_v63, %v15341_v44  ;;  %v15314_v39 = vsub.f32 %v15312_v21, %v15313_v5  ;;  %v15333_v45 = vand.u32 4294901760, %v15332_v2 }
 0xd99   : > { %22269 = vmatprep.subr.mxu1 %v27567_v16 }
 0xd9a   : > { %22270 = vmatpush3.msra.mxu1 %v27567_v16  ;;  %v15315_v9 = vand.u32 4294901760, %v15314_v39  ;;  %v15334_v3 = vsub.f32 %v15332_v2, %v15333_v45  ;;  %v15343_v25 = vand.u32 4294901760, %v15342_v60 }
 0xd9b   : > { %22253 = vmatmul.mubr.f32.gmra.mxu1 %v15341_v44  ;;  %22271 = vmatprep.subr.mxu1 %v27560_v7 }
 0xd9c   : > { %22237 = vmatprep.mubr.f32.mxu0 %v15315_v9  ;;  %22272 = vmatpush3.msra.mxu1 %v27560_v7  ;;  %v15335_v22 = vand.u32 4294901760, %v15334_v3  ;;  %v15344_v58 = vsub.f32 %v15342_v60, %v15343_v25 }
 0xd9d   : > { %22273 = vmatprep.mubr.f32.mxu1 %v15313_v5  ;;  %22238 = vmatmul.mubr.f32.vlgmr.msra.gmra.mxu0 %v15325_v13 }
 0xd9e   : > { %22256 = vmatpush3.msra.mxu0 %v27523_v24  ;;  %22291 = vmatprep.subr.mxu1 %v27509_v12  ;;  %v15345_v32 = vand.u32 4294901760, %v15344_v58 }
 0xd9f   : > { %22240 = vmatprep.mubr.f32.mxu0 %v15335_v22  ;;  %22257 = vmatprep.subr.mxu0 %v15386_v53 }
 0xda0   : > { %22258 = vmatpush3.msra.mxu0 %v15386_v53  ;;  %22274 = vmatmul.mubr.f32.vlgmr.msra.gmra.mxu1 %v15323_v33 }
 0xda1   : > { %22292 = vmatpush3.msra.mxu1 %v27509_v12  ;;  %22259 = vmatprep.subr.mxu0 %v27565_v36 }
 0xda2   : > { %22276 = vmatprep.mubr.f32.mxu1 %v15333_v45  ;;  %22293 = vmatprep.subr.mxu1 %v27567_v16 }
 0xda3   : > { %22241 = vmatmul.mubr.f32.gmra.mxu0 %v15345_v32  ;;  %22294 = vmatpush3.msra.mxu1 %v27567_v16 }
 0xda4   : > { %22260 = vmatpush3.msra.mxu0 %v27565_v36  ;;  %22261 = vmatprep.mubr.f32.mxu0 %v15312_v21 }
 0xda5   : > { %22279 = vmatprep.subr.mxu0 %v27533_v54  ;;  %22295 = vmatprep.subr.mxu1 %v27560_v7 }
 0xda6   : > { %22277 = vmatmul.mubr.f32.gmra.mxu1 %v15343_v25 }
 0xda7   : > { %22296 = vmatpush3.msra.mxu1 %v27560_v7  ;;  %22297 = vmatprep.mubr.f32.mxu1 %v27592_v38 }
 0xda8   : > { %22262 = vmatmul.mubr.f32.vlgmr.msra.gmra.mxu0 %v15322_v8 }
 0xda9   : > { %22280 = vmatpush3.msra.mxu0 %v27533_v54  ;;  %22264 = vmatprep.mubr.f32.mxu0 %v15332_v2 }
 0xdaa   : > { %22281 = vmatprep.subr.mxu0 %v27579_v0  ;;  %22298 = vmatmul.mubr.f32.vlgmr.msra.gmra.mxu1 %v27581_v41 }
 0xdab   : > { %22282 = vmatpush3.msra.mxu0 %v27579_v0  ;;  %22300 = vmatprep.mubr.f32.mxu1 %v15331_v62 }
 0xdac   : > { %22283 = vmatprep.subr.mxu0 %v27574_v43  ;;  %22265 = vmatmul.mubr.f32.gmra.mxu0 %v15342_v60 }
 0xdad   : > { %22284 = vmatpush3.msra.mxu0 %v27574_v43  ;;  %22285 = vmatprep.mubr.f32.mxu0 %v27592_v38 }
 0xdae   : > { %22301 = vmatmul.mubr.f32.gmra.mxu1 %v15341_v44 }
 0xdb0   : > { %22286 = vmatmul.mubr.f32.vlgmr.msra.gmra.mxu0 %v27581_v41 }
 0xdb1   : > { %22288 = vmatprep.mubr.f32.mxu0 %v15331_v62 }
 0xdb4   : > { %22289 = vmatmul.mubr.f32.gmra.mxu0 %v15341_v44 }
 0xdba   : > { %v13959_v12 = vpop.xlane.xlu1 %13958 }
 0xdbb   : > { %23000 = vrcp.f32 %v13959_v12 }
 0xdbe   : > { %v13956_v24 = vpop.xlane.xlu0 %13955  ;;  %v13965_v30 = vpop.xlane.xlu1 %13964 }
 0xdbf   : > { %23002 = vrcp.f32 %v13956_v24  ;;  %v22107_v54 = vpop.f32.mrf.mxu1 }
 0xdc0   : > { %23004 = vrcp.f32 %v13965_v30 }
 0xdc1   : > { %v14203_v19 = vpop.f32.mrf.mxu1 }
 0xdc2   : > { %v13962_v35 = vpop.xlane.xlu0 %13961  ;;  %v11356_v49 = vpop.permute.xlu1 %11355 }
 0xdc3   : > { %23006 = vrcp.f32 %v13962_v35  ;;  %v27625_v11 = vand.u32 4294901760, %v11356_v49  ;;  %v22110_v42 = vpop.f32.mrf.mxu1 }
 0xdc5   : > { %v27628_v61 = vsub.f32 %v11356_v49, %v27625_v11  ;;  %v14215_v34 = vpop.f32.mrf.mxu1 }
 0xdc6   : > { %v11358_v29 = vpop.permute.xlu0 %11357  ;;  %v11354_v27 = vpop.permute.xlu1 %11353 }
 0xdc7   : > { %v15856_v1 = vsel %vm14010_vm6, %v11358_v29, 0  ;;  %v27631_v7 = vand.u32 4294901760, %v11354_v27  ;;  %v22095_v23 = vpop.f32.mrf.mxu0  ;;  %v22131_v43 = vpop.f32.mrf.mxu1  ;;  %v27640_v0 = vand.u32 4294901760, %v27628_v61 }
 0xdc8   : > { %v23001_v36 = vpop.eup %23000  ;;  %v27633_v16 = vand.u32 4294901760, %v15856_v1  ;;  %v14210_v4 = vadd.f32 %v22107_v54, %v22095_v23 }
 0xdc9   : > { %v13995_v55 = vmul.f32 %v23001_v36, %v27474_v56  ;;  %v27637_v53 = vsub.f32 %v11354_v27, %v27631_v7  ;;  %v14087_v52 = vpop.f32.mrf.mxu0  ;;  %v14396_v10 = vpop.f32.mrf.mxu1  ;;  %v16003_v31 = vsub.f32 %v27628_v61, %v27640_v0 }
 0xdca   : > { %v27643_v14 = vsub.f32 %v15856_v1, %v27633_v16  ;;  %22303 = vmatprep.subr.mxu0 %v27633_v16  ;;  %v14204_v41 = vadd.f32 %v14203_v19, %v14087_v52 }
 0xdcb   : > { %v15848_v57 = vsel %vm13821_vm7, %v13995_v55, 0  ;;  %22304 = vmatpush3.msra.mxu0 %v27633_v16  ;;  %v27649_v56 = vand.u32 4294901760, %v27637_v53  ;;  %v16004_v9 = vand.u32 4294901760, %v16003_v31 }
 0xdcc   : > { %v23003_v26 = vpop.eup %23002  ;;  %v27651_v59 = vand.u32 4294901760, %v15848_v57  ;;  %22305 = vmatprep.subr.mxu0 %v27625_v11  ;;  %v27655_v48 = vand.u32 4294901760, %v27643_v14 }
 0xdcd   : > { %v23005_v8 = vpop.eup %23004  ;;  %22306 = vmatpush3.msra.mxu0 %v27625_v11  ;;  %v22098_v18 = vpop.f32.mrf.mxu0  ;;  %v13994_v28 = vmul.f32 %v23003_v26, %v27476_v46  ;;  %v16010_v46 = vsub.f32 %v27637_v53, %v27649_v56 }
 0xdce   : > { %v27662_v38 = vsub.f32 %v15848_v57, %v27651_v59  ;;  %22307 = vmatprep.subr.mxu0 %v27631_v7  ;;  %v14222_v17 = vadd.f32 %v22110_v42, %v22098_v18  ;;  %v15996_v51 = vsub.f32 %v27643_v14, %v27655_v48  ;;  %v13997_v40 = vmul.f32 %v23005_v8, %v27480_v20  ;;  %v22134_v2 = vpop.f32.mrf.mxu1 }
 0xdcf   : > { %22308 = vmatpush3.msra.mxu0 %v27631_v7  ;;  %v14107_v33 = vpop.f32.mrf.mxu0  ;;  %v15845_v62 = vsel %vm13821_vm7, %v13994_v28, 0  ;;  %v16011_v22 = vand.u32 4294901760, %v16010_v46 }
 0xdd0   : > { %v23007_v21 = vpop.eup %23006  ;;  %22327 = vmatprep.subr.mxu0 %v27643_v14  ;;  %v14216_v63 = vadd.f32 %v14215_v34, %v14107_v33  ;;  %v15997_v44 = vand.u32 4294901760, %v15996_v51  ;;  %v27673_v5 = vand.u32 4294901760, %v15845_v62  ;;  %v15938_v20 = vand.u32 4294901760, %v27662_v38  ;;  %v14412_v30 = vpop.f32.mrf.mxu1 }
 0xdd1   : > { %v22119_v47 = vpop.f32.mrf.mxu0  ;;  %v13996_v60 = vmul.f32 %v23007_v21, %v27486_v37  ;;  %v15854_v39 = vsel %vm13821_vm7, %v13997_v40, 0 }
 0xdd2   : > { %22315 = vmatprep.subr.mxu1 %v15997_v44  ;;  %22321 = vmatprep.mubr.f32.mxu1 %v27673_v5  ;;  %v14307_v45 = vadd.f32 %v22119_v47, %v14210_v4  ;;  %v27680_v3 = vsub.f32 %v15845_v62, %v27673_v5  ;;  %v27682_v25 = vand.u32 4294901760, %v15854_v39  ;;  %v15939_v54 = vsub.f32 %v27662_v38, %v15938_v20  ;;  %v22155_v36 = vpop.f32.mrf.mxu1 }
 0xdd3   : > { %22316 = vmatpush3.msra.mxu1 %v15997_v44  ;;  %v14299_v13 = vpop.f32.mrf.mxu0  ;;  %v15851_v58 = vsel %vm13821_vm7, %v13996_v60, 0 }
 0xdd4   : > { %22317 = vmatprep.subr.mxu1 %v16004_v9  ;;  %v14300_v37 = vadd.f32 %v14299_v13, %v14204_v41  ;;  %v27685_v32 = vand.u32 4294901760, %v15851_v58  ;;  %v15928_v12 = vand.u32 4294901760, %v27680_v3  ;;  %v14405_v24 = vadd.f32 %v22131_v43, %v14307_v45  ;;  %v14592_v28 = vpop.f32.mrf.mxu1 }
 0xdd5   : > { %22318 = vmatpush3.msra.mxu1 %v16004_v9  ;;  %v27692_v19 = vsub.f32 %v15854_v39, %v27682_v25  ;;  %v15940_v55 = vand.u32 4294901760, %v15939_v54 }
 0xdd6   : > { %22319 = vmatprep.subr.mxu1 %v16011_v22  ;;  %v15929_v35 = vsub.f32 %v27680_v3, %v15928_v12  ;;  %v14397_v49 = vadd.f32 %v14396_v10, %v14300_v37  ;;  %v15947_v42 = vsub.f32 %v15851_v58, %v27685_v32 }
 0xdd7   : > { %v22122_v34 = vpop.f32.mrf.mxu0  ;;  %22320 = vmatpush3.msra.mxu1 %v16011_v22  ;;  %v15958_v29 = vand.u32 4294901760, %v27692_v19 }
 0xdd8   : > { %v14321_v27 = vadd.f32 %v22122_v34, %v14222_v17  ;;  %22322 = vmatmul.mubr.f32.vlgmr.msra.gmra.mxu1 %v27651_v59  ;;  %22339 = vmatprep.subr.mxu1 %v27633_v16  ;;  %v15930_v1 = vand.u32 4294901760, %v15929_v35  ;;  %v15948_v23 = vand.u32 4294901760, %v15947_v42  ;;  %v22158_v46 = vpop.f32.mrf.mxu1 }
 0xdd9   : > { %v14313_v4 = vpop.f32.mrf.mxu0  ;;  %22324 = vmatprep.mubr.f32.mxu1 %v27685_v32  ;;  %22340 = vmatpush3.msra.mxu1 %v27633_v16  ;;  %v15959_v26 = vsub.f32 %v27692_v19, %v15958_v29 }
 0xdda   : > { %v14314_v43 = vadd.f32 %v14313_v4, %v14216_v63  ;;  %22309 = vmatprep.mubr.f32.mxu0 %v15930_v1  ;;  %22341 = vmatprep.subr.mxu1 %v27625_v11  ;;  %v15949_v52 = vsub.f32 %v15947_v42, %v15948_v23  ;;  %v14421_v41 = vadd.f32 %v22134_v2, %v14321_v27 }
 0xddb   : > { %v22143_v57 = vpop.f32.mrf.mxu0  ;;  %22310 = vmatmul.mubr.f32.vlgmr.msra.gmra.mxu0 %v15940_v55  ;;  %22342 = vmatpush3.msra.mxu1 %v27625_v11  ;;  %v15960_v40 = vand.u32 4294901760, %v15959_v26 }
 0xddc   : > { %v14507_v8 = vadd.f32 %v22143_v57, %v14405_v24  ;;  %22328 = vmatpush3.msra.mxu0 %v27643_v14  ;;  %22325 = vmatmul.mubr.f32.gmra.mxu1 %v27682_v25  ;;  %v15950_v10 = vand.u32 4294901760, %v15949_v52  ;;  %v27706_v18 = vadd.f32 %v14412_v30, %v14314_v43 }
 0xddd   : > { %22329 = vmatprep.subr.mxu0 %v27628_v61  ;;  %22343 = vmatprep.subr.mxu1 %v27631_v7  ;;  %v14500_v31 = vpop.f32.mrf.mxu0 }
 0xdde   : > { %v27710_v17 = vadd.f32 %v22155_v36, %v14507_v8  ;;  %v14501_v51 = vadd.f32 %v14500_v31, %v14397_v49  ;;  %22330 = vmatpush3.msra.mxu0 %v27628_v61  ;;  %22344 = vmatpush3.msra.mxu1 %v27631_v7 }
 0xddf   : > { %22345 = vmatprep.mubr.f32.mxu1 %v15928_v12  ;;  %22312 = vmatprep.mubr.f32.mxu0 %v15950_v10  ;;  %v22146_v14 = vpop.f32.mrf.mxu0 }
 0xde0   : > { %v27714_v33 = vadd.f32 %v14592_v28, %v14501_v51  ;;  %22331 = vmatprep.subr.mxu0 %v27637_v53  ;;  %22363 = vmatprep.subr.mxu1 %v27633_v16  ;;  %v14519_v62 = vadd.f32 %v22146_v14, %v14421_v41 }
 0xde1   : > { %22313 = vmatmul.mubr.f32.gmra.mxu0 %v15960_v40  ;;  %22346 = vmatmul.mubr.f32.vlgmr.msra.gmra.mxu1 %v15938_v20 }
 0xde2   : > { %v27720_v21 = vadd.f32 %v22158_v46, %v14519_v62  ;;  %22332 = vmatpush3.msra.mxu0 %v27637_v53  ;;  %22333 = vmatprep.mubr.f32.mxu0 %v27680_v3  ;;  %v27747_v53 = vpop.f32.mrf.mxu0 }
 0xde3   : > { %22351 = vmatprep.subr.mxu0 %v27655_v48  ;;  %22364 = vmatpush3.msra.mxu1 %v27633_v16 }
 0xde4   : > { %22348 = vmatprep.mubr.f32.mxu1 %v15948_v23  ;;  %22365 = vmatprep.subr.mxu1 %v27625_v11 }
 0xde5   : > { %22366 = vmatpush3.msra.mxu1 %v27625_v11  ;;  %22334 = vmatmul.mubr.f32.vlgmr.msra.gmra.mxu0 %v27662_v38  ;;  %v27745_v11 = vpop.f32.mrf.mxu1 }
 0xde6   : > { %22352 = vmatpush3.msra.mxu0 %v27655_v48  ;;  %22367 = vmatprep.subr.mxu1 %v27631_v7 }
 0xde7   : > { %22336 = vmatprep.mubr.f32.mxu0 %v15947_v42  ;;  %22349 = vmatmul.mubr.f32.gmra.mxu1 %v15958_v29 }
 0xde8   : > { %22353 = vmatprep.subr.mxu0 %v27640_v0  ;;  %22368 = vmatpush3.msra.mxu1 %v27631_v7 }
 0xde9   : > { %22354 = vmatpush3.msra.mxu0 %v27640_v0  ;;  %22369 = vmatprep.mubr.f32.mxu1 %v27673_v5 }
 0xdea   : > { %22355 = vmatprep.subr.mxu0 %v27649_v56  ;;  %22337 = vmatmul.mubr.f32.gmra.mxu0 %v27692_v19 }
 0xdeb   : > { %22356 = vmatpush3.msra.mxu0 %v27649_v56  ;;  %22357 = vmatprep.mubr.f32.mxu0 %v27673_v5 }
 0xdec   : > { %22370 = vmatmul.mubr.f32.vlgmr.msra.gmra.mxu1 %v27651_v59 }
 0xded   : > { %22372 = vmatprep.mubr.f32.mxu1 %v27685_v32 }
 0xdee   : > { %22358 = vmatmul.mubr.f32.vlgmr.msra.gmra.mxu0 %v27651_v59 }
 0xdef   : > { %22360 = vmatprep.mubr.f32.mxu0 %v27685_v32 }
 0xdf0   : > { %22373 = vmatmul.mubr.f32.gmra.mxu1 %v27682_v25 }
 0xdf2   : > { %22361 = vmatmul.mubr.f32.gmra.mxu0 %v27682_v25 }
 0xe2c   : > { %v22179_v61 = vpop.f32.mrf.mxu1 }
 0xe2e   : > { %v14818_v7 = vpop.f32.mrf.mxu1 }
 0xe30   : > { %v22182_v16 = vpop.f32.mrf.mxu1 }
 0xe32   : > { %v14830_v0 = vpop.f32.mrf.mxu1 }
 0xe34   : > { %v22167_v56 = vpop.f32.mrf.mxu0  ;;  %v22203_v48 = vpop.f32.mrf.mxu1 }
 0xe35   : > { %v14825_v60 = vadd.f32 %v22179_v61, %v22167_v56 }
 0xe36   : > { %v14702_v38 = vpop.f32.mrf.mxu0  ;;  %v15011_v63 = vpop.f32.mrf.mxu1 }
 0xe37   : > { %v14819_v39 = vadd.f32 %v14818_v7, %v14702_v38 }
 0xe3a   : > { %v22170_v44 = vpop.f32.mrf.mxu0  ;;  %v22206_v59 = vpop.f32.mrf.mxu1 }
 0xe3b   : > { %v14837_v22 = vadd.f32 %v22182_v16, %v22170_v44 }
 0xe3c   : > { %v14722_v5 = vpop.f32.mrf.mxu0  ;;  %v15027_v2 = vpop.f32.mrf.mxu1 }
 0xe3d   : > { %v14831_v58 = vadd.f32 %v14830_v0, %v14722_v5 }
 0xe3e   : > { %v22191_v47 = vpop.f32.mrf.mxu0  ;;  %v22227_v9 = vpop.f32.mrf.mxu1 }
 0xe3f   : > { %v14922_v45 = vadd.f32 %v22191_v47, %v14825_v60 }
 0xe40   : > { %v14914_v20 = vpop.f32.mrf.mxu0  ;;  %v15207_v32 = vpop.f32.mrf.mxu1 }
 0xe41   : > { %v14915_v25 = vadd.f32 %v14914_v20, %v14819_v39  ;;  %v15020_v37 = vadd.f32 %v22203_v48, %v14922_v45 }
 0xe42   : > { %v22194_v3 = vpop.f32.mrf.mxu0 }
 0xe43   : > { %v14936_v24 = vadd.f32 %v22194_v3, %v14837_v22  ;;  %v15012_v19 = vadd.f32 %v15011_v63, %v14915_v25  ;;  %v22230_v34 = vpop.f32.mrf.mxu1 }
 0xe44   : > { %v14928_v13 = vpop.f32.mrf.mxu0 }
 0xe45   : > { %v14929_v30 = vadd.f32 %v14928_v13, %v14831_v58  ;;  %v15036_v27 = vadd.f32 %v22206_v59, %v14936_v24  ;;  %v15219_v43 = vpop.f32.mrf.mxu1 }
 0xe46   : > { %v22215_v12 = vpop.f32.mrf.mxu0 }
 0xe47   : > { %v15122_v54 = vadd.f32 %v22215_v12, %v15020_v37  ;;  %v15028_v1 = vadd.f32 %v15027_v2, %v14929_v30  ;;  %v16522_v2 = vld [vmem:[%s24221_s18 + $0x18] sm:$0xff] }
 0xe48   : > { %v15115_v35 = vpop.f32.mrf.mxu0  ;;  %v27754_v39 = vand.u32 4294901760, %v16522_v2 }
 0xe49   : > { %v15214_v49 = vadd.f32 %v22227_v9, %v15122_v54  ;;  %v15116_v42 = vadd.f32 %v15115_v35, %v15012_v19 }
 0xe4a   : > { %v22218_v29 = vpop.f32.mrf.mxu0  ;;  %v27757_v22 = vsub.f32 %v16522_v2, %v27754_v39  ;;  %22375 = vmatprep.subr.mxu0 %v27754_v39 }
 0xe4b   : > { %16465 = vrot.lane.b32.xlu1 %v15214_v49, %s23547_s29  ;;  %v15208_v36 = vadd.f32 %v15207_v32, %v15116_v42  ;;  %v15134_v4 = vadd.f32 %v22218_v29, %v15036_v27  ;;  %22376 = vmatpush3.msra.mxu0 %v27754_v39 }
 0xe4c   : > { %v15127_v23 = vpop.f32.mrf.mxu0  ;;  %v27762_v24 = vand.u32 4294901760, %v27757_v22 }
 0xe4d   : > { %v15128_v55 = vadd.f32 %v15127_v23, %v15028_v1  ;;  %v15226_v41 = vadd.f32 %v22230_v34, %v15134_v4 }
 0xe4e   : > { %v16679_v42 = vsub.f32 %v27757_v22, %v27762_v24 }
 0xe4f   : > { %v15220_v52 = vadd.f32 %v15219_v43, %v15128_v55  ;;  %16463 = vrot.lane.b32.xlu1 %v15208_v36, %s23547_s29 }
 0xe50   : > { %v16680_v1 = vand.u32 4294901760, %v16679_v42 }
 0xe51   : > { %16467 = vrot.lane.b32.xlu0 %v15220_v52, %s23547_s29 }
 0xe52   : > { %22389 = vmatprep.subr.mxu1 %v16680_v1 }
 0xe53   : > { %16469 = vrot.lane.b32.xlu1 %v15226_v41, %s23547_s29  ;;  %22390 = vmatpush3.msra.mxu1 %v16680_v1 }
 0xe57   : > { %v22251_v57 = vpop.f32.mrf.mxu1 }
 0xe59   : > { %v15433_v26 = vpop.f32.mrf.mxu1 }
 0xe5b   : > { %v22254_v8 = vpop.f32.mrf.mxu1 }
 0xe5d   : > { %v22239_v10 = vpop.f32.mrf.mxu0  ;;  %v15445_v28 = vpop.f32.mrf.mxu1 }
 0xe5e   : > { %v15440_v16 = vadd.f32 %v22251_v57, %v22239_v10  ;;  %v16521_v57 = vld [vmem:[%s24221_s18 + $0x10] sm:$0xff]  ;;  %v16520_v10 = vld [vmem:[%s24221_s18 + $0x8] sm:$0xff] }
 0xe5f   : > { %v15317_v31 = vpop.f32.mrf.mxu0 }
 0xe60   : > { %v22275_v51 = vpop.f32.mrf.mxu1  ;;  %v15434_v56 = vadd.f32 %v15433_v26, %v15317_v31  ;;  %v27777_v31 = vand.u32 4294901760, %v16520_v10 }
 0xe62   : > { %v15626_v14 = vpop.f32.mrf.mxu1 }
 0xe63   : > { %v22242_v40 = vpop.f32.mrf.mxu0 }
 0xe64   : > { %v15452_v44 = vadd.f32 %v22254_v8, %v22242_v40  ;;  %v27771_v8 = vand.u32 4294901760, %v16521_v57  ;;  %v16519_v40 = vld [vmem:[%s24221_s18] sm:$0xff]  ;;  %s28674_s18 = scalar_lea.vmem [#allocation13], %s24153_s13 }
 0xe65   : > { %v15337_v62 = vpop.f32.mrf.mxu0 }
 0xe66   : > { %v22278_v46 = vpop.f32.mrf.mxu1  ;;  %v15446_v47 = vadd.f32 %v15445_v28, %v15337_v62  ;;  %v27775_v28 = vsub.f32 %v16521_v57, %v27771_v8  ;;  %22377 = vmatprep.subr.mxu0 %v27771_v8 }
 0xe67   : > { %22378 = vmatpush3.msra.mxu0 %v27771_v8 }
 0xe68   : > { %v22263_v61 = vpop.f32.mrf.mxu0  ;;  %v15642_v7 = vpop.f32.mrf.mxu1  ;;  %v27783_v62 = vand.u32 4294901760, %v27775_v28  ;;  %22379 = vmatprep.subr.mxu0 %v27777_v31 }
 0xe69   : > { %v15537_v48 = vadd.f32 %v22263_v61, %v15440_v16  ;;  %v27788_v61 = vand.u32 4294901760, %v16519_v40  ;;  %22380 = vmatpush3.msra.mxu0 %v27777_v31 }
 0xe6a   : > { %v15529_v0 = vpop.f32.mrf.mxu0  ;;  %v22299_v38 = vpop.f32.mrf.mxu1 }
 0xe6b   : > { %v15530_v59 = vadd.f32 %v15529_v0, %v15434_v56  ;;  %v15635_v20 = vadd.f32 %v22275_v51, %v15537_v48  ;;  %v16686_v0 = vsub.f32 %v27775_v28, %v27783_v62  ;;  %v27798_v48 = vsub.f32 %v16519_v40, %v27788_v61  ;;  %22381 = vmatprep.subr.mxu0 %v27788_v61 }
 0xe6c   : > { %v22266_v63 = vpop.f32.mrf.mxu0  ;;  %v15822_v45 = vpop.f32.mrf.mxu1  ;;  %22382 = vmatpush3.msra.mxu0 %v27788_v61 }
 0xe6d   : > { %v15551_v60 = vadd.f32 %v22266_v63, %v15452_v44  ;;  %v15627_v13 = vadd.f32 %v15626_v14, %v15530_v59  ;;  %v16687_v63 = vand.u32 4294901760, %v16686_v0  ;;  %v27805_v59 = vand.u32 4294901760, %v27798_v48  ;;  %22403 = vmatprep.subr.mxu0 %v27757_v22 }
 0xe6e   : > { %v15543_v5 = vpop.f32.mrf.mxu0  ;;  %v22302_v30 = vpop.f32.mrf.mxu1 }
 0xe6f   : > { %v15544_v3 = vadd.f32 %v15543_v5, %v15446_v47  ;;  %v15651_v12 = vadd.f32 %v22278_v46, %v15551_v60  ;;  %v27786_v46 = vsub.f32 %v16520_v10, %v27777_v31  ;;  %22391 = vmatprep.subr.mxu1 %v16687_v63 }
 0xe70   : > { %v22287_v9 = vpop.f32.mrf.mxu0  ;;  %v15834_v23 = vpop.f32.mrf.mxu1  ;;  %22392 = vmatpush3.msra.mxu1 %v16687_v63 }
 0xe71   : > { %v15737_v25 = vadd.f32 %v22287_v9, %v15635_v20  ;;  %v15643_v49 = vadd.f32 %v15642_v7, %v15544_v3  ;;  %v27795_v56 = vand.u32 4294901760, %v27786_v46  ;;  %v16700_v20 = vsub.f32 %v27798_v48, %v27805_v59 }
 0xe72   : > { %v15730_v58 = vpop.f32.mrf.mxu0 }
 0xe73   : > { %v15829_v37 = vadd.f32 %v22299_v38, %v15737_v25  ;;  %v15731_v32 = vadd.f32 %v15730_v58, %v15627_v13  ;;  %v16693_v44 = vsub.f32 %v27786_v46, %v27795_v56  ;;  %v16701_v13 = vand.u32 4294901760, %v16700_v20 }
 0xe74   : > { %v22290_v54 = vpop.f32.mrf.mxu0 }
 0xe75   : > { %v15823_v19 = vadd.f32 %v15822_v45, %v15731_v32  ;;  %v15749_v35 = vadd.f32 %v22290_v54, %v15651_v12  ;;  %16481 = vrot.lane.b32.xlu1 %v15829_v37, %s23548_s0  ;;  %v16694_v60 = vand.u32 4294901760, %v16693_v44 }
 0xe76   : > { %v15742_v34 = vpop.f32.mrf.mxu0 }
 0xe77   : > { %v15841_v29 = vadd.f32 %v22302_v30, %v15749_v35  ;;  %v15743_v27 = vadd.f32 %v15742_v34, %v15643_v49  ;;  %16479 = vrot.lane.b32.xlu0 %v15823_v19, %s23548_s0  ;;  %22393 = vmatprep.subr.mxu1 %v16694_v60 }
 0xe78   : > { %22394 = vmatpush3.msra.mxu1 %v16694_v60 }
 0xe79   : > { %v15835_v36 = vadd.f32 %v15834_v23, %v15743_v27  ;;  %16485 = vrot.lane.b32.xlu1 %v15841_v29, %s23548_s0  ;;  %22395 = vmatprep.subr.mxu1 %v16701_v13 }
 0xe7a   : > { %22396 = vmatpush3.msra.mxu1 %v16701_v13 }
 0xe7b   : > { %16483 = vrot.lane.b32.xlu0 %v15835_v36, %s23548_s0  ;;  %22417 = vmatprep.subr.mxu1 %v27754_v39 }
 0xe98   : > { %v22323_v4 = vpop.f32.mrf.mxu1 }
 0xe9a   : > { %v16048_v55 = vpop.f32.mrf.mxu1 }
 0xe9b   : > { %v22311_v43 = vpop.f32.mrf.mxu0 }
 0xe9c   : > { %v22326_v52 = vpop.f32.mrf.mxu1  ;;  %v16055_v5 = vadd.f32 %v22323_v4, %v22311_v43 }
 0xe9d   : > { %v15932_v41 = vpop.f32.mrf.mxu0 }
 0xe9e   : > { %v16060_v26 = vpop.f32.mrf.mxu1  ;;  %v16049_v45 = vadd.f32 %v16048_v55, %v15932_v41 }
 0xea1   : > { %v22314_v51 = vpop.f32.mrf.mxu0  ;;  %v22347_v14 = vpop.f32.mrf.mxu1 }
 0xea2   : > { %v16067_v58 = vadd.f32 %v22326_v52, %v22314_v51 }
 0xea3   : > { %v15952_v7 = vpop.f32.mrf.mxu0  ;;  %v16241_v16 = vpop.f32.mrf.mxu1 }
 0xea4   : > { %v16061_v30 = vadd.f32 %v16060_v26, %v15952_v7 }
 0xea5   : > { %v22335_v38 = vpop.f32.mrf.mxu0 }
 0xea6   : > { %v16152_v9 = vadd.f32 %v22335_v38, %v16055_v5 }
 0xea7   : > { %v22350_v2 = vpop.f32.mrf.mxu1  ;;  %v16144_v47 = vpop.f32.mrf.mxu0 }
 0xea8   : > { %v16145_v37 = vadd.f32 %v16144_v47, %v16049_v45  ;;  %v16250_v19 = vadd.f32 %v22347_v14, %v16152_v9 }
 0xea9   : > { %v16257_v3 = vpop.f32.mrf.mxu1 }
 0xeaa   : > { %v22338_v25 = vpop.f32.mrf.mxu0  ;;  %v16242_v29 = vadd.f32 %v16241_v16, %v16145_v37 }
 0xeab   : > { %v16166_v54 = vadd.f32 %v22338_v25, %v16067_v58 }
 0xeac   : > { %v22371_v32 = vpop.f32.mrf.mxu1  ;;  %v16158_v12 = vpop.f32.mrf.mxu0 }
 0xead   : > { %v16159_v42 = vadd.f32 %v16158_v12, %v16061_v30  ;;  %v16266_v36 = vadd.f32 %v22350_v2, %v16166_v54  ;;  %v14513_v2 = vadd.f32 %v27747_v53, %v27706_v18 }
 0xeae   : > { %v16437_v35 = vpop.f32.mrf.mxu1  ;;  %v22359_v49 = vpop.f32.mrf.mxu0 }
 0xeaf   : > { %v16352_v34 = vadd.f32 %v22359_v49, %v16250_v19  ;;  %v16258_v41 = vadd.f32 %v16257_v3, %v16159_v42  ;;  %v14605_v58 = vadd.f32 %v27745_v11, %v14513_v2 }
 0xeb0   : > { %v16345_v27 = vpop.f32.mrf.mxu0  ;;  %v22374_v4 = vpop.f32.mrf.mxu1 }
 0xeb1   : > { %v16444_v1 = vadd.f32 %v22371_v32, %v16352_v34  ;;  %v16346_v23 = vadd.f32 %v16345_v27, %v16242_v29 }
 0xeb2   : > { %v22362_v55 = vpop.f32.mrf.mxu0  ;;  %v16449_v51 = vpop.f32.mrf.mxu1 }
 0xeb3   : > { %v16438_v43 = vadd.f32 %v16437_v35, %v16346_v23  ;;  %v16364_v52 = vadd.f32 %v22362_v55, %v16266_v36  ;;  %16497 = vrot.lane.b32.xlu1 %v16444_v1, %s23549_s11 }
 0xeb4   : > { %v16357_v57 = vpop.f32.mrf.mxu0 }
 0xeb5   : > { %v16456_v26 = vadd.f32 %v22374_v4, %v16364_v52  ;;  %v16358_v10 = vadd.f32 %v16357_v57, %v16258_v41  ;;  %16495 = vrot.lane.b32.xlu0 %v16438_v43, %s23549_s11 }
 0xeb7   : > { %v16450_v14 = vadd.f32 %v16449_v51, %v16358_v10  ;;  %16501 = vrot.lane.b32.xlu1 %v16456_v26, %s23549_s11 }
 0xeb9   : > { %16499 = vrot.lane.b32.xlu0 %v16450_v14, %s23549_s11 }
 0xebd   : > { %v16466_v40 = vpop.permute.xlu1 %16465 }
 0xebe   : > { %v16508_v47 = vsel %vm3488_vm2, %v27710_v17, %v16466_v40 }
 0xec1   : > { %v16464_v7 = vpop.permute.xlu1 %16463 }
 0xec2   : > { %v16507_v45 = vsel %vm3488_vm2, %v27714_v33, %v16464_v7 }
 0xec3   : > { %v16468_v0 = vpop.permute.xlu0 %16467 }
 0xec4   : > { %v16509_v12 = vsel %vm3488_vm2, %v14605_v58, %v16468_v0 }
 0xec5   : > { %v16470_v16 = vpop.permute.xlu1 %16469 }
 0xec6   : > { %v16510_v18 = vsel %vm3488_vm2, %v27720_v21, %v16470_v16 }
 0xee7   : > { %v16482_v38 = vpop.permute.xlu1 %16481 }
 0xee8   : > { %v16512_v60 = vsel %vm8741_vm3, %v16508_v47, %v16482_v38 }
 0xee9   : > { %v16480_v63 = vpop.permute.xlu0 %16479 }
 0xeea   : > { %v16511_v3 = vsel %vm8741_vm3, %v16507_v45, %v16480_v63 }
 0xeeb   : > { %v16486_v44 = vpop.permute.xlu1 %16485 }
 0xeec   : > { %v16514_v37 = vsel %vm8741_vm3, %v16510_v18, %v16486_v44 }
 0xeed   : > { %v16484_v5 = vpop.permute.xlu0 %16483 }
 0xeee   : > { %v16513_v19 = vsel %vm8741_vm3, %v16509_v12, %v16484_v5 }
 0xf25   : > { %v16498_v20 = vpop.permute.xlu1 %16497 }
 0xf26   : > { %v16516_v9 = vsel %vm8746_vm4, %v16512_v60, %v16498_v20 }
 0xf27   : > { %v16534_v25 = vsel %vm1511_vm1, %v16516_v9, 0  ;;  %v16496_v13 = vpop.permute.xlu0 %16495 }
 0xf28   : > { %v27828_v53 = vand.u32 4294901760, %v16534_v25  ;;  %v16515_v17 = vsel %vm8746_vm4, %v16511_v3, %v16496_v13 }
 0xf29   : > { %v16531_v33 = vsel %vm1511_vm1, %v16515_v17, 0  ;;  %v16502_v32 = vpop.permute.xlu1 %16501 }
 0xf2a   : > { %v16622_v30 = vsub.f32 %v16534_v25, %v27828_v53  ;;  %v27835_v54 = vand.u32 4294901760, %v16531_v33  ;;  %v16518_v11 = vsel %vm8746_vm4, %v16514_v37, %v16502_v32 }
 0xf2b   : > { %v16540_v21 = vsel %vm1511_vm1, %v16518_v11, 0  ;;  %v16500_v35 = vpop.permute.xlu0 %16499 }
 0xf2c   : > { %v16623_v49 = vand.u32 4294901760, %v16622_v30  ;;  %v16612_v42 = vsub.f32 %v16531_v33, %v27835_v54  ;;  %v27841_v34 = vand.u32 4294901760, %v16540_v21  ;;  %v16517_v29 = vsel %vm8746_vm4, %v16513_v19, %v16500_v35  ;;  %22397 = vmatprep.mubr.f32.mxu1 %v27835_v54 }
 0xf2d   : > { %v16537_v27 = vsel %vm1511_vm1, %v16517_v29, 0  ;;  %22398 = vmatmul.mubr.f32.vlgmr.msra.gmra.mxu1 %v27828_v53 }
 0xf2e   : > { %v16642_v1 = vsub.f32 %v16540_v21, %v27841_v34  ;;  %v16631_v23 = vand.u32 4294901760, %v16537_v27  ;;  %22418 = vmatpush3.msra.mxu1 %v27754_v39  ;;  %v16613_v36 = vand.u32 4294901760, %v16612_v42  ;;  %v16624_v4 = vsub.f32 %v16622_v30, %v16623_v49 }
 0xf2f   : > { %22419 = vmatprep.subr.mxu1 %v27771_v8 }
 0xf30   : > { %v16643_v55 = vand.u32 4294901760, %v16642_v1  ;;  %v16632_v43 = vsub.f32 %v16537_v27, %v16631_v23  ;;  %22400 = vmatprep.mubr.f32.mxu1 %v16631_v23  ;;  %22420 = vmatpush3.msra.mxu1 %v27771_v8  ;;  %v16614_v52 = vsub.f32 %v16612_v42, %v16613_v36  ;;  %v16625_v26 = vand.u32 4294901760, %v16624_v4 }
 0xf31   : > { %22401 = vmatmul.mubr.f32.gmra.mxu1 %v27841_v34  ;;  %22421 = vmatprep.subr.mxu1 %v27777_v31 }
 0xf32   : > { %22422 = vmatpush3.msra.mxu1 %v27777_v31  ;;  %22425 = vmatprep.mubr.f32.mxu1 %v16613_v36  ;;  %v16615_v41 = vand.u32 4294901760, %v16614_v52  ;;  %v16633_v57 = vand.u32 4294901760, %v16632_v43  ;;  %v16644_v51 = vsub.f32 %v16642_v1, %v16643_v55 }
 0xf33   : > { %22423 = vmatprep.subr.mxu1 %v27788_v61 }
 0xf34   : > { %22383 = vmatprep.mubr.f32.mxu0 %v16615_v41  ;;  %22424 = vmatpush3.msra.mxu1 %v27788_v61  ;;  %v16634_v10 = vsub.f32 %v16632_v43, %v16633_v57  ;;  %v16645_v40 = vand.u32 4294901760, %v16644_v51 }
 0xf35   : > { %22384 = vmatmul.mubr.f32.vlgmr.msra.gmra.mxu0 %v16625_v26  ;;  %22426 = vmatmul.mubr.f32.vlgmr.msra.gmra.mxu1 %v16623_v49 }
 0xf36   : > { %22445 = vmatprep.subr.mxu1 %v27754_v39  ;;  %22404 = vmatpush3.msra.mxu0 %v27757_v22  ;;  %v16635_v14 = vand.u32 4294901760, %v16634_v10 }
 0xf37   : > { %22428 = vmatprep.mubr.f32.mxu1 %v16633_v57  ;;  %22446 = vmatpush3.msra.mxu1 %v27754_v39  ;;  %v28675_v57 = vld [vmem:[#allocation39_spill] sm:$0xff] }
 0xf38   : > { %22405 = vmatprep.subr.mxu0 %v27775_v28  ;;  %22447 = vmatprep.subr.mxu1 %v27771_v8 }
 0xf39   : > { %22386 = vmatprep.mubr.f32.mxu0 %v16635_v14  ;;  %22406 = vmatpush3.msra.mxu0 %v27775_v28 }
 0xf3a   : > { %22448 = vmatpush3.msra.mxu1 %v27771_v8  ;;  %22387 = vmatmul.mubr.f32.gmra.mxu0 %v16645_v40 }
 0xf3b   : > { %22407 = vmatprep.subr.mxu0 %v27786_v46  ;;  %22429 = vmatmul.mubr.f32.gmra.mxu1 %v16643_v55 }
 0xf3c   : > { %22449 = vmatprep.subr.mxu1 %v27777_v31  ;;  %22408 = vmatpush3.msra.mxu0 %v27786_v46 }
 0xf3d   : > { %22411 = vmatprep.mubr.f32.mxu0 %v16612_v42  ;;  %22450 = vmatpush3.msra.mxu1 %v27777_v31 }
 0xf3e   : > { %22453 = vmatprep.mubr.f32.mxu1 %v27835_v54  ;;  %22409 = vmatprep.subr.mxu0 %v27798_v48 }
 0xf3f   : > { %22451 = vmatprep.subr.mxu1 %v27788_v61  ;;  %22410 = vmatpush3.msra.mxu0 %v27798_v48 }
 0xf40   : > { %22452 = vmatpush3.msra.mxu1 %v27788_v61  ;;  %22412 = vmatmul.mubr.f32.vlgmr.msra.gmra.mxu0 %v16622_v30 }
 0xf41   : > { %22431 = vmatprep.subr.mxu0 %v27762_v24  ;;  %22454 = vmatmul.mubr.f32.vlgmr.msra.gmra.mxu1 %v27828_v53 }
 0xf42   : > { %22414 = vmatprep.mubr.f32.mxu0 %v16632_v43  ;;  %22432 = vmatpush3.msra.mxu0 %v27762_v24 }
 0xf43   : > { %22456 = vmatprep.mubr.f32.mxu1 %v16631_v23  ;;  %22433 = vmatprep.subr.mxu0 %v27783_v62 }
 0xf44   : > { %22434 = vmatpush3.msra.mxu0 %v27783_v62 }
 0xf45   : > { %22415 = vmatmul.mubr.f32.gmra.mxu0 %v16642_v1  ;;  %22435 = vmatprep.subr.mxu0 %v27795_v56 }
 0xf46   : > { %22457 = vmatmul.mubr.f32.gmra.mxu1 %v27841_v34  ;;  %22436 = vmatpush3.msra.mxu0 %v27795_v56  ;;  %v19224_v56 = vld [vmem:[%s28674_s18] ss:$0 sm:$0xff] }
 0xf47   : > { %22439 = vmatprep.mubr.f32.mxu0 %v27835_v54  ;;  %22437 = vmatprep.subr.mxu0 %v27805_v59 }
 0xf48   : > { %22438 = vmatpush3.msra.mxu0 %v27805_v59 }
 0xf49   : > { %22440 = vmatmul.mubr.f32.vlgmr.msra.gmra.mxu0 %v27828_v53 }
 0xf4a   : > { %22442 = vmatprep.mubr.f32.mxu0 %v16631_v23 }
 0xf4d   : > { %22443 = vmatmul.mubr.f32.gmra.mxu0 %v27841_v34 }
 0xfed   : > { %v22399_v39 = vpop.f32.mrf.mxu1 }
 0xfef   : > { %v16738_v22 = vpop.f32.mrf.mxu1 }
 0xff1   : > { %v22402_v24 = vpop.f32.mrf.mxu1 }
 0xff3   : > { %v16750_v8 = vpop.f32.mrf.mxu1 }
 0xff5   : > { %v22385_v28 = vpop.f32.mrf.mxu0  ;;  %v22427_v31 = vpop.f32.mrf.mxu1 }
 0xff6   : > { %v16628_v16 = vadd.f32 %v22385_v28, %v19224_v56 }
 0xff7   : > { %v16617_v62 = vpop.f32.mrf.mxu0  ;;  %v16934_v46 = vpop.f32.mrf.mxu1 }
 0xff8   : > { %v16618_v59 = vadd.f32 %v19224_v56, %v16617_v62  ;;  %v16745_v44 = vadd.f32 %v22399_v39, %v16628_v16 }
 0xffa   : > { %v22388_v61 = vpop.f32.mrf.mxu0  ;;  %v16739_v60 = vadd.f32 %v16738_v22, %v16618_v59 }
 0xffb   : > { %v22430_v7 = vpop.f32.mrf.mxu1  ;;  %v16648_v63 = vadd.f32 %v22388_v61, %v19224_v56 }
 0xffc   : > { %v16637_v48 = vpop.f32.mrf.mxu0 }
 0xffd   : > { %v16950_v38 = vpop.f32.mrf.mxu1  ;;  %v16638_v2 = vadd.f32 %v19224_v56, %v16637_v48  ;;  %v16757_v3 = vadd.f32 %v22402_v24, %v16648_v63  ;;  %v17236_v63 = vld [vmem:[%s24234_s23 + $0x10] sm:$0xff] }
 0xfff   : > { %v16751_v58 = vadd.f32 %v16750_v8, %v16638_v2  ;;  %v17235_v2 = vld [vmem:[%s24234_s23 + $0x8] sm:$0xff] }
0x1000   : > { %v22413_v0 = vpop.f32.mrf.mxu0 }
0x1001   : > { %v16844_v47 = vadd.f32 %v22413_v0, %v16745_v44  ;;  %v22455_v20 = vpop.f32.mrf.mxu1  ;;  %v17237_v0 = vld [vmem:[%s24234_s23 + $0x18] sm:$0xff] }
0x1002   : > { %v16836_v5 = vpop.f32.mrf.mxu0 }
0x1003   : > { %v16837_v9 = vadd.f32 %v16836_v5, %v16739_v60  ;;  %v16943_v18 = vadd.f32 %v22427_v31, %v16844_v47  ;;  %v17134_v53 = vpop.f32.mrf.mxu1  ;;  %v27922_v5 = vand.u32 4294901760, %v17236_v63 }
0x1005   : > { %v22416_v45 = vpop.f32.mrf.mxu0  ;;  %v16935_v32 = vadd.f32 %v16934_v46, %v16837_v9  ;;  %v27931_v60 = vsub.f32 %v17236_v63, %v27922_v5 }
0x1006   : > { %v16858_v13 = vadd.f32 %v22416_v45, %v16757_v3  ;;  %v22458_v19 = vpop.f32.mrf.mxu1  ;;  %v17234_v45 = vld [vmem:[%s24234_s23] sm:$0xff]  ;;  %s28718_s23 = scalar_lea.vmem [#allocation19], %s24153_s13 }
0x1007   : > { %v16850_v25 = vpop.f32.mrf.mxu0  ;;  %v27941_v3 = vand.u32 4294901760, %v27931_v60 }
0x1008   : > { %v16851_v37 = vadd.f32 %v16850_v25, %v16751_v58  ;;  %v16959_v11 = vadd.f32 %v22430_v7, %v16858_v13  ;;  %v17146_v36 = vpop.f32.mrf.mxu1  ;;  %v27946_v13 = vand.u32 4294901760, %v17234_v45 }
0x1009   : > { %v22441_v17 = vpop.f32.mrf.mxu0 }
0x100a   : > { %v17048_v33 = vadd.f32 %v22441_v17, %v16943_v18  ;;  %v16951_v42 = vadd.f32 %v16950_v38, %v16851_v37  ;;  %v27916_v38 = vand.u32 4294901760, %v17237_v0  ;;  %v17394_v18 = vsub.f32 %v27931_v60, %v27941_v3 }
0x100b   : > { %v17041_v12 = vpop.f32.mrf.mxu0  ;;  %v27956_v17 = vsub.f32 %v17234_v45, %v27946_v13 }
0x100c   : > { %v17141_v30 = vadd.f32 %v22455_v20, %v17048_v33  ;;  %v17042_v54 = vadd.f32 %v17041_v12, %v16935_v32  ;;  %v27920_v44 = vsub.f32 %v17237_v0, %v27916_v38  ;;  %22459 = vmatprep.subr.mxu0 %v27916_v38  ;;  %v27933_v20 = vand.u32 4294901760, %v17235_v2 }
0x100d   : > { %v22444_v21 = vpop.f32.mrf.mxu0  ;;  %22460 = vmatpush3.msra.mxu0 %v27916_v38  ;;  %v17395_v37 = vand.u32 4294901760, %v17394_v18  ;;  %v27963_v32 = vand.u32 4294901760, %v27956_v17 }
0x100e   : > { %v17135_v35 = vadd.f32 %v17134_v53, %v17042_v54  ;;  %v17060_v49 = vadd.f32 %v22444_v21, %v16959_v11  ;;  %v17159_v34 = vadd.f32 %v17141_v30, %v26183_v50  ;;  %v27928_v47 = vand.u32 4294901760, %v27920_v44  ;;  %22461 = vmatprep.subr.mxu0 %v27922_v5 }
0x100f   : > { %v17053_v29 = vpop.f32.mrf.mxu0  ;;  %22462 = vmatpush3.msra.mxu0 %v27922_v5  ;;  %v27944_v25 = vsub.f32 %v17235_v2, %v27933_v20  ;;  %v17408_v30 = vsub.f32 %v27956_v17, %v27963_v32 }
0x1010   : > { %v17054_v27 = vadd.f32 %v17053_v29, %v16951_v42  ;;  %v17165_v1 = vsel %vm1511_vm1, %v17159_v34, 0.0  ;;  %v17158_v23 = vadd.f32 %v17135_v35, %v26185_v6  ;;  %v17153_v4 = vadd.f32 %v22458_v19, %v17060_v49  ;;  %22463 = vmatprep.subr.mxu0 %v27933_v20 }
0x1011   : > { %17166 = vadd.xlane.f32.xlu1 %v17165_v1  ;;  %v17387_v9 = vsub.f32 %v27920_v44, %v27928_v47  ;;  %22464 = vmatpush3.msra.mxu0 %v27933_v20  ;;  %v27953_v53 = vand.u32 4294901760, %v27944_v25  ;;  %v17409_v54 = vand.u32 4294901760, %v17408_v30 }
0x1012   : > { %v17147_v55 = vadd.f32 %v17146_v36, %v17054_v27  ;;  %v17162_v43 = vsel %vm1511_vm1, %v17158_v23, 0.0  ;;  %v17161_v26 = vadd.f32 %v17153_v4, %v28675_v57  ;;  %22465 = vmatprep.subr.mxu0 %v27946_v13 }
0x1013   : > { %17163 = vadd.xlane.f32.xlu0 %v17162_v43  ;;  %v17388_v58 = vand.u32 4294901760, %v17387_v9  ;;  %22466 = vmatpush3.msra.mxu0 %v27946_v13  ;;  %v17401_v33 = vsub.f32 %v27944_v25, %v27953_v53 }
0x1014   : > { %v17160_v52 = vadd.f32 %v17147_v55, %v26199_v15  ;;  %v17171_v50 = vsel %vm1511_vm1, %v17161_v26, 0.0  ;;  %22487 = vmatprep.subr.mxu0 %v27920_v44  ;;  %v19225_v55 = vld [vmem:[%s1236_s21] ss:$0 sm:$0xff]  ;;  %s23552_s21 = smov [#allocation21]  }
0x1015   : > { %22473 = vmatprep.subr.mxu1 %v17388_v58  ;;  %v17402_v12 = vand.u32 4294901760, %v17401_v33 }
0x1016   : > { %v17168_v41 = vsel %vm1511_vm1, %v17160_v52, 0.0  ;;  %22474 = vmatpush3.msra.mxu1 %v17388_v58 }
0x1017   : > { %17169 = vadd.xlane.f32.xlu0 %v17168_v41  ;;  %22475 = vmatprep.subr.mxu1 %v17395_v37  ;;  %v19226_v41 = vld [vmem:[%s1244_s9] ss:$0 sm:$0xff]  ;;  %s18758_s9 = sshll.u32 %s23552_s21, 4  ;;  %s18759_s9 = int_to_ptr.vmem [resolvable:$true] %s18758_s9 }
0x1018   : > { %22476 = vmatpush3.msra.mxu1 %v17395_v37  ;;  %s23452_s13 = scalar_lea.vmem %s18759_s9, 512  ;;  %p23459_p8 = scmp.lt.s32.totalorder %s18759_s9, %s18759_s9 }
0x1019   : > { %22477 = vmatprep.subr.mxu1 %v17402_v12  ;;  %p23453_p2 = scmp.ne.s32.totalorder %s18759_s9, %s23452_s13  ;;  %p23460_p9 = scmp.lt.s32.totalorder %s23452_s13, %s23452_s13 }
0x101a   : > { %22478 = vmatpush3.msra.mxu1 %v17402_v12 }
0x101b   : > { %17172 = vadd.xlane.f32.xlu0 %v17171_v50  ;;  %22479 = vmatprep.subr.mxu1 %v17409_v54  ;;  %p23461_p12 = por %p23460_p9, %p23459_p8 }
0x101c   : > { %22480 = vmatpush3.msra.mxu1 %v17409_v54 }
0x101d   : > { %22501 = vmatprep.subr.mxu1 %v27916_v38 }
0x109a   : > { %v17167_v10 = vpop.xlane.xlu1 %17166 }
0x109b   : > { %v17175_v51 = vmul.f32 0.03125, %v17167_v10 }
0x109c   : > { %v17164_v6 = vpop.xlane.xlu0 %17163 }
0x109d   : > { %v27895_v14 = vsub.f32 %v17159_v34, %v17175_v51  ;;  %v17174_v40 = vmul.f32 0.03125, %v17164_v6 }
0x109f   : > { %v27897_v39 = vsub.f32 %v17158_v23, %v17174_v40  ;;  %v17183_v22 = vmul.f32 %v27895_v14, %v27895_v14 }
0x10a0   : > { %v17170_v15 = vpop.xlane.xlu0 %17169 }
0x10a1   : > { %v17176_v24 = vmul.f32 0.03125, %v17170_v15  ;;  %v17189_v8 = vsel %vm1511_vm1, %v17183_v22, 0.0  ;;  %v17182_v28 = vmul.f32 %v27897_v39, %v27897_v39 }
0x10a2   : > { %17190 = vadd.xlane.f32.xlu0 %v17189_v8 }
0x10a3   : > { %v27904_v31 = vsub.f32 %v17160_v52, %v17176_v24  ;;  %v17186_v62 = vsel %vm1511_vm1, %v17182_v28, 0.0 }
0x10a4   : > { %17187 = vadd.xlane.f32.xlu1 %v17186_v62  ;;  %v17173_v46 = vpop.xlane.xlu0 %17172 }
0x10a5   : > { %v17177_v61 = vmul.f32 0.03125, %v17173_v46  ;;  %v17184_v56 = vmul.f32 %v27904_v31, %v27904_v31 }
0x10a7   : > { %v27909_v48 = vsub.f32 %v17161_v26, %v17177_v61  ;;  %v17192_v7 = vsel %vm1511_vm1, %v17184_v56, 0.0 }
0x10a8   : > { %17193 = vadd.xlane.f32.xlu1 %v17192_v7 }
0x10a9   : > { %v17185_v16 = vmul.f32 %v27909_v48, %v27909_v48 }
0x10ab   : > { %v17195_v59 = vsel %vm1511_vm1, %v17185_v16, 0.0 }
0x10ac   : > { %17196 = vadd.xlane.f32.xlu0 %v17195_v59 }
0x112b   : > { %v17191_v11 = vpop.xlane.xlu0 %17190 }
0x112c   : > { %v17199_v19 = vmul.f32 0.03125, %v17191_v11 }
0x112d   : > { %v17188_v21 = vpop.xlane.xlu1 %17187 }
0x112e   : > { %v17203_v35 = vadd.f32 1e-05, %v17199_v19  ;;  %v17198_v49 = vmul.f32 0.03125, %v17188_v21 }
0x1130   : > { %23008 = vrsqrt.f32 %v17203_v35  ;;  %v17202_v42 = vadd.f32 1e-05, %v17198_v49  ;;  %v17895_v49 = vld [vmem:[%s24215_s3 + $0x58] sm:$0xff] }
0x1131   : > { %v17194_v34 = vpop.xlane.xlu1 %17193 }
0x1132   : > { %23010 = vrsqrt.f32 %v17202_v42  ;;  %v17200_v29 = vmul.f32 0.03125, %v17194_v34 }
0x1134   : > { %v17204_v27 = vadd.f32 1e-05, %v17200_v29 }
0x1135   : > { %v17197_v1 = vpop.xlane.xlu0 %17196 }
0x1136   : > { %23012 = vrsqrt.f32 %v17204_v27  ;;  %v17201_v23 = vmul.f32 0.03125, %v17197_v1  ;;  %v28086_v1 = vand.u32 4294901760, %v17895_v49 }
0x1138   : > { %v17205_v36 = vadd.f32 1e-05, %v17201_v23  ;;  %v17894_v23 = vld [vmem:[%s24215_s3 + $0x50] sm:$0xff] }
0x113a   : > { %23014 = vrsqrt.f32 %v17205_v36 }
0x113d   : > { %v23009_v4 = vpop.eup %23008 }
0x113e   : > { %v17211_v43 = vmul.f32 %v23009_v4, %v27895_v14 }
0x113f   : > { %v23011_v52 = vpop.eup %23010 }
0x1140   : > { %v17210_v57 = vmul.f32 %v23011_v52, %v27897_v39  ;;  %v17221_v26 = vmul.f32 %v19225_v55, %v17211_v43  ;;  %v28095_v43 = vand.u32 4294901760, %v17894_v23  ;;  %v28098_v52 = vsub.f32 %v17895_v49, %v28086_v1 }
0x1142   : > { %v17220_v50 = vmul.f32 %v19225_v55, %v17210_v57  ;;  %v27975_v10 = vadd.f32 %v19226_v41, %v17221_v26 }
0x1143   : > { %v23013_v51 = vpop.eup %23012 }
0x1144   : > { %28676 = vst [vmem:[#allocation37_spill] sm:$0xff] %v27975_v10  ;;  %v27977_v6 = vadd.f32 %v19226_v41, %v17220_v50  ;;  %v17242_v40 = vsel %vm1511_vm1, %v27975_v10, 0  ;;  %v17212_v22 = vmul.f32 %v23013_v51, %v27904_v31  ;;  %v28105_v50 = vsub.f32 %v17894_v23, %v28095_v43  ;;  %v17886_v23 = vld [vmem:[%s24215_s3 + $0x10] sm:$0xff] }
0x1145   : > { %v27982_v15 = vand.u32 4294901760, %v17242_v40 }
0x1146   : > { %28677 = vst [vmem:[#allocation38_spill] sm:$0xff] %v27977_v6  ;;  %v17239_v14 = vsel %vm1511_vm1, %v27977_v6, 0  ;;  %v17222_v24 = vmul.f32 %v19225_v55, %v17212_v22  ;;  %v17892_v22 = vld [vmem:[%s24215_s3 + $0x40] sm:$0xff] }
0x1147   : > { %v23015_v8 = vpop.eup %23014  ;;  %v27986_v39 = vand.u32 4294901760, %v17239_v14  ;;  %v17330_v28 = vsub.f32 %v17242_v40, %v27982_v15  ;;  %v28111_v40 = vand.u32 4294901760, %v28098_v52 }
0x1148   : > { %v27989_v62 = vadd.f32 %v19226_v41, %v17222_v24  ;;  %v17213_v46 = vmul.f32 %v23015_v8, %v27909_v48  ;;  %v28121_v8 = vand.u32 4294901760, %v17892_v22 }
0x1149   : > { %22481 = vmatprep.mubr.f32.mxu1 %v27986_v39  ;;  %v17320_v61 = vsub.f32 %v17239_v14, %v27986_v39  ;;  %v17331_v31 = vand.u32 4294901760, %v17330_v28  ;;  %28684 = vst [vmem:[#allocation42_spill] sm:$0xff] %v28111_v40  ;;  %v28116_v14 = vand.u32 4294901760, %v28105_v50 }
0x114a   : > { %28678 = vst [vmem:[#allocation40_spill] sm:$0xff] %v27989_v62  ;;  %22482 = vmatmul.mubr.f32.vlgmr.msra.gmra.mxu1 %v27982_v15  ;;  %v17245_v56 = vsel %vm1511_vm1, %v27989_v62, 0  ;;  %v17223_v7 = vmul.f32 %v19225_v55, %v17213_v46 }
0x114b   : > { %v27997_v16 = vand.u32 4294901760, %v17245_v56  ;;  %22502 = vmatpush3.msra.mxu1 %v27916_v38  ;;  %v17321_v59 = vand.u32 4294901760, %v17320_v61  ;;  %v17332_v48 = vsub.f32 %v17330_v28, %v17331_v31  ;;  %28685 = vst [vmem:[#allocation43_spill] sm:$0xff] %v28116_v14  ;;  %v18060_v46 = vsub.f32 %v28105_v50, %v28116_v14 }
0x114c   : > { %22503 = vmatprep.subr.mxu1 %v27922_v5  ;;  %v28001_v0 = vadd.f32 %v19226_v41, %v17223_v7  ;;  %v17893_v41 = vld [vmem:[%s24215_s3 + $0x48] sm:$0xff] }
0x114d   : > { %22484 = vmatprep.mubr.f32.mxu1 %v27997_v16  ;;  %22504 = vmatpush3.msra.mxu1 %v27922_v5  ;;  %v17322_v63 = vsub.f32 %v17320_v61, %v17321_v59  ;;  %v17340_v2 = vsub.f32 %v17245_v56, %v27997_v16  ;;  %v17333_v37 = vand.u32 4294901760, %v17332_v48  ;;  %v28107_v51 = vand.u32 4294901760, %v17893_v41 }
0x114e   : > { %28679 = vst [vmem:[#allocation41_spill] sm:$0xff] %v28001_v0  ;;  %v17248_v45 = vsel %vm1511_vm1, %v28001_v0, 0  ;;  %22505 = vmatprep.subr.mxu1 %v27933_v20 }
0x114f   : > { %v17323_v9 = vand.u32 4294901760, %v17322_v63  ;;  %v17349_v58 = vand.u32 4294901760, %v17248_v45  ;;  %22506 = vmatpush3.msra.mxu1 %v27933_v20  ;;  %v17341_v18 = vand.u32 4294901760, %v17340_v2  ;;  %v28119_v24 = vsub.f32 %v17893_v41, %v28107_v51 }
0x1150   : > { %22507 = vmatprep.subr.mxu1 %v27946_v13 }
0x1151   : > { %22467 = vmatprep.mubr.f32.mxu0 %v17323_v9  ;;  %v17350_v33 = vsub.f32 %v17248_v45, %v17349_v58  ;;  %22485 = vmatmul.mubr.f32.gmra.mxu1 %v17349_v58  ;;  %v17342_v12 = vsub.f32 %v17340_v2, %v17341_v18  ;;  %v17889_v9 = vld [vmem:[%s24215_s3 + $0x28] sm:$0xff] }
0x1152   : > { %22468 = vmatmul.mubr.f32.vlgmr.msra.gmra.mxu0 %v17333_v37  ;;  %22509 = vmatprep.mubr.f32.mxu1 %v17321_v59  ;;  %v18061_v59 = vand.u32 4294901760, %v18060_v46 }
0x1153   : > { %22508 = vmatpush3.msra.mxu1 %v27946_v13  ;;  %v17343_v30 = vand.u32 4294901760, %v17342_v12  ;;  %22488 = vmatpush3.msra.mxu0 %v27920_v44  ;;  %v17351_v54 = vand.u32 4294901760, %v17350_v33 }
0x1154   : > { %22529 = vmatprep.subr.mxu1 %v27916_v38  ;;  %22489 = vmatprep.subr.mxu0 %v27931_v60 }
0x1155   : > { %22470 = vmatprep.mubr.f32.mxu0 %v17343_v30  ;;  %22510 = vmatmul.mubr.f32.vlgmr.msra.gmra.mxu1 %v17331_v31  ;;  %v17352_v11 = vsub.f32 %v17350_v33, %v17351_v54  ;;  %v28134_v31 = vsub.f32 %v17892_v22, %v28121_v8  ;;  %v17888_v30 = vld [vmem:[%s24215_s3 + $0x20] sm:$0xff]  ;;  %v17885_v22 = vld [vmem:[%s24215_s3 + $0x8] sm:$0xff] }
0x1156   : > { %22512 = vmatprep.mubr.f32.mxu1 %v17341_v18  ;;  %22530 = vmatpush3.msra.mxu1 %v27916_v38  ;;  %v17899_v38 = vld [vmem:[%s24215_s3 + $0x78] sm:$0xff] }
0x1157   : > { %22531 = vmatprep.subr.mxu1 %v27922_v5  ;;  %22490 = vmatpush3.msra.mxu0 %v27931_v60  ;;  %v17353_v19 = vand.u32 4294901760, %v17352_v11  ;;  %v28042_v44 = vand.u32 4294901760, %v17899_v38  ;;  %v28144_v63 = vand.u32 4294901760, %v28134_v31 }
0x1158   : > { %22532 = vmatpush3.msra.mxu1 %v27922_v5  ;;  %22491 = vmatprep.subr.mxu0 %v27944_v25  ;;  %v17898_v5 = vld [vmem:[%s24215_s3 + $0x70] sm:$0xff] }
0x1159   : > { %22471 = vmatmul.mubr.f32.gmra.mxu0 %v17353_v19  ;;  %22513 = vmatmul.mubr.f32.gmra.mxu1 %v17351_v54  ;;  %v28048_v60 = vand.u32 4294901760, %v17898_v5  ;;  %28687 = vst [vmem:[#allocation45_spill] sm:$0xff] %v28144_v63  ;;  %v18074_v18 = vsub.f32 %v28134_v31, %v28144_v63 }
0x115a   : > { %22533 = vmatprep.subr.mxu1 %v27933_v20  ;;  %22492 = vmatpush3.msra.mxu0 %v27944_v25 }
0x115b   : > { %22495 = vmatprep.mubr.f32.mxu0 %v17320_v61  ;;  %22534 = vmatpush3.msra.mxu1 %v27933_v20  ;;  %v17897_v20 = vld [vmem:[%s24215_s3 + $0x68] sm:$0xff]  ;;  %v28057_v25 = vsub.f32 %v17898_v5, %v28048_v60  ;;  %v28131_v61 = vand.u32 4294901760, %v28119_v24  ;;  %v18075_v54 = vand.u32 4294901760, %v18074_v18 }
0x115c   : > { %22537 = vmatprep.mubr.f32.mxu1 %v27986_v39  ;;  %22493 = vmatprep.subr.mxu0 %v27956_v17 }
0x115d   : > { %22535 = vmatprep.subr.mxu1 %v27946_v13  ;;  %22494 = vmatpush3.msra.mxu0 %v27956_v17  ;;  %28686 = vst [vmem:[#allocation44_spill] sm:$0xff] %v28131_v61  ;;  %v18067_v48 = vsub.f32 %v28119_v24, %v28131_v61 }
0x115e   : > { %22536 = vmatpush3.msra.mxu1 %v27946_v13  ;;  %22496 = vmatmul.mubr.f32.vlgmr.msra.gmra.mxu0 %v17330_v28  ;;  %v28059_v13 = vand.u32 4294901760, %v17897_v20  ;;  %v17891_v28 = vld [vmem:[%s24215_s3 + $0x38] sm:$0xff] }
0x115f   : > { %22515 = vmatprep.subr.mxu0 %v27928_v47  ;;  %22538 = vmatmul.mubr.f32.vlgmr.msra.gmra.mxu1 %v27982_v15  ;;  %v28136_v56 = vand.u32 4294901760, %v17891_v28 }
0x1160   : > { %22498 = vmatprep.mubr.f32.mxu0 %v17340_v2  ;;  %22516 = vmatpush3.msra.mxu0 %v27928_v47  ;;  %v28046_v47 = vsub.f32 %v17899_v38, %v28042_v44  ;;  %v28070_v21 = vsub.f32 %v17897_v20, %v28059_v13  ;;  %v28172_v38 = vand.u32 4294901760, %v17888_v30  ;;  %v17887_v20 = vld [vmem:[%s24215_s3 + $0x18] sm:$0xff] }
0x1161   : > { %22540 = vmatprep.mubr.f32.mxu1 %v27997_v16  ;;  %22517 = vmatprep.subr.mxu0 %v27941_v3  ;;  %v28147_v2 = vsub.f32 %v17891_v28, %v28136_v56 }
0x1162   : > { %22518 = vmatpush3.msra.mxu0 %v27941_v3  ;;  %v28054_v3 = vand.u32 4294901760, %v28046_v47  ;;  %v28080_v29 = vand.u32 4294901760, %v28070_v21  ;;  %v28184_v49 = vsub.f32 %v17888_v30, %v28172_v38 }
0x1163   : > { %22499 = vmatmul.mubr.f32.gmra.mxu0 %v17350_v33  ;;  %22519 = vmatprep.subr.mxu0 %v27953_v53  ;;  %v28157_v37 = vand.u32 4294901760, %v28147_v2  ;;  %v28159_v33 = vand.u32 4294901760, %v17889_v9 }
0x1164   : > { %22541 = vmatmul.mubr.f32.gmra.mxu1 %v17349_v58  ;;  %22520 = vmatpush3.msra.mxu0 %v27953_v53  ;;  %28680 = vst [vmem:[#allocation34_spill] sm:$0xff] %v28054_v3  ;;  %v17896_v53 = vld [vmem:[%s24215_s3 + $0x60] sm:$0xff]  ;;  %v18025_v17 = vsub.f32 %v28046_v47, %v28054_v3  ;;  %28682 = vst [vmem:[#allocation35_spill] sm:$0xff] %v28080_v29  ;;  %v18039_v4 = vsub.f32 %v28070_v21, %v28080_v29 }
0x1165   : > { %22523 = vmatprep.mubr.f32.mxu0 %v27986_v39  ;;  %22521 = vmatprep.subr.mxu0 %v27963_v32  ;;  %v28072_v35 = vand.u32 4294901760, %v17896_v53  ;;  %v18053_v39 = vsub.f32 %v28098_v52, %v28111_v40  ;;  %28688 = vst [vmem:[#allocation46_spill] sm:$0xff] %v28157_v37  ;;  %v18081_v11 = vsub.f32 %v28147_v2, %v28157_v37 }
0x1166   : > { %22522 = vmatpush3.msra.mxu0 %v27963_v32  ;;  %v28067_v32 = vand.u32 4294901760, %v28057_v25  ;;  %v18026_v42 = vand.u32 4294901760, %v18025_v17  ;;  %v18040_v57 = vand.u32 4294901760, %v18039_v4  ;;  %v28170_v19 = vsub.f32 %v17889_v9, %v28159_v33 }
0x1167   : > { %22524 = vmatmul.mubr.f32.vlgmr.msra.gmra.mxu0 %v27982_v15  ;;  %22543 = vmatprep.subr.mxu0 %v28042_v44  ;;  %v28083_v27 = vsub.f32 %v17896_v53, %v28072_v35  ;;  %v18054_v7 = vand.u32 4294901760, %v18053_v39  ;;  %v18082_v53 = vand.u32 4294901760, %v18081_v11  ;;  %v28196_v4 = vand.u32 4294901760, %v28184_v49 }
0x1168   : > { %22526 = vmatprep.mubr.f32.mxu0 %v27997_v16  ;;  %22544 = vmatpush3.msra.mxu0 %v28042_v44  ;;  %28681 = vst [vmem:[#allocation36_spill] sm:$0xff] %v28067_v32  ;;  %v18032_v34 = vsub.f32 %v28057_v25, %v28067_v32  ;;  %v17890_v16 = vld [vmem:[%s24215_s3 + $0x30] sm:$0xff]  ;;  %v28181_v17 = vand.u32 4294901760, %v28170_v19 }
0x1169   : > { %22545 = vmatprep.subr.mxu0 %v28048_v60  ;;  %22581 = vmatprep.subr.mxu1 %v18026_v42  ;;  %v28093_v55 = vand.u32 4294901760, %v28083_v27  ;;  %v28150_v45 = vand.u32 4294901760, %v17890_v16  ;;  %28691 = vst [vmem:[#allocation49_spill] sm:$0xff] %v28196_v4  ;;  %v18102_v39 = vsub.f32 %v28184_v49, %v28196_v4 }
0x116a   : > { %22546 = vmatpush3.msra.mxu0 %v28048_v60  ;;  %v18033_v36 = vand.u32 4294901760, %v18032_v34  ;;  %22582 = vmatpush3.msra.mxu1 %v18026_v42  ;;  %28690 = vst [vmem:[#allocation48_spill] sm:$0xff] %v28181_v17  ;;  %v28186_v42 = vand.u32 4294901760, %v17887_v20 }
0x116b   : > { %22527 = vmatmul.mubr.f32.gmra.mxu0 %v17349_v58  ;;  %22547 = vmatprep.subr.mxu0 %v28059_v13  ;;  %28683 = vst [vmem:[#allocation39_spill] sm:$0xff] %v28093_v55  ;;  %v18046_v26 = vsub.f32 %v28083_v27, %v28093_v55  ;;  %v18068_v58 = vand.u32 4294901760, %v18067_v48  ;;  %v28163_v12 = vsub.f32 %v17890_v16, %v28150_v45  ;;  %v17884_v16 = vld [vmem:[%s24215_s3] sm:$0xff]  ;;  %s28719_s3 = sld [smem:[#allocation28_spill]] }
0x116c   : > { %22548 = vmatpush3.msra.mxu0 %v28059_v13  ;;  %22583 = vmatprep.subr.mxu1 %v18033_v36  ;;  %v28199_v41 = vsub.f32 %v17887_v20, %v28186_v42 }
0x116d   : > { %22549 = vmatprep.subr.mxu0 %v28072_v35  ;;  %22584 = vmatpush3.msra.mxu1 %v18033_v36  ;;  %v18047_v15 = vand.u32 4294901760, %v18046_v26  ;;  %v28176_v5 = vand.u32 4294901760, %v28163_v12  ;;  %v18095_v36 = vsub.f32 %v28170_v19, %v28181_v17 }
0x116e   : > { %22550 = vmatpush3.msra.mxu0 %v28072_v35  ;;  %22585 = vmatprep.subr.mxu1 %v18040_v57  ;;  %v28209_v28 = vand.u32 4294901760, %v28199_v41 }
0x116f   : > { %22551 = vmatprep.subr.mxu0 %v28086_v1  ;;  %22586 = vmatpush3.msra.mxu1 %v18040_v57  ;;  %28689 = vst [vmem:[#allocation47_spill] sm:$0xff] %v28176_v5  ;;  %v18088_v34 = vsub.f32 %v28163_v12, %v28176_v5  ;;  %v28201_v57 = vand.u32 4294901760, %v17886_v23 }
0x1170   : > { %22552 = vmatpush3.msra.mxu0 %v28086_v1  ;;  %22587 = vmatprep.subr.mxu1 %v18047_v15  ;;  %28692 = vst [vmem:[#allocation50_spill] sm:$0xff] %v28209_v28  ;;  %v18109_v48 = vsub.f32 %v28199_v41, %v28209_v28 }
0x1171   : > { %22553 = vmatprep.subr.mxu0 %v28095_v43  ;;  %22588 = vmatpush3.msra.mxu1 %v18047_v15  ;;  %v18089_v26 = vand.u32 4294901760, %v18088_v34  ;;  %v18096_v15 = vand.u32 4294901760, %v18095_v36  ;;  %v28212_v46 = vsub.f32 %v17886_v23, %v28201_v57  ;;  %p22822_p3 = scmp.eq.s32.totalorder %s28719_s3, 1 }
0x1172   : > { %22554 = vmatpush3.msra.mxu0 %v28095_v43  ;;  %22589 = vmatprep.subr.mxu1 %v18054_v7  ;;  %v18110_v30 = vand.u32 4294901760, %v18109_v48 }
0x1173   : > { %22555 = vmatprep.subr.mxu0 %v28107_v51  ;;  %22590 = vmatpush3.msra.mxu1 %v18054_v7  ;;  %v28215_v7 = vand.u32 4294901760, %v17885_v22  ;;  %v28222_v9 = vand.u32 4294901760, %v28212_v46  ;;  %p23454_p6 = pnand %p23453_p2, %p22822_p3 }
0x1174   : > { %22556 = vmatpush3.msra.mxu0 %v28107_v51  ;;  %22591 = vmatprep.subr.mxu1 %v18061_v59 }
0x1175   : > { %22557 = vmatprep.subr.mxu0 %v28121_v8  ;;  %22592 = vmatpush3.msra.mxu1 %v18061_v59  ;;  %v18103_v59 = vand.u32 4294901760, %v18102_v39  ;;  %28693 = vst [vmem:[#allocation51_spill] sm:$0xff] %v28222_v9  ;;  %v28228_v18 = vsub.f32 %v17885_v22, %v28215_v7  ;;  %p23455_p5 = pneg %p23454_p6 }
0x1176   : > { %22558 = vmatpush3.msra.mxu0 %v28121_v8  ;;  %22593 = vmatprep.subr.mxu1 %v18068_v58 }
0x1177   : > { %22559 = vmatprep.subr.mxu0 %v28136_v56  ;;  %22594 = vmatpush3.msra.mxu1 %v18068_v58  ;;  %v28224_v58 = vand.u32 4294901760, %v17884_v16  ;;  %v28238_v20 = vand.u32 4294901760, %v28228_v18  ;;  %p23462_p13 = pnand %p23461_p12, %p23455_p5 }
0x1178   : > { %22560 = vmatpush3.msra.mxu0 %v28136_v56  ;;  %22595 = vmatprep.subr.mxu1 %v18075_v54 }
0x1179   : > { %22561 = vmatprep.subr.mxu0 %v28150_v45  ;;  %22596 = vmatpush3.msra.mxu1 %v18075_v54  ;;  %v18116_v54 = vsub.f32 %v28212_v46, %v28222_v9  ;;  %v28234_v11 = vsub.f32 %v17884_v16, %v28224_v58  ;;  %28695 = vst [vmem:[#allocation53_spill] sm:$0xff] %v28238_v20 }
0x117a   : > { %22562 = vmatpush3.msra.mxu0 %v28150_v45  ;;  %22597 = vmatprep.subr.mxu1 %v18082_v53  ;;  %v18123_v23 = vsub.f32 %v28228_v18, %v28238_v20 }
0x117b   : > { %22563 = vmatprep.subr.mxu0 %v28159_v33  ;;  %22598 = vmatpush3.msra.mxu1 %v18082_v53  ;;  %28694 = vst [vmem:[#allocation52_spill] sm:$0xff] %v28234_v11  ;;  %v18117_v53 = vand.u32 4294901760, %v18116_v54  ;;  %v28242_v34 = vand.u32 4294901760, %v28234_v11 }
0x117c   : > { %22564 = vmatpush3.msra.mxu0 %v28159_v33  ;;  %22599 = vmatprep.subr.mxu1 %v18089_v26 }
0x117d   : > { %22565 = vmatprep.subr.mxu0 %v28172_v38  ;;  %22600 = vmatpush3.msra.mxu1 %v18089_v26  ;;  %28696 = vst [vmem:[#allocation54_spill] sm:$0xff] %v28242_v34  ;;  %v18130_v36 = vsub.f32 %v28234_v11, %v28242_v34  ;;  %v18124_v26 = vand.u32 4294901760, %v18123_v23 }
0x117e   : > { %22566 = vmatpush3.msra.mxu0 %v28172_v38  ;;  %22601 = vmatprep.subr.mxu1 %v18096_v15 }
0x117f   : > { %22567 = vmatprep.subr.mxu0 %v28186_v42  ;;  %22602 = vmatpush3.msra.mxu1 %v18096_v15  ;;  %v18131_v22 = vand.u32 4294901760, %v18130_v36 }
0x1180   : > { %22568 = vmatpush3.msra.mxu0 %v28186_v42  ;;  %22603 = vmatprep.subr.mxu1 %v18103_v59 }
0x1181   : > { %22569 = vmatprep.subr.mxu0 %v28201_v57  ;;  %22604 = vmatpush3.msra.mxu1 %v18103_v59 }
0x1182   : > { %22570 = vmatpush3.msra.mxu0 %v28201_v57  ;;  %22605 = vmatprep.subr.mxu1 %v18110_v30 }
0x1183   : > { %22571 = vmatprep.subr.mxu0 %v28215_v7  ;;  %22606 = vmatpush3.msra.mxu1 %v18110_v30 }
0x1184   : > { %22572 = vmatpush3.msra.mxu0 %v28215_v7  ;;  %22607 = vmatprep.subr.mxu1 %v18117_v53 }
0x1185   : > { %22573 = vmatprep.subr.mxu0 %v28224_v58  ;;  %22608 = vmatpush3.msra.mxu1 %v18117_v53 }
0x1186   : > { %22574 = vmatpush3.msra.mxu0 %v28224_v58  ;;  %22609 = vmatprep.subr.mxu1 %v18124_v26 }
0x1187   : > { %22619 = vmatprep.subr.mxu0 %v28046_v47  ;;  %22610 = vmatpush3.msra.mxu1 %v18124_v26 }
0x1188   : > { %22611 = vmatprep.subr.mxu1 %v18131_v22 }
0x1189   : > { %22612 = vmatpush3.msra.mxu1 %v18131_v22 }
0x118a   : > { %22657 = vmatprep.subr.mxu1 %v28042_v44 }
0x120a   : > { %v22483_v15 = vpop.f32.mrf.mxu1 }
0x120c   : > { %v17446_v39 = vpop.f32.mrf.mxu1 }
0x1211   : > { %v22486_v16 = vpop.f32.mrf.mxu1 }
0x1212   : > { %v22469_v59 = vpop.f32.mrf.mxu0 }
0x1213   : > { %v17458_v48 = vpop.f32.mrf.mxu1  ;;  %v17453_v53 = vadd.f32 %v22483_v15, %v22469_v59 }
0x1214   : > { %v17325_v30 = vpop.f32.mrf.mxu0 }
0x1215   : > { %v22511_v54 = vpop.f32.mrf.mxu1  ;;  %v17447_v26 = vadd.f32 %v17446_v39, %v17325_v30 }
0x1217   : > { %v17642_v62 = vpop.f32.mrf.mxu1 }
0x1219   : > { %v22472_v0 = vpop.f32.mrf.mxu0  ;;  %v22514_v10 = vpop.f32.mrf.mxu1 }
0x121a   : > { %v17465_v9 = vadd.f32 %v22486_v16, %v22472_v0 }
0x121b   : > { %v17345_v6 = vpop.f32.mrf.mxu0  ;;  %v17658_v36 = vpop.f32.mrf.mxu1 }
0x121c   : > { %v17459_v63 = vadd.f32 %v17458_v48, %v17345_v6 }
0x121e   : > { %v22497_v23 = vpop.f32.mrf.mxu0 }
0x121f   : > { %v17552_v20 = vadd.f32 %v22497_v23, %v17453_v53  ;;  %v22539_v28 = vpop.f32.mrf.mxu1 }
0x1220   : > { %v17544_v34 = vpop.f32.mrf.mxu0 }
0x1221   : > { %v17545_v4 = vadd.f32 %v17544_v34, %v17447_v26  ;;  %v17651_v37 = vadd.f32 %v22511_v54, %v17552_v20  ;;  %v17842_v14 = vpop.f32.mrf.mxu1 }
0x1223   : > { %v22500_v22 = vpop.f32.mrf.mxu0  ;;  %v17643_v55 = vadd.f32 %v17642_v62, %v17545_v4 }
0x1224   : > { %v17566_v5 = vadd.f32 %v22500_v22, %v17465_v9  ;;  %v22542_v39 = vpop.f32.mrf.mxu1 }
0x1225   : > { %v17558_v17 = vpop.f32.mrf.mxu0 }
0x1226   : > { %v17559_v29 = vadd.f32 %v17558_v17, %v17459_v63  ;;  %v17667_v59 = vadd.f32 %v22514_v10, %v17566_v5  ;;  %v17854_v48 = vpop.f32.mrf.mxu1 }
0x1227   : > { %v22525_v61 = vpop.f32.mrf.mxu0 }
0x1228   : > { %v17756_v40 = vadd.f32 %v22525_v61, %v17651_v37  ;;  %v17659_v16 = vadd.f32 %v17658_v36, %v17559_v29 }
0x1229   : > { %v17749_v32 = vpop.f32.mrf.mxu0 }
0x122a   : > { %v17849_v3 = vadd.f32 %v22539_v28, %v17756_v40  ;;  %v17750_v15 = vadd.f32 %v17749_v32, %v17643_v55 }
0x122b   : > { %v22528_v11 = vpop.f32.mrf.mxu0 }
0x122c   : > { %v17869_v30 = vmul.f32 0.70710677, %v17849_v3  ;;  %v17843_v23 = vadd.f32 %v17842_v14, %v17750_v15  ;;  %v17768_v0 = vadd.f32 %v22528_v11, %v17667_v59  ;;  %v17865_v10 = vmul.f32 0.5, %v17849_v3 }
0x122d   : > { %v17761_v34 = vpop.f32.mrf.mxu0 }
0x122e   : > { %23016 = verf.f32 %v17869_v30  ;;  %v17868_v9 = vmul.f32 0.70710677, %v17843_v23  ;;  %v17861_v20 = vadd.f32 %v22542_v39, %v17768_v0  ;;  %v17762_v6 = vadd.f32 %v17761_v34, %v17659_v16 }
0x122f   : > { %v17864_v14 = vmul.f32 0.5, %v17843_v23 }
0x1230   : > { %23018 = verf.f32 %v17868_v9  ;;  %v17871_v61 = vmul.f32 0.70710677, %v17861_v20  ;;  %v17855_v62 = vadd.f32 %v17854_v48, %v17762_v6  ;;  %v17867_v28 = vmul.f32 0.5, %v17861_v20 }
0x1232   : > { %23020 = verf.f32 %v17871_v61  ;;  %v17870_v63 = vmul.f32 0.70710677, %v17855_v62  ;;  %v17866_v22 = vmul.f32 0.5, %v17855_v62 }
0x1234   : > { %23022 = verf.f32 %v17870_v63 }
0x123b   : > { %v23017_v32 = vpop.eup %23016 }
0x123c   : > { %v17877_v55 = vadd.f32 1.0, %v23017_v32 }
0x123d   : > { %v23019_v40 = vpop.eup %23018 }
0x123e   : > { %v17881_v37 = vmul.f32 %v17877_v55, %v17865_v10  ;;  %v17876_v5 = vadd.f32 1.0, %v23019_v40 }
0x123f   : > { %v23021_v29 = vpop.eup %23020 }
0x1240   : > { %v28251_v17 = vand.u32 4294901760, %v17881_v37  ;;  %v17880_v4 = vmul.f32 %v17876_v5, %v17864_v14  ;;  %v17879_v11 = vadd.f32 1.0, %v23021_v29 }
0x1241   : > { %v23023_v54 = vpop.eup %23022 }
0x1242   : > { %v28254_v53 = vsub.f32 %v17881_v37, %v28251_v17  ;;  %v17883_v36 = vmul.f32 %v17879_v11, %v17867_v28  ;;  %v28256_v26 = vand.u32 4294901760, %v17880_v4  ;;  %v17878_v3 = vadd.f32 1.0, %v23023_v54 }
0x1244   : > { %v17993_v15 = vand.u32 4294901760, %v28254_v53  ;;  %22613 = vmatprep.mubr.f32.mxu1 %v28256_v26  ;;  %v28260_v59 = vand.u32 4294901760, %v17883_v36  ;;  %v17982_v39 = vsub.f32 %v17880_v4, %v28256_v26  ;;  %v17882_v30 = vmul.f32 %v17878_v3, %v17866_v22 }
0x1245   : > { %22614 = vmatmul.mubr.f32.vlgmr.msra.gmra.mxu1 %v28251_v17 }
0x1246   : > { %22658 = vmatpush3.msra.mxu1 %v28042_v44  ;;  %v17983_v23 = vand.u32 4294901760, %v17982_v39  ;;  %v28266_v0 = vsub.f32 %v17883_v36, %v28260_v59  ;;  %v17994_v16 = vsub.f32 %v28254_v53, %v17993_v15  ;;  %v28272_v34 = vand.u32 4294901760, %v17882_v30 }
0x1247   : > { %22659 = vmatprep.subr.mxu1 %v28048_v60 }
0x1248   : > { %22660 = vmatpush3.msra.mxu1 %v28048_v60  ;;  %v17984_v9 = vsub.f32 %v17982_v39, %v17983_v23  ;;  %22616 = vmatprep.mubr.f32.mxu1 %v28272_v34  ;;  %v28278_v20 = vsub.f32 %v17882_v30, %v28272_v34  ;;  %v18013_v6 = vand.u32 4294901760, %v28266_v0  ;;  %v17995_v61 = vand.u32 4294901760, %v17994_v16 }
0x1249   : > { %22661 = vmatprep.subr.mxu1 %v28059_v13  ;;  %22617 = vmatmul.mubr.f32.gmra.mxu1 %v28260_v59 }
0x124a   : > { %v17985_v48 = vand.u32 4294901760, %v17984_v9  ;;  %22662 = vmatpush3.msra.mxu1 %v28059_v13  ;;  %22689 = vmatprep.mubr.f32.mxu1 %v17983_v23  ;;  %v18003_v62 = vand.u32 4294901760, %v28278_v20  ;;  %v18014_v32 = vsub.f32 %v28266_v0, %v18013_v6 }
0x124b   : > { %22663 = vmatprep.subr.mxu1 %v28072_v35 }
0x124c   : > { %22575 = vmatprep.mubr.f32.mxu0 %v17985_v48  ;;  %22664 = vmatpush3.msra.mxu1 %v28072_v35  ;;  %v18004_v63 = vsub.f32 %v28278_v20, %v18003_v62  ;;  %v18015_v55 = vand.u32 4294901760, %v18014_v32 }
0x124d   : > { %22576 = vmatmul.mubr.f32.vlgmr.msra.gmra.mxu0 %v17995_v61  ;;  %22665 = vmatprep.subr.mxu1 %v28086_v1 }
0x124e   : > { %22620 = vmatpush3.msra.mxu0 %v28046_v47  ;;  %22666 = vmatpush3.msra.mxu1 %v28086_v1  ;;  %v18005_v10 = vand.u32 4294901760, %v18004_v63  ;;  %v28698_v47 = vld [vmem:[#allocation34_spill] sm:$0xff] }
0x124f   : > { %22621 = vmatprep.subr.mxu0 %v28057_v25  ;;  %22667 = vmatprep.subr.mxu1 %v28095_v43 }
0x1250   : > { %22622 = vmatpush3.msra.mxu0 %v28057_v25  ;;  %22668 = vmatpush3.msra.mxu1 %v28095_v43  ;;  %v28700_v25 = vld [vmem:[#allocation35_spill] sm:$0xff] }
0x1251   : > { %22578 = vmatprep.mubr.f32.mxu0 %v18005_v10  ;;  %22623 = vmatprep.subr.mxu0 %v28070_v21  ;;  %v28715_v10 = vld [vmem:[#allocation38_spill] sm:$0xff] }
0x1252   : > { %22669 = vmatprep.subr.mxu1 %v28107_v51  ;;  %22579 = vmatmul.mubr.f32.gmra.mxu0 %v18015_v55 }
0x1253   : > { %22670 = vmatpush3.msra.mxu1 %v28107_v51  ;;  %22624 = vmatpush3.msra.mxu0 %v28070_v21  ;;  %v28702_v21 = vld [vmem:[#allocation42_spill] sm:$0xff] }
0x1254   : > { %22651 = vmatprep.mubr.f32.mxu0 %v17982_v39  ;;  %22625 = vmatprep.subr.mxu0 %v28083_v27 }
0x1255   : > { %22671 = vmatprep.subr.mxu1 %v28121_v8  ;;  %22626 = vmatpush3.msra.mxu0 %v28083_v27  ;;  %v28704_v27 = vld [vmem:[#allocation44_spill] sm:$0xff] }
0x1256   : > { %22672 = vmatpush3.msra.mxu1 %v28121_v8  ;;  %22627 = vmatprep.subr.mxu0 %v28098_v52 }
0x1257   : > { %22673 = vmatprep.subr.mxu1 %v28136_v56  ;;  %22628 = vmatpush3.msra.mxu0 %v28098_v52  ;;  %v28707_v52 = vld [vmem:[#allocation47_spill] sm:$0xff] }
0x1258   : > { %22674 = vmatpush3.msra.mxu1 %v28136_v56  ;;  %22629 = vmatprep.subr.mxu0 %v28105_v50 }
0x1259   : > { %22675 = vmatprep.subr.mxu1 %v28150_v45  ;;  %22630 = vmatpush3.msra.mxu0 %v28105_v50  ;;  %v28708_v50 = vld [vmem:[#allocation48_spill] sm:$0xff] }
0x125a   : > { %22676 = vmatpush3.msra.mxu1 %v28150_v45  ;;  %22631 = vmatprep.subr.mxu0 %v28119_v24 }
0x125b   : > { %22677 = vmatprep.subr.mxu1 %v28159_v33  ;;  %22632 = vmatpush3.msra.mxu0 %v28119_v24  ;;  %v28710_v24 = vld [vmem:[#allocation50_spill] sm:$0xff] }
0x125c   : > { %22678 = vmatpush3.msra.mxu1 %v28159_v33  ;;  %22633 = vmatprep.subr.mxu0 %v28134_v31 }
0x125d   : > { %22679 = vmatprep.subr.mxu1 %v28172_v38  ;;  %22634 = vmatpush3.msra.mxu0 %v28134_v31  ;;  %v28712_v31 = vld [vmem:[#allocation53_spill] sm:$0xff] }
0x125e   : > { %22680 = vmatpush3.msra.mxu1 %v28172_v38  ;;  %22635 = vmatprep.subr.mxu0 %v28147_v2 }
0x125f   : > { %22681 = vmatprep.subr.mxu1 %v28186_v42  ;;  %22636 = vmatpush3.msra.mxu0 %v28147_v2 }
0x1260   : > { %22682 = vmatpush3.msra.mxu1 %v28186_v42  ;;  %22637 = vmatprep.subr.mxu0 %v28163_v12 }
0x1261   : > { %22683 = vmatprep.subr.mxu1 %v28201_v57  ;;  %22638 = vmatpush3.msra.mxu0 %v28163_v12 }
0x1262   : > { %22684 = vmatpush3.msra.mxu1 %v28201_v57  ;;  %22639 = vmatprep.subr.mxu0 %v28170_v19 }
0x1263   : > { %22685 = vmatprep.subr.mxu1 %v28215_v7  ;;  %22640 = vmatpush3.msra.mxu0 %v28170_v19 }
0x1264   : > { %22686 = vmatpush3.msra.mxu1 %v28215_v7  ;;  %22641 = vmatprep.subr.mxu0 %v28184_v49 }
0x1265   : > { %22687 = vmatprep.subr.mxu1 %v28224_v58  ;;  %22642 = vmatpush3.msra.mxu0 %v28184_v49 }
0x1266   : > { %22688 = vmatpush3.msra.mxu1 %v28224_v58  ;;  %22643 = vmatprep.subr.mxu0 %v28199_v41 }
0x1267   : > { %22690 = vmatmul.mubr.f32.vlgmr.msra.gmra.mxu1 %v17993_v15  ;;  %22733 = vmatprep.subr.mxu1 %v28042_v44 }
0x1268   : > { %22644 = vmatpush3.msra.mxu0 %v28199_v41  ;;  %22692 = vmatprep.mubr.f32.mxu1 %v18003_v62 }
0x1269   : > { %22734 = vmatpush3.msra.mxu1 %v28042_v44  ;;  %22645 = vmatprep.subr.mxu0 %v28212_v46  ;;  %v28697_v44 = vld [vmem:[#allocation52_spill] sm:$0xff] }
0x126a   : > { %22735 = vmatprep.subr.mxu1 %v28048_v60  ;;  %22646 = vmatpush3.msra.mxu0 %v28212_v46 }
0x126b   : > { %22736 = vmatpush3.msra.mxu1 %v28048_v60  ;;  %22647 = vmatprep.subr.mxu0 %v28228_v18  ;;  %v28699_v60 = vld [vmem:[#allocation36_spill] sm:$0xff] }
0x126c   : > { %22693 = vmatmul.mubr.f32.gmra.mxu1 %v18013_v6  ;;  %22737 = vmatprep.subr.mxu1 %v28059_v13  ;;  %v28714_v6 = vld [vmem:[#allocation37_spill] sm:$0xff] }
0x126d   : > { %22648 = vmatpush3.msra.mxu0 %v28228_v18  ;;  %22738 = vmatpush3.msra.mxu1 %v28059_v13  ;;  %v28701_v13 = vld [vmem:[#allocation39_spill] sm:$0xff] }
0x126e   : > { %22765 = vmatprep.mubr.f32.mxu1 %v28256_v26  ;;  %22649 = vmatprep.subr.mxu0 %v28697_v44 }
0x126f   : > { %22739 = vmatprep.subr.mxu1 %v28072_v35  ;;  %22650 = vmatpush3.msra.mxu0 %v28697_v44 }
0x1270   : > { %22740 = vmatpush3.msra.mxu1 %v28072_v35  ;;  %22652 = vmatmul.mubr.f32.vlgmr.msra.gmra.mxu0 %v28254_v53  ;;  %v28703_v35 = vld [vmem:[#allocation43_spill] sm:$0xff] }
0x1271   : > { %22695 = vmatprep.subr.mxu0 %v28698_v47  ;;  %22741 = vmatprep.subr.mxu1 %v28086_v1 }
0x1272   : > { %22654 = vmatprep.mubr.f32.mxu0 %v28278_v20  ;;  %22696 = vmatpush3.msra.mxu0 %v28698_v47 }
0x1273   : > { %22742 = vmatpush3.msra.mxu1 %v28086_v1  ;;  %22697 = vmatprep.subr.mxu0 %v28699_v60  ;;  %v28705_v1 = vld [vmem:[#allocation45_spill] sm:$0xff] }
0x1274   : > { %22743 = vmatprep.subr.mxu1 %v28095_v43  ;;  %22698 = vmatpush3.msra.mxu0 %v28699_v60 }
0x1275   : > { %22744 = vmatpush3.msra.mxu1 %v28095_v43  ;;  %22655 = vmatmul.mubr.f32.gmra.mxu0 %v28266_v0  ;;  %v28706_v43 = vld [vmem:[#allocation46_spill] sm:$0xff] }
0x1276   : > { %22699 = vmatprep.subr.mxu0 %v28700_v25  ;;  %22745 = vmatprep.subr.mxu1 %v28107_v51 }
0x1277   : > { %22700 = vmatpush3.msra.mxu0 %v28700_v25  ;;  %22727 = vmatprep.mubr.f32.mxu0 %v28256_v26  ;;  %v28716_v25 = vld [vmem:[#allocation41_spill] sm:$0xff] }
0x1278   : > { %22746 = vmatpush3.msra.mxu1 %v28107_v51  ;;  %22701 = vmatprep.subr.mxu0 %v28701_v13  ;;  %v28709_v51 = vld [vmem:[#allocation49_spill] sm:$0xff] }
0x1279   : > { %22747 = vmatprep.subr.mxu1 %v28121_v8  ;;  %22702 = vmatpush3.msra.mxu0 %v28701_v13 }
0x127a   : > { %22748 = vmatpush3.msra.mxu1 %v28121_v8  ;;  %22703 = vmatprep.subr.mxu0 %v28702_v21  ;;  %v28711_v8 = vld [vmem:[#allocation51_spill] sm:$0xff] }
0x127b   : > { %22749 = vmatprep.subr.mxu1 %v28136_v56  ;;  %22704 = vmatpush3.msra.mxu0 %v28702_v21 }
0x127c   : > { %22750 = vmatpush3.msra.mxu1 %v28136_v56  ;;  %22705 = vmatprep.subr.mxu0 %v28703_v35  ;;  %v28713_v56 = vld [vmem:[#allocation54_spill] sm:$0xff] }
0x127d   : > { %22751 = vmatprep.subr.mxu1 %v28150_v45  ;;  %22706 = vmatpush3.msra.mxu0 %v28703_v35  ;;  %v28717_v35 = vld [vmem:[#allocation40_spill] sm:$0xff] }
0x127e   : > { %22752 = vmatpush3.msra.mxu1 %v28150_v45  ;;  %22707 = vmatprep.subr.mxu0 %v28704_v27 }
0x127f   : > { %22753 = vmatprep.subr.mxu1 %v28159_v33  ;;  %22708 = vmatpush3.msra.mxu0 %v28704_v27 }
0x1280   : > { %22754 = vmatpush3.msra.mxu1 %v28159_v33  ;;  %22709 = vmatprep.subr.mxu0 %v28705_v1 }
0x1281   : > { %22755 = vmatprep.subr.mxu1 %v28172_v38  ;;  %22710 = vmatpush3.msra.mxu0 %v28705_v1 }
0x1282   : > { %22756 = vmatpush3.msra.mxu1 %v28172_v38  ;;  %22711 = vmatprep.subr.mxu0 %v28706_v43 }
0x1283   : > { %22757 = vmatprep.subr.mxu1 %v28186_v42  ;;  %22712 = vmatpush3.msra.mxu0 %v28706_v43 }
0x1284   : > { %22758 = vmatpush3.msra.mxu1 %v28186_v42  ;;  %22713 = vmatprep.subr.mxu0 %v28707_v52 }
0x1285   : > { %22759 = vmatprep.subr.mxu1 %v28201_v57  ;;  %22714 = vmatpush3.msra.mxu0 %v28707_v52 }
0x1286   : > { %22760 = vmatpush3.msra.mxu1 %v28201_v57  ;;  %22715 = vmatprep.subr.mxu0 %v28708_v50 }
0x1287   : > { %22761 = vmatprep.subr.mxu1 %v28215_v7  ;;  %22716 = vmatpush3.msra.mxu0 %v28708_v50 }
0x1288   : > { %22762 = vmatpush3.msra.mxu1 %v28215_v7  ;;  %22717 = vmatprep.subr.mxu0 %v28709_v51 }
0x1289   : > { %22763 = vmatprep.subr.mxu1 %v28224_v58  ;;  %22718 = vmatpush3.msra.mxu0 %v28709_v51 }
0x128a   : > { %22764 = vmatpush3.msra.mxu1 %v28224_v58  ;;  %22719 = vmatprep.subr.mxu0 %v28710_v24 }
0x128b   : > { %22766 = vmatmul.mubr.f32.vlgmr.msra.gmra.mxu1 %v28251_v17  ;;  %22720 = vmatpush3.msra.mxu0 %v28710_v24 }
0x128c   : > { %22768 = vmatprep.mubr.f32.mxu1 %v28272_v34  ;;  %22721 = vmatprep.subr.mxu0 %v28711_v8 }
0x128d   : > { %22722 = vmatpush3.msra.mxu0 %v28711_v8 }
0x128e   : > { %22723 = vmatprep.subr.mxu0 %v28712_v31 }
0x128f   : > { %22769 = vmatmul.mubr.f32.gmra.mxu1 %v28260_v59  ;;  %22724 = vmatpush3.msra.mxu0 %v28712_v31 }
0x1290   : > { %22725 = vmatprep.subr.mxu0 %v28713_v56 }
0x1291   : > { %22726 = vmatpush3.msra.mxu0 %v28713_v56 }
0x1292   : > { %22728 = vmatmul.mubr.f32.vlgmr.msra.gmra.mxu0 %v28251_v17 }
0x1293   : > { %22730 = vmatprep.mubr.f32.mxu0 %v28272_v34 }
0x1296   : > { %22731 = vmatmul.mubr.f32.gmra.mxu0 %v28260_v59 }
0x1305   : > { %v22615_v2 = vpop.f32.mrf.mxu1 }
0x1307   : > { %v18168_v45 = vpop.f32.mrf.mxu1 }
0x1309   : > { %v22618_v12 = vpop.f32.mrf.mxu1 }
0x130b   : > { %v18180_v38 = vpop.f32.mrf.mxu1 }
0x130d   : > { %v22577_v33 = vpop.f32.mrf.mxu0 }
0x130e   : > { %v18175_v18 = vadd.f32 %v22615_v2, %v22577_v33 }
0x130f   : > { %v17987_v19 = vpop.f32.mrf.mxu0 }
0x1310   : > { %v18169_v14 = vadd.f32 %v18168_v45, %v17987_v19 }
0x1312   : > { %v22580_v49 = vpop.f32.mrf.mxu0 }
0x1313   : > { %v18187_v17 = vadd.f32 %v22618_v12, %v22580_v49 }
0x1314   : > { %v18007_v41 = vpop.f32.mrf.mxu0 }
0x1315   : > { %v18181_v11 = vadd.f32 %v18180_v38, %v18007_v41 }
0x1327   : > { %v22691_v42 = vpop.f32.mrf.mxu1 }
0x1329   : > { %v18400_v57 = vpop.f32.mrf.mxu1 }
0x132c   : > { %v22694_v7 = vpop.f32.mrf.mxu1 }
0x132e   : > { %v18416_v40 = vpop.f32.mrf.mxu1 }
0x1330   : > { %v22653_v46 = vpop.f32.mrf.mxu0 }
0x1331   : > { %v18298_v5 = vadd.f32 %v22653_v46, %v18175_v18 }
0x1332   : > { %v18290_v58 = vpop.f32.mrf.mxu0 }
0x1333   : > { %v18291_v4 = vadd.f32 %v18290_v58, %v18169_v14  ;;  %v18409_v53 = vadd.f32 %v22691_v42, %v18298_v5 }
0x1335   : > { %v22656_v37 = vpop.f32.mrf.mxu0  ;;  %v18401_v15 = vadd.f32 %v18400_v57, %v18291_v4 }
0x1336   : > { %v18312_v54 = vadd.f32 %v22656_v37, %v18187_v17 }
0x1337   : > { %v18304_v28 = vpop.f32.mrf.mxu0 }
0x1338   : > { %v18305_v22 = vadd.f32 %v18304_v28, %v18181_v11  ;;  %v18425_v23 = vadd.f32 %v22694_v7, %v18312_v54 }
0x133a   : > { %v18417_v20 = vadd.f32 %v18416_v40, %v18305_v22 }
0x134b   : > { %v22767_v29 = vpop.f32.mrf.mxu1 }
0x134d   : > { %v18648_v36 = vpop.f32.mrf.mxu1 }
0x134f   : > { %v22770_v0 = vpop.f32.mrf.mxu1 }
0x1351   : > { %v18660_v44 = vpop.f32.mrf.mxu1 }
0x1352   : > { %v22729_v26 = vpop.f32.mrf.mxu0 }
0x1353   : > { %v18550_v3 = vadd.f32 %v22729_v26, %v18409_v53 }
0x1354   : > { %v18543_v59 = vpop.f32.mrf.mxu0 }
0x1355   : > { %v18655_v39 = vadd.f32 %v22767_v29, %v18550_v3  ;;  %v18544_v30 = vadd.f32 %v18543_v59, %v18401_v15  ;;  %v19228_v3 = vld [vmem:[%s28718_s23] ss:$0 sm:$0xff] }
0x1356   : > { %v22732_v16 = vpop.f32.mrf.mxu0 }
0x1357   : > { %v18649_v34 = vadd.f32 %v18648_v36, %v18544_v30  ;;  %v18562_v9 = vadd.f32 %v22732_v16, %v18425_v23  ;;  %v18673_v48 = vadd.f32 %v18655_v39, %v28714_v6  ;;  %v19227_v36 = vld [vmem:[%s1252_s4] ss:$0 sm:$0xff] }
0x1358   : > { %v18555_v61 = vpop.f32.mrf.mxu0 }
0x1359   : > { %v18667_v62 = vadd.f32 %v22770_v0, %v18562_v9  ;;  %v18556_v63 = vadd.f32 %v18555_v61, %v18417_v20  ;;  %v18679_v32 = vsel %vm1511_vm1, %v18673_v48, 0.0  ;;  %v18672_v55 = vadd.f32 %v18649_v34, %v28715_v10 }
0x135a   : > { %18680 = vadd.xlane.f32.xlu0 %v18679_v32 }
0x135b   : > { %v18661_v47 = vadd.f32 %v18660_v44, %v18556_v63  ;;  %v18676_v60 = vsel %vm1511_vm1, %v18672_v55, 0.0  ;;  %v18675_v13 = vadd.f32 %v18667_v62, %v28716_v25 }
0x135c   : > { %18677 = vadd.xlane.f32.xlu1 %v18676_v60 }
0x135d   : > { %v18685_v21 = vsel %vm1511_vm1, %v18675_v13, 0.0  ;;  %v18674_v27 = vadd.f32 %v18661_v47, %v28717_v35 }
0x135e   : > { %18686 = vadd.xlane.f32.xlu0 %v18685_v21 }
0x135f   : > { %v18682_v1 = vsel %vm1511_vm1, %v18674_v27, 0.0 }
0x1360   : > { %18683 = vadd.xlane.f32.xlu1 %v18682_v1 }
0x13e3   : > { %v18681_v43 = vpop.xlane.xlu0 %18680 }
0x13e4   : > { %v18689_v52 = vmul.f32 0.03125, %v18681_v43 }
0x13e5   : > { %v18678_v50 = vpop.xlane.xlu1 %18677 }
0x13e6   : > { %v18693_v51 = vsub.f32 %v18673_v48, %v18689_v52  ;;  %v18688_v24 = vmul.f32 0.03125, %v18678_v50 }
0x13e7   : > { %v18687_v8 = vpop.xlane.xlu0 %18686 }
0x13e8   : > { %v18692_v31 = vsub.f32 %v18672_v55, %v18688_v24  ;;  %v18691_v56 = vmul.f32 0.03125, %v18687_v8  ;;  %v18697_v2 = vmul.f32 %v18693_v51, %v18693_v51 }
0x13e9   : > { %v18684_v45 = vpop.xlane.xlu1 %18683 }
0x13ea   : > { %v18695_v33 = vsub.f32 %v18675_v13, %v18691_v56  ;;  %v18690_v12 = vmul.f32 0.03125, %v18684_v45  ;;  %v18703_v19 = vsel %vm1511_vm1, %v18697_v2, 0.0  ;;  %v18696_v38 = vmul.f32 %v18692_v31, %v18692_v31 }
0x13eb   : > { %18704 = vadd.xlane.f32.xlu0 %v18703_v19 }
0x13ec   : > { %v18694_v49 = vsub.f32 %v18674_v27, %v18690_v12  ;;  %v18700_v42 = vsel %vm1511_vm1, %v18696_v38, 0.0  ;;  %v18699_v41 = vmul.f32 %v18695_v33, %v18695_v33 }
0x13ed   : > { %18701 = vadd.xlane.f32.xlu1 %v18700_v42 }
0x13ee   : > { %v18709_v57 = vsel %vm1511_vm1, %v18699_v41, 0.0  ;;  %v18698_v46 = vmul.f32 %v18694_v49, %v18694_v49 }
0x13ef   : > { %18710 = vadd.xlane.f32.xlu0 %v18709_v57 }
0x13f0   : > { %v18706_v7 = vsel %vm1511_vm1, %v18698_v46, 0.0 }
0x13f1   : > { %18707 = vadd.xlane.f32.xlu1 %v18706_v7 }
0x1474   : > { %v18705_v58 = vpop.xlane.xlu0 %18704 }
0x1475   : > { %v18713_v18 = vmul.f32 0.03125, %v18705_v58 }
0x1476   : > { %v18702_v40 = vpop.xlane.xlu1 %18701 }
0x1477   : > { %v18717_v37 = vadd.f32 1e-05, %v18713_v18  ;;  %v18712_v14 = vmul.f32 0.03125, %v18702_v40 }
0x1478   : > { %v18711_v5 = vpop.xlane.xlu0 %18710 }
0x1479   : > { %23024 = vrsqrt.f32 %v18717_v37  ;;  %v18716_v29 = vadd.f32 1e-05, %v18712_v14  ;;  %v18715_v17 = vmul.f32 0.03125, %v18711_v5 }
0x147a   : > { %v18708_v4 = vpop.xlane.xlu1 %18707 }
0x147b   : > { %23026 = vrsqrt.f32 %v18716_v29  ;;  %v18719_v28 = vadd.f32 1e-05, %v18715_v17  ;;  %v18714_v11 = vmul.f32 0.03125, %v18708_v4 }
0x147d   : > { %23028 = vrsqrt.f32 %v18719_v28  ;;  %v18718_v54 = vadd.f32 1e-05, %v18714_v11 }
0x147f   : > { %23030 = vrsqrt.f32 %v18718_v54 }
0x1486   : > { %v23025_v53 = vpop.eup %23024 }
0x1487   : > { %v18725_v26 = vmul.f32 %v23025_v53, %v18693_v51 }
0x1488   : > { %v23027_v22 = vpop.eup %23026 }
0x1489   : > { %v18735_v15 = vmul.f32 %v19227_v36, %v18725_v26  ;;  %v18724_v59 = vmul.f32 %v23027_v22, %v18692_v31 }
0x148a   : > { %v23029_v39 = vpop.eup %23028 }
0x148b   : > { %v18745_v30 = vadd.f32 %v19228_v3, %v18735_v15  ;;  %v18734_v23 = vmul.f32 %v19227_v36, %v18724_v59  ;;  %v18727_v0 = vmul.f32 %v23029_v39, %v18695_v33 }
0x148c   : > { %v23031_v16 = vpop.eup %23030 }
0x148d   : > { %18749 = vst.msk [vmem:[#allocation21 + $0x8] sm:$0xff] %vm1511_vm1, %v18745_v30  ;;  %v18744_v34 = vadd.f32 %v19228_v3, %v18734_v23  ;;  %v18737_v9 = vmul.f32 %v19227_v36, %v18727_v0  ;;  %v18726_v20 = vmul.f32 %v23031_v16, %v18694_v49 }
0x148f   : > { %18748 = vst.msk [vmem:[#allocation21] sm:$0xff] %vm1511_vm1, %v18744_v34  ;;  %v18747_v6 = vadd.f32 %v19228_v3, %v18737_v9  ;;  %v18736_v48 = vmul.f32 %v19227_v36, %v18726_v20 }
0x1491   : > { %18751 = vst.msk [vmem:[#allocation21 + $0x18] sm:$0xff] %vm1511_vm1, %v18747_v6  ;;  %v18746_v61 = vadd.f32 %v19228_v3, %v18736_v48 }
0x1493   : > { %18750 = vst.msk [vmem:[#allocation21 + $0x10] sm:$0xff] %vm1511_vm1, %v18746_v61 }
0x1494   : > { %23465 = shalt.err (!%p23462_p13)
}
0x1495   : > { %s23553_s4 = smov 128   ;;  %s28720_s10 = sld [smem:[#allocation80_spill]] }
0x149b   : > { %22808 = dma.vmem_to_hbm [thread:$0]  (%p22822_p3), %s18759_s9, 512, %s28720_s10, [#allocation4], %s23553_s4, %s23553_s4, %s23547_s29  }
0x149c   : > { %23505 = dma.done.wait (%p22822_p3), [#allocation4], 512  }
0x149d   : > { %23507 = vsyncadd (%p22822_p3), [#allocation4], 4294966784 }
0x149e PF: > { %s28721_s30 = sld [smem:[#allocation29_spill]] }
0x149f   : > { %s28722_s8 = sld [smem:[#allocation26_spill]] }
0x14a0   : > { %s28723_s5 = sld [smem:[#allocation27_spill]] }
0x14a1   : > { %s28724_s9 = sld [smem:[#allocation30_spill]] }
0x14a4   : > { %p38_p7 = scmp.ge.s32.totalorder %s28721_s30, 4  }
0x14a6   :  { %40 = sbr.rel (!%p38_p7) target bundleno = 31 (0x1f), region = 353 }
0x14ab   :  { %18774 = vsyncpa [#allocation3], 1 }
0x14ac   :  { %18776 = vsyncpa [#allocation3 + $0x1], 1 }
0x14ad   :  { %18777 = vsyncpa [#allocation6], 1 }
0x14ae   :  { %18778 = vsyncpa [#allocation4], 1 }
0x14af   :  { %18780 = vsyncpa [#allocation4 + $0x1], 1 }

</bundles_post_ra>
